<compile_context>
chip_gen: v7x
topology: tpu7x:2x2x1
jax: 0.10.0
libtpu: 0.0.40
codegen_flags: <defaults>
</compile_context>

<pallas_src>
import jax
import jax.numpy as jnp
import numpy as np
from jax import lax
from jax.experimental import pallas as pl
from jax.experimental.pallas import tpu as pltpu

NUM_ACTIONS = 12
INPUT_SIZE = 12
FC_SIZE = 512
LSTM_HIDDEN = 256
MLP_OUT = FC_SIZE - NUM_ACTIONS - 1   # 499
MLP_OUT_PAD = 512                     # 499 -> 512 (zero-padded, lane aligned)
AR_SIZE = NUM_ACTIONS + 1             # one-hot action (12) + reward (1)
GATES = 4 * LSTM_HIDDEN               # 1024
HEAD_PAD = 128                        # 12 logits + 1 baseline, padded to 1 vreg
TS_MAX = 16                           # timesteps per grid block


def _leaky_relu(v):
    return jnp.where(v > 0, v, 0.01 * v)


# ---------------------------------------------------------------------------
# Fused kernel: trunk + input projection (batched over the TS block), then the
# LSTM recurrence with hx/cx persisted in VMEM scratch, then the dense head.
# ---------------------------------------------------------------------------
def fused_agent_kernel(x_ref, ar_ref,
                       w1_ref, b1_ref, w2_ref, b2_ref, w3_ref, b3_ref,
                       wx_ref, wa_ref, bg_ref,
                       whh_ref, wh_ref, bh_ref,
                       out_ref,
                       hx_scr, cx_scr, gin_scr, hbuf_scr):
    ts = gin_scr.shape[0]
    bp = gin_scr.shape[1]
    rows = ts * bp
    H = LSTM_HIDDEN
    bf = jnp.bfloat16

    # core_state is None -> zero hx/cx at the very first timestep.
    @pl.when(pl.program_id(0) == 0)
    def _():
        hx_scr[...] = jnp.zeros_like(hx_scr)
        cx_scr[...] = jnp.zeros_like(cx_scr)

    # ---- trunk + LSTM input projection, batched over all TS*bp rows --------
    xb = x_ref[...].astype(bf)
    arb = ar_ref[...].astype(bf)
    h = _leaky_relu(jnp.dot(xb, w1_ref[...],
                            preferred_element_type=jnp.float32) + b1_ref[...])
    h = _leaky_relu(jnp.dot(h.astype(bf), w2_ref[...],
                            preferred_element_type=jnp.float32) + b2_ref[...])
    h = _leaky_relu(jnp.dot(h.astype(bf), w3_ref[...],
                            preferred_element_type=jnp.float32) + b3_ref[...])
    gin = (jnp.dot(h.astype(bf), wx_ref[...], preferred_element_type=jnp.float32)
           + jnp.dot(arb, wa_ref[...], preferred_element_type=jnp.float32)
           + bg_ref[...])
    gin_scr[...] = gin.reshape(ts, bp, GATES)

    # ---- recurrence (gate columns permuted to [i, f, o | g]) ---------------
    def step(i, carry):
        hx, cx = carry
        gates = gin_scr[i] + jnp.dot(hx.astype(bf), whh_ref[...],
                                     preferred_element_type=jnp.float32)
        sig = jax.nn.sigmoid(gates[:, :3 * H])       # one EUP pass: i, f, o
        i_g = sig[:, 0 * H:1 * H]
        f_g = sig[:, 1 * H:2 * H]
        o_g = sig[:, 2 * H:3 * H]
        g_g = jnp.tanh(gates[:, 3 * H:])
        cx_new = f_g * cx + i_g * g_g
        hx_new = o_g * jnp.tanh(cx_new)
        hbuf_scr[i] = hx_new                          # lane-dense (bp, 256) store
        return (hx_new, cx_new)

    hx, cx = lax.fori_loop(0, ts, step, (hx_scr[...], cx_scr[...]), unroll=True)
    hx_scr[...] = hx
    cx_scr[...] = cx

    # ---- fused actor/critic head: one lane-dense (rows,256)@(256,128) ------
    h_all = hbuf_scr[...].reshape(rows, H).astype(bf)
    head = (jnp.dot(h_all, wh_ref[...], preferred_element_type=jnp.float32)
            + bh_ref[...])
    out_ref[...] = head


def agent_forward(params, x, action, reward):
    """Non-actor path: returns (policy_logits[B,S,A], baseline[B,S])."""
    seq, batch, _ = x.shape
    bp = ((batch + 7) // 8) * 8          # pad batch to a multiple of 8 sublanes
    pad_b = bp - batch
    ts = min(TS_MAX, seq)                # fixed block size; pad seq up to it
    seq_pad = ((seq + ts - 1) // ts) * ts
    pad_s = seq_pad - seq
    nblk = seq_pad // ts
    H = LSTM_HIDDEN
    bf = jnp.bfloat16

    x_p = jnp.pad(x.astype(jnp.float32), ((0, pad_s), (0, pad_b), (0, 0)))
    action_p = jnp.pad(action, ((0, pad_s), (0, pad_b)))
    reward_p = jnp.pad(reward.astype(jnp.float32), ((0, pad_s), (0, pad_b)))

    # Fold reward into the one-hot input: [one_hot(a) | r] (13 columns).
    act_oh = jax.nn.one_hot(action_p, NUM_ACTIONS, dtype=jnp.float32)
    ar = jnp.concatenate([act_oh, reward_p[..., None]], axis=-1)

    rows_total = seq_pad * bp
    x2 = x_p.reshape(rows_total, INPUT_SIZE)
    ar2 = ar.reshape(rows_total, AR_SIZE)

    def permute_gates(w):
        # PyTorch gate order [i, f, g, o] -> [i, f, o, g]: one sigmoid covers
        # lanes [0, 3H) and one tanh covers [3H, 4H).
        return jnp.concatenate([w[..., :2 * H], w[..., 3 * H:],
                                w[..., 2 * H:3 * H]], axis=-1)

    # Kernel-layout weight prep: pads / concats / gate permutation / bias
    # folding / bf16 cast of matmul operands (biases stay f32).
    w1 = params['w1'].astype(bf)
    w2 = params['w2'].astype(bf)
    w3p = jnp.pad(params['w3'], ((0, 0), (0, MLP_OUT_PAD - MLP_OUT))).astype(bf)
    b3p = jnp.pad(params['b3'], ((0, 0), (0, MLP_OUT_PAD - MLP_OUT)))
    wih_xp = permute_gates(
        jnp.pad(params['wih_x'], ((0, MLP_OUT_PAD - MLP_OUT), (0, 0)))).astype(bf)
    wih_ar = permute_gates(
        jnp.concatenate([params['wih_a'], params['wih_r']], axis=0)).astype(bf)
    bias_g = permute_gates(params['bih'] + params['bhh'])
    whh = permute_gates(params['whh']).astype(bf)
    whead = jnp.pad(jnp.concatenate([params['wa'], params['wc']], axis=1),
                    ((0, 0), (0, HEAD_PAD - NUM_ACTIONS - 1))).astype(bf)
    bhead = jnp.pad(jnp.concatenate([params['ba'], params['bc']], axis=1),
                    ((0, 0), (0, HEAD_PAD - NUM_ACTIONS - 1)))

    weights = [w1, params['b1'], w2, params['b2'], w3p, b3p,
               wih_xp, wih_ar, bias_g, whh, whead, bhead]

    def const_spec(arr):
        return pl.BlockSpec(arr.shape, lambda t: (0, 0))

    out = pl.pallas_call(
        fused_agent_kernel,
        out_shape=jax.ShapeDtypeStruct((rows_total, HEAD_PAD), jnp.float32),
        grid_spec=pltpu.PrefetchScalarGridSpec(
            num_scalar_prefetch=0,
            grid=(nblk,),
            in_specs=[pl.BlockSpec((ts * bp, INPUT_SIZE), lambda t: (t, 0)),
                      pl.BlockSpec((ts * bp, AR_SIZE), lambda t: (t, 0))]
                     + [const_spec(w) for w in weights],
            out_specs=pl.BlockSpec((ts * bp, HEAD_PAD), lambda t: (t, 0)),
            scratch_shapes=[pltpu.VMEM((bp, H), jnp.float32),        # hx
                            pltpu.VMEM((bp, H), jnp.float32),        # cx
                            pltpu.VMEM((ts, bp, GATES), jnp.float32),
                            pltpu.VMEM((ts, bp, H), jnp.float32)]),
        # Grid axis carries hx/cx state -> must stay sequential ("arbitrary").
        compiler_params=pltpu.CompilerParams(
            dimension_semantics=("arbitrary",)),
    )(x2, ar2, *weights)

    head = out.reshape(seq_pad, bp, HEAD_PAD)[:seq, :batch, :]
    logits = head[:, :, :NUM_ACTIONS]                     # (S, B, A) time-major
    baseline = head[:, :, NUM_ACTIONS:NUM_ACTIONS + 1]    # (S, B, 1)

    # Reproduce torch.cat(lstm_out, 0) followed by the raw .view(batch, seq, -1)
    # / .view(batch, seq) exactly (pure reshape of time-major data).
    policy_logits = logits.reshape(batch, seq, NUM_ACTIONS)
    baseline_out = baseline.reshape(batch, seq)
    # TODO(synk): Head's softmax/clamp, torch.multinomial sample and the debug
    # print are dead code on the non-actor return path, so they are not ported.
    return policy_logits, baseline_out


def init_params(key):
    """Deterministic torch-default-style (uniform +/- 1/sqrt(fan_in)) init."""
    ks = jax.random.split(key, 9)

    def lin(k, fan_in, fan_out):
        bound = 1.0 / np.sqrt(fan_in)
        kw, kb = jax.random.split(k)
        w = jax.random.uniform(kw, (fan_in, fan_out), jnp.float32, -bound, bound)
        b = jax.random.uniform(kb, (1, fan_out), jnp.float32, -bound, bound)
        return w, b

    p = {}
    p['w1'], p['b1'] = lin(ks[0], INPUT_SIZE, 128)
    p['w2'], p['b2'] = lin(ks[1], 128, 256)
    p['w3'], p['b3'] = lin(ks[2], 256, MLP_OUT)

    bound = 1.0 / np.sqrt(LSTM_HIDDEN)
    wih = jax.random.uniform(ks[3], (FC_SIZE, 4 * LSTM_HIDDEN), jnp.float32,
                             -bound, bound)
    # Split the input-to-hidden weight along the concatenated-input axis:
    # [ mlp_features (499) | one_hot_action (12) | reward (1) ].
    p['wih_x'] = wih[:MLP_OUT]
    p['wih_a'] = wih[MLP_OUT:MLP_OUT + NUM_ACTIONS]
    p['wih_r'] = wih[MLP_OUT + NUM_ACTIONS:]
    p['whh'] = jax.random.uniform(ks[4], (LSTM_HIDDEN, 4 * LSTM_HIDDEN),
                                  jnp.float32, -bound, bound)
    p['bih'] = jax.random.uniform(ks[5], (1, 4 * LSTM_HIDDEN), jnp.float32,
                                  -bound, bound)
    p['bhh'] = jax.random.uniform(ks[6], (1, 4 * LSTM_HIDDEN), jnp.float32,
                                  -bound, bound)
    p['wa'], p['ba'] = lin(ks[7], LSTM_HIDDEN, NUM_ACTIONS)
    p['wc'], p['bc'] = lin(ks[8], LSTM_HIDDEN, 1)
    return p


def reference_forward(params, x, action, reward):
    """Pure-JAX reference replicating the PyTorch forward (non-actor path)."""
    seq, batch, _ = x.shape
    act_oh = jax.nn.one_hot(action, NUM_ACTIONS, dtype=jnp.float32)
    rew = reward.reshape(seq, batch, 1).astype(jnp.float32)
    hp = lax.Precision.HIGHEST

    def mm(a, b):
        return jnp.dot(a, b, precision=hp)

    h = _leaky_relu(mm(x, params['w1']) + params['b1'])
    h = _leaky_relu(mm(h, params['w2']) + params['b2'])
    h = _leaky_relu(mm(h, params['w3']) + params['b3'])
    feat = jnp.concatenate([h, act_oh, rew], axis=2)            # (S, B, 512)
    wih = jnp.concatenate([params['wih_x'], params['wih_a'], params['wih_r']], 0)

    hx = jnp.zeros((batch, LSTM_HIDDEN), jnp.float32)
    cx = jnp.zeros((batch, LSTM_HIDDEN), jnp.float32)
    H = LSTM_HIDDEN
    outs = []
    for t in range(seq):
        gates = (mm(feat[t], wih) + params['bih'] + mm(hx, params['whh'])
                 + params['bhh'])
        i_g = jax.nn.sigmoid(gates[:, 0 * H:1 * H])
        f_g = jax.nn.sigmoid(gates[:, 1 * H:2 * H])
        g_g = jnp.tanh(gates[:, 2 * H:3 * H])
        o_g = jax.nn.sigmoid(gates[:, 3 * H:4 * H])
        cx = f_g * cx + i_g * g_g
        hx = o_g * jnp.tanh(cx)
        outs.append(hx)
    lstm_out = jnp.concatenate(outs, axis=0)                    # (S*B, 256)
    logits = mm(lstm_out, params['wa']) + params['ba']          # (S*B, A)
    baseline = mm(lstm_out, params['wc']) + params['bc']        # (S*B, 1)
    return logits.reshape(batch, seq, NUM_ACTIONS), baseline.reshape(batch, seq)


if __name__ == "__main__":
    key = jax.random.PRNGKey(0)
    kp, kx, ka, kr = jax.random.split(key, 4)

    seq_len, batch = 8, 2
    params = init_params(kp)
    x = jax.random.normal(kx, (seq_len, batch, INPUT_SIZE), jnp.float32)
    action = jax.random.randint(ka, (seq_len, batch), 0, NUM_ACTIONS, jnp.int32)
    reward = jax.random.normal(kr, (seq_len, batch), jnp.float32)

    fwd = jax.jit(agent_forward)
    policy_logits, baseline = fwd(params, x, action, reward)
    jax.block_until_ready((policy_logits, baseline))

    ref_logits, ref_baseline = reference_forward(params, x, action, reward)
    np.testing.assert_allclose(np.asarray(policy_logits), np.asarray(ref_logits),
                               rtol=2e-2, atol=2e-2)
    np.testing.assert_allclose(np.asarray(baseline), np.asarray(ref_baseline),
                               rtol=2e-2, atol=2e-2)

    assert policy_logits.shape == (batch, seq_len, NUM_ACTIONS)
    assert baseline.shape == (batch, seq_len)
    print("KERNEL_OK")
</pallas_src>

<mosaic_0001>
module attributes {stable_mosaic.version = 11 : i64} {
  func.func @fused_agent_kernel(%arg0: i32, %arg1: memref<64x12xf32, #tpu.memory_space<vmem>>, %arg2: memref<64x13xf32, #tpu.memory_space<vmem>>, %arg3: memref<12x128xbf16, #tpu.memory_space<vmem>>, %arg4: memref<1x128xf32, #tpu.memory_space<vmem>>, %arg5: memref<128x256xbf16, #tpu.memory_space<vmem>>, %arg6: memref<1x256xf32, #tpu.memory_space<vmem>>, %arg7: memref<256x512xbf16, #tpu.memory_space<vmem>>, %arg8: memref<1x512xf32, #tpu.memory_space<vmem>>, %arg9: memref<512x1024xbf16, #tpu.memory_space<vmem>>, %arg10: memref<13x1024xbf16, #tpu.memory_space<vmem>>, %arg11: memref<1x1024xf32, #tpu.memory_space<vmem>>, %arg12: memref<256x1024xbf16, #tpu.memory_space<vmem>>, %arg13: memref<256x128xbf16, #tpu.memory_space<vmem>>, %arg14: memref<1x128xf32, #tpu.memory_space<vmem>>, %arg15: memref<64x128xf32, #tpu.memory_space<vmem>>, %arg16: memref<8x256xf32, #tpu.memory_space<vmem>>, %arg17: memref<8x256xf32, #tpu.memory_space<vmem>>, %arg18: memref<8x8x1024xf32, #tpu.memory_space<vmem>>, %arg19: memref<8x8x256xf32, #tpu.memory_space<vmem>>) attributes {dimension_semantics = [#tpu.dimension_semantics<arbitrary>], iteration_bounds = array<i64: 1>, scalar_prefetch = 0 : i64, scratch_operands = 4 : i64, tpu.core_type = #tpu.core_type<tc>, window_params = [{transform_indices = @transform_0, window_bounds = array<i64: 64, 12>}, {transform_indices = @transform_1, window_bounds = array<i64: 64, 13>}, {pipeline_mode = #tpu.pipeline_mode<synchronous>, transform_indices = @transform_2, window_bounds = array<i64: 12, 128>}, {pipeline_mode = #tpu.pipeline_mode<synchronous>, transform_indices = @transform_3, window_bounds = array<i64: 1, 128>}, {pipeline_mode = #tpu.pipeline_mode<synchronous>, transform_indices = @transform_4, window_bounds = array<i64: 128, 256>}, {pipeline_mode = #tpu.pipeline_mode<synchronous>, transform_indices = @transform_5, window_bounds = array<i64: 1, 256>}, {pipeline_mode = #tpu.pipeline_mode<synchronous>, transform_indices = @transform_6, window_bounds = array<i64: 256, 512>}, {pipeline_mode = #tpu.pipeline_mode<synchronous>, transform_indices = @transform_7, window_bounds = array<i64: 1, 512>}, {pipeline_mode = #tpu.pipeline_mode<synchronous>, transform_indices = @transform_8, window_bounds = array<i64: 512, 1024>}, {pipeline_mode = #tpu.pipeline_mode<synchronous>, transform_indices = @transform_9, window_bounds = array<i64: 13, 1024>}, {pipeline_mode = #tpu.pipeline_mode<synchronous>, transform_indices = @transform_10, window_bounds = array<i64: 1, 1024>}, {pipeline_mode = #tpu.pipeline_mode<synchronous>, transform_indices = @transform_11, window_bounds = array<i64: 256, 1024>}, {pipeline_mode = #tpu.pipeline_mode<synchronous>, transform_indices = @transform_12, window_bounds = array<i64: 256, 128>}, {pipeline_mode = #tpu.pipeline_mode<synchronous>, transform_indices = @transform_13, window_bounds = array<i64: 1, 128>}, {transform_indices = @transform_14, window_bounds = array<i64: 64, 128>}]} {
    %c0_i32 = arith.constant 0 : i32
    %0 = arith.cmpi eq, %arg0, %c0_i32 : i32
    %1 = arith.extui %0 : i1 to i32
    %c0_i32_0 = arith.constant 0 : i32
    %2 = arith.cmpi ne, %1, %c0_i32_0 : i32
    scf.if %2 {
      %cst_118 = arith.constant 0.000000e+00 : f32
      %279 = vector.broadcast %cst_118 : f32 to vector<8x256xf32>
      %c0_119 = arith.constant 0 : index
      %c0_120 = arith.constant 0 : index
      %280 = vector.load %arg16[%c0_119, %c0_120] : memref<8x256xf32, #tpu.memory_space<vmem>>, vector<8x256xf32>
      tpu.vector_store %arg16[%c0_119, %c0_120], %279 {strides = array<i32>} : memref<8x256xf32, #tpu.memory_space<vmem>>, vector<8x256xf32>,
      %cst_121 = arith.constant 0.000000e+00 : f32
      %281 = vector.broadcast %cst_121 : f32 to vector<8x256xf32>
      %c0_122 = arith.constant 0 : index
      %c0_123 = arith.constant 0 : index
      %282 = vector.load %arg17[%c0_122, %c0_123] : memref<8x256xf32, #tpu.memory_space<vmem>>, vector<8x256xf32>
      tpu.vector_store %arg17[%c0_122, %c0_123], %281 {strides = array<i32>} : memref<8x256xf32, #tpu.memory_space<vmem>>, vector<8x256xf32>,
    } else {
    }
    %c0 = arith.constant 0 : index
    %c0_1 = arith.constant 0 : index
    %3 = vector.load %arg1[%c0, %c0_1] : memref<64x12xf32, #tpu.memory_space<vmem>>, vector<64x12xf32>
    %4 = arith.truncf %3 : vector<64x12xf32> to vector<64x12xbf16>
    %c0_2 = arith.constant 0 : index
    %c0_3 = arith.constant 0 : index
    %5 = vector.load %arg2[%c0_2, %c0_3] : memref<64x13xf32, #tpu.memory_space<vmem>>, vector<64x13xf32>
    %6 = arith.truncf %5 : vector<64x13xf32> to vector<64x13xbf16>
    %c0_4 = arith.constant 0 : index
    %c0_5 = arith.constant 0 : index
    %7 = vector.load %arg3[%c0_4, %c0_5] : memref<12x128xbf16, #tpu.memory_space<vmem>>, vector<12x128xbf16>
    %cst = arith.constant dense<0.000000e+00> : vector<64x128xf32>
    %8 = tpu.matmul %4, %7, %cst {dimension_numbers = #tpu.dot_dimension_numbers<[1], [0], [0], [1], [0, 0, 1, 1], [], []>} : vector<64x12xbf16>, vector<12x128xbf16>, vector<64x128xf32> -> vector<64x128xf32>
    %c0_6 = arith.constant 0 : index
    %c0_7 = arith.constant 0 : index
    %9 = vector.load %arg4[%c0_6, %c0_7] : memref<1x128xf32, #tpu.memory_space<vmem>>, vector<1x128xf32>
    %10 = vector.broadcast %9 : vector<1x128xf32> to vector<64x128xf32>
    %11 = arith.addf %8, %10 : vector<64x128xf32>
    %cst_8 = arith.constant 0.000000e+00 : f32
    %12 = vector.broadcast %cst_8 : f32 to vector<64x128xf32>
    %13 = arith.cmpf ogt, %11, %12 : vector<64x128xf32>
    %cst_9 = arith.constant 0.00999999977 : f32
    %14 = vector.broadcast %cst_9 : f32 to vector<64x128xf32>
    %15 = arith.mulf %14, %11 : vector<64x128xf32>
    %16 = arith.select %13, %11, %15 : vector<64x128xi1>, vector<64x128xf32>
    %17 = arith.truncf %16 : vector<64x128xf32> to vector<64x128xbf16>
    %c0_10 = arith.constant 0 : index
    %c0_11 = arith.constant 0 : index
    %18 = vector.load %arg5[%c0_10, %c0_11] : memref<128x256xbf16, #tpu.memory_space<vmem>>, vector<128x256xbf16>
    %cst_12 = arith.constant dense<0.000000e+00> : vector<64x256xf32>
    %19 = tpu.matmul %17, %18, %cst_12 {dimension_numbers = #tpu.dot_dimension_numbers<[1], [0], [0], [1], [0, 0, 1, 1], [], []>} : vector<64x128xbf16>, vector<128x256xbf16>, vector<64x256xf32> -> vector<64x256xf32>
    %c0_13 = arith.constant 0 : index
    %c0_14 = arith.constant 0 : index
    %20 = vector.load %arg6[%c0_13, %c0_14] : memref<1x256xf32, #tpu.memory_space<vmem>>, vector<1x256xf32>
    %21 = vector.broadcast %20 : vector<1x256xf32> to vector<64x256xf32>
    %22 = arith.addf %19, %21 : vector<64x256xf32>
    %cst_15 = arith.constant 0.000000e+00 : f32
    %23 = vector.broadcast %cst_15 : f32 to vector<64x256xf32>
    %24 = arith.cmpf ogt, %22, %23 : vector<64x256xf32>
    %cst_16 = arith.constant 0.00999999977 : f32
    %25 = vector.broadcast %cst_16 : f32 to vector<64x256xf32>
    %26 = arith.mulf %25, %22 : vector<64x256xf32>
    %27 = arith.select %24, %22, %26 : vector<64x256xi1>, vector<64x256xf32>
    %28 = arith.truncf %27 : vector<64x256xf32> to vector<64x256xbf16>
    %c0_17 = arith.constant 0 : index
    %c0_18 = arith.constant 0 : index
    %29 = vector.load %arg7[%c0_17, %c0_18] : memref<256x512xbf16, #tpu.memory_space<vmem>>, vector<256x512xbf16>
    %cst_19 = arith.constant dense<0.000000e+00> : vector<64x512xf32>
    %30 = tpu.matmul %28, %29, %cst_19 {dimension_numbers = #tpu.dot_dimension_numbers<[1], [0], [0], [1], [0, 0, 1, 1], [], []>} : vector<64x256xbf16>, vector<256x512xbf16>, vector<64x512xf32> -> vector<64x512xf32>
    %c0_20 = arith.constant 0 : index
    %c0_21 = arith.constant 0 : index
    %31 = vector.load %arg8[%c0_20, %c0_21] : memref<1x512xf32, #tpu.memory_space<vmem>>, vector<1x512xf32>
    %32 = vector.broadcast %31 : vector<1x512xf32> to vector<64x512xf32>
    %33 = arith.addf %30, %32 : vector<64x512xf32>
    %cst_22 = arith.constant 0.000000e+00 : f32
    %34 = vector.broadcast %cst_22 : f32 to vector<64x512xf32>
    %35 = arith.cmpf ogt, %33, %34 : vector<64x512xf32>
    %cst_23 = arith.constant 0.00999999977 : f32
    %36 = vector.broadcast %cst_23 : f32 to vector<64x512xf32>
    %37 = arith.mulf %36, %33 : vector<64x512xf32>
    %38 = arith.select %35, %33, %37 : vector<64x512xi1>, vector<64x512xf32>
    %39 = arith.truncf %38 : vector<64x512xf32> to vector<64x512xbf16>
    %c0_24 = arith.constant 0 : index
    %c0_25 = arith.constant 0 : index
    %40 = vector.load %arg9[%c0_24, %c0_25] : memref<512x1024xbf16, #tpu.memory_space<vmem>>, vector<512x1024xbf16>
    %cst_26 = arith.constant dense<0.000000e+00> : vector<64x1024xf32>
    %41 = tpu.matmul %39, %40, %cst_26 {dimension_numbers = #tpu.dot_dimension_numbers<[1], [0], [0], [1], [0, 0, 1, 1], [], []>} : vector<64x512xbf16>, vector<512x1024xbf16>, vector<64x1024xf32> -> vector<64x1024xf32>
    %c0_27 = arith.constant 0 : index
    %c0_28 = arith.constant 0 : index
    %42 = vector.load %arg10[%c0_27, %c0_28] : memref<13x1024xbf16, #tpu.memory_space<vmem>>, vector<13x1024xbf16>
    %cst_29 = arith.constant dense<0.000000e+00> : vector<64x1024xf32>
    %43 = tpu.matmul %6, %42, %cst_29 {dimension_numbers = #tpu.dot_dimension_numbers<[1], [0], [0], [1], [0, 0, 1, 1], [], []>} : vector<64x13xbf16>, vector<13x1024xbf16>, vector<64x1024xf32> -> vector<64x1024xf32>
    %44 = arith.addf %41, %43 : vector<64x1024xf32>
    %c0_30 = arith.constant 0 : index
    %c0_31 = arith.constant 0 : index
    %45 = vector.load %arg11[%c0_30, %c0_31] : memref<1x1024xf32, #tpu.memory_space<vmem>>, vector<1x1024xf32>
    %46 = vector.broadcast %45 : vector<1x1024xf32> to vector<64x1024xf32>
    %47 = arith.addf %44, %46 : vector<64x1024xf32>
    %48 = vector.shape_cast %47 : vector<64x1024xf32> to vector<8x8x1024xf32>
    %c0_32 = arith.constant 0 : index
    %c0_33 = arith.constant 0 : index
    %c0_34 = arith.constant 0 : index
    %49 = vector.load %arg18[%c0_32, %c0_33, %c0_34] : memref<8x8x1024xf32, #tpu.memory_space<vmem>>, vector<8x8x1024xf32>
    tpu.vector_store %arg18[%c0_32, %c0_33, %c0_34], %48 {strides = array<i32>} : memref<8x8x1024xf32, #tpu.memory_space<vmem>>, vector<8x8x1024xf32>,
    %c0_35 = arith.constant 0 : index
    %c0_36 = arith.constant 0 : index
    %50 = vector.load %arg16[%c0_35, %c0_36] : memref<8x256xf32, #tpu.memory_space<vmem>>, vector<8x256xf32>
    %c0_37 = arith.constant 0 : index
    %c0_38 = arith.constant 0 : index
    %51 = vector.load %arg17[%c0_37, %c0_38] : memref<8x256xf32, #tpu.memory_space<vmem>>, vector<8x256xf32>
    %c0_i32_39 = arith.constant 0 : i32
    %52 = arith.index_cast %c0_i32_39 : i32 to index
    %c0_40 = arith.constant 0 : index
    %c0_41 = arith.constant 0 : index
    %53 = vector.load %arg18[%52, %c0_40, %c0_41] : memref<8x8x1024xf32, #tpu.memory_space<vmem>>, vector<1x8x1024xf32>
    %54 = vector.shape_cast %53 : vector<1x8x1024xf32> to vector<8x1024xf32>
    %55 = arith.truncf %50 : vector<8x256xf32> to vector<8x256xbf16>
    %c0_42 = arith.constant 0 : index
    %c0_43 = arith.constant 0 : index
    %56 = vector.load %arg12[%c0_42, %c0_43] : memref<256x1024xbf16, #tpu.memory_space<vmem>>, vector<256x1024xbf16>
    %cst_44 = arith.constant dense<0.000000e+00> : vector<8x1024xf32>
    %57 = tpu.matmul %55, %56, %cst_44 {dimension_numbers = #tpu.dot_dimension_numbers<[1], [0], [0], [1], [0, 0, 1, 1], [], []>} : vector<8x256xbf16>, vector<256x1024xbf16>, vector<8x1024xf32> -> vector<8x1024xf32>
    %58 = arith.addf %54, %57 : vector<8x1024xf32>
    %59 = vector.extract_strided_slice %58 {offsets = [0, 0], sizes = [8, 768], strides = [1, 1]} : vector<8x1024xf32> to vector<8x768xf32>
    %60 = arith.negf %59 : vector<8x768xf32>
    %61 = math.exp %60 : vector<8x768xf32>
    %cst_45 = arith.constant 1.000000e+00 : f32
    %62 = vector.broadcast %cst_45 : f32 to vector<8x768xf32>
    %63 = arith.addf %62, %61 : vector<8x768xf32>
    %64 = arith.divf %62, %63 : vector<8x768xf32>
    %65 = vector.extract_strided_slice %64 {offsets = [0, 0], sizes = [8, 256], strides = [1, 1]} : vector<8x768xf32> to vector<8x256xf32>
    %66 = vector.extract_strided_slice %64 {offsets = [0, 256], sizes = [8, 256], strides = [1, 1]} : vector<8x768xf32> to vector<8x256xf32>
    %67 = vector.extract_strided_slice %64 {offsets = [0, 512], sizes = [8, 256], strides = [1, 1]} : vector<8x768xf32> to vector<8x256xf32>
    %68 = vector.extract_strided_slice %58 {offsets = [0, 768], sizes = [8, 256], strides = [1, 1]} : vector<8x1024xf32> to vector<8x256xf32>
    %69 = math.tanh %68 : vector<8x256xf32>
    %70 = arith.mulf %66, %51 : vector<8x256xf32>
    %71 = arith.mulf %65, %69 : vector<8x256xf32>
    %72 = arith.addf %70, %71 : vector<8x256xf32>
    %73 = math.tanh %72 : vector<8x256xf32>
    %74 = arith.mulf %67, %73 : vector<8x256xf32>
    %75 = arith.index_cast %c0_i32_39 : i32 to index
    %c0_46 = arith.constant 0 : index
    %c0_47 = arith.constant 0 : index
    %76 = vector.load %arg19[%75, %c0_46, %c0_47] : memref<8x8x256xf32, #tpu.memory_space<vmem>>, vector<1x8x256xf32>
    %77 = vector.shape_cast %76 : vector<1x8x256xf32> to vector<8x256xf32>
    %78 = vector.shape_cast %74 : vector<8x256xf32> to vector<1x8x256xf32>
    tpu.vector_store %arg19[%75, %c0_46, %c0_47], %78 {strides = array<i32>} : memref<8x8x256xf32, #tpu.memory_space<vmem>>, vector<1x8x256xf32>,
    %c1_i32 = arith.constant 1 : i32
    %79 = arith.index_cast %c1_i32 : i32 to index
    %c0_48 = arith.constant 0 : index
    %c0_49 = arith.constant 0 : index
    %80 = vector.load %arg18[%79, %c0_48, %c0_49] : memref<8x8x1024xf32, #tpu.memory_space<vmem>>, vector<1x8x1024xf32>
    %81 = vector.shape_cast %80 : vector<1x8x1024xf32> to vector<8x1024xf32>
    %82 = arith.truncf %74 : vector<8x256xf32> to vector<8x256xbf16>
    %c0_50 = arith.constant 0 : index
    %c0_51 = arith.constant 0 : index
    %83 = vector.load %arg12[%c0_50, %c0_51] : memref<256x1024xbf16, #tpu.memory_space<vmem>>, vector<256x1024xbf16>
    %cst_52 = arith.constant dense<0.000000e+00> : vector<8x1024xf32>
    %84 = tpu.matmul %82, %83, %cst_52 {dimension_numbers = #tpu.dot_dimension_numbers<[1], [0], [0], [1], [0, 0, 1, 1], [], []>} : vector<8x256xbf16>, vector<256x1024xbf16>, vector<8x1024xf32> -> vector<8x1024xf32>
    %85 = arith.addf %81, %84 : vector<8x1024xf32>
    %86 = vector.extract_strided_slice %85 {offsets = [0, 0], sizes = [8, 768], strides = [1, 1]} : vector<8x1024xf32> to vector<8x768xf32>
    %87 = arith.negf %86 : vector<8x768xf32>
    %88 = math.exp %87 : vector<8x768xf32>
    %cst_53 = arith.constant 1.000000e+00 : f32
    %89 = vector.broadcast %cst_53 : f32 to vector<8x768xf32>
    %90 = arith.addf %89, %88 : vector<8x768xf32>
    %91 = arith.divf %89, %90 : vector<8x768xf32>
    %92 = vector.extract_strided_slice %91 {offsets = [0, 0], sizes = [8, 256], strides = [1, 1]} : vector<8x768xf32> to vector<8x256xf32>
    %93 = vector.extract_strided_slice %91 {offsets = [0, 256], sizes = [8, 256], strides = [1, 1]} : vector<8x768xf32> to vector<8x256xf32>
    %94 = vector.extract_strided_slice %91 {offsets = [0, 512], sizes = [8, 256], strides = [1, 1]} : vector<8x768xf32> to vector<8x256xf32>
    %95 = vector.extract_strided_slice %85 {offsets = [0, 768], sizes = [8, 256], strides = [1, 1]} : vector<8x1024xf32> to vector<8x256xf32>
    %96 = math.tanh %95 : vector<8x256xf32>
    %97 = arith.mulf %93, %72 : vector<8x256xf32>
    %98 = arith.mulf %92, %96 : vector<8x256xf32>
    %99 = arith.addf %97, %98 : vector<8x256xf32>
    %100 = math.tanh %99 : vector<8x256xf32>
    %101 = arith.mulf %94, %100 : vector<8x256xf32>
    %102 = arith.index_cast %c1_i32 : i32 to index
    %c0_54 = arith.constant 0 : index
    %c0_55 = arith.constant 0 : index
    %103 = vector.load %arg19[%102, %c0_54, %c0_55] : memref<8x8x256xf32, #tpu.memory_space<vmem>>, vector<1x8x256xf32>
    %104 = vector.shape_cast %103 : vector<1x8x256xf32> to vector<8x256xf32>
    %105 = vector.shape_cast %101 : vector<8x256xf32> to vector<1x8x256xf32>
    tpu.vector_store %arg19[%102, %c0_54, %c0_55], %105 {strides = array<i32>} : memref<8x8x256xf32, #tpu.memory_space<vmem>>, vector<1x8x256xf32>,
    %c2_i32 = arith.constant 2 : i32
    %106 = arith.index_cast %c2_i32 : i32 to index
    %c0_56 = arith.constant 0 : index
    %c0_57 = arith.constant 0 : index
    %107 = vector.load %arg18[%106, %c0_56, %c0_57] : memref<8x8x1024xf32, #tpu.memory_space<vmem>>, vector<1x8x1024xf32>
    %108 = vector.shape_cast %107 : vector<1x8x1024xf32> to vector<8x1024xf32>
    %109 = arith.truncf %101 : vector<8x256xf32> to vector<8x256xbf16>
    %c0_58 = arith.constant 0 : index
    %c0_59 = arith.constant 0 : index
    %110 = vector.load %arg12[%c0_58, %c0_59] : memref<256x1024xbf16, #tpu.memory_space<vmem>>, vector<256x1024xbf16>
    %cst_60 = arith.constant dense<0.000000e+00> : vector<8x1024xf32>
    %111 = tpu.matmul %109, %110, %cst_60 {dimension_numbers = #tpu.dot_dimension_numbers<[1], [0], [0], [1], [0, 0, 1, 1], [], []>} : vector<8x256xbf16>, vector<256x1024xbf16>, vector<8x1024xf32> -> vector<8x1024xf32>
    %112 = arith.addf %108, %111 : vector<8x1024xf32>
    %113 = vector.extract_strided_slice %112 {offsets = [0, 0], sizes = [8, 768], strides = [1, 1]} : vector<8x1024xf32> to vector<8x768xf32>
    %114 = arith.negf %113 : vector<8x768xf32>
    %115 = math.exp %114 : vector<8x768xf32>
    %cst_61 = arith.constant 1.000000e+00 : f32
    %116 = vector.broadcast %cst_61 : f32 to vector<8x768xf32>
    %117 = arith.addf %116, %115 : vector<8x768xf32>
    %118 = arith.divf %116, %117 : vector<8x768xf32>
    %119 = vector.extract_strided_slice %118 {offsets = [0, 0], sizes = [8, 256], strides = [1, 1]} : vector<8x768xf32> to vector<8x256xf32>
    %120 = vector.extract_strided_slice %118 {offsets = [0, 256], sizes = [8, 256], strides = [1, 1]} : vector<8x768xf32> to vector<8x256xf32>
    %121 = vector.extract_strided_slice %118 {offsets = [0, 512], sizes = [8, 256], strides = [1, 1]} : vector<8x768xf32> to vector<8x256xf32>
    %122 = vector.extract_strided_slice %112 {offsets = [0, 768], sizes = [8, 256], strides = [1, 1]} : vector<8x1024xf32> to vector<8x256xf32>
    %123 = math.tanh %122 : vector<8x256xf32>
    %124 = arith.mulf %120, %99 : vector<8x256xf32>
    %125 = arith.mulf %119, %123 : vector<8x256xf32>
    %126 = arith.addf %124, %125 : vector<8x256xf32>
    %127 = math.tanh %126 : vector<8x256xf32>
    %128 = arith.mulf %121, %127 : vector<8x256xf32>
    %129 = arith.index_cast %c2_i32 : i32 to index
    %c0_62 = arith.constant 0 : index
    %c0_63 = arith.constant 0 : index
    %130 = vector.load %arg19[%129, %c0_62, %c0_63] : memref<8x8x256xf32, #tpu.memory_space<vmem>>, vector<1x8x256xf32>
    %131 = vector.shape_cast %130 : vector<1x8x256xf32> to vector<8x256xf32>
    %132 = vector.shape_cast %128 : vector<8x256xf32> to vector<1x8x256xf32>
    tpu.vector_store %arg19[%129, %c0_62, %c0_63], %132 {strides = array<i32>} : memref<8x8x256xf32, #tpu.memory_space<vmem>>, vector<1x8x256xf32>,
    %c3_i32 = arith.constant 3 : i32
    %133 = arith.index_cast %c3_i32 : i32 to index
    %c0_64 = arith.constant 0 : index
    %c0_65 = arith.constant 0 : index
    %134 = vector.load %arg18[%133, %c0_64, %c0_65] : memref<8x8x1024xf32, #tpu.memory_space<vmem>>, vector<1x8x1024xf32>
    %135 = vector.shape_cast %134 : vector<1x8x1024xf32> to vector<8x1024xf32>
    %136 = arith.truncf %128 : vector<8x256xf32> to vector<8x256xbf16>
    %c0_66 = arith.constant 0 : index
    %c0_67 = arith.constant 0 : index
    %137 = vector.load %arg12[%c0_66, %c0_67] : memref<256x1024xbf16, #tpu.memory_space<vmem>>, vector<256x1024xbf16>
    %cst_68 = arith.constant dense<0.000000e+00> : vector<8x1024xf32>
    %138 = tpu.matmul %136, %137, %cst_68 {dimension_numbers = #tpu.dot_dimension_numbers<[1], [0], [0], [1], [0, 0, 1, 1], [], []>} : vector<8x256xbf16>, vector<256x1024xbf16>, vector<8x1024xf32> -> vector<8x1024xf32>
    %139 = arith.addf %135, %138 : vector<8x1024xf32>
    %140 = vector.extract_strided_slice %139 {offsets = [0, 0], sizes = [8, 768], strides = [1, 1]} : vector<8x1024xf32> to vector<8x768xf32>
    %141 = arith.negf %140 : vector<8x768xf32>
    %142 = math.exp %141 : vector<8x768xf32>
    %cst_69 = arith.constant 1.000000e+00 : f32
    %143 = vector.broadcast %cst_69 : f32 to vector<8x768xf32>
    %144 = arith.addf %143, %142 : vector<8x768xf32>
    %145 = arith.divf %143, %144 : vector<8x768xf32>
    %146 = vector.extract_strided_slice %145 {offsets = [0, 0], sizes = [8, 256], strides = [1, 1]} : vector<8x768xf32> to vector<8x256xf32>
    %147 = vector.extract_strided_slice %145 {offsets = [0, 256], sizes = [8, 256], strides = [1, 1]} : vector<8x768xf32> to vector<8x256xf32>
    %148 = vector.extract_strided_slice %145 {offsets = [0, 512], sizes = [8, 256], strides = [1, 1]} : vector<8x768xf32> to vector<8x256xf32>
    %149 = vector.extract_strided_slice %139 {offsets = [0, 768], sizes = [8, 256], strides = [1, 1]} : vector<8x1024xf32> to vector<8x256xf32>
    %150 = math.tanh %149 : vector<8x256xf32>
    %151 = arith.mulf %147, %126 : vector<8x256xf32>
    %152 = arith.mulf %146, %150 : vector<8x256xf32>
    %153 = arith.addf %151, %152 : vector<8x256xf32>
    %154 = math.tanh %153 : vector<8x256xf32>
    %155 = arith.mulf %148, %154 : vector<8x256xf32>
    %156 = arith.index_cast %c3_i32 : i32 to index
    %c0_70 = arith.constant 0 : index
    %c0_71 = arith.constant 0 : index
    %157 = vector.load %arg19[%156, %c0_70, %c0_71] : memref<8x8x256xf32, #tpu.memory_space<vmem>>, vector<1x8x256xf32>
    %158 = vector.shape_cast %157 : vector<1x8x256xf32> to vector<8x256xf32>
    %159 = vector.shape_cast %155 : vector<8x256xf32> to vector<1x8x256xf32>
    tpu.vector_store %arg19[%156, %c0_70, %c0_71], %159 {strides = array<i32>} : memref<8x8x256xf32, #tpu.memory_space<vmem>>, vector<1x8x256xf32>,
    %c4_i32 = arith.constant 4 : i32
    %160 = arith.index_cast %c4_i32 : i32 to index
    %c0_72 = arith.constant 0 : index
    %c0_73 = arith.constant 0 : index
    %161 = vector.load %arg18[%160, %c0_72, %c0_73] : memref<8x8x1024xf32, #tpu.memory_space<vmem>>, vector<1x8x1024xf32>
    %162 = vector.shape_cast %161 : vector<1x8x1024xf32> to vector<8x1024xf32>
    %163 = arith.truncf %155 : vector<8x256xf32> to vector<8x256xbf16>
    %c0_74 = arith.constant 0 : index
    %c0_75 = arith.constant 0 : index
    %164 = vector.load %arg12[%c0_74, %c0_75] : memref<256x1024xbf16, #tpu.memory_space<vmem>>, vector<256x1024xbf16>
    %cst_76 = arith.constant dense<0.000000e+00> : vector<8x1024xf32>
    %165 = tpu.matmul %163, %164, %cst_76 {dimension_numbers = #tpu.dot_dimension_numbers<[1], [0], [0], [1], [0, 0, 1, 1], [], []>} : vector<8x256xbf16>, vector<256x1024xbf16>, vector<8x1024xf32> -> vector<8x1024xf32>
    %166 = arith.addf %162, %165 : vector<8x1024xf32>
    %167 = vector.extract_strided_slice %166 {offsets = [0, 0], sizes = [8, 768], strides = [1, 1]} : vector<8x1024xf32> to vector<8x768xf32>
    %168 = arith.negf %167 : vector<8x768xf32>
    %169 = math.exp %168 : vector<8x768xf32>
    %cst_77 = arith.constant 1.000000e+00 : f32
    %170 = vector.broadcast %cst_77 : f32 to vector<8x768xf32>
    %171 = arith.addf %170, %169 : vector<8x768xf32>
    %172 = arith.divf %170, %171 : vector<8x768xf32>
    %173 = vector.extract_strided_slice %172 {offsets = [0, 0], sizes = [8, 256], strides = [1, 1]} : vector<8x768xf32> to vector<8x256xf32>
    %174 = vector.extract_strided_slice %172 {offsets = [0, 256], sizes = [8, 256], strides = [1, 1]} : vector<8x768xf32> to vector<8x256xf32>
    %175 = vector.extract_strided_slice %172 {offsets = [0, 512], sizes = [8, 256], strides = [1, 1]} : vector<8x768xf32> to vector<8x256xf32>
    %176 = vector.extract_strided_slice %166 {offsets = [0, 768], sizes = [8, 256], strides = [1, 1]} : vector<8x1024xf32> to vector<8x256xf32>
    %177 = math.tanh %176 : vector<8x256xf32>
    %178 = arith.mulf %174, %153 : vector<8x256xf32>
    %179 = arith.mulf %173, %177 : vector<8x256xf32>
    %180 = arith.addf %178, %179 : vector<8x256xf32>
    %181 = math.tanh %180 : vector<8x256xf32>
    %182 = arith.mulf %175, %181 : vector<8x256xf32>
    %183 = arith.index_cast %c4_i32 : i32 to index
    %c0_78 = arith.constant 0 : index
    %c0_79 = arith.constant 0 : index
    %184 = vector.load %arg19[%183, %c0_78, %c0_79] : memref<8x8x256xf32, #tpu.memory_space<vmem>>, vector<1x8x256xf32>
    %185 = vector.shape_cast %184 : vector<1x8x256xf32> to vector<8x256xf32>
    %186 = vector.shape_cast %182 : vector<8x256xf32> to vector<1x8x256xf32>
    tpu.vector_store %arg19[%183, %c0_78, %c0_79], %186 {strides = array<i32>} : memref<8x8x256xf32, #tpu.memory_space<vmem>>, vector<1x8x256xf32>,
    %c5_i32 = arith.constant 5 : i32
    %187 = arith.index_cast %c5_i32 : i32 to index
    %c0_80 = arith.constant 0 : index
    %c0_81 = arith.constant 0 : index
    %188 = vector.load %arg18[%187, %c0_80, %c0_81] : memref<8x8x1024xf32, #tpu.memory_space<vmem>>, vector<1x8x1024xf32>
    %189 = vector.shape_cast %188 : vector<1x8x1024xf32> to vector<8x1024xf32>
    %190 = arith.truncf %182 : vector<8x256xf32> to vector<8x256xbf16>
    %c0_82 = arith.constant 0 : index
    %c0_83 = arith.constant 0 : index
    %191 = vector.load %arg12[%c0_82, %c0_83] : memref<256x1024xbf16, #tpu.memory_space<vmem>>, vector<256x1024xbf16>
    %cst_84 = arith.constant dense<0.000000e+00> : vector<8x1024xf32>
    %192 = tpu.matmul %190, %191, %cst_84 {dimension_numbers = #tpu.dot_dimension_numbers<[1], [0], [0], [1], [0, 0, 1, 1], [], []>} : vector<8x256xbf16>, vector<256x1024xbf16>, vector<8x1024xf32> -> vector<8x1024xf32>
    %193 = arith.addf %189, %192 : vector<8x1024xf32>
    %194 = vector.extract_strided_slice %193 {offsets = [0, 0], sizes = [8, 768], strides = [1, 1]} : vector<8x1024xf32> to vector<8x768xf32>
    %195 = arith.negf %194 : vector<8x768xf32>
    %196 = math.exp %195 : vector<8x768xf32>
    %cst_85 = arith.constant 1.000000e+00 : f32
    %197 = vector.broadcast %cst_85 : f32 to vector<8x768xf32>
    %198 = arith.addf %197, %196 : vector<8x768xf32>
    %199 = arith.divf %197, %198 : vector<8x768xf32>
    %200 = vector.extract_strided_slice %199 {offsets = [0, 0], sizes = [8, 256], strides = [1, 1]} : vector<8x768xf32> to vector<8x256xf32>
    %201 = vector.extract_strided_slice %199 {offsets = [0, 256], sizes = [8, 256], strides = [1, 1]} : vector<8x768xf32> to vector<8x256xf32>
    %202 = vector.extract_strided_slice %199 {offsets = [0, 512], sizes = [8, 256], strides = [1, 1]} : vector<8x768xf32> to vector<8x256xf32>
    %203 = vector.extract_strided_slice %193 {offsets = [0, 768], sizes = [8, 256], strides = [1, 1]} : vector<8x1024xf32> to vector<8x256xf32>
    %204 = math.tanh %203 : vector<8x256xf32>
    %205 = arith.mulf %201, %180 : vector<8x256xf32>
    %206 = arith.mulf %200, %204 : vector<8x256xf32>
    %207 = arith.addf %205, %206 : vector<8x256xf32>
    %208 = math.tanh %207 : vector<8x256xf32>
    %209 = arith.mulf %202, %208 : vector<8x256xf32>
    %210 = arith.index_cast %c5_i32 : i32 to index
    %c0_86 = arith.constant 0 : index
    %c0_87 = arith.constant 0 : index
    %211 = vector.load %arg19[%210, %c0_86, %c0_87] : memref<8x8x256xf32, #tpu.memory_space<vmem>>, vector<1x8x256xf32>
    %212 = vector.shape_cast %211 : vector<1x8x256xf32> to vector<8x256xf32>
    %213 = vector.shape_cast %209 : vector<8x256xf32> to vector<1x8x256xf32>
    tpu.vector_store %arg19[%210, %c0_86, %c0_87], %213 {strides = array<i32>} : memref<8x8x256xf32, #tpu.memory_space<vmem>>, vector<1x8x256xf32>,
    %c6_i32 = arith.constant 6 : i32
    %214 = arith.index_cast %c6_i32 : i32 to index
    %c0_88 = arith.constant 0 : index
    %c0_89 = arith.constant 0 : index
    %215 = vector.load %arg18[%214, %c0_88, %c0_89] : memref<8x8x1024xf32, #tpu.memory_space<vmem>>, vector<1x8x1024xf32>
    %216 = vector.shape_cast %215 : vector<1x8x1024xf32> to vector<8x1024xf32>
    %217 = arith.truncf %209 : vector<8x256xf32> to vector<8x256xbf16>
    %c0_90 = arith.constant 0 : index
    %c0_91 = arith.constant 0 : index
    %218 = vector.load %arg12[%c0_90, %c0_91] : memref<256x1024xbf16, #tpu.memory_space<vmem>>, vector<256x1024xbf16>
    %cst_92 = arith.constant dense<0.000000e+00> : vector<8x1024xf32>
    %219 = tpu.matmul %217, %218, %cst_92 {dimension_numbers = #tpu.dot_dimension_numbers<[1], [0], [0], [1], [0, 0, 1, 1], [], []>} : vector<8x256xbf16>, vector<256x1024xbf16>, vector<8x1024xf32> -> vector<8x1024xf32>
    %220 = arith.addf %216, %219 : vector<8x1024xf32>
    %221 = vector.extract_strided_slice %220 {offsets = [0, 0], sizes = [8, 768], strides = [1, 1]} : vector<8x1024xf32> to vector<8x768xf32>
    %222 = arith.negf %221 : vector<8x768xf32>
    %223 = math.exp %222 : vector<8x768xf32>
    %cst_93 = arith.constant 1.000000e+00 : f32
    %224 = vector.broadcast %cst_93 : f32 to vector<8x768xf32>
    %225 = arith.addf %224, %223 : vector<8x768xf32>
    %226 = arith.divf %224, %225 : vector<8x768xf32>
    %227 = vector.extract_strided_slice %226 {offsets = [0, 0], sizes = [8, 256], strides = [1, 1]} : vector<8x768xf32> to vector<8x256xf32>
    %228 = vector.extract_strided_slice %226 {offsets = [0, 256], sizes = [8, 256], strides = [1, 1]} : vector<8x768xf32> to vector<8x256xf32>
    %229 = vector.extract_strided_slice %226 {offsets = [0, 512], sizes = [8, 256], strides = [1, 1]} : vector<8x768xf32> to vector<8x256xf32>
    %230 = vector.extract_strided_slice %220 {offsets = [0, 768], sizes = [8, 256], strides = [1, 1]} : vector<8x1024xf32> to vector<8x256xf32>
    %231 = math.tanh %230 : vector<8x256xf32>
    %232 = arith.mulf %228, %207 : vector<8x256xf32>
    %233 = arith.mulf %227, %231 : vector<8x256xf32>
    %234 = arith.addf %232, %233 : vector<8x256xf32>
    %235 = math.tanh %234 : vector<8x256xf32>
    %236 = arith.mulf %229, %235 : vector<8x256xf32>
    %237 = arith.index_cast %c6_i32 : i32 to index
    %c0_94 = arith.constant 0 : index
    %c0_95 = arith.constant 0 : index
    %238 = vector.load %arg19[%237, %c0_94, %c0_95] : memref<8x8x256xf32, #tpu.memory_space<vmem>>, vector<1x8x256xf32>
    %239 = vector.shape_cast %238 : vector<1x8x256xf32> to vector<8x256xf32>
    %240 = vector.shape_cast %236 : vector<8x256xf32> to vector<1x8x256xf32>
    tpu.vector_store %arg19[%237, %c0_94, %c0_95], %240 {strides = array<i32>} : memref<8x8x256xf32, #tpu.memory_space<vmem>>, vector<1x8x256xf32>,
    %c7_i32 = arith.constant 7 : i32
    %241 = arith.index_cast %c7_i32 : i32 to index
    %c0_96 = arith.constant 0 : index
    %c0_97 = arith.constant 0 : index
    %242 = vector.load %arg18[%241, %c0_96, %c0_97] : memref<8x8x1024xf32, #tpu.memory_space<vmem>>, vector<1x8x1024xf32>
    %243 = vector.shape_cast %242 : vector<1x8x1024xf32> to vector<8x1024xf32>
    %244 = arith.truncf %236 : vector<8x256xf32> to vector<8x256xbf16>
    %c0_98 = arith.constant 0 : index
    %c0_99 = arith.constant 0 : index
    %245 = vector.load %arg12[%c0_98, %c0_99] : memref<256x1024xbf16, #tpu.memory_space<vmem>>, vector<256x1024xbf16>
    %cst_100 = arith.constant dense<0.000000e+00> : vector<8x1024xf32>
    %246 = tpu.matmul %244, %245, %cst_100 {dimension_numbers = #tpu.dot_dimension_numbers<[1], [0], [0], [1], [0, 0, 1, 1], [], []>} : vector<8x256xbf16>, vector<256x1024xbf16>, vector<8x1024xf32> -> vector<8x1024xf32>
    %247 = arith.addf %243, %246 : vector<8x1024xf32>
    %248 = vector.extract_strided_slice %247 {offsets = [0, 0], sizes = [8, 768], strides = [1, 1]} : vector<8x1024xf32> to vector<8x768xf32>
    %249 = arith.negf %248 : vector<8x768xf32>
    %250 = math.exp %249 : vector<8x768xf32>
    %cst_101 = arith.constant 1.000000e+00 : f32
    %251 = vector.broadcast %cst_101 : f32 to vector<8x768xf32>
    %252 = arith.addf %251, %250 : vector<8x768xf32>
    %253 = arith.divf %251, %252 : vector<8x768xf32>
    %254 = vector.extract_strided_slice %253 {offsets = [0, 0], sizes = [8, 256], strides = [1, 1]} : vector<8x768xf32> to vector<8x256xf32>
    %255 = vector.extract_strided_slice %253 {offsets = [0, 256], sizes = [8, 256], strides = [1, 1]} : vector<8x768xf32> to vector<8x256xf32>
    %256 = vector.extract_strided_slice %253 {offsets = [0, 512], sizes = [8, 256], strides = [1, 1]} : vector<8x768xf32> to vector<8x256xf32>
    %257 = vector.extract_strided_slice %247 {offsets = [0, 768], sizes = [8, 256], strides = [1, 1]} : vector<8x1024xf32> to vector<8x256xf32>
    %258 = math.tanh %257 : vector<8x256xf32>
    %259 = arith.mulf %255, %234 : vector<8x256xf32>
    %260 = arith.mulf %254, %258 : vector<8x256xf32>
    %261 = arith.addf %259, %260 : vector<8x256xf32>
    %262 = math.tanh %261 : vector<8x256xf32>
    %263 = arith.mulf %256, %262 : vector<8x256xf32>
    %264 = arith.index_cast %c7_i32 : i32 to index
    %c0_102 = arith.constant 0 : index
    %c0_103 = arith.constant 0 : index
    %265 = vector.load %arg19[%264, %c0_102, %c0_103] : memref<8x8x256xf32, #tpu.memory_space<vmem>>, vector<1x8x256xf32>
    %266 = vector.shape_cast %265 : vector<1x8x256xf32> to vector<8x256xf32>
    %267 = vector.shape_cast %263 : vector<8x256xf32> to vector<1x8x256xf32>
    tpu.vector_store %arg19[%264, %c0_102, %c0_103], %267 {strides = array<i32>} : memref<8x8x256xf32, #tpu.memory_space<vmem>>, vector<1x8x256xf32>,
    %c8_i32 = arith.constant 8 : i32
    %c0_104 = arith.constant 0 : index
    %c0_105 = arith.constant 0 : index
    %268 = vector.load %arg16[%c0_104, %c0_105] : memref<8x256xf32, #tpu.memory_space<vmem>>, vector<8x256xf32>
    tpu.vector_store %arg16[%c0_104, %c0_105], %263 {strides = array<i32>} : memref<8x256xf32, #tpu.memory_space<vmem>>, vector<8x256xf32>,
    %c0_106 = arith.constant 0 : index
    %c0_107 = arith.constant 0 : index
    %269 = vector.load %arg17[%c0_106, %c0_107] : memref<8x256xf32, #tpu.memory_space<vmem>>, vector<8x256xf32>
    tpu.vector_store %arg17[%c0_106, %c0_107], %261 {strides = array<i32>} : memref<8x256xf32, #tpu.memory_space<vmem>>, vector<8x256xf32>,
    %c0_108 = arith.constant 0 : index
    %c0_109 = arith.constant 0 : index
    %c0_110 = arith.constant 0 : index
    %270 = vector.load %arg19[%c0_108, %c0_109, %c0_110] : memref<8x8x256xf32, #tpu.memory_space<vmem>>, vector<8x8x256xf32>
    %271 = vector.shape_cast %270 : vector<8x8x256xf32> to vector<64x256xf32>
    %272 = arith.truncf %271 : vector<64x256xf32> to vector<64x256xbf16>
    %c0_111 = arith.constant 0 : index
    %c0_112 = arith.constant 0 : index
    %273 = vector.load %arg13[%c0_111, %c0_112] : memref<256x128xbf16, #tpu.memory_space<vmem>>, vector<256x128xbf16>
    %cst_113 = arith.constant dense<0.000000e+00> : vector<64x128xf32>
    %274 = tpu.matmul %272, %273, %cst_113 {dimension_numbers = #tpu.dot_dimension_numbers<[1], [0], [0], [1], [0, 0, 1, 1], [], []>} : vector<64x256xbf16>, vector<256x128xbf16>, vector<64x128xf32> -> vector<64x128xf32>
    %c0_114 = arith.constant 0 : index
    %c0_115 = arith.constant 0 : index
    %275 = vector.load %arg14[%c0_114, %c0_115] : memref<1x128xf32, #tpu.memory_space<vmem>>, vector<1x128xf32>
    %276 = vector.broadcast %275 : vector<1x128xf32> to vector<64x128xf32>
    %277 = arith.addf %274, %276 : vector<64x128xf32>
    %c0_116 = arith.constant 0 : index
    %c0_117 = arith.constant 0 : index
    %278 = vector.load %arg15[%c0_116, %c0_117] : memref<64x128xf32, #tpu.memory_space<vmem>>, vector<64x128xf32>
    tpu.vector_store %arg15[%c0_116, %c0_117], %277 {strides = array<i32>} : memref<64x128xf32, #tpu.memory_space<vmem>>, vector<64x128xf32>,
    return
  }
  func.func @transform_0(%arg0: i32) -> (i32, i32) {
    %c0_i32 = arith.constant 0 : i32
    %c0_i32_0 = arith.constant 0 : i32
    return %arg0, %c0_i32 : i32, i32
  }
  func.func @transform_1(%arg0: i32) -> (i32, i32) {
    %c0_i32 = arith.constant 0 : i32
    %c0_i32_0 = arith.constant 0 : i32
    return %arg0, %c0_i32 : i32, i32
  }
  func.func @transform_2(%arg0: i32) -> (i32, i32) {
    %c0_i32 = arith.constant 0 : i32
    %c0_i32_0 = arith.constant 0 : i32
    %c0_i32_1 = arith.constant 0 : i32
    return %c0_i32, %c0_i32_0 : i32, i32
  }
  func.func @transform_3(%arg0: i32) -> (i32, i32) {
    %c0_i32 = arith.constant 0 : i32
    %c0_i32_0 = arith.constant 0 : i32
    %c0_i32_1 = arith.constant 0 : i32
    return %c0_i32, %c0_i32_0 : i32, i32
  }
  func.func @transform_4(%arg0: i32) -> (i32, i32) {
    %c0_i32 = arith.constant 0 : i32
    %c0_i32_0 = arith.constant 0 : i32
    %c0_i32_1 = arith.constant 0 : i32
    return %c0_i32, %c0_i32_0 : i32, i32
  }
  func.func @transform_5(%arg0: i32) -> (i32, i32) {
    %c0_i32 = arith.constant 0 : i32
    %c0_i32_0 = arith.constant 0 : i32
    %c0_i32_1 = arith.constant 0 : i32
    return %c0_i32, %c0_i32_0 : i32, i32
  }
  func.func @transform_6(%arg0: i32) -> (i32, i32) {
    %c0_i32 = arith.constant 0 : i32
    %c0_i32_0 = arith.constant 0 : i32
    %c0_i32_1 = arith.constant 0 : i32
    return %c0_i32, %c0_i32_0 : i32, i32
  }
  func.func @transform_7(%arg0: i32) -> (i32, i32) {
    %c0_i32 = arith.constant 0 : i32
    %c0_i32_0 = arith.constant 0 : i32
    %c0_i32_1 = arith.constant 0 : i32
    return %c0_i32, %c0_i32_0 : i32, i32
  }
  func.func @transform_8(%arg0: i32) -> (i32, i32) {
    %c0_i32 = arith.constant 0 : i32
    %c0_i32_0 = arith.constant 0 : i32
    %c0_i32_1 = arith.constant 0 : i32
    return %c0_i32, %c0_i32_0 : i32, i32
  }
  func.func @transform_9(%arg0: i32) -> (i32, i32) {
    %c0_i32 = arith.constant 0 : i32
    %c0_i32_0 = arith.constant 0 : i32
    %c0_i32_1 = arith.constant 0 : i32
    return %c0_i32, %c0_i32_0 : i32, i32
  }
  func.func @transform_10(%arg0: i32) -> (i32, i32) {
    %c0_i32 = arith.constant 0 : i32
    %c0_i32_0 = arith.constant 0 : i32
    %c0_i32_1 = arith.constant 0 : i32
    return %c0_i32, %c0_i32_0 : i32, i32
  }
  func.func @transform_11(%arg0: i32) -> (i32, i32) {
    %c0_i32 = arith.constant 0 : i32
    %c0_i32_0 = arith.constant 0 : i32
    %c0_i32_1 = arith.constant 0 : i32
    return %c0_i32, %c0_i32_0 : i32, i32
  }
  func.func @transform_12(%arg0: i32) -> (i32, i32) {
    %c0_i32 = arith.constant 0 : i32
    %c0_i32_0 = arith.constant 0 : i32
    %c0_i32_1 = arith.constant 0 : i32
    return %c0_i32, %c0_i32_0 : i32, i32
  }
  func.func @transform_13(%arg0: i32) -> (i32, i32) {
    %c0_i32 = arith.constant 0 : i32
    %c0_i32_0 = arith.constant 0 : i32
    %c0_i32_1 = arith.constant 0 : i32
    return %c0_i32, %c0_i32_0 : i32, i32
  }
  func.func @transform_14(%arg0: i32) -> (i32, i32) {
    %c0_i32 = arith.constant 0 : i32
    %c0_i32_0 = arith.constant 0 : i32
    return %arg0, %c0_i32 : i32, i32
  }
}

</mosaic_0001>

<bundles_post_ra>
// kernel: agent_forward.1
= control target key start
LH: loop header
LB: loop body
LE: loop exit
PB: predicated region body
PF: predicated region fallthrough
CT: control target
= control target key end

     0   :  { %vm107_vm0 = vcmask 1045504   ;;  %vm94_vm1 = vcmask 97280   ;;  %v14062_v30 = vmov 0   ;;  %vm1414_vm10 = vcmask 1046528   ;;  %s19759_s2 = inlined_call_operand.vmem [shape: bf16[12,128], index: 2, kind: input, shape index: {}]   ;;  %s19760_s0 = inlined_call_operand.vmem [shape: f32[64,12], index: 0, kind: input, shape index: {}]   ;;  %s19761_s4 = inlined_call_operand.vmem [shape: bf16[128,256], index: 4, kind: input, shape index: {}]   ;;  %s19762_s6 = inlined_call_operand.vmem [shape: bf16[256,512], index: 6, kind: input, shape index: {}]   ;;  %s19763_s3 = inlined_call_operand.vmem [shape: f32[1,128], index: 3, kind: input, shape index: {}]   ;;  %s19764_s9 = inlined_call_operand.vmem [shape: bf16[13,1024], index: 9, kind: input, shape index: {}]   ;;  %s19765_s5 = inlined_call_operand.vmem [shape: f32[1,256], index: 5, kind: input, shape index: {}]   ;;  %s19766_s1 = inlined_call_operand.vmem [shape: f32[64,13], index: 1, kind: input, shape index: {}]   ;;  %s19767_s8 = inlined_call_operand.vmem [shape: bf16[512,1024], index: 8, kind: input, shape index: {}]   ;;  %s19768_s7 = inlined_call_operand.vmem [shape: f32[1,512], index: 7, kind: input, shape index: {}]   ;;  %s19769_s11 = inlined_call_operand.vmem [shape: bf16[256,1024], index: 11, kind: input, shape index: {}]   ;;  %s19770_s10 = inlined_call_operand.vmem [shape: f32[1,1024], index: 10, kind: input, shape index: {}]   ;;  %s19771_s12 = inlined_call_operand.vmem [shape: bf16[256,128], index: 12, kind: input, shape index: {}]   ;;  %s19772_s13 = inlined_call_operand.vmem [shape: f32[1,128], index: 13, kind: input, shape index: {}]   ;;  %s19773_s14 = inlined_call_operand.vmem [shape: f32[64,128], index: 14, kind: output, shape index: {}]  }
   0x1   :  { %v13669_v0 = vld [vmem:[%s19759_s2] sm:$0x3f]   ;;  %v57_v2 = vld [vmem:[%s19760_s0 + $0x8] sm:$0xff]  ;;  %v58_v3 = vld [vmem:[%s19760_s0 + $0x10] sm:$0xff] }
   0x2   :  { %v56_v1 = vld [vmem:[%s19760_s0] sm:$0xff]  ;;  %13665 = vmatprep.subr.msk.bf16.mxu1 %vm107_vm0, %v13669_v0  ;;  %v109_v4 = vsel %vm107_vm0, %v13669_v0, 0  ;;  %v59_v6 = vld [vmem:[%s19760_s0 + $0x18] sm:$0xff]  ;;  %v61_v8 = vld [vmem:[%s19760_s0 + $0x28] sm:$0xff] }
   0x3   :  { %v64_v5 = vpack.c.bf16 %v57_v2, %v56_v1  ;;  %v60_v7 = vld [vmem:[%s19760_s0 + $0x20] sm:$0xff]  ;;  %13526 = vmatpush3.bf16.msra.mxu1 %v109_v4  ;;  %v65_v9 = vpack.c.bf16 %v59_v6, %v58_v3  ;;  %v62_v13 = vld [vmem:[%s19760_s0 + $0x30] sm:$0xff]  ;;  %v63_v15 = vld [vmem:[%s19760_s0 + $0x38] sm:$0xff] }
   0x4   :  { %v66_v10 = vpack.c.bf16 %v61_v8, %v60_v7  ;;  %v13670_v11 = vld [vmem:[%s19761_s4] ss:$8 sps:$4 sm:$0xff]   ;;  %v13672_v12 = vld [vmem:[%s19761_s4 + $0x4] ss:$8 sps:$4 sm:$0xff]   ;;  %v13675_v14 = vld [vmem:[%s19761_s4 + $0x14] ss:$8 sps:$4 sm:$0xff]   ;;  %v67_v18 = vpack.c.bf16 %v63_v15, %v62_v13 }
   0x5   :  { %13527 = vmatprep.mubr.msk.bf16.mxu1 %vm94_vm1, %v64_v5  ;;  %312 = vmatprep.subr.bf16.mxu1 %v13672_v12  ;;  %v13673_v16 = vld [vmem:[%s19761_s4 + $0x10] ss:$8 sps:$4 sm:$0xff]   ;;  %v13678_v17 = vld [vmem:[%s19761_s4 + $0x24] ss:$8 sps:$4 sm:$0xff]   ;;  %v13676_v19 = vld [vmem:[%s19761_s4 + $0x20] ss:$8 sps:$4 sm:$0xff]  }
   0x6   :  { %13528 = vmatmul.mubr.msk.bf16.vlgmr.msra.gmra.mrb[0].mxu1 %vm94_vm1, %v65_v9  ;;  %v13681_v20 = vld [vmem:[%s19761_s4 + $0x34] ss:$8 sps:$4 sm:$0xff]   ;;  %v13679_v21 = vld [vmem:[%s19761_s4 + $0x30] ss:$8 sps:$4 sm:$0xff]   ;;  %v13684_v22 = vld [vmem:[%s19761_s4 + $0x44] ss:$8 sps:$4 sm:$0xff]  }
   0x7   :  { %13531 = vmatprep.mubr.msk.bf16.mxu1 %vm94_vm1, %v66_v10  ;;  %313 = vmatpush1.bf16.msra.mxu1 %v13670_v11  ;;  %v13682_v23 = vld [vmem:[%s19761_s4 + $0x40] ss:$8 sps:$4 sm:$0xff]   ;;  %v13687_v24 = vld [vmem:[%s19761_s4 + $0x54] ss:$8 sps:$4 sm:$0xff]   ;;  %v13685_v25 = vld [vmem:[%s19761_s4 + $0x50] ss:$8 sps:$4 sm:$0xff]  }
   0x8   :  { %314 = vmatprep.subr.bf16.mxu1 %v13675_v14  ;;  %v13690_v26 = vld [vmem:[%s19761_s4 + $0x64] ss:$8 sps:$4 sm:$0xff]   ;;  %v13688_v27 = vld [vmem:[%s19761_s4 + $0x60] ss:$8 sps:$4 sm:$0xff]   ;;  %v13693_v28 = vld [vmem:[%s19761_s4 + $0x74] ss:$8 sps:$4 sm:$0xff]  }
   0x9   :  { %v13691_v29 = vld [vmem:[%s19761_s4 + $0x70] ss:$8 sps:$4 sm:$0xff]   ;;  %v13694_v31 = vld [vmem:[%s19762_s6 + $0x4] ss:$16 sps:$4 sm:$0xff]   ;;  %v13698_v32 = vld [vmem:[%s19762_s6 + $0xc] ss:$16 sps:$4 sm:$0xff]  }
   0xa   :  { %847 = vmatprep.subr.bf16.mxu0 %v13694_v31  ;;  %v13699_v33 = vld [vmem:[%s19762_s6] ss:$16 sps:$4 sm:$0xff]   ;;  %v13700_v34 = vld [vmem:[%s19762_s6 + $0x24] ss:$16 sps:$4 sm:$0xff]   ;;  %v13696_v13 = vld [vmem:[%s19762_s6 + $0x8] ss:$16 sps:$4 sm:$0xff]  }
   0xb   :  { %315 = vmatpush1.bf16.msra.mxu1 %v13673_v16  ;;  %848 = vmatpush1.bf16.msra.mxu0 %v13699_v33  ;;  %v13705_v35 = vld [vmem:[%s19762_s6 + $0x20] ss:$16 sps:$4 sm:$0xff]   ;;  %v13706_v36 = vld [vmem:[%s19762_s6 + $0x44] ss:$16 sps:$4 sm:$0xff]  }
   0xc   :  { %316 = vmatprep.subr.bf16.mxu1 %v13678_v17  ;;  %849 = vmatprep.subr.bf16.mxu0 %v13700_v34  ;;  %v13711_v37 = vld [vmem:[%s19762_s6 + $0x40] ss:$16 sps:$4 sm:$0xff]   ;;  %v13712_v38 = vld [vmem:[%s19762_s6 + $0x64] ss:$16 sps:$4 sm:$0xff]   ;;  %v13704_v17 = vld [vmem:[%s19762_s6 + $0x2c] ss:$16 sps:$4 sm:$0xff]  }
   0xd   :  { %v13717_v39 = vld [vmem:[%s19762_s6 + $0x60] ss:$16 sps:$4 sm:$0xff]   ;;  %v13718_v40 = vld [vmem:[%s19762_s6 + $0x84] ss:$16 sps:$4 sm:$0xff]  }
   0xe   :  { %13532 = vmatmul.mubr.msk.bf16.gmra.mrb[4].mxu1 %vm94_vm1, %v67_v18  ;;  %v13723_v41 = vld [vmem:[%s19762_s6 + $0x80] ss:$16 sps:$4 sm:$0xff]   ;;  %v13724_v42 = vld [vmem:[%s19762_s6 + $0xa4] ss:$16 sps:$4 sm:$0xff]  }
   0xf   :  { %317 = vmatpush1.bf16.msra.mxu1 %v13676_v19  ;;  %344 = vmatprep.mubr.bf16.mxu1 %v14062_v30  ;;  %v13729_v43 = vld [vmem:[%s19762_s6 + $0xa0] ss:$16 sps:$4 sm:$0xff]   ;;  %v13730_v44 = vld [vmem:[%s19762_s6 + $0xc4] ss:$16 sps:$4 sm:$0xff]  }
  0x10   :  { %318 = vmatprep.subr.bf16.mxu1 %v13681_v20  ;;  %850 = vmatpush1.bf16.msra.mxu0 %v13705_v35  ;;  %v13735_v45 = vld [vmem:[%s19762_s6 + $0xc0] ss:$16 sps:$4 sm:$0xff]   ;;  %v13736_v46 = vld [vmem:[%s19762_s6 + $0xe4] ss:$16 sps:$4 sm:$0xff]   ;;  %v13708_v35 = vld [vmem:[%s19762_s6 + $0x48] ss:$16 sps:$4 sm:$0xff]  }
  0x11   :  { %851 = vmatprep.subr.bf16.mxu0 %v13706_v36  ;;  %v13741_v47 = vld [vmem:[%s19762_s6 + $0xe0] ss:$16 sps:$4 sm:$0xff]   ;;  %v13742_v48 = vld [vmem:[%s19762_s6 + $0x104] ss:$16 sps:$4 sm:$0xff]  }
  0x12   :  { %v13747_v49 = vld [vmem:[%s19762_s6 + $0x100] ss:$16 sps:$4 sm:$0xff]   ;;  %v13748_v50 = vld [vmem:[%s19762_s6 + $0x124] ss:$16 sps:$4 sm:$0xff]  }
  0x13   :  { %319 = vmatpush1.bf16.msra.mxu1 %v13679_v21  ;;  %v13753_v51 = vld [vmem:[%s19762_s6 + $0x120] ss:$16 sps:$4 sm:$0xff]   ;;  %v13754_v52 = vld [vmem:[%s19762_s6 + $0x144] ss:$16 sps:$4 sm:$0xff]  }
  0x14   :  { %320 = vmatprep.subr.bf16.mxu1 %v13684_v22  ;;  %852 = vmatpush1.bf16.msra.mxu0 %v13711_v37  ;;  %v13759_v53 = vld [vmem:[%s19762_s6 + $0x140] ss:$16 sps:$4 sm:$0xff]   ;;  %v13760_v54 = vld [vmem:[%s19762_s6 + $0x164] ss:$16 sps:$4 sm:$0xff]   ;;  %v13716_v37 = vld [vmem:[%s19762_s6 + $0x6c] ss:$16 sps:$4 sm:$0xff]  }
  0x15   :  { %853 = vmatprep.subr.bf16.mxu0 %v13712_v38  ;;  %v13765_v55 = vld [vmem:[%s19762_s6 + $0x160] ss:$16 sps:$4 sm:$0xff]   ;;  %v13766_v56 = vld [vmem:[%s19762_s6 + $0x184] ss:$16 sps:$4 sm:$0xff]   ;;  %v13714_v38 = vld [vmem:[%s19762_s6 + $0x68] ss:$16 sps:$4 sm:$0xff]  }
  0x16   :  { %v13771_v57 = vld [vmem:[%s19762_s6 + $0x180] ss:$16 sps:$4 sm:$0xff]  }
  0x17   :  { %321 = vmatpush1.bf16.msra.mxu1 %v13682_v23  ;;  %v12025_v58 = vld [vmem:[%s19763_s3] ss:$0 sm:$0xff] }
  0x18   :  { %322 = vmatprep.subr.bf16.mxu1 %v13687_v24  ;;  %854 = vmatpush1.bf16.msra.mxu0 %v13717_v39  ;;  %v13722_v39 = vld [vmem:[%s19762_s6 + $0x8c] ss:$16 sps:$4 sm:$0xff]  }
  0x19   :  { %855 = vmatprep.subr.bf16.mxu0 %v13718_v40  ;;  %v13720_v40 = vld [vmem:[%s19762_s6 + $0x88] ss:$16 sps:$4 sm:$0xff]  }
  0x1b   :  { %323 = vmatpush1.bf16.msra.mxu1 %v13685_v25  ;;  %v13702_v25 = vld [vmem:[%s19762_s6 + $0x28] ss:$16 sps:$4 sm:$0xff]  }
  0x1c   :  { %324 = vmatprep.subr.bf16.mxu1 %v13690_v26  ;;  %856 = vmatpush1.bf16.msra.mxu0 %v13723_v41  ;;  %v13728_v41 = vld [vmem:[%s19762_s6 + $0xac] ss:$16 sps:$4 sm:$0xff]  }
  0x1d   :  { %857 = vmatprep.subr.bf16.mxu0 %v13724_v42  ;;  %v13726_v42 = vld [vmem:[%s19762_s6 + $0xa8] ss:$16 sps:$4 sm:$0xff]  }
  0x1f   :  { %325 = vmatpush1.bf16.msra.mxu1 %v13688_v27 }
  0x20   :  { %326 = vmatprep.subr.bf16.mxu1 %v13693_v28  ;;  %858 = vmatpush1.bf16.msra.mxu0 %v13729_v43  ;;  %v13710_v28 = vld [vmem:[%s19762_s6 + $0x4c] ss:$16 sps:$4 sm:$0xff]  }
  0x21   :  { %859 = vmatprep.subr.bf16.mxu0 %v13730_v44  ;;  %v13734_v43 = vld [vmem:[%s19762_s6 + $0xcc] ss:$16 sps:$4 sm:$0xff]   ;;  %v13732_v44 = vld [vmem:[%s19762_s6 + $0xc8] ss:$16 sps:$4 sm:$0xff]  }
  0x23   :  { %327 = vmatpush1.bf16.msra.mxu1 %v13691_v29 }
  0x24   :  { %920 = vmatprep.subr.bf16.mxu1 %v13698_v32  ;;  %860 = vmatpush1.bf16.msra.mxu0 %v13735_v45  ;;  %v13740_v45 = vld [vmem:[%s19762_s6 + $0xec] ss:$16 sps:$4 sm:$0xff]  }
  0x25   :  { %861 = vmatprep.subr.bf16.mxu0 %v13736_v46  ;;  %v13738_v46 = vld [vmem:[%s19762_s6 + $0xe8] ss:$16 sps:$4 sm:$0xff]  }
  0x28   :  { %862 = vmatpush1.bf16.msra.mxu0 %v13741_v47  ;;  %v13746_v47 = vld [vmem:[%s19762_s6 + $0x10c] ss:$16 sps:$4 sm:$0xff]  }
  0x29   :  { %863 = vmatprep.subr.bf16.mxu0 %v13742_v48  ;;  %v13744_v48 = vld [vmem:[%s19762_s6 + $0x108] ss:$16 sps:$4 sm:$0xff]  }
  0x2c   :  { %864 = vmatpush1.bf16.msra.mxu0 %v13747_v49  ;;  %v13752_v49 = vld [vmem:[%s19762_s6 + $0x12c] ss:$16 sps:$4 sm:$0xff]  }
  0x2d   :  { %865 = vmatprep.subr.bf16.mxu0 %v13748_v50  ;;  %v13750_v50 = vld [vmem:[%s19762_s6 + $0x128] ss:$16 sps:$4 sm:$0xff]  }
  0x30   :  { %866 = vmatpush1.bf16.msra.mxu0 %v13753_v51  ;;  %v13758_v51 = vld [vmem:[%s19762_s6 + $0x14c] ss:$16 sps:$4 sm:$0xff]  }
  0x31   :  { %867 = vmatprep.subr.bf16.mxu0 %v13754_v52  ;;  %v13756_v52 = vld [vmem:[%s19762_s6 + $0x148] ss:$16 sps:$4 sm:$0xff]  }
  0x34   :  { %868 = vmatpush1.bf16.msra.mxu0 %v13759_v53  ;;  %v13764_v53 = vld [vmem:[%s19762_s6 + $0x16c] ss:$16 sps:$4 sm:$0xff]  }
  0x35   :  { %869 = vmatprep.subr.bf16.mxu0 %v13760_v54  ;;  %v13762_v54 = vld [vmem:[%s19762_s6 + $0x168] ss:$16 sps:$4 sm:$0xff]  }
  0x38   :  { %870 = vmatpush1.bf16.msra.mxu0 %v13765_v55  ;;  %v13770_v55 = vld [vmem:[%s19762_s6 + $0x18c] ss:$16 sps:$4 sm:$0xff]  }
  0x39   :  { %871 = vmatprep.subr.bf16.mxu0 %v13766_v56  ;;  %v13768_v56 = vld [vmem:[%s19762_s6 + $0x188] ss:$16 sps:$4 sm:$0xff]  }
  0x3c   :  { %872 = vmatpush1.bf16.msra.mxu0 %v13771_v57  ;;  %v13772_v57 = vld [vmem:[%s19762_s6 + $0x1a4] ss:$16 sps:$4 sm:$0xff]  }
  0x3d   :  { %873 = vmatprep.subr.bf16.mxu0 %v13772_v57 }
  0xd9   :  { %v13529_v59 = vpop.f32.mrb[0].mxu1 }
  0xda   :  { %v154_v60 = vadd.f32 %v13529_v59, %v12025_v58  ;;  %v145_v61 = vpop.f32.mrb[1].mxu1  ;;  %v13774_v59 = vld [vmem:[%s19762_s6 + $0x1a8] ss:$16 sps:$4 sm:$0xff]  }
  0xdb   :  { %v146_v62 = vadd.f32 %v12025_v58, %v145_v61  ;;  %v13530_v63 = vpop.f32.mrb[2].mxu1  ;;  %v13778_v61 = vld [vmem:[%s19762_s6 + $0x1c4] ss:$16 sps:$4 sm:$0xff]  }
  0xdc   :  { %v186_v0 = vmul.f32 0.01, %v154_v60  ;;  %v157_v1 = vadd.f32 %v13530_v63, %v12025_v58  ;;  %v148_v2 = vpop.f32.mrb[3].mxu1  ;;  %vm178_vm2 = vcmp.gt.f32.partialorder %v154_v60, 0.0  ;;  %v13780_v63 = vld [vmem:[%s19762_s6 + $0x1c8] ss:$16 sps:$4 sm:$0xff]  }
  0xdd   :  { %v184_v3 = vmul.f32 0.01, %v146_v62  ;;  %v149_v4 = vadd.f32 %v12025_v58, %v148_v2  ;;  %vm176_vm3 = vcmp.gt.f32.partialorder %v146_v62, 0.0  ;;  %v13788_v2 = vld [vmem:[%s19762_s6 + $0x1ec] ss:$16 sps:$4 sm:$0xff]  }
  0xde   :  { %vm179_vm4 = vcmp.gt.f32.partialorder %v157_v1, 0.0  ;;  %v187_v5 = vmul.f32 0.01, %v157_v1  ;;  %v194_v7 = vsel %vm178_vm2, %v154_v60, %v186_v0  ;;  %v13777_v60 = vld [vmem:[%s19762_s6 + $0x1a0] ss:$16 sps:$4 sm:$0xff]  }
  0xdf   :  { %vm177_vm5 = vcmp.gt.f32.partialorder %v149_v4, 0.0  ;;  %v185_v6 = vmul.f32 0.01, %v149_v4  ;;  %v192_v9 = vsel %vm176_vm3, %v146_v62, %v184_v3  ;;  %874 = vmatpush1.bf16.msra.mxu0 %v13777_v60  ;;  %v13782_v62 = vld [vmem:[%s19762_s6 + $0x1cc] ss:$16 sps:$4 sm:$0xff]  }
  0xe0   :  { %v195_v8 = vsel %vm179_vm4, %v157_v1, %v187_v5  ;;  %v13783_v0 = vld [vmem:[%s19762_s6 + $0x1c0] ss:$16 sps:$4 sm:$0xff]   ;;  %875 = vmatprep.subr.bf16.mxu0 %v13778_v61  ;;  %v13784_v1 = vld [vmem:[%s19762_s6 + $0x1e4] ss:$16 sps:$4 sm:$0xff]   ;;  %v13786_v3 = vld [vmem:[%s19762_s6 + $0x1e8] ss:$16 sps:$4 sm:$0xff]  }
  0xe1   :  { %v193_v10 = vsel %vm177_vm5, %v149_v4, %v185_v6  ;;  %v13533_v11 = vpop.f32.mrb[4].mxu1  ;;  %v201_v12 = vpack.c.bf16 %v195_v8, %v194_v7  ;;  %v13789_v4 = vld [vmem:[%s19762_s6 + $0x1e0] ss:$16 sps:$4 sm:$0xff]   ;;  %v14063_v5 = vmov 65535  }
  0xe2   :  { %v200_v14 = vpack.c.bf16 %v193_v10, %v192_v9  ;;  %v170_v15 = vadd.f32 %v13533_v11, %v12025_v58  ;;  %v161_v16 = vpop.f32.mrb[5].mxu1  ;;  %v1415_v6 = vsel %vm107_vm0, 4294967295, %v14063_v5  ;;  %v1361_v8 = vld [vmem:[%s19764_s9] sm:$0xff] }
  0xe3   :  { %v162_v18 = vadd.f32 %v12025_v58, %v161_v16  ;;  %v13534_v19 = vpop.f32.mrb[6].mxu1  ;;  %876 = vmatpush1.bf16.msra.mxu0 %v13783_v0  ;;  %v1416_v7 = vsel %vm1414_vm10, %v1415_v6, 0  ;;  %v1365_v9 = vld [vmem:[%s19764_s9 + $0x20] sm:$0x77] }
  0xe4   :  { %345 = vmatmul.mubr.bf16.vlgmr.msra.gmra.mrb[8].mxu1 %v200_v14  ;;  %vm182_vm6 = vcmp.gt.f32.partialorder %v170_v15, 0.0  ;;  %v190_v20 = vmul.f32 0.01, %v170_v15  ;;  %v173_v21 = vadd.f32 %v13534_v19, %v12025_v58  ;;  %v164_v22 = vpop.f32.mrb[7].mxu1  ;;  %877 = vmatprep.subr.bf16.mxu0 %v13784_v1  ;;  %v12111_v10 = vcombine.low %v1361_v8, %v1365_v9  ;;  %v1362_v14 = vld [vmem:[%s19764_s9 + $0x8] sm:$0xff] }
  0xe5   :  { %vm180_vm7 = vcmp.gt.f32.partialorder %v162_v18, 0.0  ;;  %v188_v23 = vmul.f32 0.01, %v162_v18  ;;  %354 = vmatprep.mubr.bf16.mxu1 %v14062_v30  ;;  %v165_v24 = vadd.f32 %v12025_v58, %v164_v22  ;;  %921 = vmatpush1.bf16.msra.mxu1 %v13696_v13  ;;  %v13776_v58 = vld [vmem:[%s19762_s6 + $0x1ac] ss:$16 sps:$4 sm:$0xff]   ;;  %v12112_v11 = vcombine.high %v1361_v8, %v1365_v9 }
  0xe6   :  { %vm183_vm8 = vcmp.gt.f32.partialorder %v173_v21, 0.0  ;;  %v191_v26 = vmul.f32 0.01, %v173_v21  ;;  %v198_v27 = vsel %vm182_vm6, %v170_v15, %v190_v20  ;;  %922 = vmatprep.subr.bf16.mxu1 %v13704_v17  ;;  %v14427_v13 = vand.u32 %v12111_v10, %v1416_v7  ;;  %v1366_v15 = vld [vmem:[%s19764_s9 + $0x28] sm:$0x77] }
  0xe7   :  { %vm181_vm9 = vcmp.gt.f32.partialorder %v165_v24, 0.0  ;;  %v189_v29 = vmul.f32 0.01, %v165_v24  ;;  %v196_v31 = vsel %vm180_vm7, %v162_v18, %v188_v23  ;;  %878 = vmatpush1.bf16.msra.mxu0 %v13789_v4  ;;  %v12113_v16 = vcombine.low %v1362_v14, %v1366_v15  ;;  %v1364_v18 = vld [vmem:[%s19764_s9 + $0x18] sm:$0xff] }
  0xe8   :  { %v199_v32 = vsel %vm183_vm8, %v173_v21, %v191_v26  ;;  %v12114_v17 = vcombine.high %v1362_v14, %v1366_v15  ;;  %v1368_v19 = vld [vmem:[%s19764_s9 + $0x38] sm:$0x77]  ;;  %v1363_v26 = vld [vmem:[%s19764_s9 + $0x10] sm:$0xff] }
  0xe9   :  { %v197_v33 = vsel %vm181_vm9, %v165_v24, %v189_v29  ;;  %v203_v34 = vpack.c.bf16 %v199_v32, %v198_v27  ;;  %923 = vmatpush1.bf16.msra.mxu1 %v13702_v25  ;;  %v12118_v20 = vcombine.high %v1364_v18, %v1368_v19  ;;  %v14441_v22 = vand.u32 %v12113_v16, %v1416_v7  ;;  %v1367_v27 = vld [vmem:[%s19764_s9 + $0x30] sm:$0x77] }
  0xea   :  { %v202_v36 = vpack.c.bf16 %v197_v33, %v196_v31  ;;  %924 = vmatprep.subr.bf16.mxu1 %v13710_v28  ;;  %v1427_v21 = vand.u32 %v12114_v17, %v1416_v7  ;;  %v12117_v23 = vcombine.low %v1364_v18, %v1368_v19  ;;  %v12116_v28 = vcombine.high %v1363_v26, %v1367_v27 }
  0xeb   :  { %v14443_v24 = vand.u32 %v12118_v20, %v1416_v7  ;;  %v12115_v29 = vcombine.low %v1363_v26, %v1367_v27  ;;  %v222_v33 = vlaneseq }
  0xec   :  { %355 = vmatmul.mubr.bf16.gmra.mrb[12].mxu1 %v201_v12  ;;  %v1421_v12 = vand.u32 %v12112_v11, %v1416_v7  ;;  %v14445_v25 = vand.u32 %v12117_v23, %v1416_v7  ;;  %v1433_v31 = vand.u32 %v12116_v28, %v1416_v7 }
  0xed   :  { %364 = vmatprep.mubr.bf16.mxu1 %v14062_v30  ;;  %925 = vmatpush1.bf16.msra.mxu1 %v13708_v35  ;;  %v14453_v32 = vand.u32 %v12115_v29, %v1416_v7 }
  0xee   :  { %926 = vmatprep.subr.bf16.mxu1 %v13716_v37  ;;  %1441 = vmatprep.subr.bf16.mxu0 %v1421_v12 }
  0xf1   :  { %927 = vmatpush1.bf16.msra.mxu1 %v13714_v38 }
  0xf2   :  { %928 = vmatprep.subr.bf16.mxu1 %v13722_v39 }
  0xf4   :  { %365 = vmatmul.mubr.bf16.gmra.mrb[16].mxu1 %v202_v36  ;;  %v220_v36 = vld [vmem:[%s19765_s5] sm:$0x3] }
  0xf5   :  { %374 = vmatprep.mubr.bf16.mxu1 %v14062_v30  ;;  %929 = vmatpush1.bf16.msra.mxu1 %v13720_v40 }
  0xf6   :  { %930 = vmatprep.subr.bf16.mxu1 %v13728_v41 }
  0xf9   :  { %931 = vmatpush1.bf16.msra.mxu1 %v13726_v42 }
  0xfa   :  { %932 = vmatprep.subr.bf16.mxu1 %v13734_v43 }
  0xfc   :  { %375 = vmatmul.mubr.bf16.gmra.mrb[20].mxu1 %v203_v34  ;;  %v14455_v34 = vshrl.u32 %v222_v33, 7 }
  0xfd   :  { %933 = vmatpush1.bf16.msra.mxu1 %v13732_v44 }
  0xfe   :  { %934 = vmatprep.subr.bf16.mxu1 %v13740_v45  ;;  %v14458_v35 = vsub.s32 0, %v14455_v34  ;;  %v14464_v37 = vsub.s32 1, %v14455_v34 }
 0x100   :  { %20012 = vst [vmem:[#allocation6_spill] sm:$0xff] %v14464_v37  ;;  %v14467_v38 = vrot.slane %v220_v36, %v14458_v35  ;;  %v14470_v39 = vrot.slane %v220_v36, %v14464_v37 }
 0x101   :  { %935 = vmatpush1.bf16.msra.mxu1 %v13738_v46 }
 0x102   :  { %936 = vmatprep.subr.bf16.mxu1 %v13746_v47 }
 0x105   :  { %937 = vmatpush1.bf16.msra.mxu1 %v13744_v48 }
 0x106   :  { %938 = vmatprep.subr.bf16.mxu1 %v13752_v49 }
 0x109   :  { %939 = vmatpush1.bf16.msra.mxu1 %v13750_v50 }
 0x10a   :  { %940 = vmatprep.subr.bf16.mxu1 %v13758_v51 }
 0x10d   :  { %941 = vmatpush1.bf16.msra.mxu1 %v13756_v52 }
 0x10e   :  { %942 = vmatprep.subr.bf16.mxu1 %v13764_v53 }
 0x111   :  { %943 = vmatpush1.bf16.msra.mxu1 %v13762_v54 }
 0x112   :  { %944 = vmatprep.subr.bf16.mxu1 %v13770_v55 }
 0x115   :  { %945 = vmatpush1.bf16.msra.mxu1 %v13768_v56 }
 0x116   :  { %946 = vmatprep.subr.bf16.mxu1 %v13776_v58 }
 0x119   :  { %947 = vmatpush1.bf16.msra.mxu1 %v13774_v59 }
 0x11a   :  { %948 = vmatprep.subr.bf16.mxu1 %v13782_v62 }
 0x11d   :  { %949 = vmatpush1.bf16.msra.mxu1 %v13780_v63 }
 0x11e   :  { %950 = vmatprep.subr.bf16.mxu1 %v13788_v2 }
 0x121   :  { %951 = vmatpush1.bf16.msra.mxu1 %v13786_v3 }
 0x122   :  { %13535 = vmatprep.subr.bf16.mxu1 %v1421_v12 }
 0x1b7   :  { %v346_v40 = vpop.f32.mrb[8].mxu1 }
 0x1b8   :  { %v347_v41 = vadd.f32 %v346_v40, %v14467_v38  ;;  %v348_v42 = vpop.f32.mrb[9].mxu1 }
 0x1b9   :  { %v349_v43 = vadd.f32 %v348_v42, %v14470_v39  ;;  %v350_v44 = vpop.f32.mrb[10].mxu1 }
 0x1ba   :  { %v401_v45 = vmul.f32 0.01, %v347_v41  ;;  %v351_v46 = vadd.f32 %v350_v44, %v14467_v38  ;;  %v352_v47 = vpop.f32.mrb[11].mxu1  ;;  %vm385_vm11 = vcmp.gt.f32.partialorder %v347_v41, 0.0 }
 0x1bb   :  { %v402_v48 = vmul.f32 0.01, %v349_v43  ;;  %v353_v49 = vadd.f32 %v352_v47, %v14470_v39  ;;  %vm386_vm13 = vcmp.gt.f32.partialorder %v349_v43, 0.0 }
 0x1bc   :  { %vm387_vm12 = vcmp.gt.f32.partialorder %v351_v46, 0.0  ;;  %v403_v50 = vmul.f32 0.01, %v351_v46  ;;  %v417_v52 = vsel %vm385_vm11, %v347_v41, %v401_v45  ;;  %vm1401_vm11 = vcmask 105472  }
 0x1bd   :  { %v404_v51 = vmul.f32 0.01, %v353_v49  ;;  %vm388_vm14 = vcmp.gt.f32.partialorder %v353_v49, 0.0  ;;  %v418_v55 = vsel %vm386_vm13, %v349_v43, %v402_v48 }
 0x1be   :  { %v419_v53 = vsel %vm387_vm12, %v351_v46, %v403_v50 }
 0x1bf   :  { %v356_v54 = vpop.f32.mrb[12].mxu1  ;;  %v420_v56 = vsel %vm388_vm14, %v353_v49, %v404_v51  ;;  %v433_v57 = vpack.c.bf16 %v419_v53, %v417_v52 }
 0x1c0   :  { %v357_v58 = vadd.f32 %v356_v54, %v14467_v38  ;;  %v358_v59 = vpop.f32.mrb[13].mxu1  ;;  %v434_v60 = vpack.c.bf16 %v420_v56, %v418_v55 }
 0x1c1   :  { %v359_v61 = vadd.f32 %v358_v59, %v14470_v39  ;;  %v360_v62 = vpop.f32.mrb[14].mxu1  ;;  %v69_v59 = vld [vmem:[%s19766_s1 + $0x8] sm:$0xff] }
 0x1c2   :  { %v405_v63 = vmul.f32 0.01, %v357_v58  ;;  %v361_v0 = vadd.f32 %v360_v62, %v14467_v38  ;;  %v362_v1 = vpop.f32.mrb[15].mxu1  ;;  %879 = vmatprep.mubr.bf16.mxu0 %v434_v60  ;;  %952 = vmatprep.mubr.bf16.mxu1 %v434_v60  ;;  %vm389_vm15 = vcmp.gt.f32.partialorder %v357_v58, 0.0  ;;  %v1109_v62 = vld [vmem:[%s19767_s8 + $0x20] sm:$0xff] }
 0x1c3   :  { %v406_v2 = vmul.f32 0.01, %v359_v61  ;;  %v363_v3 = vadd.f32 %v362_v1, %v14470_v39  ;;  %880 = vmatmul.mubr.bf16.vlgmr.msra.gmra.mrb[0].mxu0 %v433_v57  ;;  %953 = vmatmul.mubr.bf16.vlgmr.msra.gmra.mrb[24].mxu1 %v433_v57  ;;  %vm390_vm0 = vcmp.gt.f32.partialorder %v359_v61, 0.0  ;;  %v70_v1 = vld [vmem:[%s19766_s1 + $0x10] sm:$0xff] }
 0x1c4   :  { %vm391_vm1 = vcmp.gt.f32.partialorder %v361_v0, 0.0  ;;  %v407_v4 = vmul.f32 0.01, %v361_v0  ;;  %13536 = vmatpush1.bf16.msra.mxu1 %v14427_v13  ;;  %1442 = vmatpush1.bf16.msra.mxu0 %v14427_v13  ;;  %v421_v6 = vsel %vm389_vm15, %v357_v58, %v405_v63  ;;  %v68_v58 = vld [vmem:[%s19766_s1] sm:$0xff] }
 0x1c5   :  { %vm392_vm2 = vcmp.gt.f32.partialorder %v363_v3, 0.0  ;;  %v408_v5 = vmul.f32 0.01, %v363_v3  ;;  %1514 = vmatprep.subr.bf16.mxu1 %v1427_v21  ;;  %1587 = vmatprep.subr.bf16.mxu0 %v1433_v31  ;;  %v422_v9 = vsel %vm390_vm0, %v359_v61, %v406_v2  ;;  %v1105_v61 = vld [vmem:[%s19767_s8] sm:$0xff]  ;;  %v14512_v63 = vpack.c.bf16 %v69_v59, %v68_v58  ;;  %v71_v2 = vld [vmem:[%s19766_s1 + $0x18] sm:$0xff] }
 0x1c6   :  { %v423_v7 = vsel %vm391_vm1, %v361_v0, %v407_v4  ;;  %v12136_v0 = vcombine.high %v1105_v61, %v1109_v62  ;;  %v72_v4 = vld [vmem:[%s19766_s1 + $0x20] sm:$0xff] }
 0x1c7   :  { %v366_v8 = vpop.f32.mrb[16].mxu1  ;;  %v424_v10 = vsel %vm392_vm2, %v363_v3, %v408_v5  ;;  %v435_v11 = vpack.c.bf16 %v423_v7, %v421_v6  ;;  %v14537_v3 = vpack.c.bf16 %v71_v2, %v70_v1  ;;  %v73_v5 = vld [vmem:[%s19766_s1 + $0x28] sm:$0xff]  ;;  %v1117_v7 = vld [vmem:[%s19767_s8 + $0x60] sm:$0xff] }
 0x1c8   :  { %v367_v12 = vadd.f32 %v366_v8, %v14467_v38  ;;  %v368_v14 = vpop.f32.mrb[17].mxu1  ;;  %v436_v15 = vpack.c.bf16 %v424_v10, %v422_v9  ;;  %v14553_v6 = vpack.c.bf16 %v73_v5, %v72_v4  ;;  %v12135_v8 = vcombine.low %v1105_v61, %v1109_v62  ;;  %v1121_v10 = vld [vmem:[%s19767_s8 + $0x80] sm:$0xff]  ;;  %v1146_v62 = vld [vmem:[%s19767_s8 + $0x148] sm:$0xff] }
 0x1c9   :  { %v369_v16 = vadd.f32 %v368_v14, %v14470_v39  ;;  %v370_v17 = vpop.f32.mrb[18].mxu1  ;;  %v1177_v1 = vld [vmem:[%s19767_s8 + $0x240] sm:$0xff]  ;;  %v1158_v5 = vld [vmem:[%s19767_s8 + $0x1a8] sm:$0xff] }
 0x1ca   :  { %vm393_vm3 = vcmp.gt.f32.partialorder %v367_v12, 0.0  ;;  %v409_v18 = vmul.f32 0.01, %v367_v12  ;;  %v371_v13 = vadd.f32 %v370_v17, %v14467_v38  ;;  %v372_v19 = vpop.f32.mrb[19].mxu1  ;;  %889 = vmatprep.mubr.bf16.mxu0 %v436_v15  ;;  %962 = vmatprep.mubr.bf16.mxu1 %v436_v15  ;;  %v1129_v15 = vld [vmem:[%s19767_s8 + $0xc0] sm:$0xff] }
 0x1cb   :  { %vm394_vm4 = vcmp.gt.f32.partialorder %v369_v16, 0.0  ;;  %v410_v20 = vmul.f32 0.01, %v369_v16  ;;  %v373_v21 = vadd.f32 %v372_v19, %v14470_v39  ;;  %890 = vmatmul.mubr.bf16.gmra.mrb[4].mxu0 %v435_v11  ;;  %963 = vmatmul.mubr.bf16.gmra.mrb[28].mxu1 %v435_v11  ;;  %v1125_v11 = vld [vmem:[%s19767_s8 + $0xa0] sm:$0xff] }
 0x1cc   :  { %vm395_vm5 = vcmp.gt.f32.partialorder %v371_v13, 0.0  ;;  %v411_v23 = vmul.f32 0.01, %v371_v13  ;;  %v425_v26 = vsel %vm393_vm3, %v367_v12, %v409_v18  ;;  %v12152_v14 = vcombine.high %v1121_v10, %v1125_v11  ;;  %v1141_v19 = vld [vmem:[%s19767_s8 + $0x120] sm:$0xff] }
 0x1cd   :  { %vm396_vm6 = vcmp.gt.f32.partialorder %v373_v21, 0.0  ;;  %v412_v27 = vmul.f32 0.01, %v373_v21  ;;  %v426_v28 = vsel %vm394_vm4, %v369_v16, %v410_v20  ;;  %v1133_v16 = vld [vmem:[%s19767_s8 + $0xe0] sm:$0xff]  ;;  %v12151_v17 = vcombine.low %v1121_v10, %v1125_v11  ;;  %v1162_v11 = vld [vmem:[%s19767_s8 + $0x1c8] sm:$0xff] }
 0x1ce   :  { %v427_v29 = vsel %vm395_vm5, %v371_v13, %v411_v23  ;;  %v12160_v18 = vcombine.high %v1129_v15, %v1133_v16  ;;  %v1137_v13 = vld [vmem:[%s19767_s8 + $0x100] sm:$0xff]  ;;  %v12159_v20 = vcombine.low %v1129_v15, %v1133_v16 }
 0x1cf   :  { %v376_v31 = vpop.f32.mrb[20].mxu1  ;;  %v428_v33 = vsel %vm396_vm6, %v373_v21, %v412_v27  ;;  %v437_v36 = vpack.c.bf16 %v427_v29, %v425_v26  ;;  %v1114_v21 = vld [vmem:[%s19767_s8 + $0x48] sm:$0xff]  ;;  %v12168_v23 = vcombine.high %v1137_v13, %v1141_v19  ;;  %v1145_v27 = vld [vmem:[%s19767_s8 + $0x140] sm:$0xff] }
 0x1d0   :  { %v377_v40 = vadd.f32 %v376_v31, %v14467_v38  ;;  %v378_v41 = vpop.f32.mrb[21].mxu1  ;;  %v438_v42 = vpack.c.bf16 %v428_v33, %v426_v28  ;;  %v1118_v26 = vld [vmem:[%s19767_s8 + $0x68] sm:$0xff]  ;;  %v1149_v28 = vld [vmem:[%s19767_s8 + $0x160] sm:$0xff]  ;;  %v12167_v31 = vcombine.low %v1137_v13, %v1141_v19 }
 0x1d1   :  { %v379_v43 = vadd.f32 %v378_v41, %v14470_v39  ;;  %v380_v44 = vpop.f32.mrb[22].mxu1  ;;  %v12146_v33 = vcombine.high %v1114_v21, %v1118_v26  ;;  %v1126_v41 = vld [vmem:[%s19767_s8 + $0xa8] sm:$0xff]  ;;  %v1181_v2 = vld [vmem:[%s19767_s8 + $0x260] sm:$0xff] }
 0x1d2   :  { %vm397_vm7 = vcmp.gt.f32.partialorder %v377_v40, 0.0  ;;  %v413_v45 = vmul.f32 0.01, %v377_v40  ;;  %v381_v46 = vadd.f32 %v380_v44, %v14467_v38  ;;  %v382_v47 = vpop.f32.mrb[23].mxu1  ;;  %899 = vmatprep.mubr.bf16.mxu0 %v438_v42  ;;  %972 = vmatprep.mubr.bf16.mxu1 %v438_v42  ;;  %v74_v38 = vld [vmem:[%s19766_s1 + $0x30] sm:$0xff]  ;;  %v1153_v42 = vld [vmem:[%s19767_s8 + $0x180] sm:$0xff]  ;;  %v12145_v44 = vcombine.low %v1114_v21, %v1118_v26 }
 0x1d3   :  { %vm398_vm8 = vcmp.gt.f32.partialorder %v379_v43, 0.0  ;;  %v414_v48 = vmul.f32 0.01, %v379_v43  ;;  %v383_v49 = vadd.f32 %v382_v47, %v14470_v39  ;;  %900 = vmatmul.mubr.bf16.gmra.mrb[8].mxu0 %v437_v36  ;;  %973 = vmatmul.mubr.bf16.gmra.mrb[32].mxu1 %v437_v36  ;;  %v75_v39 = vld [vmem:[%s19766_s1 + $0x38] sm:$0xff]  ;;  %v1122_v36 = vld [vmem:[%s19767_s8 + $0x88] sm:$0xff]  ;;  %v12208_v4 = vcombine.high %v1177_v1, %v1181_v2  ;;  %v1197_v15 = vld [vmem:[%s19767_s8 + $0x2e0] sm:$0xff] }
 0x1d4   :  { %vm399_vm9 = vcmp.gt.f32.partialorder %v381_v46, 0.0  ;;  %v415_v50 = vmul.f32 0.01, %v381_v46  ;;  %v429_v51 = vsel %vm397_vm7, %v377_v40, %v413_v45  ;;  %v14504_v60 = vpack.c.bf16 %v75_v39, %v74_v38  ;;  %v1130_v47 = vld [vmem:[%s19767_s8 + $0xc8] sm:$0xff]  ;;  %v1169_v38 = vld [vmem:[%s19767_s8 + $0x200] sm:$0xff] }
 0x1d5   :  { %vm400_vm10 = vcmp.gt.f32.partialorder %v383_v49, 0.0  ;;  %v416_v52 = vmul.f32 0.01, %v383_v49  ;;  %v430_v53 = vsel %vm398_vm8, %v379_v43, %v414_v48  ;;  %v12176_v40 = vcombine.high %v1145_v27, %v1149_v28  ;;  %v1157_v43 = vld [vmem:[%s19767_s8 + $0x1a0] sm:$0xff]  ;;  %v1170_v13 = vld [vmem:[%s19767_s8 + $0x208] sm:$0xff] }
 0x1d6   :  { %v431_v54 = vsel %vm399_vm9, %v381_v46, %v415_v50  ;;  %v12175_v45 = vcombine.low %v1145_v27, %v1149_v28  ;;  %v12154_v46 = vcombine.high %v1122_v36, %v1126_v41  ;;  %v12184_v48 = vcombine.high %v1153_v42, %v1157_v43  ;;  %v1161_v50 = vld [vmem:[%s19767_s8 + $0x1c0] sm:$0xff] }
 0x1d7   :  { %v432_v55 = vsel %vm400_vm10, %v383_v49, %v416_v52  ;;  %v439_v56 = vpack.c.bf16 %v431_v54, %v429_v51  ;;  %v1134_v49 = vld [vmem:[%s19767_s8 + $0xe8] sm:$0xff]  ;;  %v1165_v51 = vld [vmem:[%s19767_s8 + $0x1e0] sm:$0xff]  ;;  %v12153_v52 = vcombine.low %v1122_v36, %v1126_v41 }
 0x1d8   :  { %v440_v57 = vpack.c.bf16 %v432_v55, %v430_v53  ;;  %v12183_v53 = vcombine.low %v1153_v42, %v1157_v43  ;;  %v12162_v54 = vcombine.high %v1130_v47, %v1134_v49  ;;  %v1138_v55 = vld [vmem:[%s19767_s8 + $0x108] sm:$0xff]  ;;  %v1173_v39 = vld [vmem:[%s19767_s8 + $0x220] sm:$0xff]  ;;  %v12161_v58 = vcombine.low %v1130_v47, %v1134_v49 }
 0x1d9   :  { %v12191_v59 = vcombine.low %v1161_v50, %v1165_v51  ;;  %v1205_v21 = vld [vmem:[%s19767_s8 + $0x320] sm:$0xff]  ;;  %v14731_v36 = vld [vmem:[%s19767_s8 + $0x428] sm:$0xff] }
 0x1da   :  { %909 = vmatprep.mubr.bf16.mxu0 %v440_v57  ;;  %982 = vmatprep.mubr.bf16.mxu1 %v440_v57  ;;  %v1142_v57 = vld [vmem:[%s19767_s8 + $0x128] sm:$0xff]  ;;  %v14713_v27 = vld [vmem:[%s19767_s8 + $0x400] sm:$0xff] }
 0x1db   :  { %910 = vmatmul.mubr.bf16.gmra.mrb[12].mxu0 %v439_v56  ;;  %983 = vmatmul.mubr.bf16.gmra.mrb[36].mxu1 %v439_v56  ;;  %v12192_v56 = vcombine.high %v1161_v50, %v1165_v51  ;;  %v12170_v61 = vcombine.high %v1138_v55, %v1142_v57  ;;  %v14718_v28 = vld [vmem:[%s19767_s8 + $0x420] sm:$0xff]  ;;  %v1190_v50 = vld [vmem:[%s19767_s8 + $0x2a8] sm:$0xff] }
 0x1dc   :  { %1503 = vmatprep.mubr.bf16.mxu1 %v14062_v30  ;;  %1473 = vmatprep.mubr.bf16.mxu0 %v14062_v30  ;;  %v1209_v41 = vld [vmem:[%s19767_s8 + $0x340] sm:$0xff] }
 0x1dd   :  { %v1213_v42 = vld [vmem:[%s19767_s8 + $0x360] sm:$0xff] }
 0x1de   :  { %v12240_v49 = vcombine.high %v1209_v41, %v1213_v42  ;;  %v1217_v51 = vld [vmem:[%s19767_s8 + $0x380] sm:$0xff] }
 0x1e3   :  { %12122 = vmatmul.mubr.msk.bf16.vlgmr.msra.gmra.mrb[40].mxu1 %vm1401_vm11, %v14504_v60  ;;  %12119 = vmatmul.mubr.msk.bf16.vlgmr.msra.gmra.mrb[16].mxu0 %vm1401_vm11, %v14512_v63 }
 0x1e4   :  { %1515 = vmatpush1.bf16.msra.mxu1 %v14441_v22  ;;  %1546 = vmatprep.mubr.bf16.mxu1 %v14062_v30  ;;  %v14532_v22 = vld [vmem:[%s19767_s8 + $0x8] sm:$0xff] }
 0x1e5   :  { %1660 = vmatprep.subr.bf16.mxu1 %v14443_v24  ;;  %1588 = vmatpush1.bf16.msra.mxu0 %v14453_v32  ;;  %v1110_v24 = vld [vmem:[%s19767_s8 + $0x28] sm:$0xff] }
 0x1e6   :  { %1483 = vmatprep.mubr.bf16.mxu0 %v14062_v30  ;;  %3013 = vmatprep.subr.bf16.mxu0 %v12136_v0  ;;  %v12138_v32 = vcombine.high %v14532_v22, %v1110_v24  ;;  %v12137_v29 = vcombine.low %v14532_v22, %v1110_v24  ;;  %v1150_v0 = vld [vmem:[%s19767_s8 + $0x168] sm:$0xff]  ;;  %v12169_v22 = vcombine.low %v1138_v55, %v1142_v57 }
 0x1e7   :  { %v12199_v24 = vcombine.low %v1169_v38, %v1173_v39 }
 0x1eb   :  { %12123 = vmatmul.mubr.msk.bf16.vlgmr.msra.gmra.mrb[44].mxu1 %vm1401_vm11, %v14512_v63  ;;  %12120 = vmatmul.mubr.msk.bf16.gmra.mrb[20].mxu0 %vm1401_vm11, %v14537_v3 }
 0x1ec   :  { %1661 = vmatpush1.bf16.msra.mxu1 %v14445_v25  ;;  %1556 = vmatprep.mubr.bf16.mxu1 %v14062_v30  ;;  %v1113_v25 = vld [vmem:[%s19767_s8 + $0x40] sm:$0xff] }
 0x1ed   :  { %1493 = vmatprep.mubr.bf16.mxu0 %v14062_v30  ;;  %3159 = vmatprep.subr.bf16.mxu1 %v12138_v32  ;;  %v12144_v9 = vcombine.high %v1113_v25, %v1117_v7  ;;  %v12143_v12 = vcombine.low %v1113_v25, %v1117_v7  ;;  %v1154_v32 = vld [vmem:[%s19767_s8 + $0x188] sm:$0xff]  ;;  %v1185_v25 = vld [vmem:[%s19767_s8 + $0x280] sm:$0xff] }
 0x1ee   :  { %v1189_v7 = vld [vmem:[%s19767_s8 + $0x2a0] sm:$0xff]  ;;  %v12186_v10 = vcombine.high %v1154_v32, %v1158_v5  ;;  %v12185_v16 = vcombine.low %v1154_v32, %v1158_v5  ;;  %v1210_v32 = vld [vmem:[%s19767_s8 + $0x348] sm:$0xff] }
 0x1f3   :  { %12124 = vmatmul.mubr.msk.bf16.gmra.mrb[48].mxu1 %vm1401_vm11, %v14537_v3  ;;  %12121 = vmatmul.mubr.msk.bf16.gmra.mrb[24].mxu0 %vm1401_vm11, %v14553_v6 }
 0x1f4   :  { %1566 = vmatprep.mubr.bf16.mxu1 %v14062_v30  ;;  %1619 = vmatprep.mubr.bf16.mxu0 %v14062_v30 }
 0x1fb   :  { %12125 = vmatmul.mubr.msk.bf16.gmra.mrb[52].mxu1 %vm1401_vm11, %v14553_v6  ;;  %12127 = vmatmul.mubr.msk.bf16.vlgmr.msra.gmra.mrb[28].mxu0 %vm1401_vm11, %v14512_v63 }
 0x1fc   :  { %1576 = vmatprep.mubr.bf16.mxu1 %v14062_v30  ;;  %3014 = vmatpush1.bf16.msra.mxu0 %v12135_v8  ;;  %v12177_v8 = vcombine.low %v1146_v62, %v1150_v0 }
 0x1fd   :  { %3015 = vmatprep.subr.bf16.mxu0 %v12144_v9  ;;  %1629 = vmatprep.mubr.bf16.mxu0 %v14062_v30  ;;  %v12207_v9 = vcombine.low %v1177_v1, %v1181_v2  ;;  %v1206_v1 = vld [vmem:[%s19767_s8 + $0x328] sm:$0xff] }
 0x200   :  { %3016 = vmatpush1.bf16.msra.mxu0 %v12143_v12  ;;  %v12216_v12 = vcombine.high %v1185_v25, %v1189_v7 }
 0x201   :  { %3017 = vmatprep.subr.bf16.mxu0 %v12152_v14  ;;  %v1166_v14 = vld [vmem:[%s19767_s8 + $0x1e8] sm:$0xff] }
 0x203   :  { %12126 = vmatmul.mubr.msk.bf16.gmra.mrb[56].mxu1 %vm1401_vm11, %v14504_v60  ;;  %12128 = vmatmul.mubr.msk.bf16.gmra.mrb[32].mxu0 %vm1401_vm11, %v14537_v3 }
 0x204   :  { %1692 = vmatprep.mubr.bf16.mxu1 %v14062_v30  ;;  %3018 = vmatpush1.bf16.msra.mxu0 %v12151_v17  ;;  %v12215_v17 = vcombine.low %v1185_v25, %v1189_v7  ;;  %v1218_v7 = vld [vmem:[%s19767_s8 + $0x388] sm:$0xff] }
 0x205   :  { %3019 = vmatprep.subr.bf16.mxu0 %v12160_v18  ;;  %1639 = vmatprep.mubr.bf16.mxu0 %v14062_v30  ;;  %v12194_v18 = vcombine.high %v1162_v11, %v1166_v14 }
 0x208   :  { %3020 = vmatpush1.bf16.msra.mxu0 %v12159_v20  ;;  %v1174_v20 = vld [vmem:[%s19767_s8 + $0x228] sm:$0xff] }
 0x209   :  { %3021 = vmatprep.subr.bf16.mxu0 %v12168_v23  ;;  %v12193_v23 = vcombine.low %v1162_v11, %v1166_v14  ;;  %v1226_v11 = vld [vmem:[%s19767_s8 + $0x3c8] sm:$0xff] }
 0x20b   :  { %12131 = vmatmul.mubr.msk.bf16.vlgmr.msra.gmra.mrb[60].mxu1 %vm1401_vm11, %v14512_v63  ;;  %12129 = vmatmul.mubr.msk.bf16.gmra.mrb[36].mxu0 %vm1401_vm11, %v14553_v6  ;;  %v12200_v63 = vcombine.high %v1169_v38, %v1173_v39  ;;  %v1198_v38 = vld [vmem:[%s19767_s8 + $0x2e8] sm:$0xff]  ;;  %v1225_v39 = vld [vmem:[%s19767_s8 + $0x3c0] sm:$0xff] }
 0x20c   :  { %3160 = vmatpush1.bf16.msra.mxu1 %v12137_v29  ;;  %3022 = vmatpush1.bf16.msra.mxu0 %v12167_v31  ;;  %v14723_v29 = vld [vmem:[%s19767_s8 + $0x408] sm:$0xff] }
 0x20d   :  { %3161 = vmatprep.subr.bf16.mxu1 %v12146_v33  ;;  %3023 = vmatprep.subr.bf16.mxu0 %v12176_v40  ;;  %v1178_v31 = vld [vmem:[%s19767_s8 + $0x248] sm:$0xff] }
 0x20e   :  { %1702 = vmatprep.mubr.bf16.mxu1 %v14062_v30  ;;  %1649 = vmatprep.mubr.bf16.mxu0 %v14062_v30  ;;  %v1182_v40 = vld [vmem:[%s19767_s8 + $0x268] sm:$0xff] }
 0x20f   :  { %v12210_v47 = vcombine.high %v1178_v31, %v1182_v40 }
 0x210   :  { %3162 = vmatpush1.bf16.msra.mxu1 %v12145_v44  ;;  %3024 = vmatpush1.bf16.msra.mxu0 %v12175_v45  ;;  %v12201_v45 = vcombine.low %v1170_v13, %v1174_v20 }
 0x211   :  { %3163 = vmatprep.subr.bf16.mxu1 %v12154_v46  ;;  %3025 = vmatprep.subr.bf16.mxu0 %v12184_v48  ;;  %v1186_v48 = vld [vmem:[%s19767_s8 + $0x288] sm:$0xff] }
 0x212   :  { %v12218_v55 = vcombine.high %v1186_v48, %v1190_v50 }
 0x213   :  { %12132 = vmatmul.mubr.msk.bf16.gmra.mrb[64].mxu1 %vm1401_vm11, %v14537_v3  ;;  %12130 = vmatmul.mubr.msk.bf16.gmra.mrb[40].mxu0 %vm1401_vm11, %v14504_v60  ;;  %v12178_v3 = vcombine.high %v1146_v62, %v1150_v0  ;;  %v1202_v0 = vld [vmem:[%s19767_s8 + $0x308] sm:$0xff] }
 0x214   :  { %3164 = vmatpush1.bf16.msra.mxu1 %v12153_v52  ;;  %3026 = vmatpush1.bf16.msra.mxu0 %v12183_v53  ;;  %v1221_v52 = vld [vmem:[%s19767_s8 + $0x3a0] sm:$0xff]  ;;  %v12209_v53 = vcombine.low %v1178_v31, %v1182_v40  ;;  %v12233_v5 = vcombine.low %v1202_v0, %v1206_v1  ;;  %v14841_v31 = vld [vmem:[%s19767_s8 + $0x4a8] sm:$0xff] }
 0x215   :  { %3165 = vmatprep.subr.bf16.mxu1 %v12162_v54  ;;  %3027 = vmatprep.subr.bf16.mxu0 %v12192_v56  ;;  %v12239_v54 = vcombine.low %v1209_v41, %v1213_v42  ;;  %v1194_v56 = vld [vmem:[%s19767_s8 + $0x2c8] sm:$0xff]  ;;  %v12248_v57 = vcombine.high %v1217_v51, %v1221_v52  ;;  %v14851_v40 = vld [vmem:[%s19767_s8 + $0x4e0] sm:$0xff] }
 0x216   :  { %1712 = vmatprep.mubr.bf16.mxu1 %v14062_v30  ;;  %v12226_v62 = vcombine.high %v1194_v56, %v1198_v38  ;;  %v12225_v2 = vcombine.low %v1194_v56, %v1198_v38  ;;  %v14856_v41 = vld [vmem:[%s19767_s8 + $0x4c8] sm:$0xff]  ;;  %v14906_v56 = vld [vmem:[%s19767_s8 + $0x540] sm:$0xff] }
 0x218   :  { %3166 = vmatpush1.bf16.msra.mxu1 %v12161_v58  ;;  %3028 = vmatpush1.bf16.msra.mxu0 %v12191_v59  ;;  %v1229_v58 = vld [vmem:[%s19767_s8 + $0x3e0] sm:$0xff]  ;;  %v12217_v59 = vcombine.low %v1186_v48, %v1190_v50 }
 0x219   :  { %3167 = vmatprep.subr.bf16.mxu1 %v12170_v61  ;;  %3029 = vmatprep.subr.bf16.mxu0 %v12200_v63  ;;  %v12247_v61 = vcombine.low %v1217_v51, %v1221_v52  ;;  %v12256_v63 = vcombine.high %v1225_v39, %v1229_v58  ;;  %v14876_v48 = vld [vmem:[%s19767_s8 + $0x500] sm:$0xff] }
 0x21b   :  { %12133 = vmatmul.mubr.msk.bf16.gmra.mrb[68].mxu1 %vm1401_vm11, %v14553_v6  ;;  %v1193_v6 = vld [vmem:[%s19767_s8 + $0x2c0] sm:$0xff] }
 0x21c   :  { %3168 = vmatpush1.bf16.msra.mxu1 %v12169_v22  ;;  %3030 = vmatpush1.bf16.msra.mxu0 %v12199_v24  ;;  %v12224_v19 = vcombine.high %v1193_v6, %v1197_v15  ;;  %v12223_v26 = vcombine.low %v1193_v6, %v1197_v15  ;;  %v12255_v22 = vcombine.low %v1225_v39, %v1229_v58 }
 0x21d   :  { %3169 = vmatprep.subr.bf16.mxu1 %v12178_v3  ;;  %3031 = vmatprep.subr.bf16.mxu0 %v12208_v4  ;;  %v12234_v24 = vcombine.high %v1202_v0, %v1206_v1  ;;  %v12264_v3 = vcombine.high %v14713_v27, %v14718_v28  ;;  %v1214_v4 = vld [vmem:[%s19767_s8 + $0x368] sm:$0xff] }
 0x21e   :  { %1722 = vmatprep.mubr.bf16.mxu1 %v14062_v30  ;;  %v1201_v30 = vld [vmem:[%s19767_s8 + $0x300] sm:$0xff]  ;;  %v12242_v25 = vcombine.high %v1210_v32, %v1214_v4 }
 0x21f   :  { %v12232_v33 = vcombine.high %v1201_v30, %v1205_v21  ;;  %v12231_v46 = vcombine.low %v1201_v30, %v1205_v21  ;;  %v14816_v30 = vld [vmem:[%s19767_s8 + $0x448] sm:$0xff] }
 0x220   :  { %3170 = vmatpush1.bf16.msra.mxu1 %v12177_v8  ;;  %3032 = vmatpush1.bf16.msra.mxu0 %v12207_v9  ;;  %v1222_v8 = vld [vmem:[%s19767_s8 + $0x3a8] sm:$0xff]  ;;  %v12241_v9 = vcombine.low %v1210_v32, %v1214_v4 }
 0x221   :  { %3171 = vmatprep.subr.bf16.mxu1 %v12186_v10  ;;  %3033 = vmatprep.subr.bf16.mxu0 %v12216_v12  ;;  %v12250_v10 = vcombine.high %v1218_v7, %v1222_v8  ;;  %v1230_v12 = vld [vmem:[%s19767_s8 + $0x3e8] sm:$0xff]  ;;  %v12249_v14 = vcombine.low %v1218_v7, %v1222_v8 }
 0x222   :  { %v12258_v6 = vcombine.high %v1226_v11, %v1230_v12  ;;  %v12257_v15 = vcombine.low %v1226_v11, %v1230_v12  ;;  %v14821_v21 = vld [vmem:[%s19767_s8 + $0x468] sm:$0xff]  ;;  %v14984_v11 = vld [vmem:[%s19767_s8 + $0x5c0] sm:$0xff] }
 0x223   :  { %12134 = vmatmul.mubr.msk.bf16.gmra.mrb[72].mxu1 %vm1401_vm11, %v14504_v60  ;;  %v12202_v60 = vcombine.high %v1170_v13, %v1174_v20  ;;  %v14805_v13 = vld [vmem:[%s19767_s8 + $0x440] sm:$0xff]  ;;  %v19774_v20 = vsub.s32 3, %v14455_v34  ;;  %v14965_v7 = vld [vmem:[%s19767_s8 + $0x5a8] sm:$0xff] }
 0x224   :  { %3172 = vmatpush1.bf16.msra.mxu1 %v12185_v16  ;;  %3034 = vmatpush1.bf16.msra.mxu0 %v12215_v17  ;;  %v12266_v16 = vcombine.high %v14723_v29, %v14731_v36  ;;  %v505_v17 = vld [vmem:[%s19768_s7] sm:$0xf] }
 0x225   :  { %3173 = vmatprep.subr.bf16.mxu1 %v12194_v18  ;;  %3035 = vmatprep.subr.bf16.mxu0 %v12224_v19  ;;  %v19775_v18 = vsub.s32 2, %v14455_v34  ;;  %v14810_v19 = vld [vmem:[%s19767_s8 + $0x460] sm:$0xff]  ;;  %v14859_v42 = vrot.slane %v505_v17, %v14458_v35  ;;  %v14885_v50 = vrot.slane %v505_v17, %v19774_v20 }
 0x228   :  { %3174 = vmatpush1.bf16.msra.mxu1 %v12193_v23  ;;  %3036 = vmatpush1.bf16.msra.mxu0 %v12223_v26  ;;  %v14826_v23 = vld [vmem:[%s19767_s8 + $0x480] sm:$0xff] }
 0x229   :  { %3175 = vmatprep.subr.bf16.mxu1 %v12202_v60  ;;  %3037 = vmatprep.subr.bf16.mxu0 %v12232_v33  ;;  %v14831_v26 = vld [vmem:[%s19767_s8 + $0x4a0] sm:$0xff]  ;;  %v14836_v60 = vld [vmem:[%s19767_s8 + $0x488] sm:$0xff] }
 0x22a   :  { %v14846_v33 = vld [vmem:[%s19767_s8 + $0x4c0] sm:$0xff] }
 0x22c   :  { %3176 = vmatpush1.bf16.msra.mxu1 %v12201_v45  ;;  %3038 = vmatpush1.bf16.msra.mxu0 %v12231_v46  ;;  %v14863_v45 = vrot.slane %v505_v17, %v19775_v18  ;;  %v14866_v46 = vrot.slane %v505_v17, %v14464_v37 }
 0x22d   :  { %3177 = vmatprep.subr.bf16.mxu1 %v12210_v47  ;;  %3039 = vmatprep.subr.bf16.mxu0 %v12240_v49  ;;  %v14871_v47 = vld [vmem:[%s19767_s8 + $0x4e8] sm:$0xff]  ;;  %v14881_v49 = vld [vmem:[%s19767_s8 + $0x520] sm:$0xff] }
 0x230   :  { %3178 = vmatpush1.bf16.msra.mxu1 %v12209_v53  ;;  %3040 = vmatpush1.bf16.msra.mxu0 %v12239_v54  ;;  %v14896_v54 = vld [vmem:[%s19767_s8 + $0x508] sm:$0xff] }
 0x231   :  { %3179 = vmatprep.subr.bf16.mxu1 %v12218_v55  ;;  %3041 = vmatprep.subr.bf16.mxu0 %v12248_v57  ;;  %v14901_v55 = vld [vmem:[%s19767_s8 + $0x528] sm:$0xff] }
 0x234   :  { %3180 = vmatpush1.bf16.msra.mxu1 %v12217_v59  ;;  %3042 = vmatpush1.bf16.msra.mxu0 %v12247_v61  ;;  %v14919_v59 = vld [vmem:[%s19767_s8 + $0x560] sm:$0xff]  ;;  %v14924_v61 = vld [vmem:[%s19767_s8 + $0x548] sm:$0xff] }
 0x235   :  { %3181 = vmatprep.subr.bf16.mxu1 %v12226_v62  ;;  %3043 = vmatprep.subr.bf16.mxu0 %v12256_v63  ;;  %v14929_v62 = vld [vmem:[%s19767_s8 + $0x568] sm:$0xff] }
 0x238   :  { %3182 = vmatpush1.bf16.msra.mxu1 %v12225_v2  ;;  %3044 = vmatpush1.bf16.msra.mxu0 %v12255_v22  ;;  %v14942_v22 = vld [vmem:[%s19767_s8 + $0x580] sm:$0xff] }
 0x239   :  { %3183 = vmatprep.subr.bf16.mxu1 %v12234_v24  ;;  %3086 = vmatprep.subr.bf16.mxu0 %v12264_v3  ;;  %v14947_v24 = vld [vmem:[%s19767_s8 + $0x5a0] sm:$0xff] }
 0x23c   :  { %3184 = vmatpush1.bf16.msra.mxu1 %v12233_v5 }
 0x23d   :  { %3185 = vmatprep.subr.bf16.mxu1 %v12242_v25  ;;  %v14960_v25 = vld [vmem:[%s19767_s8 + $0x588] sm:$0xff] }
 0x240   :  { %3186 = vmatpush1.bf16.msra.mxu1 %v12241_v9 }
 0x241   :  { %3187 = vmatprep.subr.bf16.mxu1 %v12250_v10 }
 0x244   :  { %3188 = vmatpush1.bf16.msra.mxu1 %v12249_v14  ;;  %v14989_v14 = vld [vmem:[%s19767_s8 + $0x5e0] sm:$0xff] }
 0x245   :  { %3189 = vmatprep.subr.bf16.mxu1 %v12258_v6 }
 0x248   :  { %3190 = vmatpush1.bf16.msra.mxu1 %v12257_v15 }
 0x249   :  { %3232 = vmatprep.subr.bf16.mxu1 %v12266_v16 }
 0x296   :  { %v881_v8 = vpop.f32.mrb[0].mxu0  ;;  %v954_v9 = vpop.f32.mrb[24].mxu1 }
 0x297   :  { %v882_v6 = vadd.f32 %v881_v8, %v14859_v42  ;;  %v955_v15 = vadd.f32 %v954_v9, %v14863_v45  ;;  %v883_v16 = vpop.f32.mrb[1].mxu0  ;;  %v956_v17 = vpop.f32.mrb[25].mxu1 }
 0x298   :  { %v884_v8 = vadd.f32 %v883_v16, %v14866_v46  ;;  %v957_v9 = vadd.f32 %v956_v17, %v14885_v50  ;;  %v885_v12 = vpop.f32.mrb[2].mxu0  ;;  %v958_v5 = vpop.f32.mrb[26].mxu1 }
 0x299   :  { %vm993_vm12 = vcmp.gt.f32.partialorder %v882_v6, 0.0  ;;  %v1025_v32 = vmul.f32 0.01, %v882_v6  ;;  %vm995_vm13 = vcmp.gt.f32.partialorder %v955_v15, 0.0  ;;  %v1027_v10 = vmul.f32 0.01, %v955_v15 }
 0x29a   :  { %vm994_vm14 = vcmp.gt.f32.partialorder %v884_v8, 0.0  ;;  %v1026_v4 = vmul.f32 0.01, %v884_v8  ;;  %vm996_vm15 = vcmp.gt.f32.partialorder %v957_v9, 0.0  ;;  %v1028_v17 = vmul.f32 0.01, %v957_v9 }
 0x29b   :  { %v886_v0 = vadd.f32 %v885_v12, %v14859_v42  ;;  %v959_v20 = vadd.f32 %v958_v5, %v14863_v45  ;;  %v887_v3 = vpop.f32.mrb[3].mxu0  ;;  %v960_v18 = vpop.f32.mrb[27].mxu1  ;;  %v1057_v1 = vsel %vm993_vm12, %v882_v6, %v1025_v32  ;;  %v1059_v58 = vsel %vm995_vm13, %v955_v15, %v1027_v10 }
 0x29c   :  { %v888_v38 = vadd.f32 %v887_v3, %v14866_v46  ;;  %v961_v63 = vadd.f32 %v960_v18, %v14885_v50  ;;  %v1058_v12 = vsel %vm994_vm14, %v884_v8, %v1026_v4  ;;  %v1060_v5 = vsel %vm996_vm15, %v957_v9, %v1028_v17 }
 0x29d   :  { %vm997_vm0 = vcmp.gt.f32.partialorder %v886_v0, 0.0  ;;  %v1029_v39 = vmul.f32 0.01, %v886_v0  ;;  %vm999_vm1 = vcmp.gt.f32.partialorder %v959_v20, 0.0  ;;  %v1031_v2 = vmul.f32 0.01, %v959_v20 }
 0x29e   :  { %vm998_vm2 = vcmp.gt.f32.partialorder %v888_v38, 0.0  ;;  %v1030_v16 = vmul.f32 0.01, %v888_v38  ;;  %vm1000_vm3 = vcmp.gt.f32.partialorder %v961_v63, 0.0  ;;  %v1032_v53 = vmul.f32 0.01, %v961_v63 }
 0x29f   :  { %v1061_v51 = vsel %vm997_vm0, %v886_v0, %v1029_v39  ;;  %v1063_v57 = vsel %vm999_vm1, %v959_v20, %v1031_v2  ;;  %v891_v32 = vpop.f32.mrb[4].mxu0  ;;  %v964_v10 = vpop.f32.mrb[28].mxu1 }
 0x2a0   :  { %v15007_v6 = vpack.c.bf16 %v1061_v51, %v1057_v1  ;;  %v15009_v3 = vpack.c.bf16 %v1063_v57, %v1059_v58  ;;  %v1062_v18 = vsel %vm998_vm2, %v888_v38, %v1030_v16  ;;  %v1064_v15 = vsel %vm1000_vm3, %v961_v63, %v1032_v53  ;;  %v893_v52 = vpop.f32.mrb[5].mxu0  ;;  %v966_v44 = vpop.f32.mrb[29].mxu1  ;;  %v15020_v51 = vld [vmem:[%s19767_s8 + $0x5c8] sm:$0xff] }
 0x2a1   :  { %v15011_v43 = vpack.c.bf16 %v1062_v18, %v1058_v12  ;;  %v15013_v37 = vpack.c.bf16 %v1064_v15, %v1060_v5  ;;  %v892_v4 = vadd.f32 %v891_v32, %v14859_v42  ;;  %v965_v8 = vadd.f32 %v964_v10, %v14863_v45  ;;  %v895_v39 = vpop.f32.mrb[6].mxu0  ;;  %v968_v20 = vpop.f32.mrb[30].mxu1  ;;  %v15025_v53 = vld [vmem:[%s19767_s8 + $0x5e8] sm:$0xff] }
 0x2a2   :  { %v894_v57 = vadd.f32 %v893_v52, %v14866_v46  ;;  %v967_v38 = vadd.f32 %v966_v44, %v14885_v50  ;;  %v896_v58 = vadd.f32 %v895_v39, %v14859_v42  ;;  %v969_v63 = vadd.f32 %v968_v20, %v14863_v45  ;;  %v897_v0 = vpop.f32.mrb[7].mxu0  ;;  %v970_v1 = vpop.f32.mrb[31].mxu1 }
 0x2a3   :  { %vm1001_vm4 = vcmp.gt.f32.partialorder %v892_v4, 0.0  ;;  %v1033_v2 = vmul.f32 0.01, %v892_v4  ;;  %vm1003_vm5 = vcmp.gt.f32.partialorder %v965_v8, 0.0  ;;  %v1035_v9 = vmul.f32 0.01, %v965_v8  ;;  %3045 = vmatprep.mubr.bf16.mxu0 %v15011_v43  ;;  %3191 = vmatprep.mubr.bf16.mxu1 %v15011_v43 }
 0x2a4   :  { %vm1002_vm6 = vcmp.gt.f32.partialorder %v894_v57, 0.0  ;;  %v1034_v16 = vmul.f32 0.01, %v894_v57  ;;  %vm1004_vm7 = vcmp.gt.f32.partialorder %v967_v38, 0.0  ;;  %3046 = vmatmul.mubr.bf16.vlgmr.msra.gmra.mrb[16].mxu0 %v15007_v6  ;;  %3192 = vmatmul.mubr.bf16.vlgmr.msra.gmra.mrb[44].mxu1 %v15007_v6  ;;  %v1036_v17 = vmul.f32 0.01, %v967_v38 }
 0x2a5   :  { %v1065_v52 = vsel %vm1001_vm4, %v892_v4, %v1033_v2  ;;  %vm1005_vm8 = vcmp.gt.f32.partialorder %v896_v58, 0.0  ;;  %v1037_v12 = vmul.f32 0.01, %v896_v58  ;;  %v20013_v5 = vcombine.low %v14713_v27, %v14718_v28 }
 0x2a6   :  { %v20014_v32 = vcombine.low %v14723_v29, %v14731_v36  ;;  %v1067_v10 = vsel %vm1003_vm5, %v965_v8, %v1035_v9  ;;  %v1066_v18 = vsel %vm1002_vm6, %v894_v57, %v1034_v16  ;;  %vm1007_vm9 = vcmp.gt.f32.partialorder %v969_v63, 0.0  ;;  %v901_v20 = vpop.f32.mrb[8].mxu0  ;;  %v974_v27 = vpop.f32.mrb[32].mxu1 }
 0x2a7   :  { %3087 = vmatpush1.bf16.msra.mxu0 %v20013_v5  ;;  %v1039_v15 = vmul.f32 0.01, %v969_v63  ;;  %v20015_v39 = vcombine.high %v14805_v13, %v14810_v19  ;;  %v20016_v4 = vcombine.high %v14816_v30, %v14821_v21  ;;  %v1069_v28 = vsel %vm1005_vm8, %v896_v58, %v1037_v12  ;;  %v903_v8 = vpop.f32.mrb[9].mxu0  ;;  %v976_v57 = vpop.f32.mrb[33].mxu1 }
 0x2a8   :  { %3233 = vmatpush1.bf16.msra.mxu1 %v20014_v32  ;;  %v898_v2 = vadd.f32 %v897_v0, %v14866_v46  ;;  %v971_v29 = vadd.f32 %v970_v1, %v14885_v50  ;;  %v902_v36 = vadd.f32 %v901_v20, %v14859_v42  ;;  %v15053_v9 = vpack.c.bf16 %v1069_v28, %v1065_v52  ;;  %v905_v32 = vpop.f32.mrb[10].mxu0 }
 0x2a9   :  { %3088 = vmatprep.subr.bf16.mxu0 %v20015_v39  ;;  %3234 = vmatprep.subr.bf16.mxu1 %v20016_v4  ;;  %v1071_v16 = vsel %vm1007_vm9, %v969_v63, %v1039_v15  ;;  %v904_v5 = vadd.f32 %v903_v8, %v14866_v46  ;;  %v15057_v39 = vadd.f32 %v974_v27, %v14863_v45  ;;  %v978_v4 = vpop.f32.mrb[34].mxu1  ;;  %v907_v63 = vpop.f32.mrb[11].mxu0 }
 0x2aa   :  { %v15059_v44 = vpack.c.bf16 %v1071_v16, %v1067_v10  ;;  %vm1006_vm10 = vcmp.gt.f32.partialorder %v898_v2, 0.0  ;;  %v1038_v58 = vmul.f32 0.01, %v898_v2  ;;  %vm1008_vm11 = vcmp.gt.f32.partialorder %v971_v29, 0.0  ;;  %v15067_v52 = vpop.f32.mrb[35].mxu1 }
 0x2ab   :  { %v20017_v0 = vcombine.low %v14805_v13, %v14810_v19  ;;  %v20018_v1 = vcombine.low %v14816_v30, %v14821_v21  ;;  %v1040_v12 = vmul.f32 0.01, %v971_v29  ;;  %vm1009_vm12 = vcmp.gt.f32.partialorder %v902_v36, 0.0 }
 0x2ac   :  { %v1041_v15 = vmul.f32 0.01, %v902_v36  ;;  %vm1010_vm13 = vcmp.gt.f32.partialorder %v904_v5, 0.0  ;;  %v20019_v10 = vcombine.high %v14826_v23, %v14831_v26  ;;  %v20020_v20 = vcombine.high %v14836_v60, %v14841_v31 }
 0x2ad   :  { %3089 = vmatpush1.bf16.msra.mxu0 %v20017_v0  ;;  %3235 = vmatpush1.bf16.msra.mxu1 %v20018_v1  ;;  %v1070_v13 = vsel %vm1006_vm10, %v898_v2, %v1038_v58  ;;  %v1042_v19 = vmul.f32 0.01, %v904_v5  ;;  %v906_v30 = vadd.f32 %v905_v32, %v14859_v42  ;;  %v908_v21 = vadd.f32 %v907_v63, %v14866_v46 }
 0x2ae   :  { %3090 = vmatprep.subr.bf16.mxu0 %v20019_v10  ;;  %3236 = vmatprep.subr.bf16.mxu1 %v20020_v20  ;;  %v1068_v27 = vsel %vm1004_vm7, %v967_v38, %v1036_v17  ;;  %v15078_v28 = vpack.c.bf16 %v1070_v13, %v1066_v18  ;;  %v1072_v8 = vsel %vm1008_vm11, %v971_v29, %v1040_v12  ;;  %v911_v17 = vpop.f32.mrb[12].mxu0  ;;  %v1043_v18 = vmul.f32 0.01, %v15057_v39 }
 0x2af   :  { %v1073_v16 = vsel %vm1009_vm12, %v902_v36, %v1041_v15  ;;  %v15081_v0 = vpack.c.bf16 %v1072_v8, %v1068_v27  ;;  %v1074_v1 = vsel %vm1010_vm13, %v904_v5, %v1042_v19  ;;  %vm1013_vm14 = vcmp.gt.f32.partialorder %v906_v30, 0.0 }
 0x2b0   :  { %v1045_v10 = vmul.f32 0.01, %v906_v30  ;;  %v20021_v2 = vcombine.low %v14826_v23, %v14831_v26  ;;  %v20022_v32 = vcombine.low %v14836_v60, %v14841_v31  ;;  %vm1014_vm15 = vcmp.gt.f32.partialorder %v908_v21, 0.0  ;;  %3055 = vmatprep.mubr.bf16.mxu0 %v15078_v28  ;;  %3201 = vmatprep.mubr.bf16.mxu1 %v15078_v28  ;;  %v913_v26 = vpop.f32.mrb[13].mxu0  ;;  %v984_v31 = vpop.f32.mrb[36].mxu1 }
 0x2b1   :  { %v1046_v38 = vmul.f32 0.01, %v908_v21  ;;  %v977_v29 = vadd.f32 %v976_v57, %v14885_v50  ;;  %3056 = vmatmul.mubr.bf16.gmra.mrb[20].mxu0 %v15053_v9  ;;  %3202 = vmatmul.mubr.bf16.gmra.mrb[48].mxu1 %v15053_v9  ;;  %v912_v23 = vadd.f32 %v911_v17, %v14859_v42  ;;  %vm1011_vm0 = vcmp.gt.f32.partialorder %v15057_v39, 0.0  ;;  %v915_v15 = vpop.f32.mrb[14].mxu0  ;;  %v986_v20 = vpop.f32.mrb[37].mxu1 }
 0x2b2   :  { %3091 = vmatpush1.bf16.msra.mxu0 %v20021_v2  ;;  %3237 = vmatpush1.bf16.msra.mxu1 %v20022_v32  ;;  %v1077_v36 = vsel %vm1013_vm14, %v906_v30, %v1045_v10  ;;  %v979_v60 = vadd.f32 %v978_v4, %v14863_v45  ;;  %v20023_v57 = vcombine.high %v14846_v33, %v14851_v40  ;;  %v917_v27 = vpop.f32.mrb[15].mxu0  ;;  %v988_v8 = vpop.f32.mrb[38].mxu1 }
 0x2b3   :  { %v15098_v5 = vpack.c.bf16 %v1077_v36, %v1073_v16  ;;  %v1078_v58 = vsel %vm1014_vm15, %v908_v21, %v1046_v38  ;;  %v20024_v63 = vcombine.high %v14856_v41, %v14871_v47  ;;  %v914_v12 = vadd.f32 %v913_v26, %v14866_v46 }
 0x2b4   :  { %3092 = vmatprep.subr.bf16.mxu0 %v20023_v57  ;;  %vm1012_vm1 = vcmp.gt.f32.partialorder %v977_v29, 0.0  ;;  %v15108_v13 = vpack.c.bf16 %v1078_v58, %v1074_v1  ;;  %vm1017_vm2 = vcmp.gt.f32.partialorder %v912_v23, 0.0  ;;  %v1049_v4 = vmul.f32 0.01, %v912_v23 }
 0x2b5   :  { %3238 = vmatprep.subr.bf16.mxu1 %v20024_v63  ;;  %v20025_v19 = vcombine.low %v14846_v33, %v14851_v40  ;;  %v20026_v30 = vcombine.low %v14856_v41, %v14871_v47  ;;  %v916_v21 = vadd.f32 %v915_v15, %v14859_v42  ;;  %vm1018_vm3 = vcmp.gt.f32.partialorder %v914_v12, 0.0  ;;  %v990_v41 = vpop.f32.mrb[39].mxu1 }
 0x2b6   :  { %v1050_v16 = vmul.f32 0.01, %v914_v12  ;;  %v918_v10 = vadd.f32 %v917_v27, %v14866_v46  ;;  %v20027_v1 = vcombine.high %v14876_v48, %v14881_v49  ;;  %v20028_v33 = vcombine.high %v14896_v54, %v14901_v55  ;;  %3065 = vmatprep.mubr.bf16.mxu0 %v15108_v13  ;;  %3211 = vmatprep.mubr.bf16.mxu1 %v15108_v13 }
 0x2b7   :  { %3093 = vmatpush1.bf16.msra.mxu0 %v20025_v19  ;;  %3239 = vmatpush1.bf16.msra.mxu1 %v20026_v30  ;;  %v1075_v40 = vsel %vm1011_vm0, %v15057_v39, %v1043_v18  ;;  %v1081_v42 = vsel %vm1017_vm2, %v912_v23, %v1049_v4  ;;  %vm1021_vm4 = vcmp.gt.f32.partialorder %v916_v21, 0.0  ;;  %v1053_v47 = vmul.f32 0.01, %v916_v21 }
 0x2b8   :  { %3094 = vmatprep.subr.bf16.mxu0 %v20027_v1  ;;  %3240 = vmatprep.subr.bf16.mxu1 %v20028_v33  ;;  %v1044_v46 = vmul.f32 0.01, %v977_v29  ;;  %v1082_v2 = vsel %vm1018_vm3, %v914_v12, %v1050_v16  ;;  %vm1022_vm5 = vcmp.gt.f32.partialorder %v918_v10, 0.0  ;;  %v1054_v32 = vmul.f32 0.01, %v918_v10  ;;  %v1297_v16 = vld [vmem:[%s19767_s8 + $0x600] sm:$0xff] }
 0x2b9   :  { %vm1015_vm6 = vcmp.gt.f32.partialorder %v979_v60, 0.0  ;;  %v1085_v38 = vsel %vm1021_vm4, %v916_v21, %v1053_v47  ;;  %v20029_v17 = vcombine.low %v14876_v48, %v14881_v49  ;;  %v20030_v39 = vcombine.low %v14896_v54, %v14901_v55  ;;  %v15147_v54 = vpop.f32.mrb[40].mxu1  ;;  %3066 = vmatmul.mubr.bf16.gmra.mrb[24].mxu0 %v15098_v5  ;;  %3212 = vmatmul.mubr.bf16.gmra.mrb[52].mxu1 %v15098_v5 }
 0x2ba   :  { %v1076_v18 = vsel %vm1012_vm1, %v977_v29, %v1044_v46  ;;  %v1047_v36 = vmul.f32 0.01, %v979_v60  ;;  %v981_v23 = vadd.f32 %v15067_v52, %v14885_v50  ;;  %v15138_v26 = vpack.c.bf16 %v1085_v38, %v1081_v42  ;;  %v15154_v63 = vpop.f32.mrb[41].mxu1 }
 0x2bb   :  { %3095 = vmatpush1.bf16.msra.mxu0 %v20029_v17  ;;  %3241 = vmatpush1.bf16.msra.mxu1 %v20030_v39  ;;  %v1086_v58 = vsel %vm1022_vm5, %v918_v10, %v1054_v32  ;;  %v20031_v57 = vcombine.high %v14906_v56, %v14919_v59  ;;  %v20032_v48 = vcombine.high %v14924_v61, %v14929_v62  ;;  %v15159_v4 = vpop.f32.mrb[42].mxu1 }
 0x2bc   :  { %v985_v49 = vadd.f32 %v984_v31, %v14863_v45  ;;  %v15149_v55 = vpack.c.bf16 %v1086_v58, %v1082_v2  ;;  %v1079_v52 = vsel %vm1015_vm6, %v979_v60, %v1047_v36  ;;  %vm1016_vm7 = vcmp.gt.f32.partialorder %v981_v23, 0.0  ;;  %v1313_v58 = vld [vmem:[%s19767_s8 + $0x680] sm:$0xff] }
 0x2bd   :  { %3096 = vmatprep.subr.bf16.mxu0 %v20031_v57  ;;  %3242 = vmatprep.subr.bf16.mxu1 %v20032_v48  ;;  %v1048_v29 = vmul.f32 0.01, %v981_v23  ;;  %v15156_v12 = vpack.c.bf16 %v1079_v52, %v1075_v40  ;;  %v987_v31 = vadd.f32 %v986_v20, %v14885_v50  ;;  %v20033_v30 = vcombine.low %v14906_v56, %v14919_v59  ;;  %v15172_v20 = vpop.f32.mrb[43].mxu1  ;;  %v1317_v57 = vld [vmem:[%s19767_s8 + $0x6a0] sm:$0xff]  ;;  %v1314_v48 = vld [vmem:[%s19767_s8 + $0x688] sm:$0xff] }
 0x2be   :  { %vm1019_vm8 = vcmp.gt.f32.partialorder %v985_v49, 0.0  ;;  %v1051_v15 = vmul.f32 0.01, %v985_v49  ;;  %v20034_v60 = vcombine.low %v14924_v61, %v14929_v62  ;;  %v989_v21 = vadd.f32 %v988_v8, %v14863_v45  ;;  %3075 = vmatprep.mubr.bf16.mxu0 %v15149_v55  ;;  %v1301_v45 = vld [vmem:[%s19767_s8 + $0x620] sm:$0xff]  ;;  %v1302_v61 = vld [vmem:[%s19767_s8 + $0x628] sm:$0xff]  ;;  %3221 = vmatprep.mubr.bf16.mxu1 %v15149_v55 }
 0x2bf   :  { %v1080_v19 = vsel %vm1016_vm7, %v981_v23, %v1048_v29  ;;  %3097 = vmatpush1.bf16.msra.mxu0 %v20033_v30  ;;  %v991_v27 = vadd.f32 %v990_v41, %v14885_v50  ;;  %vm1020_vm9 = vcmp.gt.f32.partialorder %v987_v31, 0.0  ;;  %v1052_v56 = vmul.f32 0.01, %v987_v31  ;;  %v1298_v50 = vld [vmem:[%s19767_s8 + $0x608] sm:$0xff]  ;;  %v1325_v30 = vld [vmem:[%s19767_s8 + $0x6e0] sm:$0xff] }
 0x2c0   :  { %3243 = vmatpush1.bf16.msra.mxu1 %v20034_v60  ;;  %v15174_v10 = vpack.c.bf16 %v1080_v19, %v1076_v18  ;;  %v1083_v1 = vsel %vm1019_vm8, %v985_v49, %v1051_v15  ;;  %v20035_v59 = vcombine.high %v14942_v22, %v14947_v24  ;;  %vm1023_vm10 = vcmp.gt.f32.partialorder %v989_v21, 0.0  ;;  %v1318_v49 = vld [vmem:[%s19767_s8 + $0x6a8] sm:$0xff]  ;;  %v1321_v19 = vld [vmem:[%s19767_s8 + $0x6c0] sm:$0xff] }
 0x2c1   :  { %v1055_v62 = vmul.f32 0.01, %v989_v21  ;;  %vm1024_vm11 = vcmp.gt.f32.partialorder %v991_v27, 0.0  ;;  %v1056_v8 = vmul.f32 0.01, %v991_v27  ;;  %v20036_v33 = vcombine.high %v14960_v25, %v14965_v7  ;;  %3076 = vmatmul.mubr.bf16.gmra.mrb[44].mxu0 %v15138_v26  ;;  %3222 = vmatmul.mubr.bf16.gmra.mrb[56].mxu1 %v15138_v26  ;;  %v1322_v60 = vld [vmem:[%s19767_s8 + $0x6c8] sm:$0xff] }
 0x2c2   :  { %3098 = vmatprep.subr.bf16.mxu0 %v20035_v59  ;;  %v1084_v40 = vsel %vm1020_vm9, %v987_v31, %v1052_v56  ;;  %v12319_v41 = vcombine.low %v14984_v11, %v14989_v14  ;;  %v12321_v42 = vcombine.low %v15020_v51, %v15025_v53  ;;  %v20037_v2 = vcombine.low %v14942_v22, %v14947_v24  ;;  %v1305_v22 = vld [vmem:[%s19767_s8 + $0x640] sm:$0xff] }
 0x2c3   :  { %3244 = vmatprep.subr.bf16.mxu1 %v20036_v33  ;;  %v1087_v47 = vsel %vm1023_vm10, %v989_v21, %v1055_v62  ;;  %v1088_v46 = vsel %vm1024_vm11, %v991_v27, %v1056_v8  ;;  %v20038_v32 = vcombine.low %v14960_v25, %v14965_v7  ;;  %v12328_v38 = vcombine.high %v1297_v16, %v1301_v45  ;;  %v1309_v24 = vld [vmem:[%s19767_s8 + $0x660] sm:$0xff]  ;;  %v1306_v25 = vld [vmem:[%s19767_s8 + $0x648] sm:$0xff] }
 0x2c4   :  { %3099 = vmatpush1.bf16.msra.mxu0 %v20037_v2  ;;  %v15203_v17 = vpack.c.bf16 %v1087_v47, %v1083_v1  ;;  %v15205_v39 = vpack.c.bf16 %v1088_v46, %v1084_v40  ;;  %v20039_v18 = vcombine.high %v14984_v11, %v14989_v14  ;;  %v20040_v36 = vcombine.high %v15020_v51, %v15025_v53  ;;  %v1310_v7 = vld [vmem:[%s19767_s8 + $0x668] sm:$0xff]  ;;  %v1329_v59 = vld [vmem:[%s19767_s8 + $0x700] sm:$0xff] }
 0x2c5   :  { %3245 = vmatpush1.bf16.msra.mxu1 %v20038_v32  ;;  %v12330_v23 = vcombine.high %v1298_v50, %v1302_v61  ;;  %3118 = vmatprep.mubr.bf16.mxu0 %v15013_v37  ;;  %v12327_v11 = vcombine.low %v1297_v16, %v1301_v45  ;;  %v12329_v14 = vcombine.low %v1298_v50, %v1302_v61  ;;  %v1326_v21 = vld [vmem:[%s19767_s8 + $0x6e8] sm:$0xff]  ;;  %v1333_v45 = vld [vmem:[%s19767_s8 + $0x720] sm:$0xff] }
 0x2c6   :  { %3100 = vmatprep.subr.bf16.mxu0 %v20039_v18  ;;  %3246 = vmatprep.subr.bf16.mxu1 %v20040_v36  ;;  %v12336_v51 = vcombine.high %v1305_v22, %v1309_v24  ;;  %v12338_v53 = vcombine.high %v1306_v25, %v1310_v7  ;;  %v12335_v52 = vcombine.low %v1305_v22, %v1309_v24  ;;  %v1330_v50 = vld [vmem:[%s19767_s8 + $0x708] sm:$0xff]  ;;  %v1345_v36 = vld [vmem:[%s19767_s8 + $0x780] sm:$0xff] }
 0x2c7   :  { %3264 = vmatprep.mubr.bf16.mxu1 %v15013_v37  ;;  %v12337_v29 = vcombine.low %v1306_v25, %v1310_v7  ;;  %v12344_v15 = vcombine.high %v1313_v58, %v1317_v57  ;;  %v12346_v31 = vcombine.high %v1314_v48, %v1318_v49  ;;  %v12343_v27 = vcombine.low %v1313_v58, %v1317_v57  ;;  %v1334_v61 = vld [vmem:[%s19767_s8 + $0x728] sm:$0xff] }
 0x2c8   :  { %3101 = vmatpush1.bf16.msra.mxu0 %v12319_v41  ;;  %v12345_v16 = vcombine.low %v1314_v48, %v1318_v49  ;;  %v12352_v1 = vcombine.high %v1321_v19, %v1325_v30  ;;  %v12354_v56 = vcombine.high %v1322_v60, %v1326_v21  ;;  %v12351_v62 = vcombine.low %v1321_v19, %v1325_v30  ;;  %v1337_v41 = vld [vmem:[%s19767_s8 + $0x740] sm:$0xff]  ;;  %v1338_v47 = vld [vmem:[%s19767_s8 + $0x748] sm:$0xff]  ;;  %v1108_v19 = vld [vmem:[%s19767_s8 + $0x18] sm:$0xff] }
 0x2c9   :  { %3247 = vmatpush1.bf16.msra.mxu1 %v12321_v42  ;;  %3102 = vmatprep.subr.bf16.mxu0 %v12328_v38  ;;  %v12353_v8 = vcombine.low %v1322_v60, %v1326_v21  ;;  %v12360_v33 = vcombine.high %v1329_v59, %v1333_v45  ;;  %v12362_v40 = vcombine.high %v1330_v50, %v1334_v61  ;;  %v1341_v42 = vld [vmem:[%s19767_s8 + $0x760] sm:$0xff]  ;;  %v1342_v46 = vld [vmem:[%s19767_s8 + $0x768] sm:$0xff]  ;;  %v1112_v30 = vld [vmem:[%s19767_s8 + $0x38] sm:$0xff] }
 0x2ca   :  { %3248 = vmatprep.subr.bf16.mxu1 %v12330_v23  ;;  %v12359_v2 = vcombine.low %v1329_v59, %v1333_v45  ;;  %v12361_v32 = vcombine.low %v1330_v50, %v1334_v61  ;;  %v12368_v38 = vcombine.high %v1337_v41, %v1341_v42  ;;  %v12370_v18 = vcombine.high %v1338_v47, %v1342_v46  ;;  %v1349_v23 = vld [vmem:[%s19767_s8 + $0x7a0] sm:$0xff]  ;;  %v1346_v22 = vld [vmem:[%s19767_s8 + $0x788] sm:$0xff]  ;;  %v1116_v59 = vld [vmem:[%s19767_s8 + $0x58] sm:$0xff] }
 0x2cb   :  { %v1350_v24 = vld [vmem:[%s19767_s8 + $0x7a8] sm:$0xff]  ;;  %v12367_v25 = vcombine.low %v1337_v41, %v1341_v42  ;;  %v12369_v7 = vcombine.low %v1338_v47, %v1342_v46  ;;  %v12375_v48 = vcombine.low %v1345_v36, %v1349_v23  ;;  %v1120_v45 = vld [vmem:[%s19767_s8 + $0x78] sm:$0xff]  ;;  %v12141_v61 = vcombine.low %v1108_v19, %v1112_v30 }
 0x2cc   :  { %3103 = vmatpush1.bf16.msra.mxu0 %v12327_v11  ;;  %v12376_v11 = vcombine.high %v1345_v36, %v1349_v23  ;;  %v1354_v58 = vld [vmem:[%s19767_s8 + $0x7c8] sm:$0xff]  ;;  %v12377_v49 = vcombine.low %v1346_v22, %v1350_v24  ;;  %v1124_v41 = vld [vmem:[%s19767_s8 + $0x98] sm:$0xff]  ;;  %v12149_v46 = vcombine.low %v1116_v59, %v1120_v45 }
 0x2cd   :  { %3249 = vmatpush1.bf16.msra.mxu1 %v12329_v14  ;;  %3104 = vmatprep.subr.bf16.mxu0 %v12336_v51  ;;  %v12378_v14 = vcombine.high %v1346_v22, %v1350_v24  ;;  %v1353_v51 = vld [vmem:[%s19767_s8 + $0x7c0] sm:$0xff]  ;;  %v1358_v57 = vld [vmem:[%s19767_s8 + $0x7e8] sm:$0xff]  ;;  %v1128_v42 = vld [vmem:[%s19767_s8 + $0xb8] sm:$0xff] }
 0x2ce   :  { %3250 = vmatprep.subr.bf16.mxu1 %v12338_v53  ;;  %v1357_v53 = vld [vmem:[%s19767_s8 + $0x7e0] sm:$0xff]  ;;  %v12385_v21 = vcombine.low %v1354_v58, %v1358_v57  ;;  %v1132_v36 = vld [vmem:[%s19767_s8 + $0xd8] sm:$0xff]  ;;  %v12157_v24 = vcombine.low %v1124_v41, %v1128_v42 }
 0x2cf   :  { %v12383_v60 = vcombine.low %v1353_v51, %v1357_v53  ;;  %v1136_v23 = vld [vmem:[%s19767_s8 + $0xf8] sm:$0xff] }
 0x2d0   :  { %3105 = vmatpush1.bf16.msra.mxu0 %v12335_v52  ;;  %v12384_v52 = vcombine.high %v1353_v51, %v1357_v53  ;;  %v1140_v51 = vld [vmem:[%s19767_s8 + $0x118] sm:$0xff] }
 0x2d1   :  { %3251 = vmatpush1.bf16.msra.mxu1 %v12337_v29  ;;  %3106 = vmatprep.subr.bf16.mxu0 %v12344_v15  ;;  %v12386_v29 = vcombine.high %v1354_v58, %v1358_v57  ;;  %v1107_v15 = vld [vmem:[%s19767_s8 + $0x10] sm:$0xff]  ;;  %v1144_v53 = vld [vmem:[%s19767_s8 + $0x138] sm:$0xff]  ;;  %v12165_v57 = vcombine.low %v1132_v36, %v1136_v23 }
 0x2d2   :  { %3252 = vmatprep.subr.bf16.mxu1 %v12346_v31  ;;  %v1111_v31 = vld [vmem:[%s19767_s8 + $0x30] sm:$0xff] }
 0x2d3   :  { %v12139_v50 = vcombine.low %v1107_v15, %v1111_v31 }
 0x2d4   :  { %3107 = vmatpush1.bf16.msra.mxu0 %v12343_v27  ;;  %v12140_v27 = vcombine.high %v1107_v15, %v1111_v31  ;;  %v1148_v15 = vld [vmem:[%s19767_s8 + $0x158] sm:$0xff] }
 0x2d5   :  { %3253 = vmatpush1.bf16.msra.mxu1 %v12345_v16  ;;  %3108 = vmatprep.subr.bf16.mxu0 %v12352_v1  ;;  %v12142_v16 = vcombine.high %v1108_v19, %v1112_v30  ;;  %v1115_v1 = vld [vmem:[%s19767_s8 + $0x50] sm:$0xff]  ;;  %v1152_v31 = vld [vmem:[%s19767_s8 + $0x178] sm:$0xff]  ;;  %v12173_v30 = vcombine.low %v1140_v51, %v1144_v53 }
 0x2d6   :  { %3254 = vmatprep.subr.bf16.mxu1 %v12354_v56  ;;  %v1119_v56 = vld [vmem:[%s19767_s8 + $0x70] sm:$0xff] }
 0x2d7   :  { %v12147_v47 = vcombine.low %v1115_v1, %v1119_v56 }
 0x2d8   :  { %3109 = vmatpush1.bf16.msra.mxu0 %v12351_v62  ;;  %v12148_v62 = vcombine.high %v1115_v1, %v1119_v56  ;;  %v1156_v1 = vld [vmem:[%s19767_s8 + $0x198] sm:$0xff] }
 0x2d9   :  { %3255 = vmatpush1.bf16.msra.mxu1 %v12353_v8  ;;  %3110 = vmatprep.subr.bf16.mxu0 %v12360_v33  ;;  %v12150_v8 = vcombine.high %v1116_v59, %v1120_v45  ;;  %v1123_v33 = vld [vmem:[%s19767_s8 + $0x90] sm:$0xff]  ;;  %v1160_v56 = vld [vmem:[%s19767_s8 + $0x1b8] sm:$0xff]  ;;  %v12181_v45 = vcombine.low %v1148_v15, %v1152_v31 }
 0x2da   :  { %3256 = vmatprep.subr.bf16.mxu1 %v12362_v40  ;;  %v1127_v40 = vld [vmem:[%s19767_s8 + $0xb0] sm:$0xff] }
 0x2db   :  { %v12155_v22 = vcombine.low %v1123_v33, %v1127_v40 }
 0x2dc   :  { %3111 = vmatpush1.bf16.msra.mxu0 %v12359_v2  ;;  %v12156_v2 = vcombine.high %v1123_v33, %v1127_v40  ;;  %v1164_v33 = vld [vmem:[%s19767_s8 + $0x1d8] sm:$0xff] }
 0x2dd   :  { %3257 = vmatpush1.bf16.msra.mxu1 %v12361_v32  ;;  %3112 = vmatprep.subr.bf16.mxu0 %v12368_v38  ;;  %v12158_v32 = vcombine.high %v1124_v41, %v1128_v42  ;;  %v1131_v38 = vld [vmem:[%s19767_s8 + $0xd0] sm:$0xff]  ;;  %v1168_v40 = vld [vmem:[%s19767_s8 + $0x1f8] sm:$0xff]  ;;  %v12189_v42 = vcombine.low %v1156_v1, %v1160_v56 }
 0x2de   :  { %3258 = vmatprep.subr.bf16.mxu1 %v12370_v18  ;;  %v1135_v18 = vld [vmem:[%s19767_s8 + $0xf0] sm:$0xff] }
 0x2df   :  { %v12163_v58 = vcombine.low %v1131_v38, %v1135_v18 }
 0x2e0   :  { %3113 = vmatpush1.bf16.msra.mxu0 %v12367_v25  ;;  %v12164_v25 = vcombine.high %v1131_v38, %v1135_v18  ;;  %v1172_v38 = vld [vmem:[%s19767_s8 + $0x218] sm:$0xff] }
 0x2e1   :  { %3259 = vmatpush1.bf16.msra.mxu1 %v12369_v7  ;;  %3114 = vmatprep.subr.bf16.mxu0 %v12376_v11  ;;  %v12166_v7 = vcombine.high %v1132_v36, %v1136_v23  ;;  %v1139_v11 = vld [vmem:[%s19767_s8 + $0x110] sm:$0xff]  ;;  %v1176_v18 = vld [vmem:[%s19767_s8 + $0x238] sm:$0xff]  ;;  %v12197_v23 = vcombine.low %v1164_v33, %v1168_v40 }
 0x2e2   :  { %3260 = vmatprep.subr.bf16.mxu1 %v12378_v14  ;;  %v1143_v14 = vld [vmem:[%s19767_s8 + $0x130] sm:$0xff] }
 0x2e3   :  { %v12171_v19 = vcombine.low %v1139_v11, %v1143_v14 }
 0x2e4   :  { %3115 = vmatpush1.bf16.msra.mxu0 %v12375_v48  ;;  %v12172_v48 = vcombine.high %v1139_v11, %v1143_v14  ;;  %v1184_v11 = vld [vmem:[%s19767_s8 + $0x278] sm:$0xff] }
 0x2e5   :  { %3261 = vmatpush1.bf16.msra.mxu1 %v12377_v49  ;;  %3116 = vmatprep.subr.bf16.mxu0 %v12384_v52  ;;  %v12174_v49 = vcombine.high %v1140_v51, %v1144_v53  ;;  %v1147_v52 = vld [vmem:[%s19767_s8 + $0x150] sm:$0xff]  ;;  %v12205_v51 = vcombine.low %v1172_v38, %v1176_v18 }
 0x2e6   :  { %3262 = vmatprep.subr.bf16.mxu1 %v12386_v29  ;;  %v1151_v29 = vld [vmem:[%s19767_s8 + $0x170] sm:$0xff] }
 0x2e7   :  { %v12179_v59 = vcombine.low %v1147_v52, %v1151_v29 }
 0x2e8   :  { %3117 = vmatpush1.bf16.msra.mxu0 %v12383_v60  ;;  %v12180_v60 = vcombine.high %v1147_v52, %v1151_v29  ;;  %v1192_v52 = vld [vmem:[%s19767_s8 + $0x2b8] sm:$0xff] }
 0x2e9   :  { %3263 = vmatpush1.bf16.msra.mxu1 %v12385_v21  ;;  %3305 = vmatprep.subr.bf16.mxu0 %v12140_v27  ;;  %v12182_v21 = vcombine.high %v1148_v15, %v1152_v31  ;;  %v1155_v27 = vld [vmem:[%s19767_s8 + $0x190] sm:$0xff] }
 0x2ea   :  { %3451 = vmatprep.subr.bf16.mxu1 %v12142_v16  ;;  %v1159_v16 = vld [vmem:[%s19767_s8 + $0x1b0] sm:$0xff] }
 0x2eb   :  { %3119 = vmatmul.mubr.bf16.vlgmr.msra.gmra.mrb[16].mxu0 %v15009_v3  ;;  %v12187_v41 = vcombine.low %v1155_v27, %v1159_v16 }
 0x2ec   :  { %3265 = vmatmul.mubr.bf16.vlgmr.msra.gmra.mrb[44].mxu1 %v15009_v3  ;;  %3128 = vmatprep.mubr.bf16.mxu0 %v15081_v0 }
 0x2ed   :  { %3274 = vmatprep.mubr.bf16.mxu1 %v15081_v0  ;;  %3306 = vmatpush1.bf16.msra.mxu0 %v12139_v50  ;;  %v12188_v50 = vcombine.high %v1155_v27, %v1159_v16  ;;  %v1200_v27 = vld [vmem:[%s19767_s8 + $0x2f8] sm:$0xff] }
 0x2ee   :  { %3452 = vmatpush1.bf16.msra.mxu1 %v12141_v61  ;;  %3307 = vmatprep.subr.bf16.mxu0 %v12148_v62  ;;  %v12190_v61 = vcombine.high %v1156_v1, %v1160_v56  ;;  %v1163_v62 = vld [vmem:[%s19767_s8 + $0x1d0] sm:$0xff] }
 0x2ef   :  { %3453 = vmatprep.subr.bf16.mxu1 %v12150_v8  ;;  %v1167_v8 = vld [vmem:[%s19767_s8 + $0x1f0] sm:$0xff] }
 0x2f0   :  { %v12195_v36 = vcombine.low %v1163_v62, %v1167_v8 }
 0x2f1   :  { %3308 = vmatpush1.bf16.msra.mxu0 %v12147_v47  ;;  %v12196_v47 = vcombine.high %v1163_v62, %v1167_v8  ;;  %v1208_v62 = vld [vmem:[%s19767_s8 + $0x338] sm:$0xff] }
 0x2f2   :  { %3454 = vmatpush1.bf16.msra.mxu1 %v12149_v46  ;;  %3309 = vmatprep.subr.bf16.mxu0 %v12156_v2  ;;  %v12198_v46 = vcombine.high %v1164_v33, %v1168_v40  ;;  %v1171_v2 = vld [vmem:[%s19767_s8 + $0x210] sm:$0xff] }
 0x2f3   :  { %3455 = vmatprep.subr.bf16.mxu1 %v12158_v32  ;;  %3129 = vmatmul.mubr.bf16.gmra.mrb[20].mxu0 %v15059_v44  ;;  %v1175_v32 = vld [vmem:[%s19767_s8 + $0x230] sm:$0xff] }
 0x2f4   :  { %3275 = vmatmul.mubr.bf16.gmra.mrb[48].mxu1 %v15059_v44  ;;  %3138 = vmatprep.mubr.bf16.mxu0 %v15174_v10  ;;  %v12203_v14 = vcombine.low %v1171_v2, %v1175_v32 }
 0x2f5   :  { %3284 = vmatprep.mubr.bf16.mxu1 %v15174_v10  ;;  %3310 = vmatpush1.bf16.msra.mxu0 %v12155_v22  ;;  %v12204_v22 = vcombine.high %v1171_v2, %v1175_v32  ;;  %v1216_v2 = vld [vmem:[%s19767_s8 + $0x378] sm:$0xff] }
 0x2f6   :  { %3456 = vmatpush1.bf16.msra.mxu1 %v12157_v24  ;;  %3311 = vmatprep.subr.bf16.mxu0 %v12164_v25  ;;  %v12206_v24 = vcombine.high %v1172_v38, %v1176_v18  ;;  %v1179_v25 = vld [vmem:[%s19767_s8 + $0x250] sm:$0xff] }
 0x2f7   :  { %3457 = vmatprep.subr.bf16.mxu1 %v12166_v7  ;;  %v1183_v7 = vld [vmem:[%s19767_s8 + $0x270] sm:$0xff] }
 0x2f8   :  { %v12212_v53 = vcombine.high %v1179_v25, %v1183_v7  ;;  %v12211_v29 = vcombine.low %v1179_v25, %v1183_v7  ;;  %v1224_v25 = vld [vmem:[%s19767_s8 + $0x3b8] sm:$0xff] }
 0x2f9   :  { %3312 = vmatpush1.bf16.msra.mxu0 %v12163_v58 }
 0x2fa   :  { %3458 = vmatpush1.bf16.msra.mxu1 %v12165_v57  ;;  %3313 = vmatprep.subr.bf16.mxu0 %v12172_v48  ;;  %v1187_v57 = vld [vmem:[%s19767_s8 + $0x290] sm:$0xff] }
 0x2fb   :  { %3459 = vmatprep.subr.bf16.mxu1 %v12174_v49  ;;  %3139 = vmatmul.mubr.bf16.gmra.mrb[24].mxu0 %v15156_v12  ;;  %v1191_v48 = vld [vmem:[%s19767_s8 + $0x2b0] sm:$0xff]  ;;  %v1188_v49 = vld [vmem:[%s19767_s8 + $0x298] sm:$0xff] }
 0x2fc   :  { %3285 = vmatmul.mubr.bf16.gmra.mrb[52].mxu1 %v15156_v12  ;;  %3148 = vmatprep.mubr.bf16.mxu0 %v15205_v39  ;;  %v12220_v31 = vcombine.high %v1187_v57, %v1191_v48  ;;  %v12219_v16 = vcombine.low %v1187_v57, %v1191_v48  ;;  %v12221_v1 = vcombine.low %v1188_v49, %v1192_v52  ;;  %v1232_v57 = vld [vmem:[%s19767_s8 + $0x3f8] sm:$0xff] }
 0x2fd   :  { %3294 = vmatprep.mubr.bf16.mxu1 %v15205_v39  ;;  %3314 = vmatpush1.bf16.msra.mxu0 %v12171_v19  ;;  %v12222_v19 = vcombine.high %v1188_v49, %v1192_v52 }
 0x2fe   :  { %3460 = vmatpush1.bf16.msra.mxu1 %v12173_v30  ;;  %3315 = vmatprep.subr.bf16.mxu0 %v12180_v60  ;;  %v1195_v30 = vld [vmem:[%s19767_s8 + $0x2d0] sm:$0xff] }
 0x2ff   :  { %3461 = vmatprep.subr.bf16.mxu1 %v12182_v21  ;;  %v1199_v60 = vld [vmem:[%s19767_s8 + $0x2f0] sm:$0xff]  ;;  %v1196_v21 = vld [vmem:[%s19767_s8 + $0x2d8] sm:$0xff] }
 0x300   :  { %v12228_v56 = vcombine.high %v1195_v30, %v1199_v60  ;;  %v12227_v8 = vcombine.low %v1195_v30, %v1199_v60  ;;  %v12229_v33 = vcombine.low %v1196_v21, %v1200_v27  ;;  %v1240_v30 = vld [vmem:[%s19767_s8 + $0x438] sm:$0xff] }
 0x301   :  { %3316 = vmatpush1.bf16.msra.mxu0 %v12179_v59  ;;  %v12230_v59 = vcombine.high %v1196_v21, %v1200_v27 }
 0x302   :  { %3462 = vmatpush1.bf16.msra.mxu1 %v12181_v45  ;;  %3317 = vmatprep.subr.bf16.mxu0 %v12188_v50  ;;  %v1203_v45 = vld [vmem:[%s19767_s8 + $0x310] sm:$0xff] }
 0x303   :  { %3463 = vmatprep.subr.bf16.mxu1 %v12190_v61  ;;  %3149 = vmatmul.mubr.bf16.gmra.mrb[44].mxu0 %v15203_v17  ;;  %v1207_v50 = vld [vmem:[%s19767_s8 + $0x330] sm:$0xff]  ;;  %v1204_v61 = vld [vmem:[%s19767_s8 + $0x318] sm:$0xff] }
 0x304   :  { %3295 = vmatmul.mubr.bf16.gmra.mrb[56].mxu1 %v15203_v17  ;;  %3337 = vmatprep.mubr.bf16.mxu0 %v15011_v43  ;;  %v12236_v40 = vcombine.high %v1203_v45, %v1207_v50  ;;  %v12235_v32 = vcombine.low %v1203_v45, %v1207_v50  ;;  %v12237_v38 = vcombine.low %v1204_v61, %v1208_v62  ;;  %v1248_v45 = vld [vmem:[%s19767_s8 + $0x478] sm:$0xff] }
 0x305   :  { %3483 = vmatprep.mubr.bf16.mxu1 %v15011_v43  ;;  %3318 = vmatpush1.bf16.msra.mxu0 %v12187_v41  ;;  %v1180_v43 = vld [vmem:[%s19767_s8 + $0x258] sm:$0xff]  ;;  %v12238_v41 = vcombine.high %v1204_v61, %v1208_v62 }
 0x306   :  { %3464 = vmatpush1.bf16.msra.mxu1 %v12189_v42  ;;  %3319 = vmatprep.subr.bf16.mxu0 %v12196_v47  ;;  %v12214_v58 = vcombine.high %v1180_v43, %v1184_v11  ;;  %v12213_v15 = vcombine.low %v1180_v43, %v1184_v11  ;;  %v1211_v42 = vld [vmem:[%s19767_s8 + $0x350] sm:$0xff] }
 0x307   :  { %3465 = vmatprep.subr.bf16.mxu1 %v12198_v46  ;;  %v1215_v47 = vld [vmem:[%s19767_s8 + $0x370] sm:$0xff]  ;;  %v1212_v46 = vld [vmem:[%s19767_s8 + $0x358] sm:$0xff] }
 0x308   :  { %v12244_v18 = vcombine.high %v1211_v42, %v1215_v47  ;;  %v12243_v7 = vcombine.low %v1211_v42, %v1215_v47  ;;  %v12245_v43 = vcombine.low %v1212_v46, %v1216_v2  ;;  %v1256_v42 = vld [vmem:[%s19767_s8 + $0x4b8] sm:$0xff] }
 0x309   :  { %3320 = vmatpush1.bf16.msra.mxu0 %v12195_v36  ;;  %v12246_v36 = vcombine.high %v1212_v46, %v1216_v2 }
 0x30a   :  { %3466 = vmatpush1.bf16.msra.mxu1 %v12197_v23  ;;  %3321 = vmatprep.subr.bf16.mxu0 %v12204_v22  ;;  %v1219_v23 = vld [vmem:[%s19767_s8 + $0x390] sm:$0xff] }
 0x30b   :  { %3467 = vmatprep.subr.bf16.mxu1 %v12206_v24  ;;  %v1223_v22 = vld [vmem:[%s19767_s8 + $0x3b0] sm:$0xff]  ;;  %v1220_v24 = vld [vmem:[%s19767_s8 + $0x398] sm:$0xff] }
 0x30c   :  { %v12252_v11 = vcombine.high %v1219_v23, %v1223_v22  ;;  %v12251_v48 = vcombine.low %v1219_v23, %v1223_v22  ;;  %v12253_v49 = vcombine.low %v1220_v24, %v1224_v25 }
 0x30d   :  { %3322 = vmatpush1.bf16.msra.mxu0 %v12203_v14  ;;  %v12254_v14 = vcombine.high %v1220_v24, %v1224_v25  ;;  %v1267_v25 = vld [vmem:[%s19767_s8 + $0x510] sm:$0xff] }
 0x30e   :  { %3468 = vmatpush1.bf16.msra.mxu1 %v12205_v51  ;;  %3323 = vmatprep.subr.bf16.mxu0 %v12212_v53  ;;  %v1227_v51 = vld [vmem:[%s19767_s8 + $0x3d0] sm:$0xff] }
 0x30f   :  { %3469 = vmatprep.subr.bf16.mxu1 %v12214_v58  ;;  %v1231_v53 = vld [vmem:[%s19767_s8 + $0x3f0] sm:$0xff]  ;;  %v1228_v58 = vld [vmem:[%s19767_s8 + $0x3d8] sm:$0xff] }
 0x310   :  { %v12260_v52 = vcombine.high %v1227_v51, %v1231_v53  ;;  %v12259_v60 = vcombine.low %v1227_v51, %v1231_v53  ;;  %v12261_v21 = vcombine.low %v1228_v58, %v1232_v57 }
 0x311   :  { %3324 = vmatpush1.bf16.msra.mxu0 %v12211_v29  ;;  %v12262_v29 = vcombine.high %v1228_v58, %v1232_v57  ;;  %v1275_v58 = vld [vmem:[%s19767_s8 + $0x550] sm:$0xff] }
 0x312   :  { %3470 = vmatpush1.bf16.msra.mxu1 %v12213_v15  ;;  %3325 = vmatprep.subr.bf16.mxu0 %v12220_v31  ;;  %v1235_v15 = vld [vmem:[%s19767_s8 + $0x410] sm:$0xff] }
 0x313   :  { %3471 = vmatprep.subr.bf16.mxu1 %v12222_v19  ;;  %v1239_v31 = vld [vmem:[%s19767_s8 + $0x430] sm:$0xff]  ;;  %v1236_v19 = vld [vmem:[%s19767_s8 + $0x418] sm:$0xff] }
 0x314   :  { %v12268_v27 = vcombine.high %v1235_v15, %v1239_v31  ;;  %v12267_v50 = vcombine.low %v1235_v15, %v1239_v31  ;;  %v12269_v61 = vcombine.low %v1236_v19, %v1240_v30  ;;  %v1279_v57 = vld [vmem:[%s19767_s8 + $0x570] sm:$0xff] }
 0x315   :  { %3326 = vmatpush1.bf16.msra.mxu0 %v12219_v16  ;;  %v12270_v16 = vcombine.high %v1236_v19, %v1240_v30  ;;  %v1283_v31 = vld [vmem:[%s19767_s8 + $0x590] sm:$0xff]  ;;  %v1284_v30 = vld [vmem:[%s19767_s8 + $0x598] sm:$0xff] }
 0x316   :  { %3472 = vmatpush1.bf16.msra.mxu1 %v12221_v1  ;;  %3327 = vmatprep.subr.bf16.mxu0 %v12228_v56  ;;  %v1243_v1 = vld [vmem:[%s19767_s8 + $0x450] sm:$0xff] }
 0x317   :  { %3473 = vmatprep.subr.bf16.mxu1 %v12230_v59  ;;  %v1247_v56 = vld [vmem:[%s19767_s8 + $0x470] sm:$0xff]  ;;  %v1244_v59 = vld [vmem:[%s19767_s8 + $0x458] sm:$0xff] }
 0x318   :  { %v12276_v62 = vcombine.high %v1243_v1, %v1247_v56  ;;  %v12275_v47 = vcombine.low %v1243_v1, %v1247_v56  ;;  %v12277_v46 = vcombine.low %v1244_v59, %v1248_v45  ;;  %v1287_v19 = vld [vmem:[%s19767_s8 + $0x5b0] sm:$0xff] }
 0x319   :  { %3328 = vmatpush1.bf16.msra.mxu0 %v12227_v8  ;;  %v12278_v8 = vcombine.high %v1244_v59, %v1248_v45  ;;  %v1291_v1 = vld [vmem:[%s19767_s8 + $0x5d0] sm:$0xff]  ;;  %v1292_v59 = vld [vmem:[%s19767_s8 + $0x5d8] sm:$0xff]  ;;  %v12315_v45 = vcombine.low %v1283_v31, %v1287_v19 }
 0x31a   :  { %3474 = vmatpush1.bf16.msra.mxu1 %v12229_v33  ;;  %3329 = vmatprep.subr.bf16.mxu0 %v12236_v40  ;;  %v1251_v33 = vld [vmem:[%s19767_s8 + $0x490] sm:$0xff] }
 0x31b   :  { %3475 = vmatprep.subr.bf16.mxu1 %v12238_v41  ;;  %v1255_v40 = vld [vmem:[%s19767_s8 + $0x4b0] sm:$0xff]  ;;  %v1252_v41 = vld [vmem:[%s19767_s8 + $0x498] sm:$0xff] }
 0x31c   :  { %v12284_v2 = vcombine.high %v1251_v33, %v1255_v40  ;;  %v12285_v23 = vcombine.low %v1252_v41, %v1256_v42  ;;  %v1295_v56 = vld [vmem:[%s19767_s8 + $0x5f0] sm:$0xff] }
 0x31d   :  { %3330 = vmatpush1.bf16.msra.mxu0 %v12235_v32  ;;  %v1259_v32 = vld [vmem:[%s19767_s8 + $0x4d0] sm:$0xff] }
 0x31e   :  { %3476 = vmatpush1.bf16.msra.mxu1 %v12237_v38  ;;  %3331 = vmatprep.subr.bf16.mxu0 %v12244_v18  ;;  %v1263_v38 = vld [vmem:[%s19767_s8 + $0x4f0] sm:$0xff]  ;;  %v1260_v18 = vld [vmem:[%s19767_s8 + $0x4d8] sm:$0xff] }
 0x31f   :  { %3477 = vmatprep.subr.bf16.mxu1 %v12246_v36  ;;  %v12283_v36 = vcombine.low %v1251_v33, %v1255_v40  ;;  %v12292_v22 = vcombine.high %v1259_v32, %v1263_v38  ;;  %v1303_v33 = vld [vmem:[%s19767_s8 + $0x630] sm:$0xff]  ;;  %v1300_v40 = vld [vmem:[%s19767_s8 + $0x618] sm:$0xff] }
 0x321   :  { %3332 = vmatpush1.bf16.msra.mxu0 %v12243_v7  ;;  %v1271_v7 = vld [vmem:[%s19767_s8 + $0x530] sm:$0xff] }
 0x322   :  { %3478 = vmatpush1.bf16.msra.mxu1 %v12245_v43  ;;  %3333 = vmatprep.subr.bf16.mxu0 %v12252_v11  ;;  %v1268_v43 = vld [vmem:[%s19767_s8 + $0x518] sm:$0xff]  ;;  %v12300_v53 = vcombine.high %v1267_v25, %v1271_v7 }
 0x323   :  { %3479 = vmatprep.subr.bf16.mxu1 %v12254_v14  ;;  %v1272_v11 = vld [vmem:[%s19767_s8 + $0x538] sm:$0xff]  ;;  %v12291_v14 = vcombine.low %v1259_v32, %v1263_v38 }
 0x324   :  { %v1308_v32 = vld [vmem:[%s19767_s8 + $0x658] sm:$0xff] }
 0x325   :  { %3334 = vmatpush1.bf16.msra.mxu0 %v12251_v48  ;;  %v1276_v48 = vld [vmem:[%s19767_s8 + $0x558] sm:$0xff] }
 0x326   :  { %3480 = vmatpush1.bf16.msra.mxu1 %v12253_v49  ;;  %3335 = vmatprep.subr.bf16.mxu0 %v12260_v52  ;;  %v12299_v49 = vcombine.low %v1267_v25, %v1271_v7  ;;  %v12301_v52 = vcombine.low %v1268_v43, %v1272_v11  ;;  %v1320_v25 = vld [vmem:[%s19767_s8 + $0x6b8] sm:$0xff] }
 0x327   :  { %3481 = vmatprep.subr.bf16.mxu1 %v12262_v29  ;;  %v12308_v29 = vcombine.high %v1275_v58, %v1279_v57 }
 0x329   :  { %3336 = vmatpush1.bf16.msra.mxu0 %v12259_v60  ;;  %v1288_v60 = vld [vmem:[%s19767_s8 + $0x5b8] sm:$0xff] }
 0x32a   :  { %3482 = vmatpush1.bf16.msra.mxu1 %v12261_v21  ;;  %3378 = vmatprep.subr.bf16.mxu0 %v12268_v27  ;;  %v12307_v21 = vcombine.low %v1275_v58, %v1279_v57  ;;  %v1328_v58 = vld [vmem:[%s19767_s8 + $0x6f8] sm:$0xff] }
 0x32b   :  { %3524 = vmatprep.subr.bf16.mxu1 %v12270_v16  ;;  %v12316_v16 = vcombine.high %v1283_v31, %v1287_v19  ;;  %v1336_v31 = vld [vmem:[%s19767_s8 + $0x738] sm:$0xff] }
 0x32c   :  { %3338 = vmatmul.mubr.bf16.vlgmr.msra.gmra.mrb[28].mxu0 %v15007_v6 }
 0x32d   :  { %3484 = vmatmul.mubr.bf16.vlgmr.msra.gmra.mrb[60].mxu1 %v15007_v6  ;;  %3347 = vmatprep.mubr.bf16.mxu0 %v15078_v28  ;;  %v12286_v6 = vcombine.high %v1252_v41, %v1256_v42  ;;  %v1304_v41 = vld [vmem:[%s19767_s8 + $0x638] sm:$0xff]  ;;  %v12323_v42 = vcombine.low %v1291_v1, %v1295_v56 }
 0x32e   :  { %3379 = vmatpush1.bf16.msra.mxu0 %v12267_v50  ;;  %3493 = vmatprep.mubr.bf16.mxu1 %v15078_v28  ;;  %v1264_v28 = vld [vmem:[%s19767_s8 + $0x4f8] sm:$0xff]  ;;  %v12317_v50 = vcombine.low %v1284_v30, %v1288_v60 }
 0x32f   :  { %3525 = vmatpush1.bf16.msra.mxu1 %v12269_v61  ;;  %3380 = vmatprep.subr.bf16.mxu0 %v12276_v62  ;;  %v12294_v24 = vcombine.high %v1260_v18, %v1264_v28  ;;  %v12293_v51 = vcombine.low %v1260_v18, %v1264_v28  ;;  %v12324_v61 = vcombine.high %v1291_v1, %v1295_v56  ;;  %v1344_v1 = vld [vmem:[%s19767_s8 + $0x778] sm:$0xff] }
 0x330   :  { %3526 = vmatprep.subr.bf16.mxu1 %v12278_v8  ;;  %v1299_v8 = vld [vmem:[%s19767_s8 + $0x610] sm:$0xff]  ;;  %v12333_v18 = vcombine.low %v1300_v40, %v1304_v41 }
 0x331   :  { %v12331_v38 = vcombine.low %v1299_v8, %v1303_v33 }
 0x332   :  { %3381 = vmatpush1.bf16.msra.mxu0 %v12275_v47 }
 0x333   :  { %3527 = vmatpush1.bf16.msra.mxu1 %v12277_v46  ;;  %3382 = vmatprep.subr.bf16.mxu0 %v12284_v2  ;;  %v12332_v46 = vcombine.high %v1299_v8, %v1303_v33  ;;  %v1307_v2 = vld [vmem:[%s19767_s8 + $0x650] sm:$0xff]  ;;  %v1352_v8 = vld [vmem:[%s19767_s8 + $0x7b8] sm:$0xff] }
 0x334   :  { %3528 = vmatprep.subr.bf16.mxu1 %v12286_v6  ;;  %3348 = vmatmul.mubr.bf16.gmra.mrb[32].mxu0 %v15053_v9  ;;  %v1311_v6 = vld [vmem:[%s19767_s8 + $0x670] sm:$0xff] }
 0x335   :  { %3494 = vmatmul.mubr.bf16.gmra.mrb[64].mxu1 %v15053_v9  ;;  %3357 = vmatprep.mubr.bf16.mxu0 %v15108_v13  ;;  %v12302_v9 = vcombine.high %v1268_v43, %v1272_v11  ;;  %v12340_v28 = vcombine.high %v1307_v2, %v1311_v6  ;;  %v12339_v7 = vcombine.low %v1307_v2, %v1311_v6  ;;  %v1360_v2 = vld [vmem:[%s19767_s8 + $0x7f8] sm:$0xff] }
 0x336   :  { %3383 = vmatpush1.bf16.msra.mxu0 %v12283_v36  ;;  %3503 = vmatprep.mubr.bf16.mxu1 %v15108_v13  ;;  %v1280_v13 = vld [vmem:[%s19767_s8 + $0x578] sm:$0xff] }
 0x337   :  { %3529 = vmatpush1.bf16.msra.mxu1 %v12285_v23  ;;  %3384 = vmatprep.subr.bf16.mxu0 %v12292_v22  ;;  %v12310_v15 = vcombine.high %v1276_v48, %v1280_v13  ;;  %v12309_v27 = vcombine.low %v1276_v48, %v1280_v13  ;;  %v1315_v23 = vld [vmem:[%s19767_s8 + $0x690] sm:$0xff] }
 0x338   :  { %3530 = vmatprep.subr.bf16.mxu1 %v12294_v24  ;;  %v1319_v22 = vld [vmem:[%s19767_s8 + $0x6b0] sm:$0xff]  ;;  %v1316_v24 = vld [vmem:[%s19767_s8 + $0x698] sm:$0xff] }
 0x339   :  { %v12348_v11 = vcombine.high %v1315_v23, %v1319_v22  ;;  %v12347_v57 = vcombine.low %v1315_v23, %v1319_v22  ;;  %v12349_v48 = vcombine.low %v1316_v24, %v1320_v25  ;;  %v3786_v23 = vld [vmem:[%s19769_s11 + $0x28] sm:$0xff] }
 0x33a   :  { %3385 = vmatpush1.bf16.msra.mxu0 %v12291_v14  ;;  %v12350_v14 = vcombine.high %v1316_v24, %v1320_v25 }
 0x33b   :  { %3531 = vmatpush1.bf16.msra.mxu1 %v12293_v51  ;;  %3386 = vmatprep.subr.bf16.mxu0 %v12300_v53  ;;  %v1323_v51 = vld [vmem:[%s19767_s8 + $0x6d0] sm:$0xff] }
 0x33c   :  { %3532 = vmatprep.subr.bf16.mxu1 %v12302_v9  ;;  %3358 = vmatmul.mubr.bf16.gmra.mrb[36].mxu0 %v15098_v5  ;;  %v1327_v53 = vld [vmem:[%s19767_s8 + $0x6f0] sm:$0xff]  ;;  %v1324_v9 = vld [vmem:[%s19767_s8 + $0x6d8] sm:$0xff] }
 0x33d   :  { %3504 = vmatmul.mubr.bf16.gmra.mrb[68].mxu1 %v15098_v5  ;;  %3367 = vmatprep.mubr.bf16.mxu0 %v15149_v55  ;;  %v12318_v5 = vcombine.high %v1284_v30, %v1288_v60  ;;  %v12356_v13 = vcombine.high %v1323_v51, %v1327_v53  ;;  %v12355_v19 = vcombine.low %v1323_v51, %v1327_v53  ;;  %v3794_v51 = vld [vmem:[%s19769_s11 + $0x68] sm:$0xff] }
 0x33e   :  { %3387 = vmatpush1.bf16.msra.mxu0 %v12299_v49  ;;  %3513 = vmatprep.mubr.bf16.mxu1 %v15149_v55  ;;  %v1296_v55 = vld [vmem:[%s19767_s8 + $0x5f8] sm:$0xff]  ;;  %v12358_v49 = vcombine.high %v1324_v9, %v1328_v58  ;;  %v12357_v30 = vcombine.low %v1324_v9, %v1328_v58 }
 0x33f   :  { %3533 = vmatpush1.bf16.msra.mxu1 %v12301_v52  ;;  %3388 = vmatprep.subr.bf16.mxu0 %v12308_v29  ;;  %v12326_v62 = vcombine.high %v1292_v59, %v1296_v55  ;;  %v12325_v47 = vcombine.low %v1292_v59, %v1296_v55  ;;  %v1331_v52 = vld [vmem:[%s19767_s8 + $0x710] sm:$0xff] }
 0x340   :  { %3534 = vmatprep.subr.bf16.mxu1 %v12310_v15  ;;  %v1335_v29 = vld [vmem:[%s19767_s8 + $0x730] sm:$0xff]  ;;  %v1332_v15 = vld [vmem:[%s19767_s8 + $0x718] sm:$0xff] }
 0x341   :  { %v12364_v60 = vcombine.high %v1331_v52, %v1335_v29  ;;  %v12363_v56 = vcombine.low %v1331_v52, %v1335_v29  ;;  %v12365_v59 = vcombine.low %v1332_v15, %v1336_v31  ;;  %v3802_v52 = vld [vmem:[%s19769_s11 + $0xa8] sm:$0xff] }
 0x342   :  { %3389 = vmatpush1.bf16.msra.mxu0 %v12307_v21  ;;  %v12366_v21 = vcombine.high %v1332_v15, %v1336_v31 }
 0x343   :  { %3535 = vmatpush1.bf16.msra.mxu1 %v12309_v27  ;;  %3390 = vmatprep.subr.bf16.mxu0 %v12316_v16  ;;  %v1339_v27 = vld [vmem:[%s19767_s8 + $0x750] sm:$0xff] }
 0x344   :  { %3536 = vmatprep.subr.bf16.mxu1 %v12318_v5  ;;  %3368 = vmatmul.mubr.bf16.gmra.mrb[40].mxu0 %v15138_v26  ;;  %v1343_v16 = vld [vmem:[%s19767_s8 + $0x770] sm:$0xff]  ;;  %v1340_v5 = vld [vmem:[%s19767_s8 + $0x758] sm:$0xff] }
 0x345   :  { %3514 = vmatmul.mubr.bf16.gmra.mrb[72].mxu1 %v15138_v26  ;;  %3410 = vmatprep.mubr.bf16.mxu0 %v15013_v37  ;;  %v12334_v26 = vcombine.high %v1300_v40, %v1304_v41  ;;  %v12372_v55 = vcombine.high %v1339_v27, %v1343_v16  ;;  %v12371_v33 = vcombine.low %v1339_v27, %v1343_v16 }
 0x346   :  { %3391 = vmatpush1.bf16.msra.mxu0 %v12315_v45  ;;  %3556 = vmatprep.mubr.bf16.mxu1 %v15013_v37  ;;  %v1312_v37 = vld [vmem:[%s19767_s8 + $0x678] sm:$0xff]  ;;  %v12374_v45 = vcombine.high %v1340_v5, %v1344_v1  ;;  %v12373_v40 = vcombine.low %v1340_v5, %v1344_v1  ;;  %v3813_v1 = vld [vmem:[%s19769_s11 + $0x100] sm:$0xff] }
 0x347   :  { %3537 = vmatpush1.bf16.msra.mxu1 %v12317_v50  ;;  %3392 = vmatprep.subr.bf16.mxu0 %v12324_v61  ;;  %v12342_v36 = vcombine.high %v1308_v32, %v1312_v37  ;;  %v12341_v43 = vcombine.low %v1308_v32, %v1312_v37  ;;  %v1347_v50 = vld [vmem:[%s19767_s8 + $0x790] sm:$0xff] }
 0x348   :  { %3538 = vmatprep.subr.bf16.mxu1 %v12326_v62  ;;  %v1351_v61 = vld [vmem:[%s19767_s8 + $0x7b0] sm:$0xff]  ;;  %v1348_v62 = vld [vmem:[%s19767_s8 + $0x798] sm:$0xff] }
 0x349   :  { %v12380_v41 = vcombine.high %v1347_v50, %v1351_v61  ;;  %v12379_v6 = vcombine.low %v1347_v50, %v1351_v61  ;;  %v12381_v32 = vcombine.low %v1348_v62, %v1352_v8 }
 0x34a   :  { %3393 = vmatpush1.bf16.msra.mxu0 %v12323_v42  ;;  %v12382_v42 = vcombine.high %v1348_v62, %v1352_v8  ;;  %v3821_v62 = vld [vmem:[%s19769_s11 + $0x140] sm:$0xff] }
 0x34b   :  { %3539 = vmatpush1.bf16.msra.mxu1 %v12325_v47  ;;  %3394 = vmatprep.subr.bf16.mxu0 %v12332_v46  ;;  %v1355_v47 = vld [vmem:[%s19767_s8 + $0x7d0] sm:$0xff]  ;;  %v3825_v8 = vld [vmem:[%s19769_s11 + $0x160] sm:$0xff] }
 0x34c   :  { %3540 = vmatprep.subr.bf16.mxu1 %v12334_v26  ;;  %v1359_v46 = vld [vmem:[%s19767_s8 + $0x7f0] sm:$0xff]  ;;  %v1356_v26 = vld [vmem:[%s19767_s8 + $0x7d8] sm:$0xff] }
 0x34d   :  { %v12388_v37 = vcombine.high %v1355_v47, %v1359_v46  ;;  %v12387_v22 = vcombine.low %v1355_v47, %v1359_v46  ;;  %v12389_v24 = vcombine.low %v1356_v26, %v1360_v2  ;;  %v3829_v46 = vld [vmem:[%s19769_s11 + $0x180] sm:$0xff] }
 0x34e   :  { %3395 = vmatpush1.bf16.msra.mxu0 %v12331_v38  ;;  %v12390_v38 = vcombine.high %v1356_v26, %v1360_v2  ;;  %v3833_v26 = vld [vmem:[%s19769_s11 + $0x1a0] sm:$0xff]  ;;  %v3830_v2 = vld [vmem:[%s19769_s11 + $0x188] sm:$0xff] }
 0x34f   :  { %3541 = vmatpush1.bf16.msra.mxu1 %v12333_v18  ;;  %3396 = vmatprep.subr.bf16.mxu0 %v12340_v28  ;;  %v3781_v18 = vld [vmem:[%s19769_s11] sm:$0xff] }
 0x350   :  { %3542 = vmatprep.subr.bf16.mxu1 %v12342_v36  ;;  %v3785_v28 = vld [vmem:[%s19769_s11 + $0x20] sm:$0xff]  ;;  %v3782_v36 = vld [vmem:[%s19769_s11 + $0x8] sm:$0xff] }
 0x351   :  { %v12392_v25 = vcombine.high %v3781_v18, %v3785_v28  ;;  %v12391_v53 = vcombine.low %v3781_v18, %v3785_v28  ;;  %v12393_v9 = vcombine.low %v3782_v36, %v3786_v23  ;;  %v3837_v18 = vld [vmem:[%s19769_s11 + $0x1c0] sm:$0xff] }
 0x352   :  { %3397 = vmatpush1.bf16.msra.mxu0 %v12339_v7  ;;  %v12394_v7 = vcombine.high %v3782_v36, %v3786_v23  ;;  %v3841_v28 = vld [vmem:[%s19769_s11 + $0x1e0] sm:$0xff]  ;;  %v3842_v36 = vld [vmem:[%s19769_s11 + $0x1e8] sm:$0xff]  ;;  %v12439_v23 = vcombine.low %v3829_v46, %v3833_v26 }
 0x353   :  { %3543 = vmatpush1.bf16.msra.mxu1 %v12341_v43  ;;  %3398 = vmatprep.subr.bf16.mxu0 %v12348_v11  ;;  %v3789_v43 = vld [vmem:[%s19769_s11 + $0x40] sm:$0xff] }
 0x354   :  { %3544 = vmatprep.subr.bf16.mxu1 %v12350_v14  ;;  %v3793_v11 = vld [vmem:[%s19769_s11 + $0x60] sm:$0xff]  ;;  %v3790_v14 = vld [vmem:[%s19769_s11 + $0x48] sm:$0xff] }
 0x355   :  { %v12400_v58 = vcombine.high %v3789_v43, %v3793_v11  ;;  %v12399_v29 = vcombine.low %v3789_v43, %v3793_v11  ;;  %v12401_v15 = vcombine.low %v3790_v14, %v3794_v51  ;;  %v3849_v43 = vld [vmem:[%s19769_s11 + $0x220] sm:$0xff]  ;;  %v3846_v11 = vld [vmem:[%s19769_s11 + $0x208] sm:$0xff] }
 0x356   :  { %3399 = vmatpush1.bf16.msra.mxu0 %v12347_v57  ;;  %v12402_v57 = vcombine.high %v3790_v14, %v3794_v51  ;;  %v3850_v14 = vld [vmem:[%s19769_s11 + $0x228] sm:$0xff]  ;;  %v14064_v51 = vmov 0.0|0.0  }
 0x357   :  { %3545 = vmatpush1.bf16.msra.mxu1 %v12349_v48  ;;  %3400 = vmatprep.subr.bf16.mxu0 %v12356_v13  ;;  %v3797_v48 = vld [vmem:[%s19769_s11 + $0x80] sm:$0xff] }
 0x358   :  { %3546 = vmatprep.subr.bf16.mxu1 %v12358_v49  ;;  %v3801_v13 = vld [vmem:[%s19769_s11 + $0xa0] sm:$0xff]  ;;  %v3798_v49 = vld [vmem:[%s19769_s11 + $0x88] sm:$0xff] }
 0x359   :  { %v12408_v31 = vcombine.high %v3797_v48, %v3801_v13  ;;  %v12409_v27 = vcombine.low %v3798_v49, %v3802_v52 }
 0x35a   :  { %3401 = vmatpush1.bf16.msra.mxu0 %v12355_v19  ;;  %v3805_v19 = vld [vmem:[%s19769_s11 + $0xc0] sm:$0xff] }
 0x35b   :  { %3547 = vmatpush1.bf16.msra.mxu1 %v12357_v30  ;;  %3402 = vmatprep.subr.bf16.mxu0 %v12364_v60  ;;  %v3809_v30 = vld [vmem:[%s19769_s11 + $0xe0] sm:$0xff]  ;;  %v3810_v60 = vld [vmem:[%s19769_s11 + $0xe8] sm:$0xff] }
 0x35c   :  { %3548 = vmatprep.subr.bf16.mxu1 %v12366_v21  ;;  %v12407_v21 = vcombine.low %v3797_v48, %v3801_v13  ;;  %v12416_v16 = vcombine.high %v3805_v19, %v3809_v30  ;;  %v3857_v48 = vld [vmem:[%s19769_s11 + $0x260] sm:$0xff]  ;;  %v3854_v13 = vld [vmem:[%s19769_s11 + $0x248] sm:$0xff] }
 0x35e   :  { %3403 = vmatpush1.bf16.msra.mxu0 %v12363_v56  ;;  %v3817_v56 = vld [vmem:[%s19769_s11 + $0x120] sm:$0xff] }
 0x35f   :  { %3549 = vmatpush1.bf16.msra.mxu1 %v12365_v59  ;;  %3404 = vmatprep.subr.bf16.mxu0 %v12372_v55  ;;  %v3814_v59 = vld [vmem:[%s19769_s11 + $0x108] sm:$0xff]  ;;  %v12424_v61 = vcombine.high %v3813_v1, %v3817_v56 }
 0x360   :  { %3550 = vmatprep.subr.bf16.mxu1 %v12374_v45  ;;  %v3818_v55 = vld [vmem:[%s19769_s11 + $0x128] sm:$0xff]  ;;  %v12415_v45 = vcombine.low %v3805_v19, %v3809_v30  ;;  %v3865_v19 = vld [vmem:[%s19769_s11 + $0x2a0] sm:$0xff] }
 0x361   :  { %v3862_v30 = vld [vmem:[%s19769_s11 + $0x288] sm:$0xff] }
 0x362   :  { %3405 = vmatpush1.bf16.msra.mxu0 %v12371_v33  ;;  %v3826_v33 = vld [vmem:[%s19769_s11 + $0x168] sm:$0xff] }
 0x363   :  { %3551 = vmatpush1.bf16.msra.mxu1 %v12373_v40  ;;  %3406 = vmatprep.subr.bf16.mxu0 %v12380_v41  ;;  %v12423_v40 = vcombine.low %v3813_v1, %v3817_v56  ;;  %v12425_v41 = vcombine.low %v3814_v59, %v3818_v55  ;;  %v3873_v1 = vld [vmem:[%s19769_s11 + $0x2e0] sm:$0xff]  ;;  %v3870_v56 = vld [vmem:[%s19769_s11 + $0x2c8] sm:$0xff] }
 0x364   :  { %3552 = vmatprep.subr.bf16.mxu1 %v12382_v42  ;;  %v12432_v42 = vcombine.high %v3821_v62, %v3825_v8 }
 0x366   :  { %3407 = vmatpush1.bf16.msra.mxu0 %v12379_v6  ;;  %v3834_v6 = vld [vmem:[%s19769_s11 + $0x1a8] sm:$0xff] }
 0x367   :  { %3553 = vmatpush1.bf16.msra.mxu1 %v12381_v32  ;;  %3408 = vmatprep.subr.bf16.mxu0 %v12388_v37  ;;  %v12431_v32 = vcombine.low %v3821_v62, %v3825_v8  ;;  %v3881_v62 = vld [vmem:[%s19769_s11 + $0x320] sm:$0xff]  ;;  %v3878_v8 = vld [vmem:[%s19769_s11 + $0x308] sm:$0xff] }
 0x368   :  { %3554 = vmatprep.subr.bf16.mxu1 %v12390_v38  ;;  %v12440_v38 = vcombine.high %v3829_v46, %v3833_v26  ;;  %v3889_v46 = vld [vmem:[%s19769_s11 + $0x360] sm:$0xff]  ;;  %v3886_v26 = vld [vmem:[%s19769_s11 + $0x348] sm:$0xff] }
 0x36a   :  { %3409 = vmatpush1.bf16.msra.mxu0 %v12387_v22  ;;  %v12441_v22 = vcombine.low %v3830_v2, %v3834_v6 }
 0x36b   :  { %3555 = vmatpush1.bf16.msra.mxu1 %v12389_v24  ;;  %4549 = vmatprep.subr.bf16.mxu0 %v12392_v25  ;;  %v12448_v24 = vcombine.high %v3837_v18, %v3841_v28 }
 0x36c   :  { %4590 = vmatprep.subr.bf16.mxu1 %v12394_v7  ;;  %v3845_v7 = vld [vmem:[%s19769_s11 + $0x200] sm:$0xff] }
 0x36d   :  { %3411 = vmatmul.mubr.bf16.vlgmr.msra.gmra.mrb[28].mxu0 %v15009_v3 }
 0x36e   :  { %3557 = vmatmul.mubr.bf16.vlgmr.msra.gmra.mrb[60].mxu1 %v15009_v3  ;;  %3420 = vmatprep.mubr.bf16.mxu0 %v15081_v0  ;;  %v12410_v3 = vcombine.high %v3798_v49, %v3802_v52  ;;  %v3858_v49 = vld [vmem:[%s19769_s11 + $0x268] sm:$0xff]  ;;  %v12455_v52 = vcombine.low %v3845_v7, %v3849_v43 }
 0x36f   :  { %3566 = vmatprep.mubr.bf16.mxu1 %v15081_v0  ;;  %4550 = vmatpush1.bf16.msra.mxu0 %v12391_v53  ;;  %v3806_v0 = vld [vmem:[%s19769_s11 + $0xc8] sm:$0xff]  ;;  %v12447_v53 = vcombine.low %v3837_v18, %v3841_v28  ;;  %v3897_v18 = vld [vmem:[%s19769_s11 + $0x3a0] sm:$0xff] }
 0x370   :  { %4591 = vmatpush1.bf16.msra.mxu1 %v12393_v9  ;;  %4551 = vmatprep.subr.bf16.mxu0 %v12400_v58  ;;  %v12418_v5 = vcombine.high %v3806_v0, %v3810_v60  ;;  %v12417_v50 = vcombine.low %v3806_v0, %v3810_v60  ;;  %v12456_v58 = vcombine.high %v3845_v7, %v3849_v43  ;;  %v3866_v0 = vld [vmem:[%s19769_s11 + $0x2a8] sm:$0xff]  ;;  %v3905_v7 = vld [vmem:[%s19769_s11 + $0x3e0] sm:$0xff] }
 0x371   :  { %4592 = vmatprep.subr.bf16.mxu1 %v12402_v57  ;;  %v3853_v57 = vld [vmem:[%s19769_s11 + $0x240] sm:$0xff]  ;;  %v3894_v28 = vld [vmem:[%s19769_s11 + $0x388] sm:$0xff] }
 0x372   :  { %v12463_v60 = vcombine.low %v3853_v57, %v3857_v48  ;;  %v3902_v43 = vld [vmem:[%s19769_s11 + $0x3c8] sm:$0xff] }
 0x373   :  { %4552 = vmatpush1.bf16.msra.mxu0 %v12399_v29  ;;  %v12457_v29 = vcombine.low %v3846_v11, %v3850_v14 }
 0x374   :  { %4593 = vmatpush1.bf16.msra.mxu1 %v12401_v15  ;;  %4553 = vmatprep.subr.bf16.mxu0 %v12408_v31  ;;  %v12464_v15 = vcombine.high %v3853_v57, %v3857_v48  ;;  %v12466_v31 = vcombine.high %v3854_v13, %v3858_v49  ;;  %v3787_v57 = vld [vmem:[%s19769_s11 + $0x30] sm:$0xff]  ;;  %v3784_v48 = vld [vmem:[%s19769_s11 + $0x18] sm:$0xff] }
 0x375   :  { %3421 = vmatmul.mubr.bf16.gmra.mrb[32].mxu0 %v15059_v44  ;;  %4594 = vmatprep.subr.bf16.mxu1 %v12410_v3  ;;  %v3861_v3 = vld [vmem:[%s19769_s11 + $0x280] sm:$0xff] }
 0x376   :  { %3567 = vmatmul.mubr.bf16.gmra.mrb[64].mxu1 %v15059_v44  ;;  %3430 = vmatprep.mubr.bf16.mxu0 %v15174_v10  ;;  %v12426_v44 = vcombine.high %v3814_v59, %v3818_v55  ;;  %v3874_v59 = vld [vmem:[%s19769_s11 + $0x2e8] sm:$0xff]  ;;  %v12471_v55 = vcombine.low %v3861_v3, %v3865_v19 }
 0x377   :  { %3576 = vmatprep.mubr.bf16.mxu1 %v15174_v10  ;;  %4554 = vmatpush1.bf16.msra.mxu0 %v12407_v21  ;;  %v3822_v10 = vld [vmem:[%s19769_s11 + $0x148] sm:$0xff]  ;;  %v12465_v21 = vcombine.low %v3854_v13, %v3858_v49  ;;  %v3788_v13 = vld [vmem:[%s19769_s11 + $0x38] sm:$0xff] }
 0x378   :  { %4595 = vmatpush1.bf16.msra.mxu1 %v12409_v27  ;;  %4555 = vmatprep.subr.bf16.mxu0 %v12416_v16  ;;  %v12434_v47 = vcombine.high %v3822_v10, %v3826_v33  ;;  %v12433_v37 = vcombine.low %v3822_v10, %v3826_v33  ;;  %v12472_v27 = vcombine.high %v3861_v3, %v3865_v19  ;;  %v3882_v10 = vld [vmem:[%s19769_s11 + $0x328] sm:$0xff]  ;;  %v3795_v3 = vld [vmem:[%s19769_s11 + $0x70] sm:$0xff]  ;;  %v3792_v19 = vld [vmem:[%s19769_s11 + $0x58] sm:$0xff] }
 0x379   :  { %4596 = vmatprep.subr.bf16.mxu1 %v12418_v5  ;;  %v12474_v16 = vcombine.high %v3862_v30, %v3866_v0  ;;  %v3869_v5 = vld [vmem:[%s19769_s11 + $0x2c0] sm:$0xff] }
 0x37a   :  { %v12479_v33 = vcombine.low %v3869_v5, %v3873_v1 }
 0x37b   :  { %4556 = vmatpush1.bf16.msra.mxu0 %v12415_v45  ;;  %v12473_v45 = vcombine.low %v3862_v30, %v3866_v0  ;;  %v3796_v30 = vld [vmem:[%s19769_s11 + $0x78] sm:$0xff] }
 0x37c   :  { %4597 = vmatpush1.bf16.msra.mxu1 %v12417_v50  ;;  %4557 = vmatprep.subr.bf16.mxu0 %v12424_v61  ;;  %v12480_v50 = vcombine.high %v3869_v5, %v3873_v1  ;;  %v12482_v61 = vcombine.high %v3870_v56, %v3874_v59  ;;  %v3803_v5 = vld [vmem:[%s19769_s11 + $0xb0] sm:$0xff]  ;;  %v3800_v1 = vld [vmem:[%s19769_s11 + $0x98] sm:$0xff] }
 0x37d   :  { %3431 = vmatmul.mubr.bf16.gmra.mrb[36].mxu0 %v15156_v12  ;;  %4598 = vmatprep.subr.bf16.mxu1 %v12426_v44  ;;  %v3877_v44 = vld [vmem:[%s19769_s11 + $0x300] sm:$0xff] }
 0x37e   :  { %3577 = vmatmul.mubr.bf16.gmra.mrb[68].mxu1 %v15156_v12  ;;  %3440 = vmatprep.mubr.bf16.mxu0 %v15205_v39  ;;  %v12442_v12 = vcombine.high %v3830_v2, %v3834_v6  ;;  %v3890_v2 = vld [vmem:[%s19769_s11 + $0x368] sm:$0xff]  ;;  %v12487_v6 = vcombine.low %v3877_v44, %v3881_v62 }
 0x37f   :  { %3586 = vmatprep.mubr.bf16.mxu1 %v15205_v39  ;;  %4558 = vmatpush1.bf16.msra.mxu0 %v12423_v40  ;;  %v3838_v39 = vld [vmem:[%s19769_s11 + $0x1c8] sm:$0xff]  ;;  %v12481_v40 = vcombine.low %v3870_v56, %v3874_v59  ;;  %v3804_v56 = vld [vmem:[%s19769_s11 + $0xb8] sm:$0xff] }
 0x380   :  { %4599 = vmatpush1.bf16.msra.mxu1 %v12425_v41  ;;  %4559 = vmatprep.subr.bf16.mxu0 %v12432_v42  ;;  %v12450_v25 = vcombine.high %v3838_v39, %v3842_v36  ;;  %v12449_v9 = vcombine.low %v3838_v39, %v3842_v36  ;;  %v12488_v41 = vcombine.high %v3877_v44, %v3881_v62  ;;  %v3898_v39 = vld [vmem:[%s19769_s11 + $0x3a8] sm:$0xff]  ;;  %v3811_v44 = vld [vmem:[%s19769_s11 + $0xf0] sm:$0xff]  ;;  %v3808_v62 = vld [vmem:[%s19769_s11 + $0xd8] sm:$0xff] }
 0x381   :  { %4600 = vmatprep.subr.bf16.mxu1 %v12434_v47  ;;  %v12490_v42 = vcombine.high %v3878_v8, %v3882_v10  ;;  %v3885_v47 = vld [vmem:[%s19769_s11 + $0x340] sm:$0xff] }
 0x382   :  { %v12495_v36 = vcombine.low %v3885_v47, %v3889_v46 }
 0x383   :  { %4560 = vmatpush1.bf16.msra.mxu0 %v12431_v32  ;;  %v12489_v32 = vcombine.low %v3878_v8, %v3882_v10  ;;  %v3812_v8 = vld [vmem:[%s19769_s11 + $0xf8] sm:$0xff] }
 0x384   :  { %4601 = vmatpush1.bf16.msra.mxu1 %v12433_v37  ;;  %4561 = vmatprep.subr.bf16.mxu0 %v12440_v38  ;;  %v12496_v37 = vcombine.high %v3885_v47, %v3889_v46  ;;  %v12498_v38 = vcombine.high %v3886_v26, %v3890_v2  ;;  %v3819_v47 = vld [vmem:[%s19769_s11 + $0x130] sm:$0xff]  ;;  %v3816_v46 = vld [vmem:[%s19769_s11 + $0x118] sm:$0xff] }
 0x385   :  { %3441 = vmatmul.mubr.bf16.gmra.mrb[40].mxu0 %v15203_v17  ;;  %4602 = vmatprep.subr.bf16.mxu1 %v12442_v12  ;;  %v3893_v12 = vld [vmem:[%s19769_s11 + $0x380] sm:$0xff] }
 0x386   :  { %3587 = vmatmul.mubr.bf16.gmra.mrb[72].mxu1 %v15203_v17  ;;  %4581 = vmatprep.mubr.bf16.mxu0 %v14064_v51  ;;  %v12458_v17 = vcombine.high %v3846_v11, %v3850_v14  ;;  %v3906_v11 = vld [vmem:[%s19769_s11 + $0x3e8] sm:$0xff]  ;;  %v12503_v14 = vcombine.low %v3893_v12, %v3897_v18 }
 0x387   :  { %4562 = vmatpush1.bf16.msra.mxu0 %v12439_v23  ;;  %4622 = vmatprep.mubr.bf16.mxu1 %v14064_v51  ;;  %v12497_v23 = vcombine.low %v3886_v26, %v3890_v2  ;;  %v3820_v26 = vld [vmem:[%s19769_s11 + $0x138] sm:$0xff] }
 0x388   :  { %4603 = vmatpush1.bf16.msra.mxu1 %v12441_v22  ;;  %4563 = vmatprep.subr.bf16.mxu0 %v12448_v24  ;;  %v12504_v22 = vcombine.high %v3893_v12, %v3897_v18  ;;  %v12506_v24 = vcombine.high %v3894_v28, %v3898_v39  ;;  %v3827_v12 = vld [vmem:[%s19769_s11 + $0x170] sm:$0xff]  ;;  %v3824_v18 = vld [vmem:[%s19769_s11 + $0x158] sm:$0xff] }
 0x389   :  { %4604 = vmatprep.subr.bf16.mxu1 %v12450_v25  ;;  %v3901_v25 = vld [vmem:[%s19769_s11 + $0x3c0] sm:$0xff] }
 0x38a   :  { %v12511_v49 = vcombine.low %v3901_v25, %v3905_v7 }
 0x38b   :  { %4564 = vmatpush1.bf16.msra.mxu0 %v12447_v53  ;;  %v12505_v53 = vcombine.low %v3894_v28, %v3898_v39  ;;  %v3828_v28 = vld [vmem:[%s19769_s11 + $0x178] sm:$0xff] }
 0x38c   :  { %4605 = vmatpush1.bf16.msra.mxu1 %v12449_v9  ;;  %4565 = vmatprep.subr.bf16.mxu0 %v12456_v58  ;;  %v12512_v9 = vcombine.high %v3901_v25, %v3905_v7  ;;  %v12514_v58 = vcombine.high %v3902_v43, %v3906_v11  ;;  %v3831_v25 = vld [vmem:[%s19769_s11 + $0x190] sm:$0xff] }
 0x38d   :  { %4606 = vmatprep.subr.bf16.mxu1 %v12458_v17  ;;  %v3783_v17 = vld [vmem:[%s19769_s11 + $0x10] sm:$0xff] }
 0x38e   :  { %v12395_v0 = vcombine.low %v3783_v17, %v3787_v57  ;;  %v3835_v7 = vld [vmem:[%s19769_s11 + $0x1b0] sm:$0xff] }
 0x38f   :  { %4566 = vmatpush1.bf16.msra.mxu0 %v12455_v52  ;;  %v12513_v52 = vcombine.low %v3902_v43, %v3906_v11  ;;  %v3832_v43 = vld [vmem:[%s19769_s11 + $0x198] sm:$0xff] }
 0x390   :  { %4607 = vmatpush1.bf16.msra.mxu1 %v12457_v29  ;;  %4567 = vmatprep.subr.bf16.mxu0 %v12464_v15  ;;  %v12396_v29 = vcombine.high %v3783_v17, %v3787_v57  ;;  %v12398_v15 = vcombine.high %v3784_v48, %v3788_v13  ;;  %v3836_v11 = vld [vmem:[%s19769_s11 + $0x1b8] sm:$0xff]  ;;  %v20041_v17 = vsub.s32 2, %v14455_v34 }
 0x391   :  { %4608 = vmatprep.subr.bf16.mxu1 %v12466_v31  ;;  %v3791_v31 = vld [vmem:[%s19769_s11 + $0x50] sm:$0xff] }
 0x392   :  { %v12403_v59 = vcombine.low %v3791_v31, %v3795_v3 }
 0x393   :  { %4568 = vmatpush1.bf16.msra.mxu0 %v12463_v60  ;;  %v12397_v60 = vcombine.low %v3784_v48, %v3788_v13 }
 0x394   :  { %4609 = vmatpush1.bf16.msra.mxu1 %v12465_v21  ;;  %4569 = vmatprep.subr.bf16.mxu0 %v12472_v27  ;;  %v12404_v21 = vcombine.high %v3791_v31, %v3795_v3  ;;  %v12406_v27 = vcombine.high %v3792_v19, %v3796_v30 }
 0x395   :  { %4610 = vmatprep.subr.bf16.mxu1 %v12474_v16  ;;  %v3799_v16 = vld [vmem:[%s19769_s11 + $0x90] sm:$0xff] }
 0x396   :  { %v12411_v10 = vcombine.low %v3799_v16, %v3803_v5 }
 0x397   :  { %4570 = vmatpush1.bf16.msra.mxu0 %v12471_v55  ;;  %v12405_v55 = vcombine.low %v3792_v19, %v3796_v30  ;;  %v12446_v30 = vcombine.high %v3832_v43, %v3836_v11 }
 0x398   :  { %4611 = vmatpush1.bf16.msra.mxu1 %v12473_v45  ;;  %4571 = vmatprep.subr.bf16.mxu0 %v12480_v50  ;;  %v12412_v45 = vcombine.high %v3799_v16, %v3803_v5  ;;  %v12414_v50 = vcombine.high %v3800_v1, %v3804_v56 }
 0x399   :  { %4612 = vmatprep.subr.bf16.mxu1 %v12482_v61  ;;  %v3807_v61 = vld [vmem:[%s19769_s11 + $0xd0] sm:$0xff] }
 0x39a   :  { %v12419_v2 = vcombine.low %v3807_v61, %v3811_v44 }
 0x39b   :  { %4572 = vmatpush1.bf16.msra.mxu0 %v12479_v33  ;;  %v12413_v33 = vcombine.low %v3800_v1, %v3804_v56  ;;  %v3840_v1 = vld [vmem:[%s19769_s11 + $0x1d8] sm:$0xff] }
 0x39c   :  { %4613 = vmatpush1.bf16.msra.mxu1 %v12481_v40  ;;  %4573 = vmatprep.subr.bf16.mxu0 %v12488_v41  ;;  %v12420_v40 = vcombine.high %v3807_v61, %v3811_v44  ;;  %v12422_v41 = vcombine.high %v3808_v62, %v3812_v8  ;;  %v3844_v56 = vld [vmem:[%s19769_s11 + $0x1f8] sm:$0xff] }
 0x39d   :  { %4614 = vmatprep.subr.bf16.mxu1 %v12490_v42  ;;  %v3815_v42 = vld [vmem:[%s19769_s11 + $0x110] sm:$0xff]  ;;  %v12454_v44 = vcombine.high %v3840_v1, %v3844_v56 }
 0x39e   :  { %v12427_v39 = vcombine.low %v3815_v42, %v3819_v47 }
 0x39f   :  { %4574 = vmatpush1.bf16.msra.mxu0 %v12487_v6  ;;  %v12421_v6 = vcombine.low %v3808_v62, %v3812_v8  ;;  %v3847_v62 = vld [vmem:[%s19769_s11 + $0x210] sm:$0xff] }
 0x3a0   :  { %4615 = vmatpush1.bf16.msra.mxu1 %v12489_v32  ;;  %4575 = vmatprep.subr.bf16.mxu0 %v12496_v37  ;;  %v12428_v32 = vcombine.high %v3815_v42, %v3819_v47  ;;  %v12430_v37 = vcombine.high %v3816_v46, %v3820_v26  ;;  %v3851_v8 = vld [vmem:[%s19769_s11 + $0x230] sm:$0xff]  ;;  %v12453_v47 = vcombine.low %v3840_v1, %v3844_v56 }
 0x3a1   :  { %4616 = vmatprep.subr.bf16.mxu1 %v12498_v38  ;;  %v3823_v38 = vld [vmem:[%s19769_s11 + $0x150] sm:$0xff] }
 0x3a3   :  { %4576 = vmatpush1.bf16.msra.mxu0 %v12495_v36  ;;  %v12429_v36 = vcombine.low %v3816_v46, %v3820_v26 }
 0x3a4   :  { %4617 = vmatpush1.bf16.msra.mxu1 %v12497_v23  ;;  %4577 = vmatprep.subr.bf16.mxu0 %v12504_v22  ;;  %v16004_v23 = vld [vmem:[%s19770_s10] sm:$0xff]  ;;  %v12436_v22 = vcombine.high %v3823_v38, %v3827_v12 }
 0x3a5   :  { %4618 = vmatprep.subr.bf16.mxu1 %v12506_v24  ;;  %v12438_v24 = vcombine.high %v3824_v18, %v3828_v28  ;;  %v16029_v57 = vrot.slane %v16004_v23, %v20041_v17 }
 0x3a7   :  { %4578 = vmatpush1.bf16.msra.mxu0 %v12503_v14 }
 0x3a8   :  { %4619 = vmatpush1.bf16.msra.mxu1 %v12505_v53  ;;  %4579 = vmatprep.subr.bf16.mxu0 %v12512_v9  ;;  %v16022_v53 = vrot.slane %v16004_v23, %v14458_v35 }
 0x3a9   :  { %4620 = vmatprep.subr.bf16.mxu1 %v12514_v58  ;;  %v12435_v58 = vcombine.low %v3823_v38, %v3827_v12 }
 0x3ab   :  { %4580 = vmatpush1.bf16.msra.mxu0 %v12511_v49  ;;  %v12437_v49 = vcombine.low %v3824_v18, %v3828_v28 }
 0x3ac   :  { %4621 = vmatpush1.bf16.msra.mxu1 %v12513_v52  ;;  %4631 = vmatprep.subr.bf16.mxu0 %v12396_v29  ;;  %v12444_v52 = vcombine.high %v3831_v25, %v3835_v7  ;;  %v20042_v29 = vld [vmem:[#allocation6_spill] sm:$0xff] }
 0x3ad   :  { %4672 = vmatprep.subr.bf16.mxu1 %v12398_v15  ;;  %v16037_v35 = vrot.slane %v16004_v23, %v20042_v29  ;;  %v20043_v15 = vsub.s32 3, %v14455_v34 }
 0x3ae   :  { %4582 = vmatmul.mubr.bf16.vlgmr.msra.gmra.mrb[48].mxu0 %v14064_v51 }
 0x3af   :  { %4623 = vmatmul.mubr.bf16.vlgmr.msra.gmra.mrb[76].mxu1 %v14064_v51  ;;  %4632 = vmatpush1.bf16.msra.mxu0 %v12395_v0  ;;  %v16042_v31 = vrot.slane %v16004_v23, %v20043_v15  ;;  %v3839_v0 = vld [vmem:[%s19769_s11 + $0x1d0] sm:$0xff] }
 0x3b0   :  { %4673 = vmatpush1.bf16.msra.mxu1 %v12397_v60  ;;  %4633 = vmatprep.subr.bf16.mxu0 %v12404_v21  ;;  %v3843_v60 = vld [vmem:[%s19769_s11 + $0x1f0] sm:$0xff] }
 0x3b1   :  { %4674 = vmatprep.subr.bf16.mxu1 %v12406_v27  ;;  %4663 = vmatprep.mubr.bf16.mxu0 %v14064_v51  ;;  %v12452_v61 = vcombine.high %v3839_v0, %v3843_v60  ;;  %v12451_v42 = vcombine.low %v3839_v0, %v3843_v60  ;;  %v3868_v0 = vld [vmem:[%s19769_s11 + $0x2b8] sm:$0xff] }
 0x3b2   :  { %4704 = vmatprep.mubr.bf16.mxu1 %v14064_v51 }
 0x3b3   :  { %4634 = vmatpush1.bf16.msra.mxu0 %v12403_v59 }
 0x3b4   :  { %4675 = vmatpush1.bf16.msra.mxu1 %v12405_v55  ;;  %4635 = vmatprep.subr.bf16.mxu0 %v12412_v45  ;;  %v12443_v45 = vcombine.low %v3831_v25, %v3835_v7 }
 0x3b5   :  { %4676 = vmatprep.subr.bf16.mxu1 %v12414_v50  ;;  %v12445_v50 = vcombine.low %v3832_v43, %v3836_v11  ;;  %v3856_v43 = vld [vmem:[%s19769_s11 + $0x258] sm:$0xff] }
 0x3b6   :  { %v3860_v11 = vld [vmem:[%s19769_s11 + $0x278] sm:$0xff] }
 0x3b7   :  { %4636 = vmatpush1.bf16.msra.mxu0 %v12411_v10  ;;  %v3848_v10 = vld [vmem:[%s19769_s11 + $0x218] sm:$0xff]  ;;  %v12470_v15 = vcombine.high %v3856_v43, %v3860_v11  ;;  %v12469_v1 = vcombine.low %v3856_v43, %v3860_v11  ;;  %v3879_v11 = vld [vmem:[%s19769_s11 + $0x310] sm:$0xff] }
 0x3b8   :  { %4677 = vmatpush1.bf16.msra.mxu1 %v12413_v33  ;;  %4637 = vmatprep.subr.bf16.mxu0 %v12420_v40  ;;  %v3852_v33 = vld [vmem:[%s19769_s11 + $0x238] sm:$0xff] }
 0x3b9   :  { %4678 = vmatprep.subr.bf16.mxu1 %v12422_v41  ;;  %v12462_v28 = vcombine.high %v3848_v10, %v3852_v33 }
 0x3bb   :  { %4638 = vmatpush1.bf16.msra.mxu0 %v12419_v2 }
 0x3bc   :  { %4679 = vmatpush1.bf16.msra.mxu1 %v12421_v6  ;;  %4639 = vmatprep.subr.bf16.mxu0 %v12428_v32  ;;  %v12460_v32 = vcombine.high %v3847_v62, %v3851_v8 }
 0x3bd   :  { %4680 = vmatprep.subr.bf16.mxu1 %v12430_v37 }
 0x3be   :  { %v16018_v14 = vpop.f32.mrb[16].mxu0 }
 0x3bf   :  { %4640 = vmatpush1.bf16.msra.mxu0 %v12427_v39  ;;  %v16024_v9 = vpop.f32.mrb[44].mxu1  ;;  %v16031_v48 = vpop.f32.mrb[17].mxu0  ;;  %v3855_v39 = vld [vmem:[%s19769_s11 + $0x250] sm:$0xff] }
 0x3c0   :  { %4681 = vmatpush1.bf16.msra.mxu1 %v12429_v36  ;;  %v16033_v13 = vpop.f32.mrb[45].mxu1  ;;  %4641 = vmatprep.subr.bf16.mxu0 %v12436_v22  ;;  %v3124_v3 = vpop.f32.mrb[18].mxu0  ;;  %v3859_v36 = vld [vmem:[%s19769_s11 + $0x270] sm:$0xff] }
 0x3c1   :  { %4682 = vmatprep.subr.bf16.mxu1 %v12438_v24  ;;  %v3270_v19 = vpop.f32.mrb[46].mxu1  ;;  %v16051_v21 = vadd.f32 %v16022_v53, %v3124_v3  ;;  %v3126_v16 = vpop.f32.mrb[19].mxu0  ;;  %v12468_v29 = vcombine.high %v3855_v39, %v3859_v36  ;;  %v3863_v3 = vld [vmem:[%s19769_s11 + $0x290] sm:$0xff] }
 0x3c2   :  { %v16054_v27 = vadd.f32 %v16029_v57, %v3270_v19  ;;  %v3272_v5 = vpop.f32.mrb[47].mxu1  ;;  %v16063_v59 = vadd.f32 %v16037_v35, %v3126_v16  ;;  %v3867_v19 = vld [vmem:[%s19769_s11 + $0x2b0] sm:$0xff] }
 0x3c3   :  { %20044 = vst [vmem:[#allocation6_spill] sm:$0xff] %v16051_v21  ;;  %4642 = vmatpush1.bf16.msra.mxu0 %v12435_v58  ;;  %v16066_v55 = vadd.f32 %v16042_v31, %v3272_v5  ;;  %v12467_v5 = vcombine.low %v3855_v39, %v3859_v36  ;;  %v12475_v36 = vcombine.low %v3863_v3, %v3867_v19 }
 0x3c4   :  { %20045 = vst [vmem:[#allocation7_spill] sm:$0xff] %v16054_v27  ;;  %20046 = vst [vmem:[#allocation8_spill] sm:$0xff] %v16063_v59  ;;  %4683 = vmatpush1.bf16.msra.mxu1 %v12437_v49  ;;  %4643 = vmatprep.subr.bf16.mxu0 %v12444_v52  ;;  %v12459_v49 = vcombine.low %v3847_v62, %v3851_v8  ;;  %v12461_v52 = vcombine.low %v3848_v10, %v3852_v33 }
 0x3c5   :  { %20047 = vst [vmem:[#allocation9_spill] sm:$0xff] %v16066_v55  ;;  %4684 = vmatprep.subr.bf16.mxu1 %v12446_v30  ;;  %v3864_v30 = vld [vmem:[%s19769_s11 + $0x298] sm:$0xff] }
 0x3c6   :  { %v3130_v40 = vpop.f32.mrb[20].mxu0 }
 0x3c7   :  { %4644 = vmatpush1.bf16.msra.mxu0 %v12443_v45  ;;  %v3276_v41 = vpop.f32.mrb[48].mxu1  ;;  %v16081_v46 = vadd.f32 %v16022_v53, %v3130_v40  ;;  %v3132_v2 = vpop.f32.mrb[21].mxu0  ;;  %v12478_v40 = vcombine.high %v3864_v30, %v3868_v0 }
 0x3c8   :  { %4685 = vmatpush1.bf16.msra.mxu1 %v12445_v50  ;;  %v16084_v26 = vadd.f32 %v16029_v57, %v3276_v41  ;;  %v3278_v6 = vpop.f32.mrb[49].mxu1  ;;  %4645 = vmatprep.subr.bf16.mxu0 %v12452_v61  ;;  %v16087_v37 = vadd.f32 %v16037_v35, %v3132_v2  ;;  %v3134_v12 = vpop.f32.mrb[22].mxu0  ;;  %v3871_v41 = vld [vmem:[%s19769_s11 + $0x2d0] sm:$0xff] }
 0x3c9   :  { %20048 = vst [vmem:[#allocation10_spill] sm:$0xff] %v16081_v46  ;;  %v16090_v38 = vadd.f32 %v16042_v31, %v3278_v6  ;;  %4686 = vmatprep.subr.bf16.mxu1 %v12454_v44  ;;  %v3280_v18 = vpop.f32.mrb[50].mxu1  ;;  %v16099_v22 = vadd.f32 %v16022_v53, %v3134_v12  ;;  %v3136_v25 = vpop.f32.mrb[23].mxu0  ;;  %v12476_v44 = vcombine.high %v3863_v3, %v3867_v19  ;;  %v3872_v12 = vld [vmem:[%s19769_s11 + $0x2d8] sm:$0xff] }
 0x3ca   :  { %20049 = vst [vmem:[#allocation11_spill] sm:$0xff] %v16084_v26  ;;  %20050 = vst [vmem:[#allocation12_spill] sm:$0xff] %v16087_v37  ;;  %v16102_v24 = vadd.f32 %v16029_v57, %v3280_v18  ;;  %v3282_v7 = vpop.f32.mrb[51].mxu1  ;;  %v16111_v58 = vadd.f32 %v16037_v35, %v3136_v25  ;;  %v3876_v18 = vld [vmem:[%s19769_s11 + $0x2f8] sm:$0xff]  ;;  %v12477_v25 = vcombine.low %v3864_v30, %v3868_v0  ;;  %v4851_v26 = vld [vmem:[%s19769_s11 + $0x228] sm:$0xff] }
 0x3cb   :  { %20051 = vst [vmem:[#allocation13_spill] sm:$0xff] %v16090_v38  ;;  %20052 = vst [vmem:[#allocation14_spill] sm:$0xff] %v16099_v22  ;;  %4646 = vmatpush1.bf16.msra.mxu0 %v12451_v42  ;;  %v16114_v17 = vadd.f32 %v16042_v31, %v3282_v7  ;;  %v3875_v42 = vld [vmem:[%s19769_s11 + $0x2f0] sm:$0xff]  ;;  %v12486_v43 = vcombine.high %v3872_v12, %v3876_v18  ;;  %v12485_v30 = vcombine.low %v3872_v12, %v3876_v18  ;;  %v3892_v12 = vld [vmem:[%s19769_s11 + $0x378] sm:$0xff] }
 0x3cc   :  { %20053 = vst [vmem:[#allocation15_spill] sm:$0xff] %v16102_v24  ;;  %20054 = vst [vmem:[#allocation16_spill] sm:$0xff] %v16111_v58  ;;  %4687 = vmatpush1.bf16.msra.mxu1 %v12453_v47  ;;  %4647 = vmatprep.subr.bf16.mxu0 %v12460_v32  ;;  %v12484_v7 = vcombine.high %v3871_v41, %v3875_v42  ;;  %v12483_v19 = vcombine.low %v3871_v41, %v3875_v42  ;;  %v4847_v38 = vld [vmem:[%s19769_s11 + $0x208] sm:$0xff] }
 0x3cd   :  { %20055 = vst [vmem:[#allocation17_spill] sm:$0xff] %v16114_v17  ;;  %4688 = vmatprep.subr.bf16.mxu1 %v12462_v28  ;;  %v16486_v55 = vcombine.low %v4847_v38, %v4851_v26  ;;  %v16488_v59 = vcombine.high %v4847_v38, %v4851_v26 }
 0x3ce   :  { %v3140_v60 = vpop.f32.mrb[24].mxu0 }
 0x3cf   :  { %4648 = vmatpush1.bf16.msra.mxu0 %v12459_v49  ;;  %v3286_v16 = vpop.f32.mrb[52].mxu1  ;;  %v16129_v56 = vadd.f32 %v16022_v53, %v3140_v60  ;;  %v3142_v50 = vpop.f32.mrb[25].mxu0  ;;  %v3883_v49 = vld [vmem:[%s19769_s11 + $0x330] sm:$0xff]  ;;  %20083 = vst [vmem:[#allocation45_spill] sm:$0xff] %v16486_v55  ;;  %20084 = vst [vmem:[#allocation46_spill] sm:$0xff] %v16488_v59 }
 0x3d0   :  { %4689 = vmatpush1.bf16.msra.mxu1 %v12461_v52  ;;  %v16132_v45 = vadd.f32 %v16029_v57, %v3286_v16  ;;  %v3288_v61 = vpop.f32.mrb[53].mxu1  ;;  %4649 = vmatprep.subr.bf16.mxu0 %v12468_v29  ;;  %v16135_v62 = vadd.f32 %v16037_v35, %v3142_v50  ;;  %v3144_v10 = vpop.f32.mrb[26].mxu0  ;;  %v3880_v52 = vld [vmem:[%s19769_s11 + $0x318] sm:$0xff] }
 0x3d1   :  { %20056 = vst [vmem:[#allocation18_spill] sm:$0xff] %v16129_v56  ;;  %v16138_v8 = vadd.f32 %v16042_v31, %v3288_v61  ;;  %4690 = vmatprep.subr.bf16.mxu1 %v12470_v15  ;;  %v3290_v33 = vpop.f32.mrb[54].mxu1  ;;  %v16147_v47 = vadd.f32 %v16022_v53, %v3144_v10  ;;  %v3146_v6 = vpop.f32.mrb[27].mxu0  ;;  %v3884_v29 = vld [vmem:[%s19769_s11 + $0x338] sm:$0xff] }
 0x3d2   :  { %20057 = vst [vmem:[#allocation19_spill] sm:$0xff] %v16132_v45  ;;  %20058 = vst [vmem:[#allocation20_spill] sm:$0xff] %v16135_v62  ;;  %v16150_v2 = vadd.f32 %v16029_v57, %v3290_v33  ;;  %v3292_v32 = vpop.f32.mrb[55].mxu1  ;;  %v16159_v28 = vadd.f32 %v16037_v35, %v3146_v6  ;;  %v12494_v33 = vcombine.high %v3880_v52, %v3884_v29 }
 0x3d3   :  { %20059 = vst [vmem:[#allocation21_spill] sm:$0xff] %v16138_v8  ;;  %20060 = vst [vmem:[#allocation22_spill] sm:$0xff] %v16147_v47  ;;  %4650 = vmatpush1.bf16.msra.mxu0 %v12467_v5  ;;  %v16162_v39 = vadd.f32 %v16042_v31, %v3292_v32  ;;  %v3888_v32 = vld [vmem:[%s19769_s11 + $0x358] sm:$0xff]  ;;  %v3617_v8 = vsub.s32 4, %v14455_v34 }
 0x3d4   :  { %20061 = vst [vmem:[#allocation23_spill] sm:$0xff] %v16150_v2  ;;  %20062 = vst [vmem:[#allocation24_spill] sm:$0xff] %v16159_v28  ;;  %4691 = vmatpush1.bf16.msra.mxu1 %v12469_v1  ;;  %4651 = vmatprep.subr.bf16.mxu0 %v12476_v44  ;;  %v12492_v1 = vcombine.high %v3879_v11, %v3883_v49 }
 0x3d5   :  { %20063 = vst [vmem:[#allocation25_spill] sm:$0xff] %v16162_v39  ;;  %4692 = vmatprep.subr.bf16.mxu1 %v12478_v40  ;;  %v3891_v40 = vld [vmem:[%s19769_s11 + $0x370] sm:$0xff]  ;;  %v4838_v39 = vld [vmem:[%s19769_s11 + $0x1c0] sm:$0xff]  ;;  %v16439_v56 = vrot.slane %v16004_v23, %v3617_v8 }
 0x3d6   :  { %v3150_v15 = vpop.f32.mrb[44].mxu0 }
 0x3d7   :  { %4652 = vmatpush1.bf16.msra.mxu0 %v12475_v36  ;;  %v3296_v3 = vpop.f32.mrb[56].mxu1  ;;  %v13537_v0 = vadd.f32 %v3150_v15, %v15147_v54  ;;  %v3152_v16 = vpop.f32.mrb[45].mxu0  ;;  %v3887_v54 = vld [vmem:[%s19769_s11 + $0x350] sm:$0xff] }
 0x3d8   :  { %4693 = vmatpush1.bf16.msra.mxu1 %v12477_v25  ;;  %v16178_v60 = vadd.f32 %v16029_v57, %v3296_v3  ;;  %v3298_v5 = vpop.f32.mrb[57].mxu1  ;;  %4653 = vmatprep.subr.bf16.mxu0 %v12484_v7  ;;  %v13538_v50 = vadd.f32 %v3152_v16, %v15154_v63  ;;  %v3154_v44 = vpop.f32.mrb[46].mxu0  ;;  %v12491_v25 = vcombine.low %v3879_v11, %v3883_v49  ;;  %v3899_v11 = vld [vmem:[%s19769_s11 + $0x3b0] sm:$0xff] }
 0x3d9   :  { %v16182_v61 = vadd.f32 %v16042_v31, %v3298_v5  ;;  %4694 = vmatprep.subr.bf16.mxu1 %v12486_v43  ;;  %v3300_v10 = vpop.f32.mrb[58].mxu1  ;;  %v13539_v41 = vadd.f32 %v3154_v44, %v15159_v4  ;;  %v3156_v63 = vpop.f32.mrb[47].mxu0  ;;  %v16201_v18 = vadd.f32 %v13537_v0, %v16022_v53  ;;  %v12493_v43 = vcombine.low %v3880_v52, %v3884_v29  ;;  %v3896_v52 = vld [vmem:[%s19769_s11 + $0x398] sm:$0xff] }
 0x3da   :  { %20064 = vst [vmem:[#allocation26_spill] sm:$0xff] %v16178_v60  ;;  %v16192_v42 = vadd.f32 %v16029_v57, %v3300_v10  ;;  %v3302_v6 = vpop.f32.mrb[59].mxu1  ;;  %v13540_v36 = vadd.f32 %v3156_v63, %v15172_v20  ;;  %v16208_v7 = vadd.f32 %v13538_v50, %v16037_v35  ;;  %v12500_v15 = vcombine.high %v3887_v54, %v3891_v40  ;;  %v3895_v20 = vld [vmem:[%s19769_s11 + $0x390] sm:$0xff]  ;;  %v3900_v29 = vld [vmem:[%s19769_s11 + $0x3b8] sm:$0xff] }
 0x3db   :  { %20065 = vst [vmem:[#allocation27_spill] sm:$0xff] %v16182_v61  ;;  %20067 = vst [vmem:[#allocation29_spill] sm:$0xff] %v16201_v18  ;;  %4654 = vmatpush1.bf16.msra.mxu0 %v12483_v19  ;;  %v16205_v4 = vadd.f32 %v16042_v31, %v3302_v6  ;;  %v16211_v3 = vadd.f32 %v13539_v41, %v16022_v53  ;;  %v12502_v0 = vcombine.high %v3888_v32, %v3892_v12  ;;  %v3907_v50 = vld [vmem:[%s19769_s11 + $0x3f0] sm:$0xff]  ;;  %v3904_v44 = vld [vmem:[%s19769_s11 + $0x3d8] sm:$0xff] }
 0x3dc   :  { %20066 = vst [vmem:[#allocation28_spill] sm:$0xff] %v16192_v42  ;;  %20069 = vst [vmem:[#allocation31_spill] sm:$0xff] %v16208_v7  ;;  %4695 = vmatpush1.bf16.msra.mxu1 %v12485_v30  ;;  %4655 = vmatprep.subr.bf16.mxu0 %v12492_v1  ;;  %v16220_v49 = vadd.f32 %v13540_v36, %v16037_v35  ;;  %v12499_v19 = vcombine.low %v3887_v54, %v3891_v40  ;;  %v3903_v1 = vld [vmem:[%s19769_s11 + $0x3d0] sm:$0xff]  ;;  %v3908_v10 = vld [vmem:[%s19769_s11 + $0x3f8] sm:$0xff] }
 0x3dd   :  { %20068 = vst [vmem:[#allocation30_spill] sm:$0xff] %v16205_v4  ;;  %20070 = vst [vmem:[#allocation32_spill] sm:$0xff] %v16211_v3  ;;  %4696 = vmatprep.subr.bf16.mxu1 %v12494_v33  ;;  %v12501_v30 = vcombine.low %v3888_v32, %v3892_v12  ;;  %v12508_v16 = vcombine.high %v3895_v20, %v3899_v11  ;;  %v12510_v5 = vcombine.high %v3896_v52, %v3900_v29  ;;  %v4782_v32 = vld [vmem:[%s19769_s11] sm:$0xff]  ;;  %v4783_v36 = vld [vmem:[%s19769_s11 + $0x8] sm:$0xff] }
 0x3de   :  { %20071 = vst [vmem:[#allocation33_spill] sm:$0xff] %v16220_v49  ;;  %v12507_v33 = vcombine.low %v3895_v20, %v3899_v11  ;;  %v12509_v54 = vcombine.low %v3896_v52, %v3900_v29  ;;  %v12516_v40 = vcombine.high %v3903_v1, %v3907_v50  ;;  %v12518_v41 = vcombine.high %v3904_v44, %v3908_v10  ;;  %v4786_v12 = vld [vmem:[%s19769_s11 + $0x20] sm:$0xff]  ;;  %v4791_v29 = vld [vmem:[%s19769_s11 + $0x48] sm:$0xff] }
 0x3df   :  { %4656 = vmatpush1.bf16.msra.mxu0 %v12491_v25  ;;  %v12515_v63 = vcombine.low %v3903_v1, %v3907_v50  ;;  %v12517_v6 = vcombine.low %v3904_v44, %v3908_v10  ;;  %v16251_v25 = vcombine.low %v4782_v32, %v4786_v12  ;;  %v4799_v1 = vld [vmem:[%s19769_s11 + $0x88] sm:$0xff]  ;;  %v4822_v4 = vld [vmem:[%s19769_s11 + $0x140] sm:$0xff] }
 0x3e0   :  { %4697 = vmatpush1.bf16.msra.mxu1 %v12493_v43  ;;  %4657 = vmatprep.subr.bf16.mxu0 %v12500_v15  ;;  %v16253_v43 = vcombine.high %v4782_v32, %v4786_v12  ;;  %v4790_v15 = vld [vmem:[%s19769_s11 + $0x40] sm:$0xff]  ;;  %v4803_v50 = vld [vmem:[%s19769_s11 + $0xa8] sm:$0xff] }
 0x3e1   :  { %4698 = vmatprep.subr.bf16.mxu1 %v12502_v0  ;;  %v4794_v0 = vld [vmem:[%s19769_s11 + $0x60] sm:$0xff]  ;;  %v16321_v12 = vcombine.low %v4799_v1, %v4803_v50 }
 0x3e2   :  { %v16268_v52 = vcombine.high %v4790_v15, %v4794_v0  ;;  %v16293_v44 = vcombine.low %v4790_v15, %v4794_v0  ;;  %v4814_v15 = vld [vmem:[%s19769_s11 + $0x100] sm:$0xff] }
 0x3e3   :  { %4658 = vmatpush1.bf16.msra.mxu0 %v12499_v19  ;;  %v4795_v19 = vld [vmem:[%s19769_s11 + $0x68] sm:$0xff]  ;;  %v4818_v0 = vld [vmem:[%s19769_s11 + $0x120] sm:$0xff] }
 0x3e4   :  { %4699 = vmatpush1.bf16.msra.mxu1 %v12501_v30  ;;  %4659 = vmatprep.subr.bf16.mxu0 %v12508_v16  ;;  %v4798_v30 = vld [vmem:[%s19769_s11 + $0x80] sm:$0xff]  ;;  %v16280_v16 = vcombine.high %v4791_v29, %v4795_v19  ;;  %v16297_v10 = vcombine.low %v4791_v29, %v4795_v19  ;;  %v4815_v29 = vld [vmem:[%s19769_s11 + $0x108] sm:$0xff] }
 0x3e5   :  { %4700 = vmatprep.subr.bf16.mxu1 %v12510_v5  ;;  %v4802_v5 = vld [vmem:[%s19769_s11 + $0xa0] sm:$0xff]  ;;  %v4819_v19 = vld [vmem:[%s19769_s11 + $0x128] sm:$0xff] }
 0x3e6   :  { %v16317_v32 = vcombine.low %v4798_v30, %v4802_v5  ;;  %v16369_v49 = vcombine.low %v4815_v29, %v4819_v19  ;;  %v4830_v61 = vld [vmem:[%s19769_s11 + $0x180] sm:$0xff] }
 0x3e7   :  { %4660 = vmatpush1.bf16.msra.mxu0 %v12507_v33  ;;  %v16299_v33 = vcombine.high %v4798_v30, %v4802_v5 }
 0x3e8   :  { %4701 = vmatpush1.bf16.msra.mxu1 %v12509_v54  ;;  %4661 = vmatprep.subr.bf16.mxu0 %v12516_v40  ;;  %v16302_v54 = vcombine.high %v4799_v1, %v4803_v50  ;;  %v4806_v40 = vld [vmem:[%s19769_s11 + $0xc0] sm:$0xff]  ;;  %v16347_v1 = vcombine.high %v4814_v15, %v4818_v0  ;;  %v16350_v50 = vcombine.high %v4815_v29, %v4819_v19  ;;  %v4835_v29 = vld [vmem:[%s19769_s11 + $0x1a8] sm:$0xff] }
 0x3e9   :  { %4702 = vmatprep.subr.bf16.mxu1 %v12518_v41  ;;  %v4810_v41 = vld [vmem:[%s19769_s11 + $0xe0] sm:$0xff] }
 0x3ea   :  { %v16341_v30 = vcombine.low %v4806_v40, %v4810_v41 }
 0x3eb   :  { %4662 = vmatpush1.bf16.msra.mxu0 %v12515_v63  ;;  %v4807_v63 = vld [vmem:[%s19769_s11 + $0xc8] sm:$0xff] }
 0x3ec   :  { %4703 = vmatpush1.bf16.msra.mxu1 %v12517_v6  ;;  %5550 = vmatprep.subr.bf16.mxu0 %v16253_v43  ;;  %v4811_v6 = vld [vmem:[%s19769_s11 + $0xe8] sm:$0xff] }
 0x3ed   :  { %v16345_v5 = vcombine.low %v4807_v63, %v4811_v6 }
 0x3ee   :  { %4664 = vmatmul.mubr.bf16.vlgmr.msra.gmra.mrb[52].mxu0 %v14064_v51 }
 0x3ef   :  { %4705 = vmatmul.mubr.bf16.vlgmr.msra.gmra.mrb[80].mxu1 %v14064_v51  ;;  %v4787_v51 = vld [vmem:[%s19769_s11 + $0x28] sm:$0xff]  ;;  %5551 = vmatpush1.bf16.msra.mxu0 %v16251_v25 }
 0x3f0   :  { %v16264_v20 = vcombine.low %v4783_v36, %v4787_v51  ;;  %v16266_v11 = vcombine.high %v4783_v36, %v4787_v51  ;;  %5552 = vmatprep.subr.bf16.mxu0 %v16268_v52  ;;  %v16323_v36 = vcombine.high %v4806_v40, %v4810_v41  ;;  %v16326_v51 = vcombine.high %v4807_v63, %v4811_v6  ;;  %v4826_v40 = vld [vmem:[%s19769_s11 + $0x160] sm:$0xff]  ;;  %v4823_v41 = vld [vmem:[%s19769_s11 + $0x148] sm:$0xff] }
 0x3f1   :  { %v4827_v63 = vld [vmem:[%s19769_s11 + $0x168] sm:$0xff]  ;;  %v16365_v6 = vcombine.low %v4814_v15, %v4818_v0  ;;  %v16371_v42 = vcombine.high %v4822_v4, %v4826_v40  ;;  %v4834_v15 = vld [vmem:[%s19769_s11 + $0x1a0] sm:$0xff]  ;;  %v16389_v19 = vcombine.low %v4822_v4, %v4826_v40 }
 0x3f2   :  { %5591 = vmatprep.subr.bf16.mxu1 %v16266_v11  ;;  %v16374_v3 = vcombine.high %v4823_v41, %v4827_v63  ;;  %v4831_v0 = vld [vmem:[%s19769_s11 + $0x188] sm:$0xff]  ;;  %v16393_v7 = vcombine.low %v4823_v41, %v4827_v63  ;;  %v16395_v60 = vcombine.high %v4830_v61, %v4834_v15  ;;  %v4842_v4 = vld [vmem:[%s19769_s11 + $0x1e0] sm:$0xff]  ;;  %v16413_v63 = vcombine.low %v4830_v61, %v4834_v15 }
 0x3f3   :  { %5592 = vmatpush1.bf16.msra.mxu1 %v16264_v20  ;;  %5553 = vmatpush1.bf16.msra.mxu0 %v16293_v44  ;;  %v16398_v18 = vcombine.high %v4831_v0, %v4835_v29  ;;  %v4839_v40 = vld [vmem:[%s19769_s11 + $0x1c8] sm:$0xff]  ;;  %v16417_v28 = vcombine.low %v4831_v0, %v4835_v29  ;;  %v16419_v2 = vcombine.high %v4838_v39, %v4842_v4  ;;  %v3625_v61 = vsub.s32 6, %v14455_v34 }
 0x3f4   :  { %5593 = vmatprep.subr.bf16.mxu1 %v16280_v16  ;;  %5554 = vmatprep.subr.bf16.mxu0 %v16299_v33  ;;  %v4843_v41 = vld [vmem:[%s19769_s11 + $0x1e8] sm:$0xff]  ;;  %v16426_v62 = vcombine.low %v4838_v39, %v4842_v4  ;;  %v3621_v15 = vsub.s32 5, %v14455_v34  ;;  %v3629_v29 = vsub.s32 7, %v14455_v34 }
 0x3f5   :  { %20072 = vst [vmem:[#allocation34_spill] sm:$0xff] %v16417_v28  ;;  %20073 = vst [vmem:[#allocation35_spill] sm:$0xff] %v16419_v2  ;;  %v16422_v47 = vcombine.high %v4839_v40, %v4843_v41  ;;  %v16432_v0 = vcombine.low %v4839_v40, %v4843_v41  ;;  %v16447_v17 = vrot.slane %v16004_v23, %v3625_v61  ;;  %v4846_v61 = vld [vmem:[%s19769_s11 + $0x200] sm:$0xff] }
 0x3f6   :  { %20075 = vst [vmem:[#allocation37_spill] sm:$0xff] %v16426_v62  ;;  %v16450_v40 = vrot.slane %v16004_v23, %v3621_v15  ;;  %v16456_v8 = vrot.slane %v16004_v23, %v3629_v29  ;;  %v4850_v15 = vld [vmem:[%s19769_s11 + $0x220] sm:$0xff] }
 0x3f7   :  { %5594 = vmatpush1.bf16.msra.mxu1 %v16297_v10  ;;  %5555 = vmatpush1.bf16.msra.mxu0 %v16317_v32  ;;  %20074 = vst [vmem:[#allocation36_spill] sm:$0xff] %v16422_v47  ;;  %20076 = vst [vmem:[#allocation38_spill] sm:$0xff] %v16432_v0  ;;  %v16476_v37 = vcombine.high %v4846_v61, %v4850_v15 }
 0x3f8   :  { %5595 = vmatprep.subr.bf16.mxu1 %v16302_v54  ;;  %5556 = vmatprep.subr.bf16.mxu0 %v16323_v36 }
 0x3f9   :  { %20080 = vst [vmem:[#allocation42_spill] sm:$0xff] %v16476_v37 }
 0x3fb   :  { %5596 = vmatpush1.bf16.msra.mxu1 %v16321_v12  ;;  %5557 = vmatpush1.bf16.msra.mxu0 %v16341_v30 }
 0x3fc   :  { %5597 = vmatprep.subr.bf16.mxu1 %v16326_v51  ;;  %5558 = vmatprep.subr.bf16.mxu0 %v16347_v1 }
 0x3ff   :  { %5598 = vmatpush1.bf16.msra.mxu1 %v16345_v5  ;;  %5559 = vmatpush1.bf16.msra.mxu0 %v16365_v6 }
 0x400   :  { %5599 = vmatprep.subr.bf16.mxu1 %v16350_v50  ;;  %5560 = vmatprep.subr.bf16.mxu0 %v16371_v42 }
 0x403   :  { %5600 = vmatpush1.bf16.msra.mxu1 %v16369_v49  ;;  %5561 = vmatpush1.bf16.msra.mxu0 %v16389_v19 }
 0x404   :  { %5601 = vmatprep.subr.bf16.mxu1 %v16374_v3  ;;  %5562 = vmatprep.subr.bf16.mxu0 %v16395_v60 }
 0x407   :  { %5602 = vmatpush1.bf16.msra.mxu1 %v16393_v7  ;;  %5563 = vmatpush1.bf16.msra.mxu0 %v16413_v63 }
 0x408   :  { %5603 = vmatprep.subr.bf16.mxu1 %v16398_v18  ;;  %5564 = vmatprep.subr.bf16.mxu0 %v16419_v2 }
 0x40b   :  { %5604 = vmatpush1.bf16.msra.mxu1 %v16417_v28  ;;  %5565 = vmatpush1.bf16.msra.mxu0 %v16426_v62  ;;  %v4906_v62 = vld [vmem:[%s19769_s11 + $0x3e0] sm:$0xff] }
 0x40c   :  { %5605 = vmatprep.subr.bf16.mxu1 %v16422_v47  ;;  %5566 = vmatprep.subr.bf16.mxu0 %v16476_v37 }
 0x40f   :  { %5606 = vmatpush1.bf16.msra.mxu1 %v16432_v0 }
 0x410   :  { %5607 = vmatprep.subr.bf16.mxu1 %v16488_v59 }
 0x413   :  { %5608 = vmatpush1.bf16.msra.mxu1 %v16486_v55 }
 0x440   :  { %v16436_v45 = vpop.f32.mrb[28].mxu0 }
 0x441   :  { %v16441_v39 = vpop.f32.mrb[60].mxu1  ;;  %v16443_v4 = vpop.f32.mrb[29].mxu0 }
 0x442   :  { %v16452_v34 = vpop.f32.mrb[61].mxu1  ;;  %v3416_v41 = vpop.f32.mrb[30].mxu0 }
 0x443   :  { %v16459_v58 = vadd.f32 %v16439_v56, %v3416_v41  ;;  %v3562_v24 = vpop.f32.mrb[62].mxu1  ;;  %v3418_v22 = vpop.f32.mrb[31].mxu0 }
 0x444   :  { %v16471_v23 = vadd.f32 %v16447_v17, %v3562_v24  ;;  %v16474_v29 = vadd.f32 %v16450_v40, %v3418_v22  ;;  %v3564_v41 = vpop.f32.mrb[63].mxu1  ;;  %v4854_v22 = vld [vmem:[%s19769_s11 + $0x240] sm:$0xff] }
 0x445   :  { %20077 = vst [vmem:[#allocation39_spill] sm:$0xff] %v16459_v58  ;;  %v16482_v46 = vadd.f32 %v16456_v8, %v3564_v41  ;;  %v16484_v58 = vcombine.low %v4846_v61, %v4850_v15  ;;  %v4858_v24 = vld [vmem:[%s19769_s11 + $0x260] sm:$0xff]  ;;  %v4855_v61 = vld [vmem:[%s19769_s11 + $0x248] sm:$0xff] }
 0x446   :  { %20078 = vst [vmem:[#allocation40_spill] sm:$0xff] %v16471_v23  ;;  %20079 = vst [vmem:[#allocation41_spill] sm:$0xff] %v16474_v29  ;;  %v16503_v38 = vcombine.high %v4854_v22, %v4858_v24  ;;  %v4859_v15 = vld [vmem:[%s19769_s11 + $0x268] sm:$0xff]  ;;  %v16511_v23 = vcombine.low %v4854_v22, %v4858_v24 }
 0x447   :  { %20081 = vst [vmem:[#allocation43_spill] sm:$0xff] %v16482_v46  ;;  %20082 = vst [vmem:[#allocation44_spill] sm:$0xff] %v16484_v58  ;;  %5567 = vmatpush1.bf16.msra.mxu0 %v16484_v58  ;;  %v16513_v27 = vcombine.low %v4855_v61, %v4859_v15  ;;  %v16515_v21 = vcombine.high %v4855_v61, %v4859_v15 }
 0x448   :  { %v3422_v26 = vpop.f32.mrb[32].mxu0  ;;  %20085 = vst [vmem:[#allocation47_spill] sm:$0xff] %v16503_v38  ;;  %20087 = vst [vmem:[#allocation49_spill] sm:$0xff] %v16511_v23  ;;  %5568 = vmatprep.subr.bf16.mxu0 %v16503_v38 }
 0x449   :  { %v16509_v41 = vadd.f32 %v16439_v56, %v3422_v26  ;;  %v3568_v46 = vpop.f32.mrb[64].mxu1  ;;  %v3424_v29 = vpop.f32.mrb[33].mxu0  ;;  %20088 = vst [vmem:[#allocation50_spill] sm:$0xff] %v16513_v27  ;;  %20089 = vst [vmem:[#allocation51_spill] sm:$0xff] %v16515_v21  ;;  %5609 = vmatprep.subr.bf16.mxu1 %v16515_v21 }
 0x44a   :  { %v16518_v58 = vadd.f32 %v16447_v17, %v3568_v46  ;;  %v16521_v55 = vadd.f32 %v16450_v40, %v3424_v29  ;;  %v3570_v59 = vpop.f32.mrb[65].mxu1  ;;  %v3426_v37 = vpop.f32.mrb[34].mxu0  ;;  %v4862_v46 = vld [vmem:[%s19769_s11 + $0x280] sm:$0xff]  ;;  %5610 = vmatpush1.bf16.msra.mxu1 %v16513_v27 }
 0x44b   :  { %20086 = vst [vmem:[#allocation48_spill] sm:$0xff] %v16509_v41  ;;  %v16525_v26 = vadd.f32 %v16456_v8, %v3570_v59  ;;  %v16528_v22 = vadd.f32 %v16439_v56, %v3426_v37  ;;  %v3572_v24 = vpop.f32.mrb[66].mxu1  ;;  %v3428_v41 = vpop.f32.mrb[35].mxu0  ;;  %5569 = vmatpush1.bf16.msra.mxu0 %v16511_v23  ;;  %v4866_v29 = vld [vmem:[%s19769_s11 + $0x2a0] sm:$0xff]  ;;  %v4863_v59 = vld [vmem:[%s19769_s11 + $0x288] sm:$0xff] }
 0x44c   :  { %20090 = vst [vmem:[#allocation52_spill] sm:$0xff] %v16518_v58  ;;  %20091 = vst [vmem:[#allocation53_spill] sm:$0xff] %v16521_v55  ;;  %v16542_v37 = vadd.f32 %v16447_v17, %v3572_v24  ;;  %v16545_v61 = vadd.f32 %v16450_v40, %v3428_v41  ;;  %v3574_v15 = vpop.f32.mrb[67].mxu1  ;;  %v16556_v58 = vcombine.low %v4862_v46, %v4866_v29  ;;  %v4870_v41 = vld [vmem:[%s19769_s11 + $0x2c0] sm:$0xff] }
 0x44d   :  { %20092 = vst [vmem:[#allocation54_spill] sm:$0xff] %v16525_v26  ;;  %20093 = vst [vmem:[#allocation55_spill] sm:$0xff] %v16528_v22  ;;  %v16548_v22 = vcombine.high %v4862_v46, %v4866_v29  ;;  %v4867_v26 = vld [vmem:[%s19769_s11 + $0x2a8] sm:$0xff]  ;;  %v16554_v55 = vadd.f32 %v16456_v8, %v3574_v15  ;;  %v4874_v15 = vld [vmem:[%s19769_s11 + $0x2e0] sm:$0xff] }
 0x44e   :  { %20094 = vst [vmem:[#allocation56_spill] sm:$0xff] %v16542_v37  ;;  %20095 = vst [vmem:[#allocation57_spill] sm:$0xff] %v16545_v61  ;;  %v16558_v23 = vcombine.low %v4863_v59, %v4867_v26  ;;  %v16560_v24 = vcombine.high %v4863_v59, %v4867_v26  ;;  %v4871_v46 = vld [vmem:[%s19769_s11 + $0x2c8] sm:$0xff]  ;;  %v16575_v29 = vcombine.high %v4870_v41, %v4874_v15 }
 0x44f   :  { %20096 = vst [vmem:[#allocation58_spill] sm:$0xff] %v16548_v22  ;;  %20097 = vst [vmem:[#allocation59_spill] sm:$0xff] %v16554_v55  ;;  %5570 = vmatprep.subr.bf16.mxu0 %v16548_v22  ;;  %v4875_v59 = vld [vmem:[%s19769_s11 + $0x2e8] sm:$0xff] }
 0x450   :  { %20098 = vst [vmem:[#allocation60_spill] sm:$0xff] %v16556_v58  ;;  %20099 = vst [vmem:[#allocation61_spill] sm:$0xff] %v16558_v23  ;;  %5611 = vmatprep.subr.bf16.mxu1 %v16560_v24  ;;  %5571 = vmatpush1.bf16.msra.mxu0 %v16556_v58  ;;  %v3432_v26 = vpop.f32.mrb[36].mxu0  ;;  %v16583_v58 = vcombine.low %v4870_v41, %v4874_v15  ;;  %v16587_v22 = vcombine.high %v4871_v46, %v4875_v59 }
 0x451   :  { %20100 = vst [vmem:[#allocation62_spill] sm:$0xff] %v16560_v24  ;;  %5612 = vmatpush1.bf16.msra.mxu1 %v16558_v23  ;;  %20101 = vst [vmem:[#allocation63_spill] sm:$0xff] %v16575_v29  ;;  %v16581_v55 = vadd.f32 %v16439_v56, %v3432_v26  ;;  %v3578_v61 = vpop.f32.mrb[68].mxu1  ;;  %v3434_v37 = vpop.f32.mrb[37].mxu0  ;;  %v16585_v24 = vcombine.low %v4871_v46, %v4875_v59  ;;  %5572 = vmatprep.subr.bf16.mxu0 %v16575_v29 }
 0x452   :  { %20103 = vst [vmem:[#allocation65_spill] sm:$0xff] %v16583_v58  ;;  %20105 = vst [vmem:[#allocation67_spill] sm:$0xff] %v16587_v22  ;;  %v16590_v27 = vadd.f32 %v16447_v17, %v3578_v61  ;;  %v16593_v23 = vadd.f32 %v16450_v40, %v3434_v37  ;;  %v3580_v21 = vpop.f32.mrb[69].mxu1  ;;  %v3436_v38 = vpop.f32.mrb[38].mxu0  ;;  %5613 = vmatprep.subr.bf16.mxu1 %v16587_v22  ;;  %v4878_v37 = vld [vmem:[%s19769_s11 + $0x300] sm:$0xff] }
 0x453   :  { %20102 = vst [vmem:[#allocation64_spill] sm:$0xff] %v16581_v55  ;;  %20104 = vst [vmem:[#allocation66_spill] sm:$0xff] %v16585_v24  ;;  %v16597_v26 = vadd.f32 %v16456_v8, %v3580_v21  ;;  %v16600_v41 = vadd.f32 %v16439_v56, %v3436_v38  ;;  %v3582_v15 = vpop.f32.mrb[70].mxu1  ;;  %v3438_v55 = vpop.f32.mrb[39].mxu0  ;;  %v4882_v61 = vld [vmem:[%s19769_s11 + $0x320] sm:$0xff]  ;;  %v4879_v21 = vld [vmem:[%s19769_s11 + $0x308] sm:$0xff] }
 0x454   :  { %20106 = vst [vmem:[#allocation68_spill] sm:$0xff] %v16590_v27  ;;  %20107 = vst [vmem:[#allocation69_spill] sm:$0xff] %v16593_v23  ;;  %5573 = vmatpush1.bf16.msra.mxu0 %v16583_v58  ;;  %v16614_v38 = vadd.f32 %v16447_v17, %v3582_v15  ;;  %v16617_v46 = vadd.f32 %v16450_v40, %v3438_v55  ;;  %v3584_v59 = vpop.f32.mrb[71].mxu1  ;;  %v16628_v27 = vcombine.low %v4878_v37, %v4882_v61  ;;  %v4886_v55 = vld [vmem:[%s19769_s11 + $0x340] sm:$0xff] }
 0x455   :  { %20108 = vst [vmem:[#allocation70_spill] sm:$0xff] %v16597_v26  ;;  %20109 = vst [vmem:[#allocation71_spill] sm:$0xff] %v16600_v41  ;;  %5614 = vmatpush1.bf16.msra.mxu1 %v16585_v24  ;;  %v16620_v41 = vcombine.high %v4878_v37, %v4882_v61  ;;  %v4883_v26 = vld [vmem:[%s19769_s11 + $0x328] sm:$0xff]  ;;  %v16626_v23 = vadd.f32 %v16456_v8, %v3584_v59  ;;  %v4890_v59 = vld [vmem:[%s19769_s11 + $0x360] sm:$0xff] }
 0x456   :  { %20110 = vst [vmem:[#allocation72_spill] sm:$0xff] %v16614_v38  ;;  %20111 = vst [vmem:[#allocation73_spill] sm:$0xff] %v16617_v46  ;;  %v16630_v58 = vcombine.low %v4879_v21, %v4883_v26  ;;  %v16632_v15 = vcombine.high %v4879_v21, %v4883_v26  ;;  %v4887_v37 = vld [vmem:[%s19769_s11 + $0x348] sm:$0xff]  ;;  %v16647_v61 = vcombine.low %v4886_v55, %v4890_v59  ;;  %v4894_v46 = vld [vmem:[%s19769_s11 + $0x380] sm:$0xff] }
 0x457   :  { %20112 = vst [vmem:[#allocation74_spill] sm:$0xff] %v16620_v41  ;;  %20113 = vst [vmem:[#allocation75_spill] sm:$0xff] %v16626_v23  ;;  %5574 = vmatprep.subr.bf16.mxu0 %v16620_v41  ;;  %v16649_v21 = vcombine.high %v4886_v55, %v4890_v59  ;;  %v4891_v23 = vld [vmem:[%s19769_s11 + $0x368] sm:$0xff]  ;;  %v4898_v38 = vld [vmem:[%s19769_s11 + $0x3a0] sm:$0xff] }
 0x458   :  { %20114 = vst [vmem:[#allocation76_spill] sm:$0xff] %v16628_v27  ;;  %20115 = vst [vmem:[#allocation77_spill] sm:$0xff] %v16630_v58  ;;  %5615 = vmatprep.subr.bf16.mxu1 %v16632_v15  ;;  %5575 = vmatpush1.bf16.msra.mxu0 %v16628_v27  ;;  %v3442_v26 = vpop.f32.mrb[40].mxu0  ;;  %v16663_v41 = vcombine.low %v4887_v37, %v4891_v23  ;;  %v16665_v55 = vcombine.high %v4887_v37, %v4891_v23  ;;  %v4895_v59 = vld [vmem:[%s19769_s11 + $0x388] sm:$0xff]  ;;  %v4902_v22 = vld [vmem:[%s19769_s11 + $0x3c0] sm:$0xff] }
 0x459   :  { %20116 = vst [vmem:[#allocation78_spill] sm:$0xff] %v16632_v15  ;;  %5616 = vmatpush1.bf16.msra.mxu1 %v16630_v58  ;;  %20117 = vst [vmem:[#allocation79_spill] sm:$0xff] %v16649_v21  ;;  %v16661_v27 = vadd.f32 %v16439_v56, %v3442_v26  ;;  %v3588_v58 = vpop.f32.mrb[72].mxu1  ;;  %v3444_v15 = vpop.f32.mrb[41].mxu0  ;;  %v4899_v24 = vld [vmem:[%s19769_s11 + $0x3a8] sm:$0xff]  ;;  %5576 = vmatprep.subr.bf16.mxu0 %v16649_v21  ;;  %v16683_v29 = vcombine.low %v4894_v46, %v4898_v38 }
 0x45a   :  { %v16677_v26 = vadd.f32 %v16447_v17, %v3588_v58  ;;  %v3590_v23 = vpop.f32.mrb[73].mxu1  ;;  %v3446_v37 = vpop.f32.mrb[42].mxu0  ;;  %v16685_v0 = vcombine.high %v4894_v46, %v4898_v38  ;;  %v4903_v58 = vld [vmem:[%s19769_s11 + $0x3c8] sm:$0xff]  ;;  %5617 = vmatprep.subr.bf16.mxu1 %v16665_v55  ;;  %v16704_v21 = vcombine.high %v4895_v59, %v4899_v24 }
 0x45b   :  { %20118 = vst [vmem:[#allocation80_spill] sm:$0xff] %v16661_v27  ;;  %v16680_v27 = vadd.f32 %v16450_v40, %v3444_v15  ;;  %20121 = vst [vmem:[#allocation83_spill] sm:$0xff] %v16683_v29  ;;  %v4907_v15 = vld [vmem:[%s19769_s11 + $0x3e8] sm:$0xff]  ;;  %v3592_v38 = vpop.f32.mrb[74].mxu1  ;;  %v3448_v46 = vpop.f32.mrb[43].mxu0 }
 0x45c   :  { %20119 = vst [vmem:[#allocation81_spill] sm:$0xff] %v16677_v26  ;;  %20122 = vst [vmem:[#allocation84_spill] sm:$0xff] %v16685_v0  ;;  %v16700_v26 = vadd.f32 %v16439_v56, %v3446_v37  ;;  %5577 = vmatpush1.bf16.msra.mxu0 %v16647_v61  ;;  %v16707_v47 = vadd.f32 %v16447_v17, %v3592_v38  ;;  %v16710_v2 = vadd.f32 %v16450_v40, %v3448_v46  ;;  %v3594_v28 = vpop.f32.mrb[75].mxu1 }
 0x45d   :  { %20120 = vst [vmem:[#allocation82_spill] sm:$0xff] %v16680_v27  ;;  %v16697_v27 = vadd.f32 %v16456_v8, %v3590_v23  ;;  %20125 = vst [vmem:[#allocation87_spill] sm:$0xff] %v16704_v21  ;;  %5618 = vmatpush1.bf16.msra.mxu1 %v16663_v41  ;;  %5578 = vmatprep.subr.bf16.mxu0 %v16685_v0  ;;  %v16714_v23 = vcombine.low %v4895_v59, %v4899_v24  ;;  %v4788_v24 = vld [vmem:[%s19769_s11 + $0x30] sm:$0xff]  ;;  %v4789_v59 = vld [vmem:[%s19769_s11 + $0x38] sm:$0xff] }
 0x45e   :  { %20124 = vst [vmem:[#allocation86_spill] sm:$0xff] %v16700_v26  ;;  %20126 = vst [vmem:[#allocation88_spill] sm:$0xff] %v16707_v47  ;;  %v16717_v37 = vadd.f32 %v16456_v8, %v3594_v28  ;;  %5619 = vmatprep.subr.bf16.mxu1 %v16704_v21  ;;  %v16720_v26 = vcombine.high %v4902_v22, %v4906_v62  ;;  %v16725_v38 = vcombine.low %v4902_v22, %v4906_v62  ;;  %v4784_v28 = vld [vmem:[%s19769_s11 + $0x10] sm:$0xff]  ;;  %v4785_v62 = vld [vmem:[%s19769_s11 + $0x18] sm:$0xff] }
 0x45f   :  { %20123 = vst [vmem:[#allocation85_spill] sm:$0xff] %v16697_v27  ;;  %20127 = vst [vmem:[#allocation89_spill] sm:$0xff] %v16710_v2  ;;  %v16722_v27 = vcombine.high %v4903_v58, %v4907_v15  ;;  %v16729_v46 = vcombine.low %v4903_v58, %v4907_v15  ;;  %v16743_v22 = vcombine.high %v4784_v28, %v4788_v24 }
 0x460   :  { %20128 = vst [vmem:[#allocation90_spill] sm:$0xff] %v16714_v23  ;;  %20129 = vst [vmem:[#allocation91_spill] sm:$0xff] %v16717_v37  ;;  %5579 = vmatpush1.bf16.msra.mxu0 %v16683_v29  ;;  %v16748_v58 = vcombine.low %v4784_v28, %v4788_v24  ;;  %v16750_v15 = vcombine.low %v4785_v62, %v4789_v59  ;;  %v16752_v37 = vcombine.high %v4785_v62, %v4789_v59 }
 0x461   :  { %20130 = vst [vmem:[#allocation92_spill] sm:$0xff] %v16720_v26  ;;  %20131 = vst [vmem:[#allocation93_spill] sm:$0xff] %v16722_v27  ;;  %5620 = vmatpush1.bf16.msra.mxu1 %v16714_v23  ;;  %5580 = vmatprep.subr.bf16.mxu0 %v16720_v26  ;;  %v3639_v2 = vadd.f32 %v16022_v53, %v16018_v14  ;;  %v3641_v47 = vadd.f32 %v16029_v57, %v16024_v9 }
 0x462   :  { %20132 = vst [vmem:[#allocation94_spill] sm:$0xff] %v16725_v38  ;;  %20133 = vst [vmem:[#allocation95_spill] sm:$0xff] %v16729_v46  ;;  %5621 = vmatprep.subr.bf16.mxu1 %v16722_v27  ;;  %v3642_v28 = vadd.f32 %v16042_v31, %v16033_v13 }
 0x463   :  { %20134 = vst [vmem:[#allocation96_spill] sm:$0xff] %v16743_v22  ;;  %20135 = vst [vmem:[#allocation97_spill] sm:$0xff] %v16752_v37 }
 0x464   :  { %5581 = vmatpush1.bf16.msra.mxu0 %v16725_v38 }
 0x465   :  { %5622 = vmatpush1.bf16.msra.mxu1 %v16729_v46  ;;  %5632 = vmatprep.subr.bf16.mxu0 %v16743_v22  ;;  %v3640_v46 = vadd.f32 %v16037_v35, %v16031_v48 }
 0x466   :  { %5673 = vmatprep.subr.bf16.mxu1 %v16752_v37 }
 0x481   :  { %v4583_v38 = vpop.f32.mrb[48].mxu0 }
 0x482   :  { %v4713_v24 = vadd.f32 %v4583_v38, %v3639_v2  ;;  %v4624_v62 = vpop.f32.mrb[76].mxu1  ;;  %v4585_v59 = vpop.f32.mrb[49].mxu0 }
 0x483   :  { %v4715_v27 = vadd.f32 %v4624_v62, %v3641_v47  ;;  %v4714_v22 = vadd.f32 %v4585_v59, %v3640_v46  ;;  %v4626_v26 = vpop.f32.mrb[77].mxu1  ;;  %v4587_v37 = vpop.f32.mrb[50].mxu0 }
 0x484   :  { %v4716_v23 = vadd.f32 %v4626_v26, %v3642_v28  ;;  %v4628_v29 = vpop.f32.mrb[78].mxu1  ;;  %v4588_v14 = vpop.f32.mrb[51].mxu0  ;;  %v12519_v21 = vmul.f32 -1.442695, %v4713_v24 }
 0x485   :  { %v4629_v53 = vpop.f32.mrb[79].mxu1  ;;  %v12521_v9 = vmul.f32 -1.442695, %v4715_v27  ;;  %v12520_v57 = vmul.f32 -1.442695, %v4714_v22  ;;  %v3643_v29 = vadd.f32 %v16439_v56, %v16436_v45  ;;  %v3645_v27 = vadd.f32 %v16447_v17, %v16441_v39 }
 0x486   :  { %v12522_v0 = vmul.f32 -1.442695, %v4716_v23  ;;  %13806 = vpow2.f32 %v12519_v21  ;;  %v3644_v21 = vadd.f32 %v16450_v40, %v16443_v4 }
 0x487   :  { %13808 = vpow2.f32 %v12521_v9 }
 0x488   :  { %13810 = vpow2.f32 %v12520_v57 }
 0x489   :  { %13812 = vpow2.f32 %v12522_v0  ;;  %v3646_v0 = vadd.f32 %v16456_v8, %v16452_v34 }
 0x490   :  { %v13807_v48 = vpop.eup %13806 }
 0x491   :  { %v13809_v13 = vpop.eup %13808  ;;  %v4739_v47 = vadd.f32 1.0, %v13807_v48 }
 0x492   :  { %v13811_v35 = vpop.eup %13810  ;;  %v4741_v2 = vadd.f32 1.0, %v13809_v13 }
 0x493   :  { %v13813_v31 = vpop.eup %13812  ;;  %v4740_v38 = vadd.f32 1.0, %v13811_v35  ;;  %13814 = vrcp.f32 %v4739_v47 }
 0x494   :  { %v4742_v26 = vadd.f32 1.0, %v13813_v31  ;;  %13816 = vrcp.f32 %v4741_v2 }
 0x495   :  { %13818 = vrcp.f32 %v4740_v38 }
 0x496   :  { %13820 = vrcp.f32 %v4742_v26 }
 0x49d   :  { %v13815_v34 = vpop.eup %13814 }
 0x49e   :  { %v13817_v8 = vpop.eup %13816 }
 0x49f   :  { %v13819_v14 = vpop.eup %13818  ;;  %v4759_v48 = vmul.f32 0.0, %v13817_v8  ;;  %v4805_v8 = vld [vmem:[%s19769_s11 + $0xb8] sm:$0xff] }
 0x4a0   :  { %v13821_v53 = vpop.eup %13820 }
 0x4c1   :  { %v4665_v23 = vpop.f32.mrb[52].mxu0 }
 0x4c2   :  { %v4717_v37 = vadd.f32 %v4665_v23, %v3643_v29  ;;  %v4706_v46 = vpop.f32.mrb[80].mxu1  ;;  %v4667_v22 = vpop.f32.mrb[53].mxu0  ;;  %v4760_v29 = vmul.f32 0.0, %v13821_v53 }
 0x4c3   :  { %v4719_v28 = vadd.f32 %v4706_v46, %v3645_v27  ;;  %v4718_v24 = vadd.f32 %v4667_v22, %v3644_v21  ;;  %v4708_v56 = vpop.f32.mrb[81].mxu1  ;;  %v4669_v45 = vpop.f32.mrb[54].mxu0 }
 0x4c4   :  { %v12523_v62 = vmul.f32 -1.442695, %v4717_v37  ;;  %v4720_v17 = vadd.f32 %v4708_v56, %v3646_v0  ;;  %v4710_v39 = vpop.f32.mrb[82].mxu1  ;;  %v4670_v59 = vpop.f32.mrb[55].mxu0  ;;  %v4793_v56 = vld [vmem:[%s19769_s11 + $0x58] sm:$0xff] }
 0x4c5   :  { %13822 = vtanh.f32 %v4719_v28  ;;  %v12524_v4 = vmul.f32 -1.442695, %v4718_v24  ;;  %v4711_v40 = vpop.f32.mrb[83].mxu1  ;;  %v4792_v28 = vld [vmem:[%s19769_s11 + $0x50] sm:$0xff]  ;;  %v4797_v45 = vld [vmem:[%s19769_s11 + $0x78] sm:$0xff] }
 0x4c6   :  { %13824 = vpow2.f32 %v12523_v62  ;;  %v4796_v24 = vld [vmem:[%s19769_s11 + $0x70] sm:$0xff]  ;;  %v16822_v53 = vcombine.low %v4793_v56, %v4797_v45 }
 0x4c7   :  { %13826 = vpow2.f32 %v12524_v4  ;;  %v4800_v39 = vld [vmem:[%s19769_s11 + $0x90] sm:$0xff]  ;;  %v16803_v59 = vcombine.high %v4792_v28, %v4796_v24  ;;  %v16805_v4 = vcombine.high %v4793_v56, %v4797_v45 }
 0x4c8   :  { %13828 = vtanh.f32 %v4720_v17  ;;  %v4804_v40 = vld [vmem:[%s19769_s11 + $0xb0] sm:$0xff] }
 0x4cf   :  { %v13823_v9 = vpop.eup %13822 }
 0x4d0   :  { %v13825_v57 = vpop.eup %13824  ;;  %v4761_v13 = vmul.f32 %v13823_v9, %v13815_v34  ;;  %v4801_v34 = vld [vmem:[%s19769_s11 + $0x98] sm:$0xff]  ;;  %v16824_v9 = vcombine.high %v4800_v39, %v4804_v40 }
 0x4d1   :  { %v13827_v35 = vpop.eup %13826  ;;  %v4743_v31 = vadd.f32 1.0, %v13825_v57  ;;  %v16826_v57 = vcombine.high %v4801_v34, %v4805_v8 }
 0x4d2   :  { %v13829_v47 = vpop.eup %13828  ;;  %v16772_v2 = vadd.f32 %v4761_v13, %v4759_v48  ;;  %v4744_v38 = vadd.f32 1.0, %v13827_v35  ;;  %v4808_v48 = vld [vmem:[%s19769_s11 + $0xd0] sm:$0xff]  ;;  %v4809_v35 = vld [vmem:[%s19769_s11 + $0xd8] sm:$0xff] }
 0x4d3   :  { %13830 = vrcp.f32 %v4743_v31  ;;  %v4762_v26 = vmul.f32 %v13829_v47, %v13819_v14  ;;  %v16820_v14 = vcombine.low %v4792_v28, %v4796_v24  ;;  %v4812_v13 = vld [vmem:[%s19769_s11 + $0xf0] sm:$0xff]  ;;  %v4813_v31 = vld [vmem:[%s19769_s11 + $0xf8] sm:$0xff]  ;;  %v16844_v47 = vcombine.low %v4800_v39, %v4804_v40 }
 0x4d4   :  { %13832 = vtanh.f32 %v16772_v2  ;;  %v16868_v28 = vcombine.low %v4808_v48, %v4812_v13  ;;  %v16870_v24 = vcombine.low %v4809_v35, %v4813_v31  ;;  %v4828_v39 = vld [vmem:[%s19769_s11 + $0x170] sm:$0xff]  ;;  %v4825_v40 = vld [vmem:[%s19769_s11 + $0x158] sm:$0xff] }
 0x4d5   :  { %13834 = vrcp.f32 %v4744_v38  ;;  %v16775_v27 = vadd.f32 %v4762_v26, %v4760_v29  ;;  %v16846_v38 = vcombine.low %v4801_v34, %v4805_v8  ;;  %v16850_v29 = vcombine.high %v4808_v48, %v4812_v13  ;;  %v4829_v34 = vld [vmem:[%s19769_s11 + $0x178] sm:$0xff] }
 0x4d6   :  { %v16852_v26 = vcombine.high %v4809_v35, %v4813_v31  ;;  %v16900_v35 = vcombine.high %v4825_v40, %v4829_v34  ;;  %v4832_v31 = vld [vmem:[%s19769_s11 + $0x190] sm:$0xff] }
 0x4d7   :  { %13836 = vtanh.f32 %v16775_v27 }
 0x4d8   :  { %20143 = vst [vmem:[#allocation105_spill] sm:$0xff] %v16900_v35 }
 0x4dd   :  { %v13831_v21 = vpop.eup %13830 }
 0x4de   :  { %v13833_v23 = vpop.eup %13832 }
 0x4df   :  { %v13835_v0 = vpop.eup %13834  ;;  %v16778_v46 = vmul.f32 %v13833_v23, %v13831_v21  ;;  %v4816_v21 = vld [vmem:[%s19769_s11 + $0x110] sm:$0xff] }
 0x4e0   :  { %v4820_v23 = vld [vmem:[%s19769_s11 + $0x130] sm:$0xff] }
 0x4e1   :  { %v13837_v37 = vpop.eup %13836  ;;  %20136 = vst [vmem:[#allocation98_spill] sm:$0xff] %v16778_v46  ;;  %v16798_v17 = vpack.c.bf16 %v16778_v46, %v16778_v46  ;;  %v16874_v56 = vcombine.high %v4816_v21, %v4820_v23  ;;  %v16892_v8 = vcombine.low %v4816_v21, %v4820_v23  ;;  %v4836_v46 = vld [vmem:[%s19769_s11 + $0x1b0] sm:$0xff]  ;;  %v4833_v21 = vld [vmem:[%s19769_s11 + $0x198] sm:$0xff] }
 0x4e2   :  { %v16780_v22 = vmul.f32 %v13837_v37, %v13835_v0  ;;  %v4817_v0 = vld [vmem:[%s19769_s11 + $0x118] sm:$0xff] }
 0x4e3   :  { %v4821_v37 = vld [vmem:[%s19769_s11 + $0x138] sm:$0xff]  ;;  %20138 = vst [vmem:[#allocation100_spill] sm:$0xff] %v16874_v56  ;;  %20140 = vst [vmem:[#allocation102_spill] sm:$0xff] %v16892_v8 }
 0x4e4   :  { %20137 = vst [vmem:[#allocation99_spill] sm:$0xff] %v16780_v22  ;;  %v4781_v62 = vpack.c.bf16 %v16780_v22, %v16780_v22  ;;  %v16876_v45 = vcombine.high %v4817_v0, %v4821_v37  ;;  %v16894_v48 = vcombine.low %v4817_v0, %v4821_v37  ;;  %v4837_v23 = vld [vmem:[%s19769_s11 + $0x1b8] sm:$0xff]  ;;  %v16918_v37 = vcombine.low %v4825_v40, %v4829_v34 }
 0x4e5   :  { %v16922_v22 = vcombine.high %v4832_v31, %v4836_v46  ;;  %v16940_v40 = vcombine.low %v4832_v31, %v4836_v46  ;;  %v16942_v34 = vcombine.low %v4833_v21, %v4837_v23  ;;  %v4849_v46 = vld [vmem:[%s19769_s11 + $0x218] sm:$0xff] }
 0x4e6   :  { %5582 = vmatprep.mubr.bf16.mxu0 %v4781_v62  ;;  %5623 = vmatprep.mubr.bf16.mxu1 %v4781_v62  ;;  %20139 = vst [vmem:[#allocation101_spill] sm:$0xff] %v16876_v45  ;;  %20141 = vst [vmem:[#allocation103_spill] sm:$0xff] %v16894_v48  ;;  %v4853_v31 = vld [vmem:[%s19769_s11 + $0x238] sm:$0xff] }
 0x4e7   :  { %5583 = vmatmul.mubr.bf16.vlgmr.msra.gmra.mrb[56].mxu0 %v16798_v17  ;;  %5624 = vmatmul.mubr.bf16.vlgmr.msra.gmra.mrb[84].mxu1 %v16798_v17  ;;  %20145 = vst [vmem:[#allocation107_spill] sm:$0xff] %v16918_v37  ;;  %20146 = vst [vmem:[#allocation108_spill] sm:$0xff] %v16922_v22 }
 0x4e8   :  { %5633 = vmatpush1.bf16.msra.mxu0 %v16748_v58  ;;  %5674 = vmatpush1.bf16.msra.mxu1 %v16750_v15  ;;  %20148 = vst [vmem:[#allocation110_spill] sm:$0xff] %v16940_v40  ;;  %20149 = vst [vmem:[#allocation111_spill] sm:$0xff] %v16942_v34 }
 0x4e9   :  { %5664 = vmatprep.mubr.bf16.mxu0 %v4781_v62  ;;  %5705 = vmatprep.mubr.bf16.mxu1 %v4781_v62  ;;  %v4824_v62 = vld [vmem:[%s19769_s11 + $0x150] sm:$0xff] }
 0x4ea   :  { %5634 = vmatprep.subr.bf16.mxu0 %v16803_v59  ;;  %5675 = vmatprep.subr.bf16.mxu1 %v16805_v4  ;;  %v16898_v13 = vcombine.high %v4824_v62, %v4828_v39  ;;  %v16916_v0 = vcombine.low %v4824_v62, %v4828_v39  ;;  %v4841_v62 = vld [vmem:[%s19769_s11 + $0x1d8] sm:$0xff] }
 0x4eb   :  { %v4845_v39 = vld [vmem:[%s19769_s11 + $0x1f8] sm:$0xff] }
 0x4ec   :  { %5635 = vmatpush1.bf16.msra.mxu0 %v16820_v14  ;;  %5676 = vmatpush1.bf16.msra.mxu1 %v16822_v53  ;;  %20142 = vst [vmem:[#allocation104_spill] sm:$0xff] %v16898_v13  ;;  %20144 = vst [vmem:[#allocation106_spill] sm:$0xff] %v16916_v0 }
 0x4ed   :  { %5636 = vmatprep.subr.bf16.mxu0 %v16824_v9  ;;  %5677 = vmatprep.subr.bf16.mxu1 %v16826_v57 }
 0x4f0   :  { %5637 = vmatpush1.bf16.msra.mxu0 %v16844_v47  ;;  %5678 = vmatpush1.bf16.msra.mxu1 %v16846_v38 }
 0x4f1   :  { %5638 = vmatprep.subr.bf16.mxu0 %v16850_v29  ;;  %5679 = vmatprep.subr.bf16.mxu1 %v16852_v26 }
 0x4f4   :  { %5639 = vmatpush1.bf16.msra.mxu0 %v16868_v28  ;;  %5680 = vmatpush1.bf16.msra.mxu1 %v16870_v24 }
 0x4f5   :  { %5640 = vmatprep.subr.bf16.mxu0 %v16874_v56  ;;  %5681 = vmatprep.subr.bf16.mxu1 %v16876_v45  ;;  %v16924_v45 = vcombine.high %v4833_v21, %v4837_v23  ;;  %v4840_v56 = vld [vmem:[%s19769_s11 + $0x1d0] sm:$0xff]  ;;  %v16966_v23 = vcombine.low %v4841_v62, %v4845_v39 }
 0x4f7   :  { %20147 = vst [vmem:[#allocation109_spill] sm:$0xff] %v16924_v45  ;;  %20153 = vst [vmem:[#allocation115_spill] sm:$0xff] %v16966_v23 }
 0x4f8   :  { %5641 = vmatpush1.bf16.msra.mxu0 %v16892_v8  ;;  %5682 = vmatpush1.bf16.msra.mxu1 %v16894_v48  ;;  %v4844_v48 = vld [vmem:[%s19769_s11 + $0x1f0] sm:$0xff] }
 0x4f9   :  { %5642 = vmatprep.subr.bf16.mxu0 %v16898_v13  ;;  %5683 = vmatprep.subr.bf16.mxu1 %v16900_v35  ;;  %v16946_v35 = vcombine.high %v4840_v56, %v4844_v48  ;;  %v16948_v13 = vcombine.high %v4841_v62, %v4845_v39  ;;  %v4848_v8 = vld [vmem:[%s19769_s11 + $0x210] sm:$0xff]  ;;  %v16964_v21 = vcombine.low %v4840_v56, %v4844_v48  ;;  %v4857_v56 = vld [vmem:[%s19769_s11 + $0x258] sm:$0xff] }
 0x4fa   :  { %v4861_v48 = vld [vmem:[%s19769_s11 + $0x278] sm:$0xff]  ;;  %v16990_v39 = vcombine.low %v4849_v46, %v4853_v31 }
 0x4fb   :  { %20150 = vst [vmem:[#allocation112_spill] sm:$0xff] %v16946_v35  ;;  %20151 = vst [vmem:[#allocation113_spill] sm:$0xff] %v16948_v13 }
 0x4fc   :  { %5643 = vmatpush1.bf16.msra.mxu0 %v16916_v0  ;;  %5684 = vmatpush1.bf16.msra.mxu1 %v16918_v37  ;;  %v4852_v37 = vld [vmem:[%s19769_s11 + $0x230] sm:$0xff]  ;;  %20152 = vst [vmem:[#allocation114_spill] sm:$0xff] %v16964_v21  ;;  %20157 = vst [vmem:[#allocation119_spill] sm:$0xff] %v16990_v39 }
 0x4fd   :  { %5644 = vmatprep.subr.bf16.mxu0 %v16922_v22  ;;  %5685 = vmatprep.subr.bf16.mxu1 %v16924_v45  ;;  %v16970_v45 = vcombine.high %v4848_v8, %v4852_v37  ;;  %v16972_v22 = vcombine.high %v4849_v46, %v4853_v31  ;;  %v4856_v0 = vld [vmem:[%s19769_s11 + $0x250] sm:$0xff]  ;;  %v16988_v62 = vcombine.low %v4848_v8, %v4852_v37  ;;  %v4865_v8 = vld [vmem:[%s19769_s11 + $0x298] sm:$0xff] }
 0x4fe   :  { %v4869_v37 = vld [vmem:[%s19769_s11 + $0x2b8] sm:$0xff]  ;;  %v17014_v31 = vcombine.low %v4857_v56, %v4861_v48 }
 0x4ff   :  { %20154 = vst [vmem:[#allocation116_spill] sm:$0xff] %v16970_v45  ;;  %20155 = vst [vmem:[#allocation117_spill] sm:$0xff] %v16972_v22 }
 0x500   :  { %5645 = vmatpush1.bf16.msra.mxu0 %v16940_v40  ;;  %5686 = vmatpush1.bf16.msra.mxu1 %v16942_v34  ;;  %v4860_v34 = vld [vmem:[%s19769_s11 + $0x270] sm:$0xff]  ;;  %20156 = vst [vmem:[#allocation118_spill] sm:$0xff] %v16988_v62  ;;  %20161 = vst [vmem:[#allocation123_spill] sm:$0xff] %v17014_v31 }
 0x501   :  { %5646 = vmatprep.subr.bf16.mxu0 %v16946_v35  ;;  %5687 = vmatprep.subr.bf16.mxu1 %v16948_v13  ;;  %v16994_v13 = vcombine.high %v4856_v0, %v4860_v34  ;;  %v16996_v35 = vcombine.high %v4857_v56, %v4861_v48  ;;  %v4864_v40 = vld [vmem:[%s19769_s11 + $0x290] sm:$0xff]  ;;  %v17012_v46 = vcombine.low %v4856_v0, %v4860_v34  ;;  %v4873_v0 = vld [vmem:[%s19769_s11 + $0x2d8] sm:$0xff] }
 0x502   :  { %v4877_v34 = vld [vmem:[%s19769_s11 + $0x2f8] sm:$0xff]  ;;  %v17038_v48 = vcombine.low %v4865_v8, %v4869_v37 }
 0x503   :  { %20158 = vst [vmem:[#allocation120_spill] sm:$0xff] %v16994_v13  ;;  %20159 = vst [vmem:[#allocation121_spill] sm:$0xff] %v16996_v35 }
 0x504   :  { %5647 = vmatpush1.bf16.msra.mxu0 %v16964_v21  ;;  %5688 = vmatpush1.bf16.msra.mxu1 %v16966_v23  ;;  %v4868_v23 = vld [vmem:[%s19769_s11 + $0x2b0] sm:$0xff]  ;;  %20160 = vst [vmem:[#allocation122_spill] sm:$0xff] %v17012_v46  ;;  %20165 = vst [vmem:[#allocation127_spill] sm:$0xff] %v17038_v48 }
 0x505   :  { %5648 = vmatprep.subr.bf16.mxu0 %v16970_v45  ;;  %5689 = vmatprep.subr.bf16.mxu1 %v16972_v22  ;;  %v17018_v22 = vcombine.high %v4864_v40, %v4868_v23  ;;  %v17020_v45 = vcombine.high %v4865_v8, %v4869_v37  ;;  %v4872_v21 = vld [vmem:[%s19769_s11 + $0x2d0] sm:$0xff]  ;;  %v17036_v56 = vcombine.low %v4864_v40, %v4868_v23  ;;  %v4881_v40 = vld [vmem:[%s19769_s11 + $0x318] sm:$0xff] }
 0x506   :  { %v4885_v23 = vld [vmem:[%s19769_s11 + $0x338] sm:$0xff]  ;;  %v17062_v37 = vcombine.low %v4873_v0, %v4877_v34 }
 0x507   :  { %20162 = vst [vmem:[#allocation124_spill] sm:$0xff] %v17018_v22  ;;  %20163 = vst [vmem:[#allocation125_spill] sm:$0xff] %v17020_v45 }
 0x508   :  { %5649 = vmatpush1.bf16.msra.mxu0 %v16988_v62  ;;  %5690 = vmatpush1.bf16.msra.mxu1 %v16990_v39  ;;  %v4876_v39 = vld [vmem:[%s19769_s11 + $0x2f0] sm:$0xff]  ;;  %20164 = vst [vmem:[#allocation126_spill] sm:$0xff] %v17036_v56  ;;  %20169 = vst [vmem:[#allocation131_spill] sm:$0xff] %v17062_v37 }
 0x509   :  { %5650 = vmatprep.subr.bf16.mxu0 %v16994_v13  ;;  %5691 = vmatprep.subr.bf16.mxu1 %v16996_v35  ;;  %v17042_v35 = vcombine.high %v4872_v21, %v4876_v39  ;;  %v17044_v13 = vcombine.high %v4873_v0, %v4877_v34  ;;  %v4880_v62 = vld [vmem:[%s19769_s11 + $0x310] sm:$0xff]  ;;  %v17060_v8 = vcombine.low %v4872_v21, %v4876_v39  ;;  %v4889_v21 = vld [vmem:[%s19769_s11 + $0x358] sm:$0xff] }
 0x50a   :  { %v4893_v39 = vld [vmem:[%s19769_s11 + $0x378] sm:$0xff]  ;;  %v17086_v34 = vcombine.low %v4881_v40, %v4885_v23 }
 0x50b   :  { %20166 = vst [vmem:[#allocation128_spill] sm:$0xff] %v17042_v35  ;;  %20167 = vst [vmem:[#allocation129_spill] sm:$0xff] %v17044_v13 }
 0x50c   :  { %5651 = vmatpush1.bf16.msra.mxu0 %v17012_v46  ;;  %5692 = vmatpush1.bf16.msra.mxu1 %v17014_v31  ;;  %v4884_v31 = vld [vmem:[%s19769_s11 + $0x330] sm:$0xff]  ;;  %20168 = vst [vmem:[#allocation130_spill] sm:$0xff] %v17060_v8  ;;  %20173 = vst [vmem:[#allocation135_spill] sm:$0xff] %v17086_v34 }
 0x50d   :  { %5652 = vmatprep.subr.bf16.mxu0 %v17018_v22  ;;  %5693 = vmatprep.subr.bf16.mxu1 %v17020_v45  ;;  %v17066_v45 = vcombine.high %v4880_v62, %v4884_v31  ;;  %v17068_v22 = vcombine.high %v4881_v40, %v4885_v23  ;;  %v4888_v46 = vld [vmem:[%s19769_s11 + $0x350] sm:$0xff]  ;;  %v17084_v0 = vcombine.low %v4880_v62, %v4884_v31  ;;  %v4897_v62 = vld [vmem:[%s19769_s11 + $0x398] sm:$0xff] }
 0x50e   :  { %v4901_v31 = vld [vmem:[%s19769_s11 + $0x3b8] sm:$0xff]  ;;  %v17110_v23 = vcombine.low %v4889_v21, %v4893_v39 }
 0x50f   :  { %20170 = vst [vmem:[#allocation132_spill] sm:$0xff] %v17066_v45  ;;  %20171 = vst [vmem:[#allocation133_spill] sm:$0xff] %v17068_v22 }
 0x510   :  { %5653 = vmatpush1.bf16.msra.mxu0 %v17036_v56  ;;  %5694 = vmatpush1.bf16.msra.mxu1 %v17038_v48  ;;  %v4892_v48 = vld [vmem:[%s19769_s11 + $0x370] sm:$0xff]  ;;  %20172 = vst [vmem:[#allocation134_spill] sm:$0xff] %v17084_v0 }
 0x511   :  { %5654 = vmatprep.subr.bf16.mxu0 %v17042_v35  ;;  %5695 = vmatprep.subr.bf16.mxu1 %v17044_v13  ;;  %v17090_v13 = vcombine.high %v4888_v46, %v4892_v48  ;;  %v17092_v35 = vcombine.high %v4889_v21, %v4893_v39  ;;  %v4896_v56 = vld [vmem:[%s19769_s11 + $0x390] sm:$0xff]  ;;  %v17108_v40 = vcombine.low %v4888_v46, %v4892_v48  ;;  %v4905_v46 = vld [vmem:[%s19769_s11 + $0x3d8] sm:$0xff] }
 0x512   :  { %v4909_v48 = vld [vmem:[%s19769_s11 + $0x3f8] sm:$0xff]  ;;  %v17134_v39 = vcombine.low %v4897_v62, %v4901_v31 }
 0x513   :  { %20174 = vst [vmem:[#allocation136_spill] sm:$0xff] %v17090_v13  ;;  %20175 = vst [vmem:[#allocation137_spill] sm:$0xff] %v17092_v35 }
 0x514   :  { %5655 = vmatpush1.bf16.msra.mxu0 %v17060_v8  ;;  %5696 = vmatpush1.bf16.msra.mxu1 %v17062_v37  ;;  %v4900_v37 = vld [vmem:[%s19769_s11 + $0x3b0] sm:$0xff]  ;;  %20176 = vst [vmem:[#allocation138_spill] sm:$0xff] %v17108_v40 }
 0x515   :  { %5656 = vmatprep.subr.bf16.mxu0 %v17066_v45  ;;  %5697 = vmatprep.subr.bf16.mxu1 %v17068_v22  ;;  %v17114_v22 = vcombine.high %v4896_v56, %v4900_v37  ;;  %v17116_v45 = vcombine.high %v4897_v62, %v4901_v31  ;;  %v4904_v8 = vld [vmem:[%s19769_s11 + $0x3d0] sm:$0xff]  ;;  %v17132_v21 = vcombine.low %v4896_v56, %v4900_v37  ;;  %v20205_v56 = vld [vmem:[#allocation83_spill] sm:$0xff]  ;;  %v20209_v62 = vld [vmem:[#allocation94_spill] sm:$0xff] }
 0x516   :  { %v20207_v37 = vld [vmem:[#allocation92_spill] sm:$0xff]  ;;  %v20210_v31 = vld [vmem:[#allocation95_spill] sm:$0xff] }
 0x518   :  { %5657 = vmatpush1.bf16.msra.mxu0 %v17084_v0  ;;  %5698 = vmatpush1.bf16.msra.mxu1 %v17086_v34  ;;  %v4908_v34 = vld [vmem:[%s19769_s11 + $0x3f0] sm:$0xff] }
 0x519   :  { %5658 = vmatprep.subr.bf16.mxu0 %v17090_v13  ;;  %5699 = vmatprep.subr.bf16.mxu1 %v17092_v35  ;;  %v17138_v35 = vcombine.high %v4904_v8, %v4908_v34  ;;  %v17140_v13 = vcombine.high %v4905_v46, %v4909_v48  ;;  %v17144_v0 = vcombine.low %v4904_v8, %v4908_v34  ;;  %v20206_v8 = vld [vmem:[#allocation90_spill] sm:$0xff]  ;;  %v20208_v34 = vld [vmem:[#allocation93_spill] sm:$0xff] }
 0x51c   :  { %5659 = vmatpush1.bf16.msra.mxu0 %v17108_v40  ;;  %5700 = vmatpush1.bf16.msra.mxu1 %v17110_v23  ;;  %v17146_v40 = vcombine.low %v4905_v46, %v4909_v48  ;;  %v20213_v48 = vld [vmem:[#allocation6_spill] sm:$0xff] }
 0x51d   :  { %5660 = vmatprep.subr.bf16.mxu0 %v17114_v22  ;;  %5701 = vmatprep.subr.bf16.mxu1 %v17116_v45 }
 0x520   :  { %5661 = vmatpush1.bf16.msra.mxu0 %v17132_v21  ;;  %5702 = vmatpush1.bf16.msra.mxu1 %v17134_v39 }
 0x521   :  { %5662 = vmatprep.subr.bf16.mxu0 %v17138_v35  ;;  %5703 = vmatprep.subr.bf16.mxu1 %v17140_v13 }
 0x524   :  { %5663 = vmatpush1.bf16.msra.mxu0 %v17144_v0  ;;  %5704 = vmatpush1.bf16.msra.mxu1 %v17146_v40 }
 0x525   :  { %6552 = vmatprep.subr.bf16.mxu0 %v16253_v43  ;;  %6593 = vmatprep.subr.bf16.mxu1 %v16266_v11  ;;  %v20178_v43 = vld [vmem:[#allocation35_spill] sm:$0xff]  ;;  %v20183_v11 = vld [vmem:[#allocation46_spill] sm:$0xff] }
 0x527   :  { %5665 = vmatmul.mubr.bf16.vlgmr.msra.gmra.mrb[60].mxu0 %v16798_v17  ;;  %5706 = vmatmul.mubr.bf16.vlgmr.msra.gmra.mrb[88].mxu1 %v16798_v17  ;;  %v20204_v17 = vld [vmem:[#allocation87_spill] sm:$0xff] }
 0x528   :  { %6553 = vmatpush1.bf16.msra.mxu0 %v16251_v25  ;;  %6594 = vmatpush1.bf16.msra.mxu1 %v16264_v20  ;;  %v20177_v25 = vld [vmem:[#allocation34_spill] sm:$0xff]  ;;  %v20179_v20 = vld [vmem:[#allocation36_spill] sm:$0xff] }
 0x529   :  { %6554 = vmatprep.subr.bf16.mxu0 %v16268_v52  ;;  %6595 = vmatprep.subr.bf16.mxu1 %v16280_v16  ;;  %v20187_v52 = vld [vmem:[#allocation51_spill] sm:$0xff]  ;;  %v20188_v16 = vld [vmem:[#allocation49_spill] sm:$0xff] }
 0x52c   :  { %6555 = vmatpush1.bf16.msra.mxu0 %v16293_v44  ;;  %6596 = vmatpush1.bf16.msra.mxu1 %v16297_v10  ;;  %v20189_v44 = vld [vmem:[#allocation50_spill] sm:$0xff] }
 0x52d   :  { %6556 = vmatprep.subr.bf16.mxu0 %v16299_v33  ;;  %6597 = vmatprep.subr.bf16.mxu1 %v16302_v54  ;;  %v20190_v10 = vld [vmem:[#allocation58_spill] sm:$0xff]  ;;  %v20192_v54 = vld [vmem:[#allocation60_spill] sm:$0xff] }
 0x52e   :  { %v20191_v33 = vld [vmem:[#allocation62_spill] sm:$0xff] }
 0x530   :  { %6557 = vmatpush1.bf16.msra.mxu0 %v16317_v32  ;;  %6598 = vmatpush1.bf16.msra.mxu1 %v16321_v12  ;;  %v20193_v32 = vld [vmem:[#allocation61_spill] sm:$0xff]  ;;  %v20194_v12 = vld [vmem:[#allocation63_spill] sm:$0xff] }
 0x531   :  { %6558 = vmatprep.subr.bf16.mxu0 %v16323_v36  ;;  %6599 = vmatprep.subr.bf16.mxu1 %v16326_v51  ;;  %v20195_v36 = vld [vmem:[#allocation67_spill] sm:$0xff]  ;;  %v20196_v51 = vld [vmem:[#allocation65_spill] sm:$0xff] }
 0x534   :  { %6559 = vmatpush1.bf16.msra.mxu0 %v16341_v30  ;;  %6600 = vmatpush1.bf16.msra.mxu1 %v16345_v5  ;;  %v20197_v30 = vld [vmem:[#allocation66_spill] sm:$0xff] }
 0x535   :  { %6560 = vmatprep.subr.bf16.mxu0 %v16347_v1  ;;  %6601 = vmatprep.subr.bf16.mxu1 %v16350_v50  ;;  %v20198_v5 = vld [vmem:[#allocation74_spill] sm:$0xff]  ;;  %v20200_v50 = vld [vmem:[#allocation76_spill] sm:$0xff] }
 0x536   :  { %v20199_v1 = vld [vmem:[#allocation78_spill] sm:$0xff] }
 0x538   :  { %6561 = vmatpush1.bf16.msra.mxu0 %v16365_v6  ;;  %6602 = vmatpush1.bf16.msra.mxu1 %v16369_v49  ;;  %v20180_v49 = vld [vmem:[#allocation37_spill] sm:$0xff] }
 0x539   :  { %6562 = vmatprep.subr.bf16.mxu0 %v16371_v42  ;;  %6603 = vmatprep.subr.bf16.mxu1 %v16374_v3  ;;  %v20181_v42 = vld [vmem:[#allocation38_spill] sm:$0xff]  ;;  %v20201_v6 = vld [vmem:[#allocation77_spill] sm:$0xff] }
 0x53a   :  { %v20182_v3 = vld [vmem:[#allocation42_spill] sm:$0xff] }
 0x53c   :  { %6563 = vmatpush1.bf16.msra.mxu0 %v16389_v19  ;;  %6604 = vmatpush1.bf16.msra.mxu1 %v16393_v7  ;;  %v20184_v7 = vld [vmem:[#allocation44_spill] sm:$0xff]  ;;  %v20202_v19 = vld [vmem:[#allocation79_spill] sm:$0xff] }
 0x53d   :  { %6564 = vmatprep.subr.bf16.mxu0 %v16395_v60  ;;  %6605 = vmatprep.subr.bf16.mxu1 %v16398_v18  ;;  %v20185_v60 = vld [vmem:[#allocation45_spill] sm:$0xff]  ;;  %v20186_v18 = vld [vmem:[#allocation47_spill] sm:$0xff] }
 0x540   :  { %6565 = vmatpush1.bf16.msra.mxu0 %v16413_v63  ;;  %6606 = vmatpush1.bf16.msra.mxu1 %v20177_v25  ;;  %v20203_v63 = vld [vmem:[#allocation84_spill] sm:$0xff] }
 0x541   :  { %6566 = vmatprep.subr.bf16.mxu0 %v20178_v43  ;;  %6607 = vmatprep.subr.bf16.mxu1 %v20179_v20  ;;  %v20214_v43 = vld [vmem:[#allocation7_spill] sm:$0xff] }
 0x544   :  { %6567 = vmatpush1.bf16.msra.mxu0 %v20180_v49  ;;  %6608 = vmatpush1.bf16.msra.mxu1 %v20181_v42 }
 0x545   :  { %6568 = vmatprep.subr.bf16.mxu0 %v20182_v3  ;;  %6609 = vmatprep.subr.bf16.mxu1 %v20183_v11  ;;  %v20215_v3 = vld [vmem:[#allocation8_spill] sm:$0xff] }
 0x548   :  { %6569 = vmatpush1.bf16.msra.mxu0 %v20184_v7  ;;  %6610 = vmatpush1.bf16.msra.mxu1 %v20185_v60  ;;  %v20216_v7 = vld [vmem:[#allocation9_spill] sm:$0xff] }
 0x549   :  { %6570 = vmatprep.subr.bf16.mxu0 %v20186_v18  ;;  %6611 = vmatprep.subr.bf16.mxu1 %v20187_v52 }
 0x54c   :  { %6571 = vmatpush1.bf16.msra.mxu0 %v20188_v16  ;;  %6612 = vmatpush1.bf16.msra.mxu1 %v20189_v44 }
 0x54d   :  { %6572 = vmatprep.subr.bf16.mxu0 %v20190_v10  ;;  %6613 = vmatprep.subr.bf16.mxu1 %v20191_v33 }
 0x550   :  { %6573 = vmatpush1.bf16.msra.mxu0 %v20192_v54  ;;  %6614 = vmatpush1.bf16.msra.mxu1 %v20193_v32 }
 0x551   :  { %6574 = vmatprep.subr.bf16.mxu0 %v20194_v12  ;;  %6615 = vmatprep.subr.bf16.mxu1 %v20195_v36 }
 0x554   :  { %6575 = vmatpush1.bf16.msra.mxu0 %v20196_v51  ;;  %6616 = vmatpush1.bf16.msra.mxu1 %v20197_v30 }
 0x555   :  { %6576 = vmatprep.subr.bf16.mxu0 %v20198_v5  ;;  %6617 = vmatprep.subr.bf16.mxu1 %v20199_v1 }
 0x558   :  { %6577 = vmatpush1.bf16.msra.mxu0 %v20200_v50  ;;  %6618 = vmatpush1.bf16.msra.mxu1 %v20201_v6 }
 0x559   :  { %6578 = vmatprep.subr.bf16.mxu0 %v20202_v19  ;;  %6619 = vmatprep.subr.bf16.mxu1 %v16665_v55  ;;  %v20211_v55 = vld [vmem:[#allocation96_spill] sm:$0xff] }
 0x55c   :  { %6579 = vmatpush1.bf16.msra.mxu0 %v16647_v61  ;;  %6620 = vmatpush1.bf16.msra.mxu1 %v16663_v41  ;;  %v20212_v61 = vld [vmem:[#allocation97_spill] sm:$0xff] }
 0x55d   :  { %6580 = vmatprep.subr.bf16.mxu0 %v20203_v63  ;;  %6621 = vmatprep.subr.bf16.mxu1 %v20204_v17  ;;  %v20217_v17 = vld [vmem:[#allocation39_spill] sm:$0xff] }
 0x560   :  { %6581 = vmatpush1.bf16.msra.mxu0 %v20205_v56  ;;  %6622 = vmatpush1.bf16.msra.mxu1 %v20206_v8  ;;  %v20218_v8 = vld [vmem:[#allocation40_spill] sm:$0xff] }
 0x561   :  { %6582 = vmatprep.subr.bf16.mxu0 %v20207_v37  ;;  %6623 = vmatprep.subr.bf16.mxu1 %v20208_v34 }
 0x564   :  { %6583 = vmatpush1.bf16.msra.mxu0 %v20209_v62  ;;  %6624 = vmatpush1.bf16.msra.mxu1 %v20210_v31  ;;  %v20219_v31 = vld [vmem:[#allocation41_spill] sm:$0xff] }
 0x565   :  { %6634 = vmatprep.subr.bf16.mxu0 %v20211_v55  ;;  %6675 = vmatprep.subr.bf16.mxu1 %v20212_v61  ;;  %v20220_v61 = vld [vmem:[#allocation43_spill] sm:$0xff] }
 0x5ba   :  { %v5584_v41 = vpop.f32.mrb[56].mxu0  ;;  %v5625_v46 = vpop.f32.mrb[84].mxu1 }
 0x5bb   :  { %v5714_v25 = vadd.f32 %v5584_v41, %v20213_v48  ;;  %v5716_v20 = vadd.f32 %v5625_v46, %v20214_v43  ;;  %v5586_v49 = vpop.f32.mrb[57].mxu0  ;;  %v5627_v42 = vpop.f32.mrb[85].mxu1 }
 0x5bc   :  { %v5715_v11 = vadd.f32 %v5586_v49, %v20215_v3  ;;  %v5717_v60 = vadd.f32 %v5627_v42, %v20216_v7  ;;  %v5588_v18 = vpop.f32.mrb[58].mxu0  ;;  %v5629_v52 = vpop.f32.mrb[86].mxu1 }
 0x5bd   :  { %v5589_v16 = vpop.f32.mrb[59].mxu0  ;;  %v5630_v44 = vpop.f32.mrb[87].mxu1  ;;  %v12653_v10 = vmul.f32 -1.442695, %v5714_v25  ;;  %v12655_v33 = vmul.f32 -1.442695, %v5716_v20 }
 0x5be   :  { %v12654_v54 = vmul.f32 -1.442695, %v5715_v11  ;;  %v12656_v32 = vmul.f32 -1.442695, %v5717_v60 }
 0x5bf   :  { %13838 = vpow2.f32 %v12653_v10 }
 0x5c0   :  { %13840 = vpow2.f32 %v12655_v33 }
 0x5c1   :  { %13842 = vpow2.f32 %v12654_v54 }
 0x5c2   :  { %13844 = vpow2.f32 %v12656_v32 }
 0x5c9   :  { %v13839_v12 = vpop.eup %13838 }
 0x5ca   :  { %v13841_v36 = vpop.eup %13840  ;;  %v5740_v5 = vadd.f32 1.0, %v13839_v12 }
 0x5cb   :  { %v13843_v51 = vpop.eup %13842  ;;  %v5742_v1 = vadd.f32 1.0, %v13841_v36 }
 0x5cc   :  { %v13845_v30 = vpop.eup %13844  ;;  %v5741_v50 = vadd.f32 1.0, %v13843_v51  ;;  %13846 = vrcp.f32 %v5740_v5 }
 0x5cd   :  { %v5743_v6 = vadd.f32 1.0, %v13845_v30  ;;  %13848 = vrcp.f32 %v5742_v1 }
 0x5ce   :  { %13850 = vrcp.f32 %v5741_v50 }
 0x5cf   :  { %13852 = vrcp.f32 %v5743_v6 }
 0x5d6   :  { %v13847_v42 = vpop.eup %13846 }
 0x5d7   :  { %v13849_v3 = vpop.eup %13848 }
 0x5d8   :  { %v13851_v11 = vpop.eup %13850  ;;  %v5760_v52 = vmul.f32 %v13849_v3, %v16772_v2  ;;  %v20255_v3 = vld [vmem:[#allocation132_spill] sm:$0xff] }
 0x5d9   :  { %v13853_v7 = vpop.eup %13852 }
 0x5da   :  { %v5761_v10 = vmul.f32 %v13853_v7, %v16775_v27  ;;  %v20257_v7 = vld [vmem:[#allocation134_spill] sm:$0xff] }
 0x5fa   :  { %v5666_v19 = vpop.f32.mrb[60].mxu0  ;;  %v5707_v63 = vpop.f32.mrb[88].mxu1 }
 0x5fb   :  { %v5718_v56 = vadd.f32 %v5666_v19, %v20217_v17  ;;  %v5720_v37 = vadd.f32 %v5707_v63, %v20218_v8  ;;  %v5668_v34 = vpop.f32.mrb[61].mxu0  ;;  %v5709_v62 = vpop.f32.mrb[89].mxu1  ;;  %v20237_v63 = vld [vmem:[#allocation114_spill] sm:$0xff]  ;;  %v20238_v17 = vld [vmem:[#allocation115_spill] sm:$0xff]  ;;  %v20240_v8 = vld [vmem:[#allocation117_spill] sm:$0xff] }
 0x5fc   :  { %v5719_v55 = vadd.f32 %v5668_v34, %v20219_v31  ;;  %v5721_v41 = vadd.f32 %v5709_v62, %v20220_v61  ;;  %v5670_v46 = vpop.f32.mrb[62].mxu0  ;;  %v5711_v48 = vpop.f32.mrb[90].mxu1  ;;  %v20242_v34 = vld [vmem:[#allocation119_spill] sm:$0xff]  ;;  %v20243_v62 = vld [vmem:[#allocation120_spill] sm:$0xff]  ;;  %v20244_v31 = vld [vmem:[#allocation121_spill] sm:$0xff] }
 0x5fd   :  { %v12657_v25 = vmul.f32 -1.442695, %v5718_v56  ;;  %13854 = vtanh.f32 %v5720_v37  ;;  %v5671_v43 = vpop.f32.mrb[63].mxu0  ;;  %v5712_v20 = vpop.f32.mrb[91].mxu1  ;;  %v20239_v56 = vld [vmem:[#allocation116_spill] sm:$0xff]  ;;  %v20241_v37 = vld [vmem:[#allocation118_spill] sm:$0xff] }
 0x5fe   :  { %v12658_v49 = vmul.f32 -1.442695, %v5719_v55  ;;  %13856 = vtanh.f32 %v5721_v41  ;;  %v20245_v55 = vld [vmem:[#allocation122_spill] sm:$0xff]  ;;  %v20246_v61 = vld [vmem:[#allocation123_spill] sm:$0xff]  ;;  %v20247_v41 = vld [vmem:[#allocation124_spill] sm:$0xff] }
 0x5ff   :  { %13858 = vpow2.f32 %v12657_v25  ;;  %v20248_v46 = vld [vmem:[#allocation125_spill] sm:$0xff]  ;;  %v20249_v48 = vld [vmem:[#allocation126_spill] sm:$0xff]  ;;  %v20250_v25 = vld [vmem:[#allocation127_spill] sm:$0xff] }
 0x600   :  { %13860 = vpow2.f32 %v12658_v49  ;;  %v20251_v43 = vld [vmem:[#allocation128_spill] sm:$0xff]  ;;  %v20252_v20 = vld [vmem:[#allocation129_spill] sm:$0xff]  ;;  %v20253_v49 = vld [vmem:[#allocation130_spill] sm:$0xff] }
 0x607   :  { %v13855_v60 = vpop.eup %13854 }
 0x608   :  { %v13857_v18 = vpop.eup %13856  ;;  %v5762_v16 = vmul.f32 %v13855_v60, %v13847_v42  ;;  %v20254_v42 = vld [vmem:[#allocation131_spill] sm:$0xff] }
 0x609   :  { %v13859_v44 = vpop.eup %13858  ;;  %v5763_v33 = vmul.f32 %v13857_v18, %v13851_v11  ;;  %v20256_v11 = vld [vmem:[#allocation133_spill] sm:$0xff]  ;;  %v20258_v60 = vld [vmem:[#allocation135_spill] sm:$0xff]  ;;  %v20259_v18 = vld [vmem:[#allocation136_spill] sm:$0xff] }
 0x60a   :  { %v13861_v54 = vpop.eup %13860  ;;  %v5744_v32 = vadd.f32 1.0, %v13859_v44  ;;  %v17230_v12 = vadd.f32 %v5762_v16, %v5760_v52  ;;  %v20260_v52 = vld [vmem:[#allocation137_spill] sm:$0xff]  ;;  %v20261_v16 = vld [vmem:[#allocation138_spill] sm:$0xff] }
 0x60b   :  { %v5745_v36 = vadd.f32 1.0, %v13861_v54  ;;  %v17232_v51 = vadd.f32 %v5763_v33, %v5761_v10  ;;  %v6795_v33 = vld [vmem:[%s19769_s11 + $0x48] sm:$0xff] }
 0x60c   :  { %13862 = vrcp.f32 %v5744_v32  ;;  %v6799_v54 = vld [vmem:[%s19769_s11 + $0x68] sm:$0xff]  ;;  %v6802_v32 = vld [vmem:[%s19769_s11 + $0x80] sm:$0xff] }
 0x60d   :  { %13864 = vtanh.f32 %v17230_v12 }
 0x60e   :  { %13866 = vrcp.f32 %v5745_v36  ;;  %v17350_v36 = vcombine.high %v6795_v33, %v6799_v54 }
 0x60f   :  { %13868 = vtanh.f32 %v17232_v51 }
 0x616   :  { %v13863_v30 = vpop.eup %13862 }
 0x617   :  { %v13865_v2 = vpop.eup %13864 }
 0x618   :  { %v13867_v5 = vpop.eup %13866  ;;  %v17236_v50 = vmul.f32 %v13865_v2, %v13863_v30  ;;  %v6806_v30 = vld [vmem:[%s19769_s11 + $0xa0] sm:$0xff]  ;;  %v6803_v2 = vld [vmem:[%s19769_s11 + $0x88] sm:$0xff] }
 0x619   :  { %v13869_v1 = vpop.eup %13868 }
 0x61a   :  { %20221 = vst [vmem:[#allocation34_spill] sm:$0xff] %v17236_v50  ;;  %v17238_v27 = vmul.f32 %v13869_v1, %v13867_v5  ;;  %v17244_v19 = vpack.c.bf16 %v17236_v50, %v17236_v50  ;;  %v6807_v5 = vld [vmem:[%s19769_s11 + $0xa8] sm:$0xff] }
 0x61c   :  { %20222 = vst [vmem:[#allocation35_spill] sm:$0xff] %v17238_v27  ;;  %v5783_v6 = vpack.c.bf16 %v17238_v27, %v17238_v27 }
 0x61e   :  { %6584 = vmatprep.mubr.bf16.mxu0 %v5783_v6  ;;  %6625 = vmatprep.mubr.bf16.mxu1 %v5783_v6 }
 0x61f   :  { %6585 = vmatmul.mubr.bf16.vlgmr.msra.gmra.mrb[64].mxu0 %v17244_v19  ;;  %6626 = vmatmul.mubr.bf16.vlgmr.msra.gmra.mrb[92].mxu1 %v17244_v19 }
 0x620   :  { %6635 = vmatpush1.bf16.msra.mxu0 %v16748_v58  ;;  %6676 = vmatpush1.bf16.msra.mxu1 %v16750_v15  ;;  %v20223_v58 = vld [vmem:[#allocation100_spill] sm:$0xff]  ;;  %v20224_v15 = vld [vmem:[#allocation101_spill] sm:$0xff] }
 0x621   :  { %6666 = vmatprep.mubr.bf16.mxu0 %v5783_v6  ;;  %6707 = vmatprep.mubr.bf16.mxu1 %v5783_v6  ;;  %v17367_v6 = vcombine.low %v6795_v33, %v6799_v54  ;;  %v6851_v33 = vld [vmem:[%s19769_s11 + $0x208] sm:$0xff] }
 0x622   :  { %6636 = vmatprep.subr.bf16.mxu0 %v16803_v59  ;;  %6677 = vmatprep.subr.bf16.mxu1 %v16805_v4  ;;  %v20225_v59 = vld [vmem:[#allocation102_spill] sm:$0xff]  ;;  %v20226_v4 = vld [vmem:[#allocation103_spill] sm:$0xff] }
 0x624   :  { %6637 = vmatpush1.bf16.msra.mxu0 %v16820_v14  ;;  %6678 = vmatpush1.bf16.msra.mxu1 %v16822_v53  ;;  %v20227_v14 = vld [vmem:[#allocation104_spill] sm:$0xff]  ;;  %v20228_v53 = vld [vmem:[#allocation105_spill] sm:$0xff] }
 0x625   :  { %6638 = vmatprep.subr.bf16.mxu0 %v16824_v9  ;;  %6679 = vmatprep.subr.bf16.mxu1 %v16826_v57  ;;  %v20229_v9 = vld [vmem:[#allocation106_spill] sm:$0xff]  ;;  %v20230_v57 = vld [vmem:[#allocation107_spill] sm:$0xff] }
 0x628   :  { %6639 = vmatpush1.bf16.msra.mxu0 %v16844_v47  ;;  %6680 = vmatpush1.bf16.msra.mxu1 %v16846_v38  ;;  %v20231_v47 = vld [vmem:[#allocation108_spill] sm:$0xff]  ;;  %v20232_v38 = vld [vmem:[#allocation109_spill] sm:$0xff] }
 0x629   :  { %6640 = vmatprep.subr.bf16.mxu0 %v16850_v29  ;;  %6681 = vmatprep.subr.bf16.mxu1 %v16852_v26  ;;  %v20233_v29 = vld [vmem:[#allocation110_spill] sm:$0xff]  ;;  %v20234_v26 = vld [vmem:[#allocation111_spill] sm:$0xff] }
 0x62c   :  { %6641 = vmatpush1.bf16.msra.mxu0 %v16868_v28  ;;  %6682 = vmatpush1.bf16.msra.mxu1 %v16870_v24  ;;  %v20235_v28 = vld [vmem:[#allocation112_spill] sm:$0xff]  ;;  %v20236_v24 = vld [vmem:[#allocation113_spill] sm:$0xff] }
 0x62d   :  { %6642 = vmatprep.subr.bf16.mxu0 %v20223_v58  ;;  %6683 = vmatprep.subr.bf16.mxu1 %v20224_v15  ;;  %v17372_v58 = vcombine.high %v6803_v2, %v6807_v5  ;;  %v6810_v15 = vld [vmem:[%s19769_s11 + $0xc0] sm:$0xff] }
 0x630   :  { %6643 = vmatpush1.bf16.msra.mxu0 %v20225_v59  ;;  %6684 = vmatpush1.bf16.msra.mxu1 %v20226_v4  ;;  %v6814_v59 = vld [vmem:[%s19769_s11 + $0xe0] sm:$0xff]  ;;  %v6811_v4 = vld [vmem:[%s19769_s11 + $0xc8] sm:$0xff] }
 0x631   :  { %6644 = vmatprep.subr.bf16.mxu0 %v20227_v14  ;;  %6685 = vmatprep.subr.bf16.mxu1 %v20228_v53  ;;  %v6815_v14 = vld [vmem:[%s19769_s11 + $0xe8] sm:$0xff]  ;;  %v17387_v53 = vcombine.low %v6802_v32, %v6806_v30 }
 0x634   :  { %6645 = vmatpush1.bf16.msra.mxu0 %v20229_v9  ;;  %6686 = vmatpush1.bf16.msra.mxu1 %v20230_v57  ;;  %v17391_v9 = vcombine.low %v6803_v2, %v6807_v5  ;;  %v17393_v57 = vcombine.high %v6810_v15, %v6814_v59 }
 0x635   :  { %6646 = vmatprep.subr.bf16.mxu0 %v20231_v47  ;;  %6687 = vmatprep.subr.bf16.mxu1 %v20232_v38  ;;  %v17396_v47 = vcombine.high %v6811_v4, %v6815_v14  ;;  %v6818_v38 = vld [vmem:[%s19769_s11 + $0x100] sm:$0xff] }
 0x638   :  { %6647 = vmatpush1.bf16.msra.mxu0 %v20233_v29  ;;  %6688 = vmatpush1.bf16.msra.mxu1 %v20234_v26  ;;  %v6822_v29 = vld [vmem:[%s19769_s11 + $0x120] sm:$0xff]  ;;  %v6819_v26 = vld [vmem:[%s19769_s11 + $0x108] sm:$0xff] }
 0x639   :  { %6648 = vmatprep.subr.bf16.mxu0 %v20235_v28  ;;  %6689 = vmatprep.subr.bf16.mxu1 %v20236_v24  ;;  %v6823_v28 = vld [vmem:[%s19769_s11 + $0x128] sm:$0xff]  ;;  %v17411_v24 = vcombine.low %v6810_v15, %v6814_v59  ;;  %v6858_v15 = vld [vmem:[%s19769_s11 + $0x240] sm:$0xff] }
 0x63a   :  { %v6862_v59 = vld [vmem:[%s19769_s11 + $0x260] sm:$0xff] }
 0x63c   :  { %6649 = vmatpush1.bf16.msra.mxu0 %v20237_v63  ;;  %6690 = vmatpush1.bf16.msra.mxu1 %v20238_v17  ;;  %v17415_v63 = vcombine.low %v6811_v4, %v6815_v14  ;;  %v17417_v17 = vcombine.high %v6818_v38, %v6822_v29  ;;  %v6859_v4 = vld [vmem:[%s19769_s11 + $0x248] sm:$0xff]  ;;  %v17537_v14 = vcombine.high %v6858_v15, %v6862_v59 }
 0x63d   :  { %6650 = vmatprep.subr.bf16.mxu0 %v20239_v56  ;;  %6691 = vmatprep.subr.bf16.mxu1 %v20240_v8  ;;  %v17420_v56 = vcombine.high %v6819_v26, %v6823_v28  ;;  %v6826_v8 = vld [vmem:[%s19769_s11 + $0x140] sm:$0xff] }
 0x640   :  { %6651 = vmatpush1.bf16.msra.mxu0 %v20241_v37  ;;  %6692 = vmatpush1.bf16.msra.mxu1 %v20242_v34  ;;  %v6830_v37 = vld [vmem:[%s19769_s11 + $0x160] sm:$0xff]  ;;  %v6827_v34 = vld [vmem:[%s19769_s11 + $0x148] sm:$0xff] }
 0x641   :  { %6652 = vmatprep.subr.bf16.mxu0 %v20243_v62  ;;  %6693 = vmatprep.subr.bf16.mxu1 %v20244_v31  ;;  %v6831_v62 = vld [vmem:[%s19769_s11 + $0x168] sm:$0xff]  ;;  %v17435_v31 = vcombine.low %v6818_v38, %v6822_v29  ;;  %v17542_v29 = vcombine.low %v6858_v15, %v6862_v59  ;;  %v6882_v15 = vld [vmem:[%s19769_s11 + $0x300] sm:$0xff] }
 0x642   :  { %v6863_v38 = vld [vmem:[%s19769_s11 + $0x268] sm:$0xff]  ;;  %v6886_v59 = vld [vmem:[%s19769_s11 + $0x320] sm:$0xff] }
 0x644   :  { %6653 = vmatpush1.bf16.msra.mxu0 %v20245_v55  ;;  %6694 = vmatpush1.bf16.msra.mxu1 %v20246_v61  ;;  %v17439_v55 = vcombine.low %v6819_v26, %v6823_v28  ;;  %v17441_v61 = vcombine.high %v6826_v8, %v6830_v37  ;;  %v17544_v26 = vcombine.low %v6859_v4, %v6863_v38 }
 0x645   :  { %6654 = vmatprep.subr.bf16.mxu0 %v20247_v41  ;;  %6695 = vmatprep.subr.bf16.mxu1 %v20248_v46  ;;  %v17444_v41 = vcombine.high %v6827_v34, %v6831_v62  ;;  %v6834_v46 = vld [vmem:[%s19769_s11 + $0x180] sm:$0xff]  ;;  %v17546_v28 = vcombine.high %v6859_v4, %v6863_v38  ;;  %v6883_v4 = vld [vmem:[%s19769_s11 + $0x308] sm:$0xff]  ;;  %v17609_v38 = vcombine.high %v6882_v15, %v6886_v59 }
 0x646   :  { %20262 = vst [vmem:[#allocation36_spill] sm:$0xff] %v17544_v26 }
 0x647   :  { %20271 = vst [vmem:[#allocation49_spill] sm:$0xff] %v17609_v38 }
 0x648   :  { %6655 = vmatpush1.bf16.msra.mxu0 %v20249_v48  ;;  %6696 = vmatpush1.bf16.msra.mxu1 %v20250_v25  ;;  %v6838_v48 = vld [vmem:[%s19769_s11 + $0x1a0] sm:$0xff]  ;;  %v6835_v25 = vld [vmem:[%s19769_s11 + $0x188] sm:$0xff] }
 0x649   :  { %6656 = vmatprep.subr.bf16.mxu0 %v20251_v43  ;;  %6697 = vmatprep.subr.bf16.mxu1 %v20252_v20  ;;  %v6839_v43 = vld [vmem:[%s19769_s11 + $0x1a8] sm:$0xff]  ;;  %v17459_v20 = vcombine.low %v6826_v8, %v6830_v37  ;;  %v6866_v8 = vld [vmem:[%s19769_s11 + $0x280] sm:$0xff] }
 0x64a   :  { %v6870_v37 = vld [vmem:[%s19769_s11 + $0x2a0] sm:$0xff] }
 0x64c   :  { %6657 = vmatpush1.bf16.msra.mxu0 %v20253_v49  ;;  %6698 = vmatpush1.bf16.msra.mxu1 %v20254_v42  ;;  %v17463_v49 = vcombine.low %v6827_v34, %v6831_v62  ;;  %v17465_v42 = vcombine.high %v6834_v46, %v6838_v48  ;;  %v6867_v34 = vld [vmem:[%s19769_s11 + $0x288] sm:$0xff]  ;;  %v17561_v62 = vcombine.high %v6866_v8, %v6870_v37 }
 0x64d   :  { %6658 = vmatprep.subr.bf16.mxu0 %v20255_v3  ;;  %6699 = vmatprep.subr.bf16.mxu1 %v20256_v11  ;;  %v17468_v3 = vcombine.high %v6835_v25, %v6839_v43  ;;  %v6842_v11 = vld [vmem:[%s19769_s11 + $0x1c0] sm:$0xff] }
 0x64e   :  { %20263 = vst [vmem:[#allocation37_spill] sm:$0xff] %v17561_v62 }
 0x650   :  { %6659 = vmatpush1.bf16.msra.mxu0 %v20257_v7  ;;  %6700 = vmatpush1.bf16.msra.mxu1 %v20258_v60  ;;  %v6846_v7 = vld [vmem:[%s19769_s11 + $0x1e0] sm:$0xff]  ;;  %v6843_v60 = vld [vmem:[%s19769_s11 + $0x1c8] sm:$0xff] }
 0x651   :  { %6660 = vmatprep.subr.bf16.mxu0 %v20259_v18  ;;  %6701 = vmatprep.subr.bf16.mxu1 %v20260_v52  ;;  %v6847_v18 = vld [vmem:[%s19769_s11 + $0x1e8] sm:$0xff]  ;;  %v17483_v52 = vcombine.low %v6834_v46, %v6838_v48  ;;  %v17566_v48 = vcombine.low %v6866_v8, %v6870_v37  ;;  %v17614_v37 = vcombine.low %v6882_v15, %v6886_v59 }
 0x652   :  { %v6871_v46 = vld [vmem:[%s19769_s11 + $0x2a8] sm:$0xff] }
 0x653   :  { %20264 = vst [vmem:[#allocation38_spill] sm:$0xff] %v17566_v48  ;;  %v6887_v8 = vld [vmem:[%s19769_s11 + $0x328] sm:$0xff]  ;;  %20272 = vst [vmem:[#allocation50_spill] sm:$0xff] %v17614_v37 }
 0x654   :  { %6661 = vmatpush1.bf16.msra.mxu0 %v20261_v16  ;;  %6702 = vmatpush1.bf16.msra.mxu1 %v17110_v23  ;;  %v6794_v23 = vld [vmem:[%s19769_s11 + $0x40] sm:$0xff]  ;;  %v17487_v16 = vcombine.low %v6835_v25, %v6839_v43  ;;  %v17568_v25 = vcombine.low %v6867_v34, %v6871_v46  ;;  %v17570_v43 = vcombine.high %v6867_v34, %v6871_v46  ;;  %v6895_v59 = vld [vmem:[%s19769_s11 + $0x368] sm:$0xff] }
 0x655   :  { %6662 = vmatprep.subr.bf16.mxu0 %v17114_v22  ;;  %6703 = vmatprep.subr.bf16.mxu1 %v17116_v45  ;;  %v6786_v22 = vld [vmem:[%s19769_s11] sm:$0xff]  ;;  %v17616_v34 = vcombine.low %v6883_v4, %v6887_v8  ;;  %v17618_v46 = vcombine.high %v6883_v4, %v6887_v8 }
 0x656   :  { %v6790_v45 = vld [vmem:[%s19769_s11 + $0x20] sm:$0xff]  ;;  %20265 = vst [vmem:[#allocation42_spill] sm:$0xff] %v17568_v25  ;;  %20266 = vst [vmem:[#allocation46_spill] sm:$0xff] %v17570_v43 }
 0x657   :  { %20273 = vst [vmem:[#allocation58_spill] sm:$0xff] %v17616_v34  ;;  %20274 = vst [vmem:[#allocation62_spill] sm:$0xff] %v17618_v46  ;;  %v6898_v4 = vld [vmem:[%s19769_s11 + $0x380] sm:$0xff] }
 0x658   :  { %6663 = vmatpush1.bf16.msra.mxu0 %v17132_v21  ;;  %6704 = vmatpush1.bf16.msra.mxu1 %v17134_v39  ;;  %v6798_v21 = vld [vmem:[%s19769_s11 + $0x60] sm:$0xff] }
 0x659   :  { %6664 = vmatprep.subr.bf16.mxu0 %v17138_v35  ;;  %6705 = vmatprep.subr.bf16.mxu1 %v17140_v13  ;;  %v6787_v13 = vld [vmem:[%s19769_s11 + $0x8] sm:$0xff]  ;;  %v17321_v35 = vcombine.low %v6786_v22, %v6790_v45  ;;  %v17338_v10 = vcombine.high %v6794_v23, %v6798_v21  ;;  %v17363_v1 = vcombine.low %v6794_v23, %v6798_v21  ;;  %v6850_v23 = vld [vmem:[%s19769_s11 + $0x200] sm:$0xff] }
 0x65a   :  { %v6854_v21 = vld [vmem:[%s19769_s11 + $0x220] sm:$0xff] }
 0x65b   :  { %v17513_v54 = vcombine.high %v6850_v23, %v6854_v21  ;;  %v6902_v8 = vld [vmem:[%s19769_s11 + $0x3a0] sm:$0xff] }
 0x65c   :  { %6665 = vmatpush1.bf16.msra.mxu0 %v17144_v0  ;;  %6706 = vmatpush1.bf16.msra.mxu1 %v17146_v40  ;;  %v17323_v0 = vcombine.high %v6786_v22, %v6790_v45  ;;  %v6791_v40 = vld [vmem:[%s19769_s11 + $0x28] sm:$0xff]  ;;  %v17489_v22 = vcombine.high %v6842_v11, %v6846_v7  ;;  %v17492_v45 = vcombine.high %v6843_v60, %v6847_v18 }
 0x65d   :  { %v17334_v39 = vcombine.low %v6787_v13, %v6791_v40  ;;  %v17336_v44 = vcombine.high %v6787_v13, %v6791_v40  ;;  %v17495_v13 = vcombine.low %v6842_v11, %v6846_v7  ;;  %v17499_v40 = vcombine.low %v6843_v60, %v6847_v18  ;;  %v6874_v11 = vld [vmem:[%s19769_s11 + $0x2c0] sm:$0xff]  ;;  %v6875_v60 = vld [vmem:[%s19769_s11 + $0x2c8] sm:$0xff] }
 0x65e   :  { %7554 = vmatprep.subr.bf16.mxu0 %v17323_v0  ;;  %v6878_v7 = vld [vmem:[%s19769_s11 + $0x2e0] sm:$0xff] }
 0x65f   :  { %6667 = vmatmul.mubr.bf16.vlgmr.msra.gmra.mrb[68].mxu0 %v17244_v19  ;;  %6708 = vmatmul.mubr.bf16.vlgmr.msra.gmra.mrb[96].mxu1 %v17244_v19  ;;  %v17369_v19 = vcombine.high %v6802_v32, %v6806_v30  ;;  %v6855_v32 = vld [vmem:[%s19769_s11 + $0x228] sm:$0xff]  ;;  %v17518_v30 = vcombine.low %v6850_v23, %v6854_v21  ;;  %v17585_v18 = vcombine.high %v6874_v11, %v6878_v7 }
 0x660   :  { %7595 = vmatprep.subr.bf16.mxu1 %v17336_v44  ;;  %7555 = vmatpush1.bf16.msra.mxu0 %v17321_v35  ;;  %v17520_v2 = vcombine.low %v6851_v33, %v6855_v32  ;;  %v17522_v5 = vcombine.high %v6851_v33, %v6855_v32  ;;  %v6879_v23 = vld [vmem:[%s19769_s11 + $0x2e8] sm:$0xff]  ;;  %v17590_v21 = vcombine.low %v6874_v11, %v6878_v7  ;;  %v6890_v11 = vld [vmem:[%s19769_s11 + $0x340] sm:$0xff] }
 0x661   :  { %7596 = vmatpush1.bf16.msra.mxu1 %v17334_v39  ;;  %7556 = vmatprep.subr.bf16.mxu0 %v17338_v10  ;;  %20267 = vst [vmem:[#allocation44_spill] sm:$0xff] %v17585_v18  ;;  %v17592_v33 = vcombine.low %v6875_v60, %v6879_v23  ;;  %v17594_v32 = vcombine.high %v6875_v60, %v6879_v23  ;;  %v6894_v7 = vld [vmem:[%s19769_s11 + $0x360] sm:$0xff]  ;;  %v6891_v60 = vld [vmem:[%s19769_s11 + $0x348] sm:$0xff] }
 0x662   :  { %7597 = vmatprep.subr.bf16.mxu1 %v17350_v36  ;;  %20268 = vst [vmem:[#allocation45_spill] sm:$0xff] %v17590_v21  ;;  %v17633_v23 = vcombine.low %v6890_v11, %v6894_v7  ;;  %v17635_v15 = vcombine.high %v6890_v11, %v6894_v7  ;;  %v17646_v50 = vcombine.low %v6891_v60, %v6895_v59  ;;  %v6899_v11 = vld [vmem:[%s19769_s11 + $0x388] sm:$0xff] }
 0x663   :  { %20269 = vst [vmem:[#allocation47_spill] sm:$0xff] %v17592_v33  ;;  %20270 = vst [vmem:[#allocation51_spill] sm:$0xff] %v17594_v32  ;;  %v17648_v27 = vcombine.high %v6891_v60, %v6895_v59  ;;  %v6903_v7 = vld [vmem:[%s19769_s11 + $0x3a8] sm:$0xff]  ;;  %v6910_v60 = vld [vmem:[%s19769_s11 + $0x3e0] sm:$0xff] }
 0x664   :  { %7557 = vmatpush1.bf16.msra.mxu0 %v17363_v1  ;;  %20275 = vst [vmem:[#allocation60_spill] sm:$0xff] %v17633_v23  ;;  %20276 = vst [vmem:[#allocation61_spill] sm:$0xff] %v17635_v15  ;;  %v6907_v59 = vld [vmem:[%s19769_s11 + $0x3c8] sm:$0xff] }
 0x665   :  { %7598 = vmatpush1.bf16.msra.mxu1 %v17367_v6  ;;  %7558 = vmatprep.subr.bf16.mxu0 %v17369_v19  ;;  %20277 = vst [vmem:[#allocation63_spill] sm:$0xff] %v17646_v50  ;;  %20278 = vst [vmem:[#allocation67_spill] sm:$0xff] %v17648_v27 }
 0x666   :  { %7599 = vmatprep.subr.bf16.mxu1 %v17372_v58 }
 0x668   :  { %7559 = vmatpush1.bf16.msra.mxu0 %v17387_v53 }
 0x669   :  { %7600 = vmatpush1.bf16.msra.mxu1 %v17391_v9  ;;  %7560 = vmatprep.subr.bf16.mxu0 %v17393_v57 }
 0x66a   :  { %7601 = vmatprep.subr.bf16.mxu1 %v17396_v47 }
 0x66c   :  { %7561 = vmatpush1.bf16.msra.mxu0 %v17411_v24 }
 0x66d   :  { %7602 = vmatpush1.bf16.msra.mxu1 %v17415_v63  ;;  %7562 = vmatprep.subr.bf16.mxu0 %v17417_v17 }
 0x66e   :  { %7603 = vmatprep.subr.bf16.mxu1 %v17420_v56 }
 0x670   :  { %7563 = vmatpush1.bf16.msra.mxu0 %v17435_v31 }
 0x671   :  { %7604 = vmatpush1.bf16.msra.mxu1 %v17439_v55  ;;  %7564 = vmatprep.subr.bf16.mxu0 %v17441_v61 }
 0x672   :  { %7605 = vmatprep.subr.bf16.mxu1 %v17444_v41 }
 0x674   :  { %7565 = vmatpush1.bf16.msra.mxu0 %v17459_v20 }
 0x675   :  { %7606 = vmatpush1.bf16.msra.mxu1 %v17463_v49  ;;  %7566 = vmatprep.subr.bf16.mxu0 %v17465_v42 }
 0x676   :  { %7607 = vmatprep.subr.bf16.mxu1 %v17468_v3 }
 0x678   :  { %7567 = vmatpush1.bf16.msra.mxu0 %v17483_v52 }
 0x679   :  { %7608 = vmatpush1.bf16.msra.mxu1 %v17487_v16  ;;  %7568 = vmatprep.subr.bf16.mxu0 %v17489_v22 }
 0x67a   :  { %7609 = vmatprep.subr.bf16.mxu1 %v17492_v45 }
 0x67c   :  { %7569 = vmatpush1.bf16.msra.mxu0 %v17495_v13 }
 0x67d   :  { %7610 = vmatpush1.bf16.msra.mxu1 %v17499_v40  ;;  %7570 = vmatprep.subr.bf16.mxu0 %v17513_v54 }
 0x67e   :  { %7611 = vmatprep.subr.bf16.mxu1 %v17522_v5 }
 0x680   :  { %7571 = vmatpush1.bf16.msra.mxu0 %v17518_v30 }
 0x681   :  { %7612 = vmatpush1.bf16.msra.mxu1 %v17520_v2  ;;  %7572 = vmatprep.subr.bf16.mxu0 %v17537_v14 }
 0x682   :  { %7613 = vmatprep.subr.bf16.mxu1 %v17546_v28 }
 0x684   :  { %7573 = vmatpush1.bf16.msra.mxu0 %v17542_v29 }
 0x685   :  { %7614 = vmatpush1.bf16.msra.mxu1 %v17544_v26  ;;  %7574 = vmatprep.subr.bf16.mxu0 %v17561_v62 }
 0x686   :  { %7615 = vmatprep.subr.bf16.mxu1 %v17570_v43 }
 0x688   :  { %7575 = vmatpush1.bf16.msra.mxu0 %v17566_v48 }
 0x689   :  { %7616 = vmatpush1.bf16.msra.mxu1 %v17568_v25  ;;  %7576 = vmatprep.subr.bf16.mxu0 %v17585_v18 }
 0x68a   :  { %7617 = vmatprep.subr.bf16.mxu1 %v17594_v32 }
 0x68c   :  { %7577 = vmatpush1.bf16.msra.mxu0 %v17590_v21 }
 0x68d   :  { %7618 = vmatpush1.bf16.msra.mxu1 %v17592_v33  ;;  %7578 = vmatprep.subr.bf16.mxu0 %v17609_v38  ;;  %v6911_v38 = vld [vmem:[%s19769_s11 + $0x3e8] sm:$0xff]  ;;  %v17675_v33 = vcombine.low %v6898_v4, %v6902_v8 }
 0x68e   :  { %7619 = vmatprep.subr.bf16.mxu1 %v17618_v46  ;;  %v17662_v46 = vcombine.high %v6899_v11, %v6903_v7  ;;  %v17684_v32 = vcombine.high %v6907_v59, %v6911_v38 }
 0x68f   :  { %20281 = vst [vmem:[#allocation74_spill] sm:$0xff] %v17675_v33 }
 0x690   :  { %7579 = vmatpush1.bf16.msra.mxu0 %v17614_v37  ;;  %v6906_v37 = vld [vmem:[%s19769_s11 + $0x3c0] sm:$0xff]  ;;  %20280 = vst [vmem:[#allocation66_spill] sm:$0xff] %v17662_v46  ;;  %20284 = vst [vmem:[#allocation77_spill] sm:$0xff] %v17684_v32 }
 0x691   :  { %7620 = vmatpush1.bf16.msra.mxu1 %v17616_v34  ;;  %v17650_v34 = vcombine.high %v6898_v4, %v6902_v8  ;;  %7580 = vmatprep.subr.bf16.mxu0 %v17635_v15  ;;  %v17679_v15 = vcombine.low %v6899_v11, %v6903_v7  ;;  %v17681_v21 = vcombine.high %v6906_v37, %v6910_v60  ;;  %v6788_v8 = vld [vmem:[%s19769_s11 + $0x10] sm:$0xff]  ;;  %v6793_v7 = vld [vmem:[%s19769_s11 + $0x38] sm:$0xff] }
 0x692   :  { %7621 = vmatprep.subr.bf16.mxu1 %v17648_v27  ;;  %v17687_v18 = vcombine.low %v6906_v37, %v6910_v60  ;;  %v17691_v4 = vcombine.low %v6907_v59, %v6911_v38  ;;  %v6792_v11 = vld [vmem:[%s19769_s11 + $0x30] sm:$0xff]  ;;  %v6789_v37 = vld [vmem:[%s19769_s11 + $0x18] sm:$0xff] }
 0x693   :  { %20279 = vst [vmem:[#allocation65_spill] sm:$0xff] %v17650_v34  ;;  %20282 = vst [vmem:[#allocation78_spill] sm:$0xff] %v17679_v15  ;;  %v17705_v38 = vcombine.high %v6788_v8, %v6792_v11  ;;  %v17710_v60 = vcombine.low %v6788_v8, %v6792_v11  ;;  %v17712_v59 = vcombine.low %v6789_v37, %v6793_v7  ;;  %v20292_v8 = vld [vmem:[#allocation13_spill] sm:$0xff] }
 0x694   :  { %7581 = vmatpush1.bf16.msra.mxu0 %v17633_v23  ;;  %20283 = vst [vmem:[#allocation76_spill] sm:$0xff] %v17681_v21  ;;  %20285 = vst [vmem:[#allocation79_spill] sm:$0xff] %v17687_v18  ;;  %v20291_v23 = vld [vmem:[#allocation12_spill] sm:$0xff] }
 0x695   :  { %7622 = vmatpush1.bf16.msra.mxu1 %v17646_v50  ;;  %7582 = vmatprep.subr.bf16.mxu0 %v17650_v34  ;;  %20286 = vst [vmem:[#allocation84_spill] sm:$0xff] %v17691_v4  ;;  %20287 = vst [vmem:[#allocation87_spill] sm:$0xff] %v17705_v38 }
 0x696   :  { %7623 = vmatprep.subr.bf16.mxu1 %v17662_v46 }
 0x698   :  { %7583 = vmatpush1.bf16.msra.mxu0 %v17675_v33  ;;  %v20290_v33 = vld [vmem:[#allocation11_spill] sm:$0xff] }
 0x699   :  { %7624 = vmatpush1.bf16.msra.mxu1 %v17679_v15  ;;  %7584 = vmatprep.subr.bf16.mxu0 %v17681_v21  ;;  %v20289_v15 = vld [vmem:[#allocation10_spill] sm:$0xff] }
 0x69a   :  { %7625 = vmatprep.subr.bf16.mxu1 %v17684_v32 }
 0x69c   :  { %7585 = vmatpush1.bf16.msra.mxu0 %v17687_v18  ;;  %v17714_v18 = vcombine.high %v6789_v37, %v6793_v7 }
 0x69d   :  { %7626 = vmatpush1.bf16.msra.mxu1 %v17691_v4  ;;  %7636 = vmatprep.subr.bf16.mxu0 %v17705_v38 }
 0x69e   :  { %20288 = vst [vmem:[#allocation83_spill] sm:$0xff] %v17714_v18  ;;  %7677 = vmatprep.subr.bf16.mxu1 %v17714_v18 }
 0x6f2   :  { %v6586_v32 = vpop.f32.mrb[64].mxu0  ;;  %v6627_v21 = vpop.f32.mrb[92].mxu1 }
 0x6f3   :  { %v6716_v4 = vadd.f32 %v6586_v32, %v20289_v15  ;;  %v6718_v46 = vadd.f32 %v6627_v21, %v20290_v33  ;;  %v6588_v34 = vpop.f32.mrb[65].mxu0  ;;  %v6629_v50 = vpop.f32.mrb[93].mxu1 }
 0x6f4   :  { %v6717_v27 = vadd.f32 %v6588_v34, %v20291_v23  ;;  %v6719_v11 = vadd.f32 %v6629_v50, %v20292_v8  ;;  %v6590_v25 = vpop.f32.mrb[66].mxu0  ;;  %v6631_v48 = vpop.f32.mrb[94].mxu1 }
 0x6f5   :  { %v6591_v37 = vpop.f32.mrb[67].mxu0  ;;  %v6632_v7 = vpop.f32.mrb[95].mxu1  ;;  %v12787_v43 = vmul.f32 -1.442695, %v6716_v4  ;;  %v12789_v38 = vmul.f32 -1.442695, %v6718_v46 }
 0x6f6   :  { %v12788_v62 = vmul.f32 -1.442695, %v6717_v27  ;;  %v12790_v18 = vmul.f32 -1.442695, %v6719_v11  ;;  %v20293_v46 = vld [vmem:[#allocation48_spill] sm:$0xff]  ;;  %v20296_v11 = vld [vmem:[#allocation54_spill] sm:$0xff] }
 0x6f7   :  { %13870 = vpow2.f32 %v12787_v43  ;;  %v20294_v4 = vld [vmem:[#allocation52_spill] sm:$0xff] }
 0x6f8   :  { %13872 = vpow2.f32 %v12789_v38 }
 0x6f9   :  { %13874 = vpow2.f32 %v12788_v62 }
 0x6fa   :  { %13876 = vpow2.f32 %v12790_v18  ;;  %v20295_v18 = vld [vmem:[#allocation53_spill] sm:$0xff] }
 0x701   :  { %v13871_v32 = vpop.eup %13870 }
 0x702   :  { %v13873_v21 = vpop.eup %13872  ;;  %v6742_v26 = vadd.f32 1.0, %v13871_v32 }
 0x703   :  { %v13875_v33 = vpop.eup %13874  ;;  %v6744_v34 = vadd.f32 1.0, %v13873_v21 }
 0x704   :  { %v13877_v15 = vpop.eup %13876  ;;  %v6743_v23 = vadd.f32 1.0, %v13875_v33  ;;  %13878 = vrcp.f32 %v6742_v26 }
 0x705   :  { %v6745_v50 = vadd.f32 1.0, %v13877_v15  ;;  %13880 = vrcp.f32 %v6744_v34 }
 0x706   :  { %13882 = vrcp.f32 %v6743_v23 }
 0x707   :  { %13884 = vrcp.f32 %v6745_v50 }
 0x70e   :  { %v13879_v34 = vpop.eup %13878 }
 0x70f   :  { %v13881_v23 = vpop.eup %13880 }
 0x732   :  { %v6668_v48 = vpop.f32.mrb[68].mxu0  ;;  %v6709_v25 = vpop.f32.mrb[96].mxu1 }
 0x733   :  { %v6720_v27 = vadd.f32 %v6668_v48, %v20293_v46  ;;  %v6722_v43 = vadd.f32 %v6709_v25, %v20294_v4  ;;  %v6670_v38 = vpop.f32.mrb[69].mxu0  ;;  %v6711_v62 = vpop.f32.mrb[97].mxu1  ;;  %v6762_v4 = vmul.f32 %v13881_v23, %v17230_v12  ;;  %v6797_v23 = vld [vmem:[%s19769_s11 + $0x58] sm:$0xff] }
 0x734   :  { %v6721_v8 = vadd.f32 %v6670_v38, %v20295_v18  ;;  %v6723_v37 = vadd.f32 %v6711_v62, %v20296_v11  ;;  %v6672_v7 = vpop.f32.mrb[70].mxu0  ;;  %v6713_v32 = vpop.f32.mrb[98].mxu1 }
 0x735   :  { %v12791_v21 = vmul.f32 -1.442695, %v6720_v27  ;;  %13886 = vtanh.f32 %v6722_v43  ;;  %v6673_v26 = vpop.f32.mrb[71].mxu0  ;;  %v6714_v33 = vpop.f32.mrb[99].mxu1 }
 0x736   :  { %v12792_v15 = vmul.f32 -1.442695, %v6721_v8  ;;  %13888 = vtanh.f32 %v6723_v37  ;;  %v13883_v48 = vpop.eup %13882 }
 0x737   :  { %13890 = vpow2.f32 %v12791_v21  ;;  %v13885_v25 = vpop.eup %13884 }
 0x738   :  { %13892 = vpow2.f32 %v12792_v15  ;;  %v6763_v18 = vmul.f32 %v13885_v25, %v17232_v51  ;;  %v6796_v15 = vld [vmem:[%s19769_s11 + $0x50] sm:$0xff] }
 0x73f   :  { %v13887_v46 = vpop.eup %13886 }
 0x740   :  { %v13889_v50 = vpop.eup %13888  ;;  %v6764_v38 = vmul.f32 %v13887_v46, %v13879_v34  ;;  %v6800_v34 = vld [vmem:[%s19769_s11 + $0x70] sm:$0xff] }
 0x741   :  { %v13891_v62 = vpop.eup %13890  ;;  %v6765_v27 = vmul.f32 %v13889_v50, %v13883_v48  ;;  %v6801_v48 = vld [vmem:[%s19769_s11 + $0x78] sm:$0xff]  ;;  %v6804_v50 = vld [vmem:[%s19769_s11 + $0x90] sm:$0xff] }
 0x742   :  { %v13893_v43 = vpop.eup %13892  ;;  %v6746_v11 = vadd.f32 1.0, %v13891_v62  ;;  %v17728_v7 = vadd.f32 %v6764_v38, %v6762_v4  ;;  %v17759_v4 = vcombine.high %v6796_v15, %v6800_v34  ;;  %v17761_v38 = vcombine.high %v6797_v23, %v6801_v48  ;;  %v6808_v62 = vld [vmem:[%s19769_s11 + $0xb0] sm:$0xff] }
 0x743   :  { %v6747_v8 = vadd.f32 1.0, %v13893_v43  ;;  %v17730_v37 = vadd.f32 %v6765_v27, %v6763_v18  ;;  %v6805_v18 = vld [vmem:[%s19769_s11 + $0x98] sm:$0xff]  ;;  %v17776_v43 = vcombine.low %v6796_v15, %v6800_v34  ;;  %v17800_v34 = vcombine.low %v6804_v50, %v6808_v62 }
 0x744   :  { %13894 = vrcp.f32 %v6746_v11  ;;  %v6809_v27 = vld [vmem:[%s19769_s11 + $0xb8] sm:$0xff]  ;;  %v17778_v11 = vcombine.low %v6797_v23, %v6801_v48 }
 0x745   :  { %13896 = vtanh.f32 %v17728_v7  ;;  %v6817_v15 = vld [vmem:[%s19769_s11 + $0xf8] sm:$0xff]  ;;  %20302 = vst [vmem:[#allocation96_spill] sm:$0xff] %v17800_v34  ;;  %v17802_v23 = vcombine.low %v6805_v18, %v6809_v27 }
 0x746   :  { %13898 = vrcp.f32 %v6747_v8  ;;  %20299 = vst [vmem:[#allocation93_spill] sm:$0xff] %v17778_v11  ;;  %v17780_v8 = vcombine.high %v6804_v50, %v6808_v62  ;;  %v6821_v50 = vld [vmem:[%s19769_s11 + $0x118] sm:$0xff] }
 0x747   :  { %13900 = vtanh.f32 %v17730_v37  ;;  %20303 = vst [vmem:[#allocation97_spill] sm:$0xff] %v17802_v23  ;;  %v6825_v62 = vld [vmem:[%s19769_s11 + $0x138] sm:$0xff] }
 0x748   :  { %20300 = vst [vmem:[#allocation94_spill] sm:$0xff] %v17780_v8 }
 0x74e   :  { %v13895_v32 = vpop.eup %13894 }
 0x74f   :  { %v13897_v12 = vpop.eup %13896 }
 0x750   :  { %v13899_v21 = vpop.eup %13898  ;;  %v17734_v33 = vmul.f32 %v13897_v12, %v13895_v32  ;;  %v17782_v32 = vcombine.high %v6805_v18, %v6809_v27  ;;  %v6812_v12 = vld [vmem:[%s19769_s11 + $0xd0] sm:$0xff] }
 0x751   :  { %v13901_v26 = vpop.eup %13900 }
 0x752   :  { %20297 = vst [vmem:[#allocation90_spill] sm:$0xff] %v17734_v33  ;;  %v17736_v51 = vmul.f32 %v13901_v26, %v13899_v21  ;;  %v17754_v46 = vpack.c.bf16 %v17734_v33, %v17734_v33  ;;  %20301 = vst [vmem:[#allocation95_spill] sm:$0xff] %v17782_v32  ;;  %v6816_v21 = vld [vmem:[%s19769_s11 + $0xf0] sm:$0xff]  ;;  %v6813_v26 = vld [vmem:[%s19769_s11 + $0xd8] sm:$0xff] }
 0x753   :  { %v17806_v48 = vcombine.high %v6812_v12, %v6816_v21  ;;  %v6820_v33 = vld [vmem:[%s19769_s11 + $0x110] sm:$0xff]  ;;  %v17824_v18 = vcombine.low %v6812_v12, %v6816_v21  ;;  %v17826_v27 = vcombine.low %v6813_v26, %v6817_v15  ;;  %v6829_v12 = vld [vmem:[%s19769_s11 + $0x158] sm:$0xff] }
 0x754   :  { %20298 = vst [vmem:[#allocation92_spill] sm:$0xff] %v17736_v51  ;;  %v6785_v25 = vpack.c.bf16 %v17736_v51, %v17736_v51  ;;  %v6824_v51 = vld [vmem:[%s19769_s11 + $0x130] sm:$0xff]  ;;  %v6833_v21 = vld [vmem:[%s19769_s11 + $0x178] sm:$0xff] }
 0x755   :  { %20304 = vst [vmem:[#allocation6_spill] sm:$0xff] %v17806_v48  ;;  %20306 = vst [vmem:[#allocation8_spill] sm:$0xff] %v17824_v18 }
 0x756   :  { %7586 = vmatprep.mubr.bf16.mxu0 %v6785_v25  ;;  %7627 = vmatprep.mubr.bf16.mxu1 %v6785_v25  ;;  %20307 = vst [vmem:[#allocation9_spill] sm:$0xff] %v17826_v27 }
 0x757   :  { %7587 = vmatmul.mubr.bf16.vlgmr.msra.gmra.mrb[72].mxu0 %v17754_v46  ;;  %7628 = vmatmul.mubr.bf16.vlgmr.msra.gmra.mrb[100].mxu1 %v17754_v46 }
 0x758   :  { %7637 = vmatpush1.bf16.msra.mxu0 %v17710_v60  ;;  %7678 = vmatpush1.bf16.msra.mxu1 %v17712_v59 }
 0x759   :  { %7668 = vmatprep.mubr.bf16.mxu0 %v6785_v25  ;;  %7709 = vmatprep.mubr.bf16.mxu1 %v6785_v25  ;;  %v17808_v25 = vcombine.high %v6813_v26, %v6817_v15  ;;  %v17848_v26 = vcombine.low %v6820_v33, %v6824_v51  ;;  %v17850_v15 = vcombine.low %v6821_v50, %v6825_v62 }
 0x75a   :  { %7638 = vmatprep.subr.bf16.mxu0 %v17759_v4  ;;  %7679 = vmatprep.subr.bf16.mxu1 %v17761_v38 }
 0x75b   :  { %20305 = vst [vmem:[#allocation7_spill] sm:$0xff] %v17808_v25  ;;  %20310 = vst [vmem:[#allocation41_spill] sm:$0xff] %v17848_v26 }
 0x75c   :  { %7639 = vmatpush1.bf16.msra.mxu0 %v17776_v43  ;;  %7680 = vmatpush1.bf16.msra.mxu1 %v17778_v11  ;;  %v6828_v11 = vld [vmem:[%s19769_s11 + $0x150] sm:$0xff]  ;;  %20311 = vst [vmem:[#allocation43_spill] sm:$0xff] %v17850_v15 }
 0x75d   :  { %7640 = vmatprep.subr.bf16.mxu0 %v17780_v8  ;;  %7681 = vmatprep.subr.bf16.mxu1 %v17782_v32  ;;  %v17830_v32 = vcombine.high %v6820_v33, %v6824_v51  ;;  %v17832_v8 = vcombine.high %v6821_v50, %v6825_v62  ;;  %v6837_v33 = vld [vmem:[%s19769_s11 + $0x198] sm:$0xff]  ;;  %v17874_v62 = vcombine.low %v6829_v12, %v6833_v21 }
 0x75e   :  { %v6841_v51 = vld [vmem:[%s19769_s11 + $0x1b8] sm:$0xff] }
 0x75f   :  { %20308 = vst [vmem:[#allocation39_spill] sm:$0xff] %v17830_v32  ;;  %20309 = vst [vmem:[#allocation40_spill] sm:$0xff] %v17832_v8 }
 0x760   :  { %7641 = vmatpush1.bf16.msra.mxu0 %v17800_v34  ;;  %7682 = vmatpush1.bf16.msra.mxu1 %v17802_v23  ;;  %v6832_v23 = vld [vmem:[%s19769_s11 + $0x170] sm:$0xff]  ;;  %20315 = vst [vmem:[#allocation103_spill] sm:$0xff] %v17874_v62 }
 0x761   :  { %7642 = vmatprep.subr.bf16.mxu0 %v17806_v48  ;;  %7683 = vmatprep.subr.bf16.mxu1 %v17808_v25  ;;  %v17854_v25 = vcombine.high %v6828_v11, %v6832_v23  ;;  %v17856_v48 = vcombine.high %v6829_v12, %v6833_v21  ;;  %v6836_v34 = vld [vmem:[%s19769_s11 + $0x190] sm:$0xff]  ;;  %v17872_v50 = vcombine.low %v6828_v11, %v6832_v23  ;;  %v6845_v11 = vld [vmem:[%s19769_s11 + $0x1d8] sm:$0xff] }
 0x762   :  { %v6849_v23 = vld [vmem:[%s19769_s11 + $0x1f8] sm:$0xff]  ;;  %v17898_v21 = vcombine.low %v6837_v33, %v6841_v51 }
 0x763   :  { %20312 = vst [vmem:[#allocation100_spill] sm:$0xff] %v17854_v25  ;;  %20313 = vst [vmem:[#allocation101_spill] sm:$0xff] %v17856_v48 }
 0x764   :  { %7643 = vmatpush1.bf16.msra.mxu0 %v17824_v18  ;;  %7684 = vmatpush1.bf16.msra.mxu1 %v17826_v27  ;;  %v6840_v27 = vld [vmem:[%s19769_s11 + $0x1b0] sm:$0xff]  ;;  %20314 = vst [vmem:[#allocation102_spill] sm:$0xff] %v17872_v50  ;;  %20319 = vst [vmem:[#allocation107_spill] sm:$0xff] %v17898_v21 }
 0x765   :  { %7644 = vmatprep.subr.bf16.mxu0 %v17830_v32  ;;  %7685 = vmatprep.subr.bf16.mxu1 %v17832_v8  ;;  %v17878_v8 = vcombine.high %v6836_v34, %v6840_v27  ;;  %v17880_v32 = vcombine.high %v6837_v33, %v6841_v51  ;;  %v6844_v18 = vld [vmem:[%s19769_s11 + $0x1d0] sm:$0xff]  ;;  %v17896_v12 = vcombine.low %v6836_v34, %v6840_v27  ;;  %v6853_v34 = vld [vmem:[%s19769_s11 + $0x218] sm:$0xff] }
 0x766   :  { %v6857_v27 = vld [vmem:[%s19769_s11 + $0x238] sm:$0xff]  ;;  %v17922_v51 = vcombine.low %v6845_v11, %v6849_v23 }
 0x767   :  { %20316 = vst [vmem:[#allocation104_spill] sm:$0xff] %v17878_v8  ;;  %20317 = vst [vmem:[#allocation105_spill] sm:$0xff] %v17880_v32 }
 0x768   :  { %7645 = vmatpush1.bf16.msra.mxu0 %v17848_v26  ;;  %7686 = vmatpush1.bf16.msra.mxu1 %v17850_v15  ;;  %v6848_v15 = vld [vmem:[%s19769_s11 + $0x1f0] sm:$0xff]  ;;  %20318 = vst [vmem:[#allocation106_spill] sm:$0xff] %v17896_v12  ;;  %20323 = vst [vmem:[#allocation111_spill] sm:$0xff] %v17922_v51 }
 0x769   :  { %7646 = vmatprep.subr.bf16.mxu0 %v17854_v25  ;;  %7687 = vmatprep.subr.bf16.mxu1 %v17856_v48  ;;  %v17902_v48 = vcombine.high %v6844_v18, %v6848_v15  ;;  %v17904_v25 = vcombine.high %v6845_v11, %v6849_v23  ;;  %v6852_v26 = vld [vmem:[%s19769_s11 + $0x210] sm:$0xff]  ;;  %v17920_v33 = vcombine.low %v6844_v18, %v6848_v15  ;;  %v6861_v18 = vld [vmem:[%s19769_s11 + $0x258] sm:$0xff] }
 0x76a   :  { %v6865_v15 = vld [vmem:[%s19769_s11 + $0x278] sm:$0xff]  ;;  %v17946_v23 = vcombine.low %v6853_v34, %v6857_v27 }
 0x76b   :  { %20320 = vst [vmem:[#allocation108_spill] sm:$0xff] %v17902_v48  ;;  %20321 = vst [vmem:[#allocation109_spill] sm:$0xff] %v17904_v25 }
 0x76c   :  { %7647 = vmatpush1.bf16.msra.mxu0 %v17872_v50  ;;  %7688 = vmatpush1.bf16.msra.mxu1 %v17874_v62  ;;  %v6856_v62 = vld [vmem:[%s19769_s11 + $0x230] sm:$0xff]  ;;  %20322 = vst [vmem:[#allocation110_spill] sm:$0xff] %v17920_v33  ;;  %20327 = vst [vmem:[#allocation115_spill] sm:$0xff] %v17946_v23 }
 0x76d   :  { %7648 = vmatprep.subr.bf16.mxu0 %v17878_v8  ;;  %7689 = vmatprep.subr.bf16.mxu1 %v17880_v32  ;;  %v17926_v32 = vcombine.high %v6852_v26, %v6856_v62  ;;  %v17928_v8 = vcombine.high %v6853_v34, %v6857_v27  ;;  %v6860_v50 = vld [vmem:[%s19769_s11 + $0x250] sm:$0xff]  ;;  %v17944_v11 = vcombine.low %v6852_v26, %v6856_v62  ;;  %v6869_v26 = vld [vmem:[%s19769_s11 + $0x298] sm:$0xff] }
 0x76e   :  { %v6873_v62 = vld [vmem:[%s19769_s11 + $0x2b8] sm:$0xff]  ;;  %v17970_v27 = vcombine.low %v6861_v18, %v6865_v15 }
 0x76f   :  { %20324 = vst [vmem:[#allocation112_spill] sm:$0xff] %v17926_v32  ;;  %20325 = vst [vmem:[#allocation113_spill] sm:$0xff] %v17928_v8 }
 0x770   :  { %7649 = vmatpush1.bf16.msra.mxu0 %v17896_v12  ;;  %7690 = vmatpush1.bf16.msra.mxu1 %v17898_v21  ;;  %v6864_v21 = vld [vmem:[%s19769_s11 + $0x270] sm:$0xff]  ;;  %20326 = vst [vmem:[#allocation114_spill] sm:$0xff] %v17944_v11  ;;  %20331 = vst [vmem:[#allocation119_spill] sm:$0xff] %v17970_v27 }
 0x771   :  { %7650 = vmatprep.subr.bf16.mxu0 %v17902_v48  ;;  %7691 = vmatprep.subr.bf16.mxu1 %v17904_v25  ;;  %v17950_v25 = vcombine.high %v6860_v50, %v6864_v21  ;;  %v17952_v48 = vcombine.high %v6861_v18, %v6865_v15  ;;  %v6868_v12 = vld [vmem:[%s19769_s11 + $0x290] sm:$0xff]  ;;  %v17968_v34 = vcombine.low %v6860_v50, %v6864_v21  ;;  %v6877_v50 = vld [vmem:[%s19769_s11 + $0x2d8] sm:$0xff] }
 0x772   :  { %v6881_v21 = vld [vmem:[%s19769_s11 + $0x2f8] sm:$0xff]  ;;  %v17994_v15 = vcombine.low %v6869_v26, %v6873_v62 }
 0x773   :  { %20328 = vst [vmem:[#allocation116_spill] sm:$0xff] %v17950_v25  ;;  %20329 = vst [vmem:[#allocation117_spill] sm:$0xff] %v17952_v48 }
 0x774   :  { %7651 = vmatpush1.bf16.msra.mxu0 %v17920_v33  ;;  %7692 = vmatpush1.bf16.msra.mxu1 %v17922_v51  ;;  %v6872_v51 = vld [vmem:[%s19769_s11 + $0x2b0] sm:$0xff]  ;;  %20330 = vst [vmem:[#allocation118_spill] sm:$0xff] %v17968_v34  ;;  %20335 = vst [vmem:[#allocation123_spill] sm:$0xff] %v17994_v15 }
 0x775   :  { %7652 = vmatprep.subr.bf16.mxu0 %v17926_v32  ;;  %7693 = vmatprep.subr.bf16.mxu1 %v17928_v8  ;;  %v17974_v8 = vcombine.high %v6868_v12, %v6872_v51  ;;  %v17976_v32 = vcombine.high %v6869_v26, %v6873_v62  ;;  %v6876_v33 = vld [vmem:[%s19769_s11 + $0x2d0] sm:$0xff]  ;;  %v17992_v18 = vcombine.low %v6868_v12, %v6872_v51  ;;  %v6885_v12 = vld [vmem:[%s19769_s11 + $0x318] sm:$0xff] }
 0x776   :  { %v6889_v51 = vld [vmem:[%s19769_s11 + $0x338] sm:$0xff]  ;;  %v18018_v62 = vcombine.low %v6877_v50, %v6881_v21 }
 0x777   :  { %20332 = vst [vmem:[#allocation120_spill] sm:$0xff] %v17974_v8  ;;  %20333 = vst [vmem:[#allocation121_spill] sm:$0xff] %v17976_v32 }
 0x778   :  { %7653 = vmatpush1.bf16.msra.mxu0 %v17944_v11  ;;  %7694 = vmatpush1.bf16.msra.mxu1 %v17946_v23  ;;  %v6880_v23 = vld [vmem:[%s19769_s11 + $0x2f0] sm:$0xff]  ;;  %20334 = vst [vmem:[#allocation122_spill] sm:$0xff] %v17992_v18  ;;  %20339 = vst [vmem:[#allocation127_spill] sm:$0xff] %v18018_v62 }
 0x779   :  { %7654 = vmatprep.subr.bf16.mxu0 %v17950_v25  ;;  %7695 = vmatprep.subr.bf16.mxu1 %v17952_v48  ;;  %v17998_v48 = vcombine.high %v6876_v33, %v6880_v23  ;;  %v18000_v25 = vcombine.high %v6877_v50, %v6881_v21  ;;  %v6884_v11 = vld [vmem:[%s19769_s11 + $0x310] sm:$0xff]  ;;  %v18016_v26 = vcombine.low %v6876_v33, %v6880_v23  ;;  %v6893_v33 = vld [vmem:[%s19769_s11 + $0x358] sm:$0xff] }
 0x77a   :  { %v6897_v23 = vld [vmem:[%s19769_s11 + $0x378] sm:$0xff]  ;;  %v18042_v21 = vcombine.low %v6885_v12, %v6889_v51 }
 0x77b   :  { %20336 = vst [vmem:[#allocation124_spill] sm:$0xff] %v17998_v48  ;;  %20337 = vst [vmem:[#allocation125_spill] sm:$0xff] %v18000_v25 }
 0x77c   :  { %7655 = vmatpush1.bf16.msra.mxu0 %v17968_v34  ;;  %7696 = vmatpush1.bf16.msra.mxu1 %v17970_v27  ;;  %v6888_v27 = vld [vmem:[%s19769_s11 + $0x330] sm:$0xff]  ;;  %20338 = vst [vmem:[#allocation126_spill] sm:$0xff] %v18016_v26  ;;  %20343 = vst [vmem:[#allocation131_spill] sm:$0xff] %v18042_v21 }
 0x77d   :  { %7656 = vmatprep.subr.bf16.mxu0 %v17974_v8  ;;  %7697 = vmatprep.subr.bf16.mxu1 %v17976_v32  ;;  %v18022_v32 = vcombine.high %v6884_v11, %v6888_v27  ;;  %v18024_v8 = vcombine.high %v6885_v12, %v6889_v51  ;;  %v6892_v34 = vld [vmem:[%s19769_s11 + $0x350] sm:$0xff]  ;;  %v18040_v50 = vcombine.low %v6884_v11, %v6888_v27  ;;  %v6901_v11 = vld [vmem:[%s19769_s11 + $0x398] sm:$0xff] }
 0x77e   :  { %v6905_v27 = vld [vmem:[%s19769_s11 + $0x3b8] sm:$0xff]  ;;  %v18066_v51 = vcombine.low %v6893_v33, %v6897_v23 }
 0x77f   :  { %20340 = vst [vmem:[#allocation128_spill] sm:$0xff] %v18022_v32  ;;  %20341 = vst [vmem:[#allocation129_spill] sm:$0xff] %v18024_v8 }
 0x780   :  { %7657 = vmatpush1.bf16.msra.mxu0 %v17992_v18  ;;  %7698 = vmatpush1.bf16.msra.mxu1 %v17994_v15  ;;  %v6896_v15 = vld [vmem:[%s19769_s11 + $0x370] sm:$0xff]  ;;  %20342 = vst [vmem:[#allocation130_spill] sm:$0xff] %v18040_v50 }
 0x781   :  { %7658 = vmatprep.subr.bf16.mxu0 %v17998_v48  ;;  %7699 = vmatprep.subr.bf16.mxu1 %v18000_v25  ;;  %v18046_v25 = vcombine.high %v6892_v34, %v6896_v15  ;;  %v18048_v48 = vcombine.high %v6893_v33, %v6897_v23  ;;  %v6900_v18 = vld [vmem:[%s19769_s11 + $0x390] sm:$0xff]  ;;  %v18064_v12 = vcombine.low %v6892_v34, %v6896_v15  ;;  %v6909_v34 = vld [vmem:[%s19769_s11 + $0x3d8] sm:$0xff] }
 0x782   :  { %v6913_v15 = vld [vmem:[%s19769_s11 + $0x3f8] sm:$0xff]  ;;  %v18090_v23 = vcombine.low %v6901_v11, %v6905_v27 }
 0x783   :  { %20344 = vst [vmem:[#allocation132_spill] sm:$0xff] %v18046_v25  ;;  %20345 = vst [vmem:[#allocation133_spill] sm:$0xff] %v18048_v48 }
 0x784   :  { %7659 = vmatpush1.bf16.msra.mxu0 %v18016_v26  ;;  %7700 = vmatpush1.bf16.msra.mxu1 %v18018_v62  ;;  %v6904_v62 = vld [vmem:[%s19769_s11 + $0x3b0] sm:$0xff]  ;;  %20346 = vst [vmem:[#allocation134_spill] sm:$0xff] %v18064_v12 }
 0x785   :  { %7660 = vmatprep.subr.bf16.mxu0 %v18022_v32  ;;  %7701 = vmatprep.subr.bf16.mxu1 %v18024_v8  ;;  %v18070_v8 = vcombine.high %v6900_v18, %v6904_v62  ;;  %v18072_v32 = vcombine.high %v6901_v11, %v6905_v27  ;;  %v6908_v26 = vld [vmem:[%s19769_s11 + $0x3d0] sm:$0xff]  ;;  %v18088_v33 = vcombine.low %v6900_v18, %v6904_v62 }
 0x788   :  { %7661 = vmatpush1.bf16.msra.mxu0 %v18040_v50  ;;  %7702 = vmatpush1.bf16.msra.mxu1 %v18042_v21  ;;  %v6912_v21 = vld [vmem:[%s19769_s11 + $0x3f0] sm:$0xff] }
 0x789   :  { %7662 = vmatprep.subr.bf16.mxu0 %v18046_v25  ;;  %7703 = vmatprep.subr.bf16.mxu1 %v18048_v48  ;;  %v18094_v48 = vcombine.high %v6908_v26, %v6912_v21  ;;  %v18096_v25 = vcombine.high %v6909_v34, %v6913_v15  ;;  %v18100_v50 = vcombine.low %v6908_v26, %v6912_v21 }
 0x78c   :  { %7663 = vmatpush1.bf16.msra.mxu0 %v18064_v12  ;;  %7704 = vmatpush1.bf16.msra.mxu1 %v18066_v51  ;;  %v18102_v12 = vcombine.low %v6909_v34, %v6913_v15 }
 0x78d   :  { %7664 = vmatprep.subr.bf16.mxu0 %v18070_v8  ;;  %7705 = vmatprep.subr.bf16.mxu1 %v18072_v32 }
 0x790   :  { %7665 = vmatpush1.bf16.msra.mxu0 %v18088_v33  ;;  %7706 = vmatpush1.bf16.msra.mxu1 %v18090_v23 }
 0x791   :  { %7666 = vmatprep.subr.bf16.mxu0 %v18094_v48  ;;  %7707 = vmatprep.subr.bf16.mxu1 %v18096_v25 }
 0x794   :  { %7667 = vmatpush1.bf16.msra.mxu0 %v18100_v50  ;;  %7708 = vmatpush1.bf16.msra.mxu1 %v18102_v12 }
 0x795   :  { %8556 = vmatprep.subr.bf16.mxu0 %v17323_v0  ;;  %8597 = vmatprep.subr.bf16.mxu1 %v17336_v44  ;;  %v20348_v0 = vld [vmem:[#allocation37_spill] sm:$0xff]  ;;  %v20350_v44 = vld [vmem:[#allocation38_spill] sm:$0xff] }
 0x797   :  { %7669 = vmatmul.mubr.bf16.vlgmr.msra.gmra.mrb[76].mxu0 %v17754_v46  ;;  %7710 = vmatmul.mubr.bf16.vlgmr.msra.gmra.mrb[104].mxu1 %v17754_v46 }
 0x798   :  { %8557 = vmatpush1.bf16.msra.mxu0 %v17321_v35  ;;  %8598 = vmatpush1.bf16.msra.mxu1 %v17334_v39  ;;  %v20347_v35 = vld [vmem:[#allocation36_spill] sm:$0xff]  ;;  %v20349_v39 = vld [vmem:[#allocation46_spill] sm:$0xff] }
 0x799   :  { %8558 = vmatprep.subr.bf16.mxu0 %v17338_v10  ;;  %8599 = vmatprep.subr.bf16.mxu1 %v17350_v36  ;;  %v20351_v10 = vld [vmem:[#allocation42_spill] sm:$0xff]  ;;  %v20352_v36 = vld [vmem:[#allocation44_spill] sm:$0xff] }
 0x79c   :  { %8559 = vmatpush1.bf16.msra.mxu0 %v17363_v1  ;;  %8600 = vmatpush1.bf16.msra.mxu1 %v17367_v6  ;;  %v20353_v1 = vld [vmem:[#allocation51_spill] sm:$0xff]  ;;  %v20354_v6 = vld [vmem:[#allocation45_spill] sm:$0xff] }
 0x79d   :  { %8560 = vmatprep.subr.bf16.mxu0 %v17369_v19  ;;  %8601 = vmatprep.subr.bf16.mxu1 %v17372_v58  ;;  %v20355_v19 = vld [vmem:[#allocation47_spill] sm:$0xff]  ;;  %v20356_v58 = vld [vmem:[#allocation49_spill] sm:$0xff] }
 0x7a0   :  { %8561 = vmatpush1.bf16.msra.mxu0 %v17387_v53  ;;  %8602 = vmatpush1.bf16.msra.mxu1 %v17391_v9  ;;  %v20357_v53 = vld [vmem:[#allocation62_spill] sm:$0xff] }
 0x7a1   :  { %8562 = vmatprep.subr.bf16.mxu0 %v17393_v57  ;;  %8603 = vmatprep.subr.bf16.mxu1 %v17396_v47  ;;  %v20358_v9 = vld [vmem:[#allocation50_spill] sm:$0xff]  ;;  %v20360_v47 = vld [vmem:[#allocation61_spill] sm:$0xff] }
 0x7a2   :  { %v20359_v57 = vld [vmem:[#allocation58_spill] sm:$0xff] }
 0x7a4   :  { %8563 = vmatpush1.bf16.msra.mxu0 %v17411_v24  ;;  %8604 = vmatpush1.bf16.msra.mxu1 %v17415_v63  ;;  %v20361_v24 = vld [vmem:[#allocation67_spill] sm:$0xff]  ;;  %v20362_v63 = vld [vmem:[#allocation60_spill] sm:$0xff] }
 0x7a5   :  { %8564 = vmatprep.subr.bf16.mxu0 %v17417_v17  ;;  %8605 = vmatprep.subr.bf16.mxu1 %v17420_v56  ;;  %v20363_v17 = vld [vmem:[#allocation63_spill] sm:$0xff]  ;;  %v20364_v56 = vld [vmem:[#allocation65_spill] sm:$0xff] }
 0x7a8   :  { %8565 = vmatpush1.bf16.msra.mxu0 %v17435_v31  ;;  %8606 = vmatpush1.bf16.msra.mxu1 %v17439_v55  ;;  %v20365_v31 = vld [vmem:[#allocation66_spill] sm:$0xff] }
 0x7a9   :  { %8566 = vmatprep.subr.bf16.mxu0 %v17441_v61  ;;  %8607 = vmatprep.subr.bf16.mxu1 %v17444_v41  ;;  %v20366_v55 = vld [vmem:[#allocation74_spill] sm:$0xff]  ;;  %v20368_v41 = vld [vmem:[#allocation76_spill] sm:$0xff] }
 0x7aa   :  { %v20367_v61 = vld [vmem:[#allocation78_spill] sm:$0xff] }
 0x7ac   :  { %8567 = vmatpush1.bf16.msra.mxu0 %v17459_v20  ;;  %8608 = vmatpush1.bf16.msra.mxu1 %v17463_v49  ;;  %v20369_v20 = vld [vmem:[#allocation77_spill] sm:$0xff]  ;;  %v20370_v49 = vld [vmem:[#allocation79_spill] sm:$0xff] }
 0x7ad   :  { %8568 = vmatprep.subr.bf16.mxu0 %v17465_v42  ;;  %8609 = vmatprep.subr.bf16.mxu1 %v17468_v3  ;;  %v20371_v42 = vld [vmem:[#allocation84_spill] sm:$0xff]  ;;  %v20372_v3 = vld [vmem:[#allocation87_spill] sm:$0xff] }
 0x7b0   :  { %8569 = vmatpush1.bf16.msra.mxu0 %v17483_v52  ;;  %8610 = vmatpush1.bf16.msra.mxu1 %v17487_v16  ;;  %v20373_v52 = vld [vmem:[#allocation83_spill] sm:$0xff] }
 0x7b1   :  { %8570 = vmatprep.subr.bf16.mxu0 %v17489_v22  ;;  %8611 = vmatprep.subr.bf16.mxu1 %v17492_v45  ;;  %v20374_v45 = vld [vmem:[#allocation14_spill] sm:$0xff] }
 0x7b4   :  { %8571 = vmatpush1.bf16.msra.mxu0 %v17495_v13  ;;  %8612 = vmatpush1.bf16.msra.mxu1 %v17499_v40  ;;  %v20375_v40 = vld [vmem:[#allocation15_spill] sm:$0xff] }
 0x7b5   :  { %8572 = vmatprep.subr.bf16.mxu0 %v17513_v54  ;;  %8613 = vmatprep.subr.bf16.mxu1 %v17522_v5  ;;  %v20376_v5 = vld [vmem:[#allocation16_spill] sm:$0xff] }
 0x7b8   :  { %8573 = vmatpush1.bf16.msra.mxu0 %v17518_v30  ;;  %8614 = vmatpush1.bf16.msra.mxu1 %v17520_v2 }
 0x7b9   :  { %8574 = vmatprep.subr.bf16.mxu0 %v17537_v14  ;;  %8615 = vmatprep.subr.bf16.mxu1 %v17546_v28 }
 0x7bc   :  { %8575 = vmatpush1.bf16.msra.mxu0 %v17542_v29  ;;  %8616 = vmatpush1.bf16.msra.mxu1 %v20347_v35  ;;  %v20377_v29 = vld [vmem:[#allocation17_spill] sm:$0xff] }
 0x7bd   :  { %8576 = vmatprep.subr.bf16.mxu0 %v20348_v0  ;;  %8617 = vmatprep.subr.bf16.mxu1 %v20349_v39 }
 0x7c0   :  { %8577 = vmatpush1.bf16.msra.mxu0 %v20350_v44  ;;  %8618 = vmatpush1.bf16.msra.mxu1 %v20351_v10 }
 0x7c1   :  { %8578 = vmatprep.subr.bf16.mxu0 %v20352_v36  ;;  %8619 = vmatprep.subr.bf16.mxu1 %v20353_v1 }
 0x7c4   :  { %8579 = vmatpush1.bf16.msra.mxu0 %v20354_v6  ;;  %8620 = vmatpush1.bf16.msra.mxu1 %v20355_v19 }
 0x7c5   :  { %8580 = vmatprep.subr.bf16.mxu0 %v20356_v58  ;;  %8621 = vmatprep.subr.bf16.mxu1 %v20357_v53  ;;  %v20378_v58 = vld [vmem:[#allocation55_spill] sm:$0xff] }
 0x7c8   :  { %8581 = vmatpush1.bf16.msra.mxu0 %v20358_v9  ;;  %8622 = vmatpush1.bf16.msra.mxu1 %v20359_v57  ;;  %v20379_v9 = vld [vmem:[#allocation56_spill] sm:$0xff] }
 0x7c9   :  { %8582 = vmatprep.subr.bf16.mxu0 %v20360_v47  ;;  %8623 = vmatprep.subr.bf16.mxu1 %v20361_v24 }
 0x7cc   :  { %8583 = vmatpush1.bf16.msra.mxu0 %v20362_v63  ;;  %8624 = vmatpush1.bf16.msra.mxu1 %v20363_v17  ;;  %v20380_v63 = vld [vmem:[#allocation57_spill] sm:$0xff] }
 0x7cd   :  { %8584 = vmatprep.subr.bf16.mxu0 %v20364_v56  ;;  %8625 = vmatprep.subr.bf16.mxu1 %v20365_v31  ;;  %v20381_v56 = vld [vmem:[#allocation59_spill] sm:$0xff] }
 0x7d0   :  { %8585 = vmatpush1.bf16.msra.mxu0 %v20366_v55  ;;  %8626 = vmatpush1.bf16.msra.mxu1 %v20367_v61 }
 0x7d1   :  { %8586 = vmatprep.subr.bf16.mxu0 %v20368_v41  ;;  %8627 = vmatprep.subr.bf16.mxu1 %v20369_v20 }
 0x7d4   :  { %8587 = vmatpush1.bf16.msra.mxu0 %v20370_v49  ;;  %8628 = vmatpush1.bf16.msra.mxu1 %v20371_v42 }
 0x7d5   :  { %8638 = vmatprep.subr.bf16.mxu0 %v20372_v3  ;;  %8679 = vmatprep.subr.bf16.mxu1 %v20373_v52 }
 0x82a   :  { %v7588_v16 = vpop.f32.mrb[72].mxu0  ;;  %v7629_v22 = vpop.f32.mrb[100].mxu1 }
 0x82b   :  { %v7718_v13 = vadd.f32 %v7588_v16, %v20374_v45  ;;  %v7720_v54 = vadd.f32 %v7629_v22, %v20375_v40  ;;  %v7590_v30 = vpop.f32.mrb[73].mxu0  ;;  %v7631_v2 = vpop.f32.mrb[101].mxu1 }
 0x82c   :  { %v7719_v14 = vadd.f32 %v7590_v30, %v20376_v5  ;;  %v7721_v28 = vadd.f32 %v7631_v2, %v20377_v29  ;;  %v7592_v46 = vpop.f32.mrb[74].mxu0  ;;  %v7633_v18 = vpop.f32.mrb[102].mxu1 }
 0x82d   :  { %v7593_v26 = vpop.f32.mrb[75].mxu0  ;;  %v7634_v62 = vpop.f32.mrb[103].mxu1  ;;  %v12921_v21 = vmul.f32 -1.442695, %v7718_v13  ;;  %v12923_v11 = vmul.f32 -1.442695, %v7720_v54 }
 0x82e   :  { %v12922_v27 = vmul.f32 -1.442695, %v7719_v14  ;;  %v12924_v34 = vmul.f32 -1.442695, %v7721_v28 }
 0x82f   :  { %13902 = vpow2.f32 %v12921_v21 }
 0x830   :  { %13904 = vpow2.f32 %v12923_v11 }
 0x831   :  { %13906 = vpow2.f32 %v12922_v27 }
 0x832   :  { %13908 = vpow2.f32 %v12924_v34 }
 0x839   :  { %v13903_v15 = vpop.eup %13902 }
 0x83a   :  { %v13905_v35 = vpop.eup %13904  ;;  %v7744_v44 = vadd.f32 1.0, %v13903_v15  ;;  %v20384_v15 = vld [vmem:[#allocation93_spill] sm:$0xff] }
 0x83b   :  { %v13907_v0 = vpop.eup %13906  ;;  %v7746_v10 = vadd.f32 1.0, %v13905_v35  ;;  %v20385_v35 = vld [vmem:[#allocation94_spill] sm:$0xff] }
 0x83c   :  { %v13909_v39 = vpop.eup %13908  ;;  %v7745_v36 = vadd.f32 1.0, %v13907_v0  ;;  %13910 = vrcp.f32 %v7744_v44  ;;  %v20386_v0 = vld [vmem:[#allocation95_spill] sm:$0xff]  ;;  %v20388_v44 = vld [vmem:[#allocation97_spill] sm:$0xff] }
 0x83d   :  { %v7747_v1 = vadd.f32 1.0, %v13909_v39  ;;  %13912 = vrcp.f32 %v7746_v10  ;;  %v20387_v39 = vld [vmem:[#allocation96_spill] sm:$0xff] }
 0x83e   :  { %13914 = vrcp.f32 %v7745_v36  ;;  %v20391_v10 = vld [vmem:[#allocation8_spill] sm:$0xff]  ;;  %v20395_v36 = vld [vmem:[#allocation41_spill] sm:$0xff] }
 0x83f   :  { %13916 = vrcp.f32 %v7747_v1  ;;  %v20396_v1 = vld [vmem:[#allocation43_spill] sm:$0xff] }
 0x846   :  { %v13911_v3 = vpop.eup %13910 }
 0x847   :  { %v13913_v52 = vpop.eup %13912 }
 0x848   :  { %v13915_v16 = vpop.eup %13914  ;;  %v7764_v40 = vmul.f32 %v13913_v52, %v17728_v7  ;;  %v20416_v52 = vld [vmem:[#allocation119_spill] sm:$0xff] }
 0x849   :  { %v13917_v22 = vpop.eup %13916 }
 0x84a   :  { %v7765_v2 = vmul.f32 %v13917_v22, %v17730_v37  ;;  %v20418_v22 = vld [vmem:[#allocation121_spill] sm:$0xff] }
 0x86a   :  { %v7670_v6 = vpop.f32.mrb[76].mxu0  ;;  %v7711_v19 = vpop.f32.mrb[104].mxu1 }
 0x86b   :  { %v7722_v53 = vadd.f32 %v7670_v6, %v20378_v58  ;;  %v7724_v57 = vadd.f32 %v7711_v19, %v20379_v9  ;;  %v7672_v47 = vpop.f32.mrb[77].mxu0  ;;  %v7713_v24 = vpop.f32.mrb[105].mxu1  ;;  %v20397_v6 = vld [vmem:[#allocation100_spill] sm:$0xff]  ;;  %v20398_v19 = vld [vmem:[#allocation101_spill] sm:$0xff]  ;;  %v20399_v58 = vld [vmem:[#allocation102_spill] sm:$0xff] }
 0x86c   :  { %v7723_v17 = vadd.f32 %v7672_v47, %v20380_v63  ;;  %v7725_v31 = vadd.f32 %v7713_v24, %v20381_v56  ;;  %v7674_v55 = vpop.f32.mrb[78].mxu0  ;;  %v7715_v61 = vpop.f32.mrb[106].mxu1  ;;  %v20401_v9 = vld [vmem:[#allocation104_spill] sm:$0xff]  ;;  %v20403_v47 = vld [vmem:[#allocation106_spill] sm:$0xff]  ;;  %v20404_v24 = vld [vmem:[#allocation107_spill] sm:$0xff] }
 0x86d   :  { %v12925_v41 = vmul.f32 -1.442695, %v7722_v53  ;;  %13918 = vtanh.f32 %v7724_v57  ;;  %v7675_v20 = vpop.f32.mrb[79].mxu0  ;;  %v7716_v49 = vpop.f32.mrb[107].mxu1  ;;  %v20400_v53 = vld [vmem:[#allocation103_spill] sm:$0xff]  ;;  %v20402_v57 = vld [vmem:[#allocation105_spill] sm:$0xff] }
 0x86e   :  { %v12926_v42 = vmul.f32 -1.442695, %v7723_v17  ;;  %13920 = vtanh.f32 %v7725_v31  ;;  %v20405_v63 = vld [vmem:[#allocation108_spill] sm:$0xff]  ;;  %v20406_v17 = vld [vmem:[#allocation109_spill] sm:$0xff]  ;;  %v20407_v56 = vld [vmem:[#allocation110_spill] sm:$0xff] }
 0x86f   :  { %13922 = vpow2.f32 %v12925_v41  ;;  %v20408_v31 = vld [vmem:[#allocation111_spill] sm:$0xff]  ;;  %v20409_v55 = vld [vmem:[#allocation112_spill] sm:$0xff]  ;;  %v20410_v61 = vld [vmem:[#allocation113_spill] sm:$0xff] }
 0x870   :  { %13924 = vpow2.f32 %v12926_v42  ;;  %v20411_v41 = vld [vmem:[#allocation114_spill] sm:$0xff]  ;;  %v20412_v20 = vld [vmem:[#allocation115_spill] sm:$0xff]  ;;  %v20413_v49 = vld [vmem:[#allocation116_spill] sm:$0xff] }
 0x871   :  { %v20414_v42 = vld [vmem:[#allocation117_spill] sm:$0xff] }
 0x877   :  { %v13919_v45 = vpop.eup %13918 }
 0x878   :  { %v13921_v13 = vpop.eup %13920  ;;  %v7766_v54 = vmul.f32 %v13919_v45, %v13911_v3  ;;  %v20415_v3 = vld [vmem:[#allocation118_spill] sm:$0xff] }
 0x879   :  { %v13923_v30 = vpop.eup %13922  ;;  %v7767_v5 = vmul.f32 %v13921_v13, %v13915_v16  ;;  %v20417_v16 = vld [vmem:[#allocation120_spill] sm:$0xff]  ;;  %v20419_v45 = vld [vmem:[#allocation122_spill] sm:$0xff]  ;;  %v20420_v13 = vld [vmem:[#allocation123_spill] sm:$0xff] }
 0x87a   :  { %v13925_v14 = vpop.eup %13924  ;;  %v7748_v29 = vadd.f32 1.0, %v13923_v30  ;;  %v18186_v28 = vadd.f32 %v7766_v54, %v7764_v40  ;;  %v20421_v40 = vld [vmem:[#allocation124_spill] sm:$0xff]  ;;  %v20422_v54 = vld [vmem:[#allocation125_spill] sm:$0xff]  ;;  %v20423_v30 = vld [vmem:[#allocation126_spill] sm:$0xff] }
 0x87b   :  { %v7749_v46 = vadd.f32 1.0, %v13925_v14  ;;  %v18188_v18 = vadd.f32 %v7767_v5, %v7765_v2  ;;  %v20424_v2 = vld [vmem:[#allocation127_spill] sm:$0xff]  ;;  %v20425_v5 = vld [vmem:[#allocation128_spill] sm:$0xff]  ;;  %v20426_v14 = vld [vmem:[#allocation129_spill] sm:$0xff] }
 0x87c   :  { %13926 = vrcp.f32 %v7748_v29  ;;  %v20427_v29 = vld [vmem:[#allocation130_spill] sm:$0xff] }
 0x87d   :  { %13928 = vtanh.f32 %v18186_v28 }
 0x87e   :  { %13930 = vrcp.f32 %v7749_v46  ;;  %v20428_v46 = vld [vmem:[#allocation131_spill] sm:$0xff] }
 0x87f   :  { %13932 = vtanh.f32 %v18188_v18 }
 0x886   :  { %v13927_v26 = vpop.eup %13926 }
 0x887   :  { %v13929_v7 = vpop.eup %13928 }
 0x888   :  { %v13931_v62 = vpop.eup %13930  ;;  %v18192_v11 = vmul.f32 %v13929_v7, %v13927_v26  ;;  %v20429_v26 = vld [vmem:[#allocation132_spill] sm:$0xff]  ;;  %v20430_v7 = vld [vmem:[#allocation133_spill] sm:$0xff] }
 0x889   :  { %v13933_v21 = vpop.eup %13932 }
 0x88a   :  { %20382 = vst [vmem:[#allocation135_spill] sm:$0xff] %v18192_v11  ;;  %v18194_v37 = vmul.f32 %v13933_v21, %v13931_v62  ;;  %v18200_v34 = vpack.c.bf16 %v18192_v11, %v18192_v11  ;;  %v20431_v62 = vld [vmem:[#allocation134_spill] sm:$0xff] }
 0x88c   :  { %20383 = vst [vmem:[#allocation136_spill] sm:$0xff] %v18194_v37  ;;  %v7787_v27 = vpack.c.bf16 %v18194_v37, %v18194_v37 }
 0x88e   :  { %8588 = vmatprep.mubr.bf16.mxu0 %v7787_v27  ;;  %8629 = vmatprep.mubr.bf16.mxu1 %v7787_v27 }
 0x88f   :  { %8589 = vmatmul.mubr.bf16.vlgmr.msra.gmra.mrb[80].mxu0 %v18200_v34  ;;  %8630 = vmatmul.mubr.bf16.vlgmr.msra.gmra.mrb[108].mxu1 %v18200_v34 }
 0x890   :  { %8639 = vmatpush1.bf16.msra.mxu0 %v17710_v60  ;;  %8680 = vmatpush1.bf16.msra.mxu1 %v17712_v59  ;;  %v20389_v60 = vld [vmem:[#allocation6_spill] sm:$0xff]  ;;  %v20390_v59 = vld [vmem:[#allocation7_spill] sm:$0xff] }
 0x891   :  { %8670 = vmatprep.mubr.bf16.mxu0 %v7787_v27  ;;  %8711 = vmatprep.mubr.bf16.mxu1 %v7787_v27 }
 0x892   :  { %8640 = vmatprep.subr.bf16.mxu0 %v17759_v4  ;;  %8681 = vmatprep.subr.bf16.mxu1 %v17761_v38  ;;  %v20392_v4 = vld [vmem:[#allocation9_spill] sm:$0xff]  ;;  %v20393_v38 = vld [vmem:[#allocation39_spill] sm:$0xff] }
 0x894   :  { %8641 = vmatpush1.bf16.msra.mxu0 %v17776_v43  ;;  %8682 = vmatpush1.bf16.msra.mxu1 %v20384_v15  ;;  %v20394_v43 = vld [vmem:[#allocation40_spill] sm:$0xff]  ;;  %v8803_v15 = vld [vmem:[%s19769_s11 + $0x68] sm:$0xff] }
 0x895   :  { %8642 = vmatprep.subr.bf16.mxu0 %v20385_v35  ;;  %8683 = vmatprep.subr.bf16.mxu1 %v20386_v0  ;;  %v8806_v35 = vld [vmem:[%s19769_s11 + $0x80] sm:$0xff] }
 0x898   :  { %8643 = vmatpush1.bf16.msra.mxu0 %v20387_v39  ;;  %8684 = vmatpush1.bf16.msra.mxu1 %v20388_v44  ;;  %v8810_v39 = vld [vmem:[%s19769_s11 + $0xa0] sm:$0xff]  ;;  %v8807_v44 = vld [vmem:[%s19769_s11 + $0x88] sm:$0xff] }
 0x899   :  { %8644 = vmatprep.subr.bf16.mxu0 %v20389_v60  ;;  %8685 = vmatprep.subr.bf16.mxu1 %v20390_v59  ;;  %v8811_v60 = vld [vmem:[%s19769_s11 + $0xa8] sm:$0xff] }
 0x89c   :  { %8645 = vmatpush1.bf16.msra.mxu0 %v20391_v10  ;;  %8686 = vmatpush1.bf16.msra.mxu1 %v20392_v4  ;;  %v18325_v4 = vcombine.high %v8806_v35, %v8810_v39 }
 0x89d   :  { %8646 = vmatprep.subr.bf16.mxu0 %v20393_v38  ;;  %8687 = vmatprep.subr.bf16.mxu1 %v20394_v43  ;;  %v18328_v38 = vcombine.high %v8807_v44, %v8811_v60  ;;  %v8814_v43 = vld [vmem:[%s19769_s11 + $0xc0] sm:$0xff] }
 0x8a0   :  { %8647 = vmatpush1.bf16.msra.mxu0 %v20395_v36  ;;  %8688 = vmatpush1.bf16.msra.mxu1 %v20396_v1  ;;  %v8818_v36 = vld [vmem:[%s19769_s11 + $0xe0] sm:$0xff]  ;;  %v8815_v1 = vld [vmem:[%s19769_s11 + $0xc8] sm:$0xff] }
 0x8a1   :  { %8648 = vmatprep.subr.bf16.mxu0 %v20397_v6  ;;  %8689 = vmatprep.subr.bf16.mxu1 %v20398_v19  ;;  %v8819_v6 = vld [vmem:[%s19769_s11 + $0xe8] sm:$0xff]  ;;  %v18343_v19 = vcombine.low %v8806_v35, %v8810_v39 }
 0x8a2   :  { %v8859_v35 = vld [vmem:[%s19769_s11 + $0x228] sm:$0xff] }
 0x8a4   :  { %8649 = vmatpush1.bf16.msra.mxu0 %v20399_v58  ;;  %8690 = vmatpush1.bf16.msra.mxu1 %v20400_v53  ;;  %v18347_v58 = vcombine.low %v8807_v44, %v8811_v60  ;;  %v18349_v53 = vcombine.high %v8814_v43, %v8818_v36 }
 0x8a5   :  { %8650 = vmatprep.subr.bf16.mxu0 %v20401_v9  ;;  %8691 = vmatprep.subr.bf16.mxu1 %v20402_v57  ;;  %v18352_v9 = vcombine.high %v8815_v1, %v8819_v6  ;;  %v8822_v57 = vld [vmem:[%s19769_s11 + $0x100] sm:$0xff] }
 0x8a8   :  { %8651 = vmatpush1.bf16.msra.mxu0 %v20403_v47  ;;  %8692 = vmatpush1.bf16.msra.mxu1 %v20404_v24  ;;  %v8826_v47 = vld [vmem:[%s19769_s11 + $0x120] sm:$0xff]  ;;  %v8823_v24 = vld [vmem:[%s19769_s11 + $0x108] sm:$0xff] }
 0x8a9   :  { %8652 = vmatprep.subr.bf16.mxu0 %v20405_v63  ;;  %8693 = vmatprep.subr.bf16.mxu1 %v20406_v17  ;;  %v8827_v63 = vld [vmem:[%s19769_s11 + $0x128] sm:$0xff]  ;;  %v18367_v17 = vcombine.low %v8814_v43, %v8818_v36  ;;  %v8862_v43 = vld [vmem:[%s19769_s11 + $0x240] sm:$0xff] }
 0x8aa   :  { %v8866_v36 = vld [vmem:[%s19769_s11 + $0x260] sm:$0xff] }
 0x8ac   :  { %8653 = vmatpush1.bf16.msra.mxu0 %v20407_v56  ;;  %8694 = vmatpush1.bf16.msra.mxu1 %v20408_v31  ;;  %v18371_v56 = vcombine.low %v8815_v1, %v8819_v6  ;;  %v18373_v31 = vcombine.high %v8822_v57, %v8826_v47  ;;  %v8863_v1 = vld [vmem:[%s19769_s11 + $0x248] sm:$0xff]  ;;  %v18493_v6 = vcombine.high %v8862_v43, %v8866_v36 }
 0x8ad   :  { %8654 = vmatprep.subr.bf16.mxu0 %v20409_v55  ;;  %8695 = vmatprep.subr.bf16.mxu1 %v20410_v61  ;;  %v18376_v55 = vcombine.high %v8823_v24, %v8827_v63  ;;  %v8830_v61 = vld [vmem:[%s19769_s11 + $0x140] sm:$0xff] }
 0x8b0   :  { %8655 = vmatpush1.bf16.msra.mxu0 %v20411_v41  ;;  %8696 = vmatpush1.bf16.msra.mxu1 %v20412_v20  ;;  %v8834_v41 = vld [vmem:[%s19769_s11 + $0x160] sm:$0xff]  ;;  %v8831_v20 = vld [vmem:[%s19769_s11 + $0x148] sm:$0xff] }
 0x8b1   :  { %8656 = vmatprep.subr.bf16.mxu0 %v20413_v49  ;;  %8697 = vmatprep.subr.bf16.mxu1 %v20414_v42  ;;  %v8835_v49 = vld [vmem:[%s19769_s11 + $0x168] sm:$0xff]  ;;  %v18391_v42 = vcombine.low %v8822_v57, %v8826_v47  ;;  %v18498_v47 = vcombine.low %v8862_v43, %v8866_v36  ;;  %v8886_v43 = vld [vmem:[%s19769_s11 + $0x300] sm:$0xff] }
 0x8b2   :  { %v8867_v57 = vld [vmem:[%s19769_s11 + $0x268] sm:$0xff]  ;;  %v8890_v36 = vld [vmem:[%s19769_s11 + $0x320] sm:$0xff] }
 0x8b4   :  { %8657 = vmatpush1.bf16.msra.mxu0 %v20415_v3  ;;  %8698 = vmatpush1.bf16.msra.mxu1 %v20416_v52  ;;  %v18395_v3 = vcombine.low %v8823_v24, %v8827_v63  ;;  %v18397_v52 = vcombine.high %v8830_v61, %v8834_v41  ;;  %v18500_v24 = vcombine.low %v8863_v1, %v8867_v57 }
 0x8b5   :  { %8658 = vmatprep.subr.bf16.mxu0 %v20417_v16  ;;  %8699 = vmatprep.subr.bf16.mxu1 %v20418_v22  ;;  %v18400_v16 = vcombine.high %v8831_v20, %v8835_v49  ;;  %v8838_v22 = vld [vmem:[%s19769_s11 + $0x180] sm:$0xff]  ;;  %v18502_v63 = vcombine.high %v8863_v1, %v8867_v57  ;;  %v8887_v1 = vld [vmem:[%s19769_s11 + $0x308] sm:$0xff]  ;;  %v18565_v57 = vcombine.high %v8886_v43, %v8890_v36 }
 0x8b6   :  { %20432 = vst [vmem:[#allocation137_spill] sm:$0xff] %v18500_v24 }
 0x8b7   :  { %20441 = vst [vmem:[#allocation54_spill] sm:$0xff] %v18565_v57 }
 0x8b8   :  { %8659 = vmatpush1.bf16.msra.mxu0 %v20419_v45  ;;  %8700 = vmatpush1.bf16.msra.mxu1 %v20420_v13  ;;  %v8842_v45 = vld [vmem:[%s19769_s11 + $0x1a0] sm:$0xff]  ;;  %v8839_v13 = vld [vmem:[%s19769_s11 + $0x188] sm:$0xff] }
 0x8b9   :  { %8660 = vmatprep.subr.bf16.mxu0 %v20421_v40  ;;  %8701 = vmatprep.subr.bf16.mxu1 %v20422_v54  ;;  %v8843_v40 = vld [vmem:[%s19769_s11 + $0x1a8] sm:$0xff]  ;;  %v18415_v54 = vcombine.low %v8830_v61, %v8834_v41  ;;  %v8870_v61 = vld [vmem:[%s19769_s11 + $0x280] sm:$0xff] }
 0x8ba   :  { %v8874_v41 = vld [vmem:[%s19769_s11 + $0x2a0] sm:$0xff] }
 0x8bc   :  { %8661 = vmatpush1.bf16.msra.mxu0 %v20423_v30  ;;  %8702 = vmatpush1.bf16.msra.mxu1 %v20424_v2  ;;  %v18419_v30 = vcombine.low %v8831_v20, %v8835_v49  ;;  %v18421_v2 = vcombine.high %v8838_v22, %v8842_v45  ;;  %v8871_v20 = vld [vmem:[%s19769_s11 + $0x288] sm:$0xff]  ;;  %v18517_v49 = vcombine.high %v8870_v61, %v8874_v41 }
 0x8bd   :  { %8662 = vmatprep.subr.bf16.mxu0 %v20425_v5  ;;  %8703 = vmatprep.subr.bf16.mxu1 %v20426_v14  ;;  %v18424_v5 = vcombine.high %v8839_v13, %v8843_v40  ;;  %v8846_v14 = vld [vmem:[%s19769_s11 + $0x1c0] sm:$0xff] }
 0x8be   :  { %20433 = vst [vmem:[#allocation138_spill] sm:$0xff] %v18517_v49 }
 0x8c0   :  { %8663 = vmatpush1.bf16.msra.mxu0 %v20427_v29  ;;  %8704 = vmatpush1.bf16.msra.mxu1 %v20428_v46  ;;  %v8850_v29 = vld [vmem:[%s19769_s11 + $0x1e0] sm:$0xff]  ;;  %v8847_v46 = vld [vmem:[%s19769_s11 + $0x1c8] sm:$0xff] }
 0x8c1   :  { %8664 = vmatprep.subr.bf16.mxu0 %v20429_v26  ;;  %8705 = vmatprep.subr.bf16.mxu1 %v20430_v7  ;;  %v8851_v26 = vld [vmem:[%s19769_s11 + $0x1e8] sm:$0xff]  ;;  %v18439_v7 = vcombine.low %v8838_v22, %v8842_v45  ;;  %v18522_v45 = vcombine.low %v8870_v61, %v8874_v41  ;;  %v18570_v41 = vcombine.low %v8886_v43, %v8890_v36 }
 0x8c2   :  { %v8875_v22 = vld [vmem:[%s19769_s11 + $0x2a8] sm:$0xff] }
 0x8c3   :  { %20434 = vst [vmem:[#allocation10_spill] sm:$0xff] %v18522_v45  ;;  %v8891_v61 = vld [vmem:[%s19769_s11 + $0x328] sm:$0xff]  ;;  %20442 = vst [vmem:[#allocation36_spill] sm:$0xff] %v18570_v41 }
 0x8c4   :  { %8665 = vmatpush1.bf16.msra.mxu0 %v20431_v62  ;;  %8706 = vmatpush1.bf16.msra.mxu1 %v18066_v51  ;;  %v8798_v51 = vld [vmem:[%s19769_s11 + $0x40] sm:$0xff]  ;;  %v18443_v62 = vcombine.low %v8839_v13, %v8843_v40  ;;  %v18524_v13 = vcombine.low %v8871_v20, %v8875_v22  ;;  %v18526_v40 = vcombine.high %v8871_v20, %v8875_v22  ;;  %v8899_v36 = vld [vmem:[%s19769_s11 + $0x368] sm:$0xff] }
 0x8c5   :  { %8666 = vmatprep.subr.bf16.mxu0 %v18070_v8  ;;  %8707 = vmatprep.subr.bf16.mxu1 %v18072_v32  ;;  %v8790_v8 = vld [vmem:[%s19769_s11] sm:$0xff]  ;;  %v18572_v20 = vcombine.low %v8887_v1, %v8891_v61  ;;  %v18574_v22 = vcombine.high %v8887_v1, %v8891_v61 }
 0x8c6   :  { %v8794_v32 = vld [vmem:[%s19769_s11 + $0x20] sm:$0xff]  ;;  %20435 = vst [vmem:[#allocation11_spill] sm:$0xff] %v18524_v13  ;;  %20436 = vst [vmem:[#allocation12_spill] sm:$0xff] %v18526_v40 }
 0x8c7   :  { %20443 = vst [vmem:[#allocation37_spill] sm:$0xff] %v18572_v20  ;;  %20444 = vst [vmem:[#allocation46_spill] sm:$0xff] %v18574_v22  ;;  %v8902_v1 = vld [vmem:[%s19769_s11 + $0x380] sm:$0xff] }
 0x8c8   :  { %8667 = vmatpush1.bf16.msra.mxu0 %v18088_v33  ;;  %8708 = vmatpush1.bf16.msra.mxu1 %v18090_v23  ;;  %v8802_v33 = vld [vmem:[%s19769_s11 + $0x60] sm:$0xff] }
 0x8c9   :  { %8668 = vmatprep.subr.bf16.mxu0 %v18094_v48  ;;  %8709 = vmatprep.subr.bf16.mxu1 %v18096_v25  ;;  %v8791_v48 = vld [vmem:[%s19769_s11 + $0x8] sm:$0xff]  ;;  %v18277_v25 = vcombine.low %v8790_v8, %v8794_v32  ;;  %v18294_v27 = vcombine.high %v8798_v51, %v8802_v33  ;;  %v18319_v59 = vcombine.low %v8798_v51, %v8802_v33  ;;  %v8854_v51 = vld [vmem:[%s19769_s11 + $0x200] sm:$0xff] }
 0x8ca   :  { %v8858_v33 = vld [vmem:[%s19769_s11 + $0x220] sm:$0xff] }
 0x8cb   :  { %v18474_v39 = vcombine.low %v8854_v51, %v8858_v33  ;;  %v8906_v61 = vld [vmem:[%s19769_s11 + $0x3a0] sm:$0xff] }
 0x8cc   :  { %8669 = vmatpush1.bf16.msra.mxu0 %v18100_v50  ;;  %8710 = vmatpush1.bf16.msra.mxu1 %v18102_v12  ;;  %v18279_v50 = vcombine.high %v8790_v8, %v8794_v32  ;;  %v8795_v12 = vld [vmem:[%s19769_s11 + $0x28] sm:$0xff]  ;;  %v18445_v8 = vcombine.high %v8846_v14, %v8850_v29  ;;  %v18448_v32 = vcombine.high %v8847_v46, %v8851_v26 }
 0x8cd   :  { %v18290_v23 = vcombine.low %v8791_v48, %v8795_v12  ;;  %v18292_v21 = vcombine.high %v8791_v48, %v8795_v12  ;;  %v18451_v48 = vcombine.low %v8846_v14, %v8850_v29  ;;  %v18455_v12 = vcombine.low %v8847_v46, %v8851_v26  ;;  %v8878_v14 = vld [vmem:[%s19769_s11 + $0x2c0] sm:$0xff]  ;;  %v8879_v46 = vld [vmem:[%s19769_s11 + $0x2c8] sm:$0xff] }
 0x8ce   :  { %9558 = vmatprep.subr.bf16.mxu0 %v18279_v50  ;;  %v8882_v29 = vld [vmem:[%s19769_s11 + $0x2e0] sm:$0xff] }
 0x8cf   :  { %8671 = vmatmul.mubr.bf16.vlgmr.msra.gmra.mrb[84].mxu0 %v18200_v34  ;;  %8712 = vmatmul.mubr.bf16.vlgmr.msra.gmra.mrb[112].mxu1 %v18200_v34  ;;  %v8799_v34 = vld [vmem:[%s19769_s11 + $0x48] sm:$0xff]  ;;  %v18541_v26 = vcombine.high %v8878_v14, %v8882_v29 }
 0x8d0   :  { %v18306_v0 = vcombine.high %v8799_v34, %v8803_v15  ;;  %9599 = vmatprep.subr.bf16.mxu1 %v18292_v21  ;;  %9559 = vmatpush1.bf16.msra.mxu0 %v18277_v25  ;;  %v18323_v10 = vcombine.low %v8799_v34, %v8803_v15  ;;  %v8855_v34 = vld [vmem:[%s19769_s11 + $0x208] sm:$0xff]  ;;  %v18469_v15 = vcombine.high %v8854_v51, %v8858_v33 }
 0x8d1   :  { %9600 = vmatpush1.bf16.msra.mxu1 %v18290_v23  ;;  %9560 = vmatprep.subr.bf16.mxu0 %v18294_v27  ;;  %v18476_v44 = vcombine.low %v8855_v34, %v8859_v35  ;;  %v18478_v60 = vcombine.high %v8855_v34, %v8859_v35  ;;  %20437 = vst [vmem:[#allocation13_spill] sm:$0xff] %v18541_v26  ;;  %v8883_v51 = vld [vmem:[%s19769_s11 + $0x2e8] sm:$0xff] }
 0x8d2   :  { %9601 = vmatprep.subr.bf16.mxu1 %v18306_v0  ;;  %v18546_v33 = vcombine.low %v8878_v14, %v8882_v29  ;;  %v18548_v34 = vcombine.low %v8879_v46, %v8883_v51  ;;  %v18550_v35 = vcombine.high %v8879_v46, %v8883_v51  ;;  %v8894_v14 = vld [vmem:[%s19769_s11 + $0x340] sm:$0xff]  ;;  %v8895_v46 = vld [vmem:[%s19769_s11 + $0x348] sm:$0xff] }
 0x8d3   :  { %v8898_v29 = vld [vmem:[%s19769_s11 + $0x360] sm:$0xff]  ;;  %v18602_v11 = vcombine.low %v8895_v46, %v8899_v36  ;;  %v18604_v37 = vcombine.high %v8895_v46, %v8899_v36  ;;  %v8911_v36 = vld [vmem:[%s19769_s11 + $0x3c8] sm:$0xff] }
 0x8d4   :  { %9561 = vmatpush1.bf16.msra.mxu0 %v18319_v59  ;;  %20438 = vst [vmem:[#allocation48_spill] sm:$0xff] %v18546_v33  ;;  %20439 = vst [vmem:[#allocation52_spill] sm:$0xff] %v18548_v34  ;;  %v18589_v51 = vcombine.low %v8894_v14, %v8898_v29  ;;  %v18591_v43 = vcombine.high %v8894_v14, %v8898_v29  ;;  %v8903_v14 = vld [vmem:[%s19769_s11 + $0x388] sm:$0xff]  ;;  %v8914_v46 = vld [vmem:[%s19769_s11 + $0x3e0] sm:$0xff] }
 0x8d5   :  { %9602 = vmatpush1.bf16.msra.mxu1 %v18323_v10  ;;  %9562 = vmatprep.subr.bf16.mxu0 %v18325_v4  ;;  %20440 = vst [vmem:[#allocation53_spill] sm:$0xff] %v18550_v35  ;;  %20447 = vst [vmem:[#allocation44_spill] sm:$0xff] %v18602_v11  ;;  %v8907_v29 = vld [vmem:[%s19769_s11 + $0x3a8] sm:$0xff] }
 0x8d6   :  { %9603 = vmatprep.subr.bf16.mxu1 %v18328_v38  ;;  %20445 = vst [vmem:[#allocation38_spill] sm:$0xff] %v18589_v51  ;;  %20446 = vst [vmem:[#allocation42_spill] sm:$0xff] %v18591_v43 }
 0x8d7   :  { %20448 = vst [vmem:[#allocation51_spill] sm:$0xff] %v18604_v37 }
 0x8d8   :  { %9563 = vmatpush1.bf16.msra.mxu0 %v18343_v19 }
 0x8d9   :  { %9604 = vmatpush1.bf16.msra.mxu1 %v18347_v58  ;;  %9564 = vmatprep.subr.bf16.mxu0 %v18349_v53 }
 0x8da   :  { %9605 = vmatprep.subr.bf16.mxu1 %v18352_v9 }
 0x8dc   :  { %9565 = vmatpush1.bf16.msra.mxu0 %v18367_v17 }
 0x8dd   :  { %9606 = vmatpush1.bf16.msra.mxu1 %v18371_v56  ;;  %9566 = vmatprep.subr.bf16.mxu0 %v18373_v31 }
 0x8de   :  { %9607 = vmatprep.subr.bf16.mxu1 %v18376_v55 }
 0x8e0   :  { %9567 = vmatpush1.bf16.msra.mxu0 %v18391_v42 }
 0x8e1   :  { %9608 = vmatpush1.bf16.msra.mxu1 %v18395_v3  ;;  %9568 = vmatprep.subr.bf16.mxu0 %v18397_v52 }
 0x8e2   :  { %9609 = vmatprep.subr.bf16.mxu1 %v18400_v16 }
 0x8e4   :  { %9569 = vmatpush1.bf16.msra.mxu0 %v18415_v54 }
 0x8e5   :  { %9610 = vmatpush1.bf16.msra.mxu1 %v18419_v30  ;;  %9570 = vmatprep.subr.bf16.mxu0 %v18421_v2 }
 0x8e6   :  { %9611 = vmatprep.subr.bf16.mxu1 %v18424_v5 }
 0x8e8   :  { %9571 = vmatpush1.bf16.msra.mxu0 %v18439_v7 }
 0x8e9   :  { %9612 = vmatpush1.bf16.msra.mxu1 %v18443_v62  ;;  %9572 = vmatprep.subr.bf16.mxu0 %v18445_v8 }
 0x8ea   :  { %9613 = vmatprep.subr.bf16.mxu1 %v18448_v32 }
 0x8ec   :  { %9573 = vmatpush1.bf16.msra.mxu0 %v18451_v48 }
 0x8ed   :  { %9614 = vmatpush1.bf16.msra.mxu1 %v18455_v12  ;;  %9574 = vmatprep.subr.bf16.mxu0 %v18469_v15 }
 0x8ee   :  { %9615 = vmatprep.subr.bf16.mxu1 %v18478_v60 }
 0x8f0   :  { %9575 = vmatpush1.bf16.msra.mxu0 %v18474_v39 }
 0x8f1   :  { %9616 = vmatpush1.bf16.msra.mxu1 %v18476_v44  ;;  %9576 = vmatprep.subr.bf16.mxu0 %v18493_v6 }
 0x8f2   :  { %9617 = vmatprep.subr.bf16.mxu1 %v18502_v63 }
 0x8f4   :  { %9577 = vmatpush1.bf16.msra.mxu0 %v18498_v47 }
 0x8f5   :  { %9618 = vmatpush1.bf16.msra.mxu1 %v18500_v24  ;;  %9578 = vmatprep.subr.bf16.mxu0 %v18517_v49 }
 0x8f6   :  { %9619 = vmatprep.subr.bf16.mxu1 %v18526_v40 }
 0x8f8   :  { %9579 = vmatpush1.bf16.msra.mxu0 %v18522_v45 }
 0x8f9   :  { %9620 = vmatpush1.bf16.msra.mxu1 %v18524_v13  ;;  %9580 = vmatprep.subr.bf16.mxu0 %v18541_v26 }
 0x8fa   :  { %9621 = vmatprep.subr.bf16.mxu1 %v18550_v35 }
 0x8fc   :  { %9581 = vmatpush1.bf16.msra.mxu0 %v18546_v33 }
 0x8fd   :  { %9622 = vmatpush1.bf16.msra.mxu1 %v18548_v34  ;;  %9582 = vmatprep.subr.bf16.mxu0 %v18565_v57  ;;  %v8915_v57 = vld [vmem:[%s19769_s11 + $0x3e8] sm:$0xff]  ;;  %v18631_v34 = vcombine.low %v8902_v1, %v8906_v61 }
 0x8fe   :  { %9623 = vmatprep.subr.bf16.mxu1 %v18574_v22  ;;  %v18618_v22 = vcombine.high %v8903_v14, %v8907_v29  ;;  %v18640_v35 = vcombine.high %v8911_v36, %v8915_v57 }
 0x8ff   :  { %20451 = vst [vmem:[#allocation49_spill] sm:$0xff] %v18631_v34 }
 0x900   :  { %9583 = vmatpush1.bf16.msra.mxu0 %v18570_v41  ;;  %v8910_v41 = vld [vmem:[%s19769_s11 + $0x3c0] sm:$0xff]  ;;  %20450 = vst [vmem:[#allocation47_spill] sm:$0xff] %v18618_v22  ;;  %20454 = vst [vmem:[#allocation58_spill] sm:$0xff] %v18640_v35 }
 0x901   :  { %9624 = vmatpush1.bf16.msra.mxu1 %v18572_v20  ;;  %v18606_v20 = vcombine.high %v8902_v1, %v8906_v61  ;;  %9584 = vmatprep.subr.bf16.mxu0 %v18591_v43  ;;  %v18635_v43 = vcombine.low %v8903_v14, %v8907_v29  ;;  %v18637_v33 = vcombine.high %v8910_v41, %v8914_v46  ;;  %v8792_v61 = vld [vmem:[%s19769_s11 + $0x10] sm:$0xff]  ;;  %v8797_v29 = vld [vmem:[%s19769_s11 + $0x38] sm:$0xff] }
 0x902   :  { %9625 = vmatprep.subr.bf16.mxu1 %v18604_v37  ;;  %v18643_v26 = vcombine.low %v8910_v41, %v8914_v46  ;;  %v18647_v1 = vcombine.low %v8911_v36, %v8915_v57  ;;  %v8796_v14 = vld [vmem:[%s19769_s11 + $0x30] sm:$0xff]  ;;  %v8793_v41 = vld [vmem:[%s19769_s11 + $0x18] sm:$0xff] }
 0x903   :  { %20449 = vst [vmem:[#allocation45_spill] sm:$0xff] %v18606_v20  ;;  %20452 = vst [vmem:[#allocation62_spill] sm:$0xff] %v18635_v43  ;;  %v18661_v57 = vcombine.high %v8792_v61, %v8796_v14  ;;  %v18666_v46 = vcombine.low %v8792_v61, %v8796_v14  ;;  %v18668_v36 = vcombine.low %v8793_v41, %v8797_v29  ;;  %v20462_v61 = vld [vmem:[#allocation21_spill] sm:$0xff] }
 0x904   :  { %9585 = vmatpush1.bf16.msra.mxu0 %v18589_v51  ;;  %20453 = vst [vmem:[#allocation50_spill] sm:$0xff] %v18637_v33  ;;  %20455 = vst [vmem:[#allocation61_spill] sm:$0xff] %v18643_v26  ;;  %v20461_v51 = vld [vmem:[#allocation20_spill] sm:$0xff] }
 0x905   :  { %9626 = vmatpush1.bf16.msra.mxu1 %v18602_v11  ;;  %9586 = vmatprep.subr.bf16.mxu0 %v18606_v20  ;;  %20456 = vst [vmem:[#allocation67_spill] sm:$0xff] %v18647_v1  ;;  %20457 = vst [vmem:[#allocation60_spill] sm:$0xff] %v18661_v57 }
 0x906   :  { %9627 = vmatprep.subr.bf16.mxu1 %v18618_v22 }
 0x908   :  { %9587 = vmatpush1.bf16.msra.mxu0 %v18631_v34  ;;  %v20460_v34 = vld [vmem:[#allocation19_spill] sm:$0xff] }
 0x909   :  { %9628 = vmatpush1.bf16.msra.mxu1 %v18635_v43  ;;  %9588 = vmatprep.subr.bf16.mxu0 %v18637_v33  ;;  %v20459_v43 = vld [vmem:[#allocation18_spill] sm:$0xff] }
 0x90a   :  { %9629 = vmatprep.subr.bf16.mxu1 %v18640_v35 }
 0x90c   :  { %9589 = vmatpush1.bf16.msra.mxu0 %v18643_v26  ;;  %v18670_v26 = vcombine.high %v8793_v41, %v8797_v29 }
 0x90d   :  { %9630 = vmatpush1.bf16.msra.mxu1 %v18647_v1  ;;  %9640 = vmatprep.subr.bf16.mxu0 %v18661_v57 }
 0x90e   :  { %20458 = vst [vmem:[#allocation63_spill] sm:$0xff] %v18670_v26  ;;  %9681 = vmatprep.subr.bf16.mxu1 %v18670_v26 }
 0x962   :  { %v8590_v35 = vpop.f32.mrb[80].mxu0  ;;  %v8631_v33 = vpop.f32.mrb[108].mxu1 }
 0x963   :  { %v8720_v1 = vadd.f32 %v8590_v35, %v20459_v43  ;;  %v8722_v22 = vadd.f32 %v8631_v33, %v20460_v34  ;;  %v8592_v20 = vpop.f32.mrb[81].mxu0  ;;  %v8633_v11 = vpop.f32.mrb[109].mxu1 }
 0x964   :  { %v8721_v37 = vadd.f32 %v8592_v20, %v20461_v51  ;;  %v8723_v14 = vadd.f32 %v8633_v11, %v20462_v61  ;;  %v8594_v13 = vpop.f32.mrb[82].mxu0  ;;  %v8635_v45 = vpop.f32.mrb[110].mxu1 }
 0x965   :  { %v8595_v41 = vpop.f32.mrb[83].mxu0  ;;  %v8636_v29 = vpop.f32.mrb[111].mxu1  ;;  %v13055_v40 = vmul.f32 -1.442695, %v8720_v1  ;;  %v13057_v57 = vmul.f32 -1.442695, %v8722_v22 }
 0x966   :  { %v13056_v49 = vmul.f32 -1.442695, %v8721_v37  ;;  %v13058_v26 = vmul.f32 -1.442695, %v8723_v14  ;;  %v20463_v22 = vld [vmem:[#allocation64_spill] sm:$0xff]  ;;  %v20466_v14 = vld [vmem:[#allocation70_spill] sm:$0xff] }
 0x967   :  { %13934 = vpow2.f32 %v13055_v40  ;;  %v20464_v1 = vld [vmem:[#allocation68_spill] sm:$0xff] }
 0x968   :  { %13936 = vpow2.f32 %v13057_v57 }
 0x969   :  { %13938 = vpow2.f32 %v13056_v49 }
 0x96a   :  { %13940 = vpow2.f32 %v13058_v26  ;;  %v20465_v26 = vld [vmem:[#allocation69_spill] sm:$0xff] }
 0x971   :  { %v13935_v35 = vpop.eup %13934 }
 0x972   :  { %v13937_v33 = vpop.eup %13936  ;;  %v8746_v24 = vadd.f32 1.0, %v13935_v35 }
 0x973   :  { %v13939_v34 = vpop.eup %13938  ;;  %v8748_v20 = vadd.f32 1.0, %v13937_v33 }
 0x974   :  { %v13941_v43 = vpop.eup %13940  ;;  %v8747_v51 = vadd.f32 1.0, %v13939_v34  ;;  %13942 = vrcp.f32 %v8746_v24 }
 0x975   :  { %v8749_v11 = vadd.f32 1.0, %v13941_v43  ;;  %13944 = vrcp.f32 %v8748_v20 }
 0x976   :  { %13946 = vrcp.f32 %v8747_v51 }
 0x977   :  { %13948 = vrcp.f32 %v8749_v11 }
 0x97e   :  { %v13943_v20 = vpop.eup %13942 }
 0x97f   :  { %v13945_v51 = vpop.eup %13944 }
 0x9a2   :  { %v8672_v45 = vpop.f32.mrb[84].mxu0  ;;  %v8713_v13 = vpop.f32.mrb[112].mxu1 }
 0x9a3   :  { %v8724_v37 = vadd.f32 %v8672_v45, %v20463_v22  ;;  %v8726_v40 = vadd.f32 %v8713_v13, %v20464_v1  ;;  %v8674_v57 = vpop.f32.mrb[85].mxu0  ;;  %v8715_v49 = vpop.f32.mrb[113].mxu1  ;;  %v8766_v1 = vmul.f32 %v13945_v51, %v18186_v28  ;;  %v8801_v51 = vld [vmem:[%s19769_s11 + $0x58] sm:$0xff] }
 0x9a4   :  { %v8725_v61 = vadd.f32 %v8674_v57, %v20465_v26  ;;  %v8727_v41 = vadd.f32 %v8715_v49, %v20466_v14  ;;  %v8676_v29 = vpop.f32.mrb[86].mxu0  ;;  %v8717_v35 = vpop.f32.mrb[114].mxu1 }
 0x9a5   :  { %v13059_v33 = vmul.f32 -1.442695, %v8724_v37  ;;  %13950 = vtanh.f32 %v8726_v40  ;;  %v8677_v24 = vpop.f32.mrb[87].mxu0  ;;  %v8718_v34 = vpop.f32.mrb[115].mxu1 }
 0x9a6   :  { %v13060_v43 = vmul.f32 -1.442695, %v8725_v61  ;;  %13952 = vtanh.f32 %v8727_v41  ;;  %v13947_v45 = vpop.eup %13946 }
 0x9a7   :  { %13954 = vpow2.f32 %v13059_v33  ;;  %v13949_v13 = vpop.eup %13948 }
 0x9a8   :  { %13956 = vpow2.f32 %v13060_v43  ;;  %v8767_v26 = vmul.f32 %v13949_v13, %v18188_v18  ;;  %v8800_v43 = vld [vmem:[%s19769_s11 + $0x50] sm:$0xff] }
 0x9af   :  { %v13951_v22 = vpop.eup %13950 }
 0x9b0   :  { %v13953_v11 = vpop.eup %13952  ;;  %v8768_v57 = vmul.f32 %v13951_v22, %v13943_v20  ;;  %v8804_v20 = vld [vmem:[%s19769_s11 + $0x70] sm:$0xff] }
 0x9b1   :  { %v13955_v49 = vpop.eup %13954  ;;  %v8769_v37 = vmul.f32 %v13953_v11, %v13947_v45  ;;  %v8805_v45 = vld [vmem:[%s19769_s11 + $0x78] sm:$0xff]  ;;  %v8808_v11 = vld [vmem:[%s19769_s11 + $0x90] sm:$0xff] }
 0x9b2   :  { %v13957_v40 = vpop.eup %13956  ;;  %v8750_v14 = vadd.f32 1.0, %v13955_v49  ;;  %v18684_v29 = vadd.f32 %v8768_v57, %v8766_v1  ;;  %v18715_v1 = vcombine.high %v8800_v43, %v8804_v20  ;;  %v18717_v57 = vcombine.high %v8801_v51, %v8805_v45  ;;  %v8812_v49 = vld [vmem:[%s19769_s11 + $0xb0] sm:$0xff] }
 0x9b3   :  { %v8751_v61 = vadd.f32 1.0, %v13957_v40  ;;  %v18686_v41 = vadd.f32 %v8769_v37, %v8767_v26  ;;  %v8809_v26 = vld [vmem:[%s19769_s11 + $0x98] sm:$0xff]  ;;  %v18732_v40 = vcombine.low %v8800_v43, %v8804_v20  ;;  %v18756_v20 = vcombine.low %v8808_v11, %v8812_v49 }
 0x9b4   :  { %13958 = vrcp.f32 %v8750_v14  ;;  %v8813_v37 = vld [vmem:[%s19769_s11 + $0xb8] sm:$0xff]  ;;  %v18734_v14 = vcombine.low %v8801_v51, %v8805_v45 }
 0x9b5   :  { %13960 = vtanh.f32 %v18684_v29  ;;  %v8821_v43 = vld [vmem:[%s19769_s11 + $0xf8] sm:$0xff]  ;;  %20472 = vst [vmem:[#allocation77_spill] sm:$0xff] %v18756_v20  ;;  %v18758_v51 = vcombine.low %v8809_v26, %v8813_v37 }
 0x9b6   :  { %13962 = vrcp.f32 %v8751_v61  ;;  %20469 = vst [vmem:[#allocation74_spill] sm:$0xff] %v18734_v14  ;;  %v18736_v61 = vcombine.high %v8808_v11, %v8812_v49  ;;  %v8825_v11 = vld [vmem:[%s19769_s11 + $0x118] sm:$0xff] }
 0x9b7   :  { %13964 = vtanh.f32 %v18686_v41  ;;  %20473 = vst [vmem:[#allocation79_spill] sm:$0xff] %v18758_v51  ;;  %v8829_v49 = vld [vmem:[%s19769_s11 + $0x138] sm:$0xff] }
 0x9b8   :  { %20470 = vst [vmem:[#allocation78_spill] sm:$0xff] %v18736_v61 }
 0x9be   :  { %v13959_v35 = vpop.eup %13958 }
 0x9bf   :  { %v13961_v28 = vpop.eup %13960 }
 0x9c0   :  { %v13963_v33 = vpop.eup %13962  ;;  %v18690_v34 = vmul.f32 %v13961_v28, %v13959_v35  ;;  %v18738_v35 = vcombine.high %v8809_v26, %v8813_v37  ;;  %v8816_v28 = vld [vmem:[%s19769_s11 + $0xd0] sm:$0xff] }
 0x9c1   :  { %v13965_v24 = vpop.eup %13964 }
 0x9c2   :  { %20467 = vst [vmem:[#allocation65_spill] sm:$0xff] %v18690_v34  ;;  %v18692_v18 = vmul.f32 %v13965_v24, %v13963_v33  ;;  %v18710_v22 = vpack.c.bf16 %v18690_v34, %v18690_v34  ;;  %20471 = vst [vmem:[#allocation76_spill] sm:$0xff] %v18738_v35  ;;  %v8820_v33 = vld [vmem:[%s19769_s11 + $0xf0] sm:$0xff]  ;;  %v8817_v24 = vld [vmem:[%s19769_s11 + $0xd8] sm:$0xff] }
 0x9c3   :  { %v18762_v45 = vcombine.high %v8816_v28, %v8820_v33  ;;  %v8824_v34 = vld [vmem:[%s19769_s11 + $0x110] sm:$0xff]  ;;  %v18780_v26 = vcombine.low %v8816_v28, %v8820_v33  ;;  %v18782_v37 = vcombine.low %v8817_v24, %v8821_v43  ;;  %v8833_v28 = vld [vmem:[%s19769_s11 + $0x158] sm:$0xff] }
 0x9c4   :  { %20468 = vst [vmem:[#allocation66_spill] sm:$0xff] %v18692_v18  ;;  %v8789_v13 = vpack.c.bf16 %v18692_v18, %v18692_v18  ;;  %v8828_v18 = vld [vmem:[%s19769_s11 + $0x130] sm:$0xff]  ;;  %v8837_v33 = vld [vmem:[%s19769_s11 + $0x178] sm:$0xff] }
 0x9c5   :  { %20474 = vst [vmem:[#allocation84_spill] sm:$0xff] %v18762_v45  ;;  %20476 = vst [vmem:[#allocation83_spill] sm:$0xff] %v18780_v26 }
 0x9c6   :  { %9590 = vmatprep.mubr.bf16.mxu0 %v8789_v13  ;;  %9631 = vmatprep.mubr.bf16.mxu1 %v8789_v13  ;;  %20477 = vst [vmem:[#allocation14_spill] sm:$0xff] %v18782_v37 }
 0x9c7   :  { %9591 = vmatmul.mubr.bf16.vlgmr.msra.gmra.mrb[88].mxu0 %v18710_v22  ;;  %9632 = vmatmul.mubr.bf16.vlgmr.msra.gmra.mrb[116].mxu1 %v18710_v22 }
 0x9c8   :  { %9641 = vmatpush1.bf16.msra.mxu0 %v18666_v46  ;;  %9682 = vmatpush1.bf16.msra.mxu1 %v18668_v36 }
 0x9c9   :  { %9672 = vmatprep.mubr.bf16.mxu0 %v8789_v13  ;;  %9713 = vmatprep.mubr.bf16.mxu1 %v8789_v13  ;;  %v18764_v13 = vcombine.high %v8817_v24, %v8821_v43  ;;  %v18804_v24 = vcombine.low %v8824_v34, %v8828_v18  ;;  %v18806_v43 = vcombine.low %v8825_v11, %v8829_v49 }
 0x9ca   :  { %9642 = vmatprep.subr.bf16.mxu0 %v18715_v1  ;;  %9683 = vmatprep.subr.bf16.mxu1 %v18717_v57 }
 0x9cb   :  { %20475 = vst [vmem:[#allocation87_spill] sm:$0xff] %v18764_v13  ;;  %20480 = vst [vmem:[#allocation17_spill] sm:$0xff] %v18804_v24 }
 0x9cc   :  { %9643 = vmatpush1.bf16.msra.mxu0 %v18732_v40  ;;  %9684 = vmatpush1.bf16.msra.mxu1 %v18734_v14  ;;  %v8832_v14 = vld [vmem:[%s19769_s11 + $0x150] sm:$0xff]  ;;  %20481 = vst [vmem:[#allocation55_spill] sm:$0xff] %v18806_v43 }
 0x9cd   :  { %9644 = vmatprep.subr.bf16.mxu0 %v18736_v61  ;;  %9685 = vmatprep.subr.bf16.mxu1 %v18738_v35  ;;  %v18786_v35 = vcombine.high %v8824_v34, %v8828_v18  ;;  %v18788_v61 = vcombine.high %v8825_v11, %v8829_v49  ;;  %v8841_v34 = vld [vmem:[%s19769_s11 + $0x198] sm:$0xff]  ;;  %v18830_v49 = vcombine.low %v8833_v28, %v8837_v33 }
 0x9ce   :  { %v8845_v18 = vld [vmem:[%s19769_s11 + $0x1b8] sm:$0xff] }
 0x9cf   :  { %20478 = vst [vmem:[#allocation15_spill] sm:$0xff] %v18786_v35  ;;  %20479 = vst [vmem:[#allocation16_spill] sm:$0xff] %v18788_v61 }
 0x9d0   :  { %9645 = vmatpush1.bf16.msra.mxu0 %v18756_v20  ;;  %9686 = vmatpush1.bf16.msra.mxu1 %v18758_v51  ;;  %v8836_v51 = vld [vmem:[%s19769_s11 + $0x170] sm:$0xff]  ;;  %20485 = vst [vmem:[#allocation93_spill] sm:$0xff] %v18830_v49 }
 0x9d1   :  { %9646 = vmatprep.subr.bf16.mxu0 %v18762_v45  ;;  %9687 = vmatprep.subr.bf16.mxu1 %v18764_v13  ;;  %v18810_v13 = vcombine.high %v8832_v14, %v8836_v51  ;;  %v18812_v45 = vcombine.high %v8833_v28, %v8837_v33  ;;  %v8840_v20 = vld [vmem:[%s19769_s11 + $0x190] sm:$0xff]  ;;  %v18828_v11 = vcombine.low %v8832_v14, %v8836_v51  ;;  %v8849_v14 = vld [vmem:[%s19769_s11 + $0x1d8] sm:$0xff] }
 0x9d2   :  { %v8853_v51 = vld [vmem:[%s19769_s11 + $0x1f8] sm:$0xff]  ;;  %v18854_v33 = vcombine.low %v8841_v34, %v8845_v18 }
 0x9d3   :  { %20482 = vst [vmem:[#allocation56_spill] sm:$0xff] %v18810_v13  ;;  %20483 = vst [vmem:[#allocation57_spill] sm:$0xff] %v18812_v45 }
 0x9d4   :  { %9647 = vmatpush1.bf16.msra.mxu0 %v18780_v26  ;;  %9688 = vmatpush1.bf16.msra.mxu1 %v18782_v37  ;;  %v8844_v37 = vld [vmem:[%s19769_s11 + $0x1b0] sm:$0xff]  ;;  %20484 = vst [vmem:[#allocation59_spill] sm:$0xff] %v18828_v11  ;;  %20489 = vst [vmem:[#allocation97_spill] sm:$0xff] %v18854_v33 }
 0x9d5   :  { %9648 = vmatprep.subr.bf16.mxu0 %v18786_v35  ;;  %9689 = vmatprep.subr.bf16.mxu1 %v18788_v61  ;;  %v18834_v61 = vcombine.high %v8840_v20, %v8844_v37  ;;  %v18836_v35 = vcombine.high %v8841_v34, %v8845_v18  ;;  %v8848_v26 = vld [vmem:[%s19769_s11 + $0x1d0] sm:$0xff]  ;;  %v18852_v28 = vcombine.low %v8840_v20, %v8844_v37  ;;  %v8857_v20 = vld [vmem:[%s19769_s11 + $0x218] sm:$0xff] }
 0x9d6   :  { %v8861_v37 = vld [vmem:[%s19769_s11 + $0x238] sm:$0xff]  ;;  %v18878_v18 = vcombine.low %v8849_v14, %v8853_v51 }
 0x9d7   :  { %20486 = vst [vmem:[#allocation94_spill] sm:$0xff] %v18834_v61  ;;  %20487 = vst [vmem:[#allocation95_spill] sm:$0xff] %v18836_v35 }
 0x9d8   :  { %9649 = vmatpush1.bf16.msra.mxu0 %v18804_v24  ;;  %9690 = vmatpush1.bf16.msra.mxu1 %v18806_v43  ;;  %v8852_v43 = vld [vmem:[%s19769_s11 + $0x1f0] sm:$0xff]  ;;  %20488 = vst [vmem:[#allocation96_spill] sm:$0xff] %v18852_v28  ;;  %20493 = vst [vmem:[#allocation9_spill] sm:$0xff] %v18878_v18 }
 0x9d9   :  { %9650 = vmatprep.subr.bf16.mxu0 %v18810_v13  ;;  %9691 = vmatprep.subr.bf16.mxu1 %v18812_v45  ;;  %v18858_v45 = vcombine.high %v8848_v26, %v8852_v43  ;;  %v18860_v13 = vcombine.high %v8849_v14, %v8853_v51  ;;  %v8856_v24 = vld [vmem:[%s19769_s11 + $0x210] sm:$0xff]  ;;  %v18876_v34 = vcombine.low %v8848_v26, %v8852_v43  ;;  %v8865_v26 = vld [vmem:[%s19769_s11 + $0x258] sm:$0xff] }
 0x9da   :  { %v8869_v43 = vld [vmem:[%s19769_s11 + $0x278] sm:$0xff]  ;;  %v18902_v51 = vcombine.low %v8857_v20, %v8861_v37 }
 0x9db   :  { %20490 = vst [vmem:[#allocation6_spill] sm:$0xff] %v18858_v45  ;;  %20491 = vst [vmem:[#allocation7_spill] sm:$0xff] %v18860_v13 }
 0x9dc   :  { %9651 = vmatpush1.bf16.msra.mxu0 %v18828_v11  ;;  %9692 = vmatpush1.bf16.msra.mxu1 %v18830_v49  ;;  %v8860_v49 = vld [vmem:[%s19769_s11 + $0x230] sm:$0xff]  ;;  %20492 = vst [vmem:[#allocation8_spill] sm:$0xff] %v18876_v34  ;;  %20497 = vst [vmem:[#allocation43_spill] sm:$0xff] %v18902_v51 }
 0x9dd   :  { %9652 = vmatprep.subr.bf16.mxu0 %v18834_v61  ;;  %9693 = vmatprep.subr.bf16.mxu1 %v18836_v35  ;;  %v18882_v35 = vcombine.high %v8856_v24, %v8860_v49  ;;  %v18884_v61 = vcombine.high %v8857_v20, %v8861_v37  ;;  %v8864_v11 = vld [vmem:[%s19769_s11 + $0x250] sm:$0xff]  ;;  %v18900_v14 = vcombine.low %v8856_v24, %v8860_v49  ;;  %v8873_v24 = vld [vmem:[%s19769_s11 + $0x298] sm:$0xff] }
 0x9de   :  { %v8877_v49 = vld [vmem:[%s19769_s11 + $0x2b8] sm:$0xff]  ;;  %v18926_v37 = vcombine.low %v8865_v26, %v8869_v43 }
 0x9df   :  { %20494 = vst [vmem:[#allocation39_spill] sm:$0xff] %v18882_v35  ;;  %20495 = vst [vmem:[#allocation40_spill] sm:$0xff] %v18884_v61 }
 0x9e0   :  { %9653 = vmatpush1.bf16.msra.mxu0 %v18852_v28  ;;  %9694 = vmatpush1.bf16.msra.mxu1 %v18854_v33  ;;  %v8868_v33 = vld [vmem:[%s19769_s11 + $0x270] sm:$0xff]  ;;  %20496 = vst [vmem:[#allocation41_spill] sm:$0xff] %v18900_v14  ;;  %20501 = vst [vmem:[#allocation103_spill] sm:$0xff] %v18926_v37 }
 0x9e1   :  { %9654 = vmatprep.subr.bf16.mxu0 %v18858_v45  ;;  %9695 = vmatprep.subr.bf16.mxu1 %v18860_v13  ;;  %v18906_v13 = vcombine.high %v8864_v11, %v8868_v33  ;;  %v18908_v45 = vcombine.high %v8865_v26, %v8869_v43  ;;  %v8872_v28 = vld [vmem:[%s19769_s11 + $0x290] sm:$0xff]  ;;  %v18924_v20 = vcombine.low %v8864_v11, %v8868_v33  ;;  %v8881_v11 = vld [vmem:[%s19769_s11 + $0x2d8] sm:$0xff] }
 0x9e2   :  { %v8885_v33 = vld [vmem:[%s19769_s11 + $0x2f8] sm:$0xff]  ;;  %v18950_v43 = vcombine.low %v8873_v24, %v8877_v49 }
 0x9e3   :  { %20498 = vst [vmem:[#allocation100_spill] sm:$0xff] %v18906_v13  ;;  %20499 = vst [vmem:[#allocation101_spill] sm:$0xff] %v18908_v45 }
 0x9e4   :  { %9655 = vmatpush1.bf16.msra.mxu0 %v18876_v34  ;;  %9696 = vmatpush1.bf16.msra.mxu1 %v18878_v18  ;;  %v8876_v18 = vld [vmem:[%s19769_s11 + $0x2b0] sm:$0xff]  ;;  %20500 = vst [vmem:[#allocation102_spill] sm:$0xff] %v18924_v20  ;;  %20505 = vst [vmem:[#allocation107_spill] sm:$0xff] %v18950_v43 }
 0x9e5   :  { %9656 = vmatprep.subr.bf16.mxu0 %v18882_v35  ;;  %9697 = vmatprep.subr.bf16.mxu1 %v18884_v61  ;;  %v18930_v61 = vcombine.high %v8872_v28, %v8876_v18  ;;  %v18932_v35 = vcombine.high %v8873_v24, %v8877_v49  ;;  %v8880_v34 = vld [vmem:[%s19769_s11 + $0x2d0] sm:$0xff]  ;;  %v18948_v26 = vcombine.low %v8872_v28, %v8876_v18  ;;  %v8889_v28 = vld [vmem:[%s19769_s11 + $0x318] sm:$0xff] }
 0x9e6   :  { %v8893_v18 = vld [vmem:[%s19769_s11 + $0x338] sm:$0xff]  ;;  %v18974_v49 = vcombine.low %v8881_v11, %v8885_v33 }
 0x9e7   :  { %20502 = vst [vmem:[#allocation104_spill] sm:$0xff] %v18930_v61  ;;  %20503 = vst [vmem:[#allocation105_spill] sm:$0xff] %v18932_v35 }
 0x9e8   :  { %9657 = vmatpush1.bf16.msra.mxu0 %v18900_v14  ;;  %9698 = vmatpush1.bf16.msra.mxu1 %v18902_v51  ;;  %v8884_v51 = vld [vmem:[%s19769_s11 + $0x2f0] sm:$0xff]  ;;  %20504 = vst [vmem:[#allocation106_spill] sm:$0xff] %v18948_v26  ;;  %20509 = vst [vmem:[#allocation111_spill] sm:$0xff] %v18974_v49 }
 0x9e9   :  { %9658 = vmatprep.subr.bf16.mxu0 %v18906_v13  ;;  %9699 = vmatprep.subr.bf16.mxu1 %v18908_v45  ;;  %v18954_v45 = vcombine.high %v8880_v34, %v8884_v51  ;;  %v18956_v13 = vcombine.high %v8881_v11, %v8885_v33  ;;  %v8888_v14 = vld [vmem:[%s19769_s11 + $0x310] sm:$0xff]  ;;  %v18972_v24 = vcombine.low %v8880_v34, %v8884_v51  ;;  %v8897_v34 = vld [vmem:[%s19769_s11 + $0x358] sm:$0xff] }
 0x9ea   :  { %v8901_v51 = vld [vmem:[%s19769_s11 + $0x378] sm:$0xff]  ;;  %v18998_v33 = vcombine.low %v8889_v28, %v8893_v18 }
 0x9eb   :  { %20506 = vst [vmem:[#allocation108_spill] sm:$0xff] %v18954_v45  ;;  %20507 = vst [vmem:[#allocation109_spill] sm:$0xff] %v18956_v13 }
 0x9ec   :  { %9659 = vmatpush1.bf16.msra.mxu0 %v18924_v20  ;;  %9700 = vmatpush1.bf16.msra.mxu1 %v18926_v37  ;;  %v8892_v37 = vld [vmem:[%s19769_s11 + $0x330] sm:$0xff]  ;;  %20508 = vst [vmem:[#allocation110_spill] sm:$0xff] %v18972_v24  ;;  %20513 = vst [vmem:[#allocation115_spill] sm:$0xff] %v18998_v33 }
 0x9ed   :  { %9660 = vmatprep.subr.bf16.mxu0 %v18930_v61  ;;  %9701 = vmatprep.subr.bf16.mxu1 %v18932_v35  ;;  %v18978_v35 = vcombine.high %v8888_v14, %v8892_v37  ;;  %v18980_v61 = vcombine.high %v8889_v28, %v8893_v18  ;;  %v8896_v20 = vld [vmem:[%s19769_s11 + $0x350] sm:$0xff]  ;;  %v18996_v11 = vcombine.low %v8888_v14, %v8892_v37  ;;  %v8905_v14 = vld [vmem:[%s19769_s11 + $0x398] sm:$0xff] }
 0x9ee   :  { %v8909_v37 = vld [vmem:[%s19769_s11 + $0x3b8] sm:$0xff]  ;;  %v19022_v18 = vcombine.low %v8897_v34, %v8901_v51 }
 0x9ef   :  { %20510 = vst [vmem:[#allocation112_spill] sm:$0xff] %v18978_v35  ;;  %20511 = vst [vmem:[#allocation113_spill] sm:$0xff] %v18980_v61 }
 0x9f0   :  { %9661 = vmatpush1.bf16.msra.mxu0 %v18948_v26  ;;  %9702 = vmatpush1.bf16.msra.mxu1 %v18950_v43  ;;  %v8900_v43 = vld [vmem:[%s19769_s11 + $0x370] sm:$0xff]  ;;  %20512 = vst [vmem:[#allocation114_spill] sm:$0xff] %v18996_v11 }
 0x9f1   :  { %9662 = vmatprep.subr.bf16.mxu0 %v18954_v45  ;;  %9703 = vmatprep.subr.bf16.mxu1 %v18956_v13  ;;  %v19002_v13 = vcombine.high %v8896_v20, %v8900_v43  ;;  %v19004_v45 = vcombine.high %v8897_v34, %v8901_v51  ;;  %v8904_v26 = vld [vmem:[%s19769_s11 + $0x390] sm:$0xff]  ;;  %v19020_v28 = vcombine.low %v8896_v20, %v8900_v43  ;;  %v8913_v20 = vld [vmem:[%s19769_s11 + $0x3d8] sm:$0xff] }
 0x9f2   :  { %v8917_v43 = vld [vmem:[%s19769_s11 + $0x3f8] sm:$0xff]  ;;  %v19046_v51 = vcombine.low %v8905_v14, %v8909_v37 }
 0x9f3   :  { %20514 = vst [vmem:[#allocation116_spill] sm:$0xff] %v19002_v13  ;;  %20515 = vst [vmem:[#allocation117_spill] sm:$0xff] %v19004_v45 }
 0x9f4   :  { %9663 = vmatpush1.bf16.msra.mxu0 %v18972_v24  ;;  %9704 = vmatpush1.bf16.msra.mxu1 %v18974_v49  ;;  %v8908_v49 = vld [vmem:[%s19769_s11 + $0x3b0] sm:$0xff]  ;;  %20516 = vst [vmem:[#allocation118_spill] sm:$0xff] %v19020_v28 }
 0x9f5   :  { %9664 = vmatprep.subr.bf16.mxu0 %v18978_v35  ;;  %9705 = vmatprep.subr.bf16.mxu1 %v18980_v61  ;;  %v19026_v61 = vcombine.high %v8904_v26, %v8908_v49  ;;  %v19028_v35 = vcombine.high %v8905_v14, %v8909_v37  ;;  %v8912_v24 = vld [vmem:[%s19769_s11 + $0x3d0] sm:$0xff]  ;;  %v19044_v34 = vcombine.low %v8904_v26, %v8908_v49 }
 0x9f8   :  { %9665 = vmatpush1.bf16.msra.mxu0 %v18996_v11  ;;  %9706 = vmatpush1.bf16.msra.mxu1 %v18998_v33  ;;  %v8916_v33 = vld [vmem:[%s19769_s11 + $0x3f0] sm:$0xff] }
 0x9f9   :  { %9666 = vmatprep.subr.bf16.mxu0 %v19002_v13  ;;  %9707 = vmatprep.subr.bf16.mxu1 %v19004_v45  ;;  %v19050_v45 = vcombine.high %v8912_v24, %v8916_v33  ;;  %v19052_v13 = vcombine.high %v8913_v20, %v8917_v43  ;;  %v19056_v11 = vcombine.low %v8912_v24, %v8916_v33 }
 0x9fc   :  { %9667 = vmatpush1.bf16.msra.mxu0 %v19020_v28  ;;  %9708 = vmatpush1.bf16.msra.mxu1 %v19022_v18  ;;  %v19058_v28 = vcombine.low %v8913_v20, %v8917_v43 }
 0x9fd   :  { %9668 = vmatprep.subr.bf16.mxu0 %v19026_v61  ;;  %9709 = vmatprep.subr.bf16.mxu1 %v19028_v35 }
 0xa00   :  { %9669 = vmatpush1.bf16.msra.mxu0 %v19044_v34  ;;  %9710 = vmatpush1.bf16.msra.mxu1 %v19046_v51 }
 0xa01   :  { %9670 = vmatprep.subr.bf16.mxu0 %v19050_v45  ;;  %9711 = vmatprep.subr.bf16.mxu1 %v19052_v13 }
 0xa04   :  { %9671 = vmatpush1.bf16.msra.mxu0 %v19056_v11  ;;  %9712 = vmatpush1.bf16.msra.mxu1 %v19058_v28 }
 0xa05   :  { %10560 = vmatprep.subr.bf16.mxu0 %v18279_v50  ;;  %10601 = vmatprep.subr.bf16.mxu1 %v18292_v21  ;;  %v20518_v50 = vld [vmem:[#allocation138_spill] sm:$0xff] }
 0xa06   :  { %v20520_v21 = vld [vmem:[#allocation10_spill] sm:$0xff] }
 0xa07   :  { %9673 = vmatmul.mubr.bf16.vlgmr.msra.gmra.mrb[92].mxu0 %v18710_v22  ;;  %9714 = vmatmul.mubr.bf16.vlgmr.msra.gmra.mrb[120].mxu1 %v18710_v22 }
 0xa08   :  { %10561 = vmatpush1.bf16.msra.mxu0 %v18277_v25  ;;  %10602 = vmatpush1.bf16.msra.mxu1 %v18290_v23  ;;  %v20517_v25 = vld [vmem:[#allocation137_spill] sm:$0xff]  ;;  %v20519_v23 = vld [vmem:[#allocation12_spill] sm:$0xff] }
 0xa09   :  { %10562 = vmatprep.subr.bf16.mxu0 %v18294_v27  ;;  %10603 = vmatprep.subr.bf16.mxu1 %v18306_v0  ;;  %v20521_v27 = vld [vmem:[#allocation11_spill] sm:$0xff]  ;;  %v20522_v0 = vld [vmem:[#allocation13_spill] sm:$0xff] }
 0xa0c   :  { %10563 = vmatpush1.bf16.msra.mxu0 %v18319_v59  ;;  %10604 = vmatpush1.bf16.msra.mxu1 %v18323_v10  ;;  %v20523_v59 = vld [vmem:[#allocation53_spill] sm:$0xff]  ;;  %v20524_v10 = vld [vmem:[#allocation48_spill] sm:$0xff] }
 0xa0d   :  { %10564 = vmatprep.subr.bf16.mxu0 %v18325_v4  ;;  %10605 = vmatprep.subr.bf16.mxu1 %v18328_v38  ;;  %v20525_v4 = vld [vmem:[#allocation52_spill] sm:$0xff]  ;;  %v20526_v38 = vld [vmem:[#allocation54_spill] sm:$0xff] }
 0xa10   :  { %10565 = vmatpush1.bf16.msra.mxu0 %v18343_v19  ;;  %10606 = vmatpush1.bf16.msra.mxu1 %v18347_v58  ;;  %v20527_v19 = vld [vmem:[#allocation46_spill] sm:$0xff]  ;;  %v20528_v58 = vld [vmem:[#allocation36_spill] sm:$0xff] }
 0xa11   :  { %10566 = vmatprep.subr.bf16.mxu0 %v18349_v53  ;;  %10607 = vmatprep.subr.bf16.mxu1 %v18352_v9  ;;  %v20529_v53 = vld [vmem:[#allocation37_spill] sm:$0xff]  ;;  %v20530_v9 = vld [vmem:[#allocation42_spill] sm:$0xff] }
 0xa14   :  { %10567 = vmatpush1.bf16.msra.mxu0 %v18367_v17  ;;  %10608 = vmatpush1.bf16.msra.mxu1 %v18371_v56  ;;  %v20531_v17 = vld [vmem:[#allocation51_spill] sm:$0xff]  ;;  %v20532_v56 = vld [vmem:[#allocation38_spill] sm:$0xff] }
 0xa15   :  { %10568 = vmatprep.subr.bf16.mxu0 %v18373_v31  ;;  %10609 = vmatprep.subr.bf16.mxu1 %v18376_v55  ;;  %v20533_v31 = vld [vmem:[#allocation44_spill] sm:$0xff]  ;;  %v20534_v55 = vld [vmem:[#allocation45_spill] sm:$0xff] }
 0xa18   :  { %10569 = vmatpush1.bf16.msra.mxu0 %v18391_v42  ;;  %10610 = vmatpush1.bf16.msra.mxu1 %v18395_v3  ;;  %v20535_v42 = vld [vmem:[#allocation47_spill] sm:$0xff]  ;;  %v20536_v3 = vld [vmem:[#allocation49_spill] sm:$0xff] }
 0xa19   :  { %10570 = vmatprep.subr.bf16.mxu0 %v18397_v52  ;;  %10611 = vmatprep.subr.bf16.mxu1 %v18400_v16  ;;  %v20537_v52 = vld [vmem:[#allocation62_spill] sm:$0xff] }
 0xa1a   :  { %v20538_v16 = vld [vmem:[#allocation50_spill] sm:$0xff] }
 0xa1c   :  { %10571 = vmatpush1.bf16.msra.mxu0 %v18415_v54  ;;  %10612 = vmatpush1.bf16.msra.mxu1 %v18419_v30  ;;  %v20539_v54 = vld [vmem:[#allocation58_spill] sm:$0xff]  ;;  %v20540_v30 = vld [vmem:[#allocation61_spill] sm:$0xff] }
 0xa1d   :  { %10572 = vmatprep.subr.bf16.mxu0 %v18421_v2  ;;  %10613 = vmatprep.subr.bf16.mxu1 %v18424_v5  ;;  %v20541_v2 = vld [vmem:[#allocation67_spill] sm:$0xff]  ;;  %v20542_v5 = vld [vmem:[#allocation60_spill] sm:$0xff] }
 0xa20   :  { %10573 = vmatpush1.bf16.msra.mxu0 %v18439_v7  ;;  %10614 = vmatpush1.bf16.msra.mxu1 %v18443_v62  ;;  %v20543_v7 = vld [vmem:[#allocation63_spill] sm:$0xff] }
 0xa21   :  { %10574 = vmatprep.subr.bf16.mxu0 %v18445_v8  ;;  %10615 = vmatprep.subr.bf16.mxu1 %v18448_v32  ;;  %v20544_v32 = vld [vmem:[#allocation22_spill] sm:$0xff] }
 0xa24   :  { %10575 = vmatpush1.bf16.msra.mxu0 %v18451_v48  ;;  %10616 = vmatpush1.bf16.msra.mxu1 %v18455_v12  ;;  %v20545_v12 = vld [vmem:[#allocation23_spill] sm:$0xff] }
 0xa25   :  { %10576 = vmatprep.subr.bf16.mxu0 %v18469_v15  ;;  %10617 = vmatprep.subr.bf16.mxu1 %v18478_v60  ;;  %v20546_v60 = vld [vmem:[#allocation24_spill] sm:$0xff] }
 0xa28   :  { %10577 = vmatpush1.bf16.msra.mxu0 %v18474_v39  ;;  %10618 = vmatpush1.bf16.msra.mxu1 %v18476_v44 }
 0xa29   :  { %10578 = vmatprep.subr.bf16.mxu0 %v18493_v6  ;;  %10619 = vmatprep.subr.bf16.mxu1 %v18502_v63 }
 0xa2c   :  { %10579 = vmatpush1.bf16.msra.mxu0 %v18498_v47  ;;  %10620 = vmatpush1.bf16.msra.mxu1 %v20517_v25  ;;  %v20547_v47 = vld [vmem:[#allocation25_spill] sm:$0xff] }
 0xa2d   :  { %10580 = vmatprep.subr.bf16.mxu0 %v20518_v50  ;;  %10621 = vmatprep.subr.bf16.mxu1 %v20519_v23 }
 0xa30   :  { %10581 = vmatpush1.bf16.msra.mxu0 %v20520_v21  ;;  %10622 = vmatpush1.bf16.msra.mxu1 %v20521_v27 }
 0xa31   :  { %10582 = vmatprep.subr.bf16.mxu0 %v20522_v0  ;;  %10623 = vmatprep.subr.bf16.mxu1 %v20523_v59 }
 0xa34   :  { %10583 = vmatpush1.bf16.msra.mxu0 %v20524_v10  ;;  %10624 = vmatpush1.bf16.msra.mxu1 %v20525_v4 }
 0xa35   :  { %10584 = vmatprep.subr.bf16.mxu0 %v20526_v38  ;;  %10625 = vmatprep.subr.bf16.mxu1 %v20527_v19  ;;  %v20548_v38 = vld [vmem:[#allocation71_spill] sm:$0xff] }
 0xa38   :  { %10585 = vmatpush1.bf16.msra.mxu0 %v20528_v58  ;;  %10626 = vmatpush1.bf16.msra.mxu1 %v20529_v53  ;;  %v20549_v58 = vld [vmem:[#allocation72_spill] sm:$0xff] }
 0xa39   :  { %10586 = vmatprep.subr.bf16.mxu0 %v20530_v9  ;;  %10627 = vmatprep.subr.bf16.mxu1 %v20531_v17 }
 0xa3c   :  { %10587 = vmatpush1.bf16.msra.mxu0 %v20532_v56  ;;  %10628 = vmatpush1.bf16.msra.mxu1 %v20533_v31  ;;  %v20550_v56 = vld [vmem:[#allocation73_spill] sm:$0xff] }
 0xa3d   :  { %10588 = vmatprep.subr.bf16.mxu0 %v20534_v55  ;;  %10629 = vmatprep.subr.bf16.mxu1 %v20535_v42  ;;  %v20551_v55 = vld [vmem:[#allocation75_spill] sm:$0xff] }
 0xa40   :  { %10589 = vmatpush1.bf16.msra.mxu0 %v20536_v3  ;;  %10630 = vmatpush1.bf16.msra.mxu1 %v20537_v52 }
 0xa41   :  { %10590 = vmatprep.subr.bf16.mxu0 %v20538_v16  ;;  %10631 = vmatprep.subr.bf16.mxu1 %v20539_v54 }
 0xa44   :  { %10591 = vmatpush1.bf16.msra.mxu0 %v20540_v30  ;;  %10632 = vmatpush1.bf16.msra.mxu1 %v20541_v2 }
 0xa45   :  { %10642 = vmatprep.subr.bf16.mxu0 %v20542_v5  ;;  %10683 = vmatprep.subr.bf16.mxu1 %v20543_v7 }
 0xa9a   :  { %v9592_v62 = vpop.f32.mrb[88].mxu0  ;;  %v9633_v8 = vpop.f32.mrb[116].mxu1 }
 0xa9b   :  { %v9722_v48 = vadd.f32 %v9592_v62, %v20544_v32  ;;  %v9724_v15 = vadd.f32 %v9633_v8, %v20545_v12  ;;  %v9594_v39 = vpop.f32.mrb[89].mxu0  ;;  %v9635_v44 = vpop.f32.mrb[117].mxu1 }
 0xa9c   :  { %v9723_v6 = vadd.f32 %v9594_v39, %v20546_v60  ;;  %v9725_v63 = vadd.f32 %v9635_v44, %v20547_v47  ;;  %v9596_v22 = vpop.f32.mrb[90].mxu0  ;;  %v9637_v26 = vpop.f32.mrb[118].mxu1 }
 0xa9d   :  { %v9597_v24 = vpop.f32.mrb[91].mxu0  ;;  %v9638_v49 = vpop.f32.mrb[119].mxu1  ;;  %v13189_v33 = vmul.f32 -1.442695, %v9722_v48  ;;  %v13191_v14 = vmul.f32 -1.442695, %v9724_v15 }
 0xa9e   :  { %v13190_v37 = vmul.f32 -1.442695, %v9723_v6  ;;  %v13192_v20 = vmul.f32 -1.442695, %v9725_v63 }
 0xa9f   :  { %13966 = vpow2.f32 %v13189_v33 }
 0xaa0   :  { %13968 = vpow2.f32 %v13191_v14 }
 0xaa1   :  { %13970 = vpow2.f32 %v13190_v37 }
 0xaa2   :  { %13972 = vpow2.f32 %v13192_v20 }
 0xaa9   :  { %v13967_v43 = vpop.eup %13966 }
 0xaaa   :  { %v13969_v25 = vpop.eup %13968  ;;  %v9748_v21 = vadd.f32 1.0, %v13967_v43  ;;  %v20552_v43 = vld [vmem:[#allocation74_spill] sm:$0xff] }
 0xaab   :  { %v13971_v50 = vpop.eup %13970  ;;  %v9750_v27 = vadd.f32 1.0, %v13969_v25  ;;  %v20553_v25 = vld [vmem:[#allocation78_spill] sm:$0xff] }
 0xaac   :  { %v13973_v23 = vpop.eup %13972  ;;  %v9749_v0 = vadd.f32 1.0, %v13971_v50  ;;  %13974 = vrcp.f32 %v9748_v21  ;;  %v20554_v50 = vld [vmem:[#allocation76_spill] sm:$0xff]  ;;  %v20556_v21 = vld [vmem:[#allocation79_spill] sm:$0xff] }
 0xaad   :  { %v9751_v59 = vadd.f32 1.0, %v13973_v23  ;;  %13976 = vrcp.f32 %v9750_v27  ;;  %v20555_v23 = vld [vmem:[#allocation77_spill] sm:$0xff]  ;;  %v20559_v27 = vld [vmem:[#allocation83_spill] sm:$0xff] }
 0xaae   :  { %13978 = vrcp.f32 %v9749_v0  ;;  %v20563_v0 = vld [vmem:[#allocation17_spill] sm:$0xff] }
 0xaaf   :  { %13980 = vrcp.f32 %v9751_v59  ;;  %v20564_v59 = vld [vmem:[#allocation55_spill] sm:$0xff] }
 0xab6   :  { %v13975_v5 = vpop.eup %13974 }
 0xab7   :  { %v13977_v7 = vpop.eup %13976 }
 0xab8   :  { %v13979_v62 = vpop.eup %13978  ;;  %v9768_v12 = vmul.f32 %v13977_v7, %v18684_v29  ;;  %v20584_v7 = vld [vmem:[#allocation103_spill] sm:$0xff] }
 0xab9   :  { %v13981_v8 = vpop.eup %13980 }
 0xaba   :  { %v9769_v44 = vmul.f32 %v13981_v8, %v18686_v41  ;;  %v20586_v8 = vld [vmem:[#allocation105_spill] sm:$0xff] }
 0xada   :  { %v9674_v10 = vpop.f32.mrb[92].mxu0  ;;  %v9715_v4 = vpop.f32.mrb[120].mxu1 }
 0xadb   :  { %v9726_v19 = vadd.f32 %v9674_v10, %v20548_v38  ;;  %v9728_v53 = vadd.f32 %v9715_v4, %v20549_v58  ;;  %v9676_v9 = vpop.f32.mrb[93].mxu0  ;;  %v9717_v17 = vpop.f32.mrb[121].mxu1  ;;  %v20565_v10 = vld [vmem:[#allocation56_spill] sm:$0xff]  ;;  %v20566_v4 = vld [vmem:[#allocation57_spill] sm:$0xff]  ;;  %v20567_v38 = vld [vmem:[#allocation59_spill] sm:$0xff] }
 0xadc   :  { %v9727_v31 = vadd.f32 %v9676_v9, %v20550_v56  ;;  %v9729_v42 = vadd.f32 %v9717_v17, %v20551_v55  ;;  %v9678_v3 = vpop.f32.mrb[94].mxu0  ;;  %v9719_v52 = vpop.f32.mrb[122].mxu1  ;;  %v20569_v58 = vld [vmem:[#allocation94_spill] sm:$0xff]  ;;  %v20571_v9 = vld [vmem:[#allocation96_spill] sm:$0xff]  ;;  %v20572_v17 = vld [vmem:[#allocation97_spill] sm:$0xff] }
 0xadd   :  { %v13193_v16 = vmul.f32 -1.442695, %v9726_v19  ;;  %13982 = vtanh.f32 %v9728_v53  ;;  %v9679_v54 = vpop.f32.mrb[95].mxu0  ;;  %v9720_v30 = vpop.f32.mrb[123].mxu1  ;;  %v20568_v19 = vld [vmem:[#allocation93_spill] sm:$0xff]  ;;  %v20570_v53 = vld [vmem:[#allocation95_spill] sm:$0xff] }
 0xade   :  { %v13194_v2 = vmul.f32 -1.442695, %v9727_v31  ;;  %13984 = vtanh.f32 %v9729_v42  ;;  %v20573_v56 = vld [vmem:[#allocation6_spill] sm:$0xff]  ;;  %v20574_v31 = vld [vmem:[#allocation7_spill] sm:$0xff]  ;;  %v20575_v55 = vld [vmem:[#allocation8_spill] sm:$0xff] }
 0xadf   :  { %13986 = vpow2.f32 %v13193_v16  ;;  %v20576_v42 = vld [vmem:[#allocation9_spill] sm:$0xff]  ;;  %v20577_v3 = vld [vmem:[#allocation39_spill] sm:$0xff]  ;;  %v20578_v52 = vld [vmem:[#allocation40_spill] sm:$0xff] }
 0xae0   :  { %13988 = vpow2.f32 %v13194_v2  ;;  %v20579_v16 = vld [vmem:[#allocation41_spill] sm:$0xff]  ;;  %v20580_v54 = vld [vmem:[#allocation43_spill] sm:$0xff]  ;;  %v20581_v30 = vld [vmem:[#allocation100_spill] sm:$0xff] }
 0xae1   :  { %v20582_v2 = vld [vmem:[#allocation101_spill] sm:$0xff] }
 0xae7   :  { %v13983_v32 = vpop.eup %13982 }
 0xae8   :  { %v13985_v48 = vpop.eup %13984  ;;  %v9770_v15 = vmul.f32 %v13983_v32, %v13975_v5  ;;  %v20583_v5 = vld [vmem:[#allocation102_spill] sm:$0xff] }
 0xae9   :  { %v13987_v39 = vpop.eup %13986  ;;  %v9771_v60 = vmul.f32 %v13985_v48, %v13979_v62  ;;  %v20585_v62 = vld [vmem:[#allocation104_spill] sm:$0xff]  ;;  %v20587_v32 = vld [vmem:[#allocation106_spill] sm:$0xff]  ;;  %v20588_v48 = vld [vmem:[#allocation107_spill] sm:$0xff] }
 0xaea   :  { %v13989_v6 = vpop.eup %13988  ;;  %v9752_v47 = vadd.f32 1.0, %v13987_v39  ;;  %v19142_v63 = vadd.f32 %v9770_v15, %v9768_v12  ;;  %v20589_v12 = vld [vmem:[#allocation108_spill] sm:$0xff]  ;;  %v20590_v15 = vld [vmem:[#allocation109_spill] sm:$0xff]  ;;  %v20591_v39 = vld [vmem:[#allocation110_spill] sm:$0xff] }
 0xaeb   :  { %v9753_v22 = vadd.f32 1.0, %v13989_v6  ;;  %v19144_v26 = vadd.f32 %v9771_v60, %v9769_v44  ;;  %v20592_v44 = vld [vmem:[#allocation111_spill] sm:$0xff]  ;;  %v20593_v60 = vld [vmem:[#allocation112_spill] sm:$0xff]  ;;  %v20594_v6 = vld [vmem:[#allocation113_spill] sm:$0xff] }
 0xaec   :  { %13990 = vrcp.f32 %v9752_v47  ;;  %v20595_v47 = vld [vmem:[#allocation114_spill] sm:$0xff] }
 0xaed   :  { %13992 = vtanh.f32 %v19142_v63 }
 0xaee   :  { %13994 = vrcp.f32 %v9753_v22  ;;  %v20596_v22 = vld [vmem:[#allocation115_spill] sm:$0xff] }
 0xaef   :  { %13996 = vtanh.f32 %v19144_v26 }
 0xaf6   :  { %v13991_v24 = vpop.eup %13990 }
 0xaf7   :  { %v13993_v29 = vpop.eup %13992 }
 0xaf8   :  { %v13995_v49 = vpop.eup %13994  ;;  %v19148_v14 = vmul.f32 %v13993_v29, %v13991_v24  ;;  %v20597_v24 = vld [vmem:[#allocation116_spill] sm:$0xff]  ;;  %v20598_v29 = vld [vmem:[#allocation117_spill] sm:$0xff] }
 0xaf9   :  { %v13997_v33 = vpop.eup %13996 }
 0xafa   :  { %v19150_v41 = vmul.f32 %v13997_v33, %v13995_v49  ;;  %v19156_v20 = vpack.c.bf16 %v19148_v14, %v19148_v14  ;;  %v20599_v49 = vld [vmem:[#allocation118_spill] sm:$0xff] }
 0xafc   :  { %v9791_v37 = vpack.c.bf16 %v19150_v41, %v19150_v41 }
 0xafe   :  { %10592 = vmatprep.mubr.bf16.mxu0 %v9791_v37  ;;  %10633 = vmatprep.mubr.bf16.mxu1 %v9791_v37 }
 0xaff   :  { %10593 = vmatmul.mubr.bf16.vlgmr.msra.gmra.mrb[96].mxu0 %v19156_v20  ;;  %10634 = vmatmul.mubr.bf16.vlgmr.msra.gmra.mrb[124].mxu1 %v19156_v20 }
 0xb00   :  { %10643 = vmatpush1.bf16.msra.mxu0 %v18666_v46  ;;  %10684 = vmatpush1.bf16.msra.mxu1 %v18668_v36  ;;  %v20557_v46 = vld [vmem:[#allocation84_spill] sm:$0xff]  ;;  %v20558_v36 = vld [vmem:[#allocation87_spill] sm:$0xff] }
 0xb01   :  { %10674 = vmatprep.mubr.bf16.mxu0 %v9791_v37  ;;  %10715 = vmatprep.mubr.bf16.mxu1 %v9791_v37 }
 0xb02   :  { %10644 = vmatprep.subr.bf16.mxu0 %v18715_v1  ;;  %10685 = vmatprep.subr.bf16.mxu1 %v18717_v57  ;;  %v20560_v1 = vld [vmem:[#allocation14_spill] sm:$0xff]  ;;  %v20561_v57 = vld [vmem:[#allocation15_spill] sm:$0xff] }
 0xb04   :  { %10645 = vmatpush1.bf16.msra.mxu0 %v18732_v40  ;;  %10686 = vmatpush1.bf16.msra.mxu1 %v20552_v43  ;;  %v20562_v40 = vld [vmem:[#allocation16_spill] sm:$0xff]  ;;  %v10807_v43 = vld [vmem:[%s19769_s11 + $0x68] sm:$0xff] }
 0xb05   :  { %10646 = vmatprep.subr.bf16.mxu0 %v20553_v25  ;;  %10687 = vmatprep.subr.bf16.mxu1 %v20554_v50  ;;  %v10810_v25 = vld [vmem:[%s19769_s11 + $0x80] sm:$0xff] }
 0xb08   :  { %10647 = vmatpush1.bf16.msra.mxu0 %v20555_v23  ;;  %10688 = vmatpush1.bf16.msra.mxu1 %v20556_v21  ;;  %v10814_v23 = vld [vmem:[%s19769_s11 + $0xa0] sm:$0xff]  ;;  %v10811_v21 = vld [vmem:[%s19769_s11 + $0x88] sm:$0xff] }
 0xb09   :  { %10648 = vmatprep.subr.bf16.mxu0 %v20557_v46  ;;  %10689 = vmatprep.subr.bf16.mxu1 %v20558_v36  ;;  %v10815_v46 = vld [vmem:[%s19769_s11 + $0xa8] sm:$0xff] }
 0xb0c   :  { %10649 = vmatpush1.bf16.msra.mxu0 %v20559_v27  ;;  %10690 = vmatpush1.bf16.msra.mxu1 %v20560_v1  ;;  %v13346_v1 = vcombine.high %v10810_v25, %v10814_v23 }
 0xb0d   :  { %10650 = vmatprep.subr.bf16.mxu0 %v20561_v57  ;;  %10691 = vmatprep.subr.bf16.mxu1 %v20562_v40  ;;  %v13348_v57 = vcombine.high %v10811_v21, %v10815_v46  ;;  %v10818_v40 = vld [vmem:[%s19769_s11 + $0xc0] sm:$0xff] }
 0xb10   :  { %10651 = vmatpush1.bf16.msra.mxu0 %v20563_v0  ;;  %10692 = vmatpush1.bf16.msra.mxu1 %v20564_v59  ;;  %v10822_v0 = vld [vmem:[%s19769_s11 + $0xe0] sm:$0xff]  ;;  %v10819_v59 = vld [vmem:[%s19769_s11 + $0xc8] sm:$0xff] }
 0xb11   :  { %10652 = vmatprep.subr.bf16.mxu0 %v20565_v10  ;;  %10693 = vmatprep.subr.bf16.mxu1 %v20566_v4  ;;  %v10823_v10 = vld [vmem:[%s19769_s11 + $0xe8] sm:$0xff]  ;;  %v13345_v4 = vcombine.low %v10810_v25, %v10814_v23  ;;  %v10870_v25 = vld [vmem:[%s19769_s11 + $0x260] sm:$0xff] }
 0xb14   :  { %10653 = vmatpush1.bf16.msra.mxu0 %v20567_v38  ;;  %10694 = vmatpush1.bf16.msra.mxu1 %v20568_v19  ;;  %v13347_v38 = vcombine.low %v10811_v21, %v10815_v46  ;;  %v13354_v19 = vcombine.high %v10818_v40, %v10822_v0  ;;  %v10871_v21 = vld [vmem:[%s19769_s11 + $0x268] sm:$0xff] }
 0xb15   :  { %10654 = vmatprep.subr.bf16.mxu0 %v20569_v58  ;;  %10695 = vmatprep.subr.bf16.mxu1 %v20570_v53  ;;  %v13356_v58 = vcombine.high %v10819_v59, %v10823_v10  ;;  %v10826_v53 = vld [vmem:[%s19769_s11 + $0x100] sm:$0xff] }
 0xb18   :  { %10655 = vmatpush1.bf16.msra.mxu0 %v20571_v9  ;;  %10696 = vmatpush1.bf16.msra.mxu1 %v20572_v17  ;;  %v10830_v9 = vld [vmem:[%s19769_s11 + $0x120] sm:$0xff]  ;;  %v10827_v17 = vld [vmem:[%s19769_s11 + $0x108] sm:$0xff] }
 0xb19   :  { %10656 = vmatprep.subr.bf16.mxu0 %v20573_v56  ;;  %10697 = vmatprep.subr.bf16.mxu1 %v20574_v31  ;;  %v10831_v56 = vld [vmem:[%s19769_s11 + $0x128] sm:$0xff]  ;;  %v13353_v31 = vcombine.low %v10818_v40, %v10822_v0 }
 0xb1a   :  { %v10875_v40 = vld [vmem:[%s19769_s11 + $0x288] sm:$0xff] }
 0xb1c   :  { %10657 = vmatpush1.bf16.msra.mxu0 %v20575_v55  ;;  %10698 = vmatpush1.bf16.msra.mxu1 %v20576_v42  ;;  %v13355_v55 = vcombine.low %v10819_v59, %v10823_v10  ;;  %v13362_v42 = vcombine.high %v10826_v53, %v10830_v9  ;;  %v10879_v59 = vld [vmem:[%s19769_s11 + $0x2a8] sm:$0xff] }
 0xb1d   :  { %10658 = vmatprep.subr.bf16.mxu0 %v20577_v3  ;;  %10699 = vmatprep.subr.bf16.mxu1 %v20578_v52  ;;  %v13364_v3 = vcombine.high %v10827_v17, %v10831_v56  ;;  %v10834_v52 = vld [vmem:[%s19769_s11 + $0x140] sm:$0xff] }
 0xb20   :  { %10659 = vmatpush1.bf16.msra.mxu0 %v20579_v16  ;;  %10700 = vmatpush1.bf16.msra.mxu1 %v20580_v54  ;;  %v10838_v16 = vld [vmem:[%s19769_s11 + $0x160] sm:$0xff]  ;;  %v10835_v54 = vld [vmem:[%s19769_s11 + $0x148] sm:$0xff] }
 0xb21   :  { %10660 = vmatprep.subr.bf16.mxu0 %v20581_v30  ;;  %10701 = vmatprep.subr.bf16.mxu1 %v20582_v2  ;;  %v10839_v30 = vld [vmem:[%s19769_s11 + $0x168] sm:$0xff]  ;;  %v13361_v2 = vcombine.low %v10826_v53, %v10830_v9 }
 0xb22   :  { %v10883_v53 = vld [vmem:[%s19769_s11 + $0x2c8] sm:$0xff] }
 0xb24   :  { %10661 = vmatpush1.bf16.msra.mxu0 %v20583_v5  ;;  %10702 = vmatpush1.bf16.msra.mxu1 %v20584_v7  ;;  %v13363_v5 = vcombine.low %v10827_v17, %v10831_v56  ;;  %v13370_v7 = vcombine.high %v10834_v52, %v10838_v16  ;;  %v10887_v17 = vld [vmem:[%s19769_s11 + $0x2e8] sm:$0xff] }
 0xb25   :  { %10662 = vmatprep.subr.bf16.mxu0 %v20585_v62  ;;  %10703 = vmatprep.subr.bf16.mxu1 %v20586_v8  ;;  %v13372_v62 = vcombine.high %v10835_v54, %v10839_v30  ;;  %v10842_v8 = vld [vmem:[%s19769_s11 + $0x180] sm:$0xff] }
 0xb28   :  { %10663 = vmatpush1.bf16.msra.mxu0 %v20587_v32  ;;  %10704 = vmatpush1.bf16.msra.mxu1 %v20588_v48  ;;  %v10846_v32 = vld [vmem:[%s19769_s11 + $0x1a0] sm:$0xff]  ;;  %v10843_v48 = vld [vmem:[%s19769_s11 + $0x188] sm:$0xff] }
 0xb29   :  { %10664 = vmatprep.subr.bf16.mxu0 %v20589_v12  ;;  %10705 = vmatprep.subr.bf16.mxu1 %v20590_v15  ;;  %v10847_v12 = vld [vmem:[%s19769_s11 + $0x1a8] sm:$0xff]  ;;  %v13369_v15 = vcombine.low %v10834_v52, %v10838_v16 }
 0xb2a   :  { %v10891_v52 = vld [vmem:[%s19769_s11 + $0x308] sm:$0xff] }
 0xb2c   :  { %10665 = vmatpush1.bf16.msra.mxu0 %v20591_v39  ;;  %10706 = vmatpush1.bf16.msra.mxu1 %v20592_v44  ;;  %v13371_v39 = vcombine.low %v10835_v54, %v10839_v30  ;;  %v13378_v44 = vcombine.high %v10842_v8, %v10846_v32  ;;  %v10895_v54 = vld [vmem:[%s19769_s11 + $0x328] sm:$0xff] }
 0xb2d   :  { %10666 = vmatprep.subr.bf16.mxu0 %v20593_v60  ;;  %10707 = vmatprep.subr.bf16.mxu1 %v20594_v6  ;;  %v13380_v60 = vcombine.high %v10843_v48, %v10847_v12  ;;  %v10850_v6 = vld [vmem:[%s19769_s11 + $0x1c0] sm:$0xff] }
 0xb30   :  { %10667 = vmatpush1.bf16.msra.mxu0 %v20595_v47  ;;  %10708 = vmatpush1.bf16.msra.mxu1 %v20596_v22  ;;  %v10854_v47 = vld [vmem:[%s19769_s11 + $0x1e0] sm:$0xff]  ;;  %v10851_v22 = vld [vmem:[%s19769_s11 + $0x1c8] sm:$0xff] }
 0xb31   :  { %10668 = vmatprep.subr.bf16.mxu0 %v20597_v24  ;;  %10709 = vmatprep.subr.bf16.mxu1 %v20598_v29  ;;  %v10855_v24 = vld [vmem:[%s19769_s11 + $0x1e8] sm:$0xff]  ;;  %v13377_v29 = vcombine.low %v10842_v8, %v10846_v32 }
 0xb32   :  { %v10899_v8 = vld [vmem:[%s19769_s11 + $0x348] sm:$0xff] }
 0xb34   :  { %10669 = vmatpush1.bf16.msra.mxu0 %v20599_v49  ;;  %10710 = vmatpush1.bf16.msra.mxu1 %v19022_v18  ;;  %v10802_v18 = vld [vmem:[%s19769_s11 + $0x40] sm:$0xff]  ;;  %v13379_v49 = vcombine.low %v10843_v48, %v10847_v12  ;;  %v10903_v12 = vld [vmem:[%s19769_s11 + $0x368] sm:$0xff] }
 0xb35   :  { %10670 = vmatprep.subr.bf16.mxu0 %v19026_v61  ;;  %10711 = vmatprep.subr.bf16.mxu1 %v19028_v35  ;;  %v10794_v61 = vld [vmem:[%s19769_s11] sm:$0xff] }
 0xb36   :  { %v10798_v35 = vld [vmem:[%s19769_s11 + $0x20] sm:$0xff] }
 0xb38   :  { %10671 = vmatpush1.bf16.msra.mxu0 %v19044_v34  ;;  %10712 = vmatpush1.bf16.msra.mxu1 %v19046_v51  ;;  %v10806_v34 = vld [vmem:[%s19769_s11 + $0x60] sm:$0xff] }
 0xb39   :  { %10672 = vmatprep.subr.bf16.mxu0 %v19050_v45  ;;  %10713 = vmatprep.subr.bf16.mxu1 %v19052_v13  ;;  %v10795_v45 = vld [vmem:[%s19769_s11 + $0x8] sm:$0xff]  ;;  %v13329_v13 = vcombine.low %v10794_v61, %v10798_v35  ;;  %v13338_v37 = vcombine.high %v10802_v18, %v10806_v34  ;;  %v13337_v36 = vcombine.low %v10802_v18, %v10806_v34 }
 0xb3a   :  { %v10859_v18 = vld [vmem:[%s19769_s11 + $0x208] sm:$0xff] }
 0xb3c   :  { %10673 = vmatpush1.bf16.msra.mxu0 %v19056_v11  ;;  %10714 = vmatpush1.bf16.msra.mxu1 %v19058_v28  ;;  %v13330_v11 = vcombine.high %v10794_v61, %v10798_v35  ;;  %v10799_v28 = vld [vmem:[%s19769_s11 + $0x28] sm:$0xff]  ;;  %v13386_v61 = vcombine.high %v10850_v6, %v10854_v47  ;;  %v13388_v35 = vcombine.high %v10851_v22, %v10855_v24 }
 0xb3d   :  { %v13331_v51 = vcombine.low %v10795_v45, %v10799_v28  ;;  %v13332_v33 = vcombine.high %v10795_v45, %v10799_v28  ;;  %v13385_v45 = vcombine.low %v10850_v6, %v10854_v47  ;;  %v10862_v28 = vld [vmem:[%s19769_s11 + $0x220] sm:$0xff]  ;;  %v10907_v47 = vld [vmem:[%s19769_s11 + $0x388] sm:$0xff] }
 0xb3e   :  { %11562 = vmatprep.subr.bf16.mxu0 %v13330_v11  ;;  %v10858_v11 = vld [vmem:[%s19769_s11 + $0x200] sm:$0xff] }
 0xb3f   :  { %10675 = vmatmul.mubr.bf16.vlgmr.msra.gmra.mrb[100].mxu0 %v19156_v20  ;;  %10716 = vmatmul.mubr.bf16.vlgmr.msra.gmra.mrb[128].mxu1 %v19156_v20  ;;  %v10803_v20 = vld [vmem:[%s19769_s11 + $0x48] sm:$0xff]  ;;  %v13394_v34 = vcombine.high %v10858_v11, %v10862_v28 }
 0xb40   :  { %v13340_v50 = vcombine.high %v10803_v20, %v10807_v43  ;;  %11603 = vmatprep.subr.bf16.mxu1 %v13332_v33  ;;  %11563 = vmatpush1.bf16.msra.mxu0 %v13329_v13  ;;  %v13339_v27 = vcombine.low %v10803_v20, %v10807_v43  ;;  %v13387_v13 = vcombine.low %v10851_v22, %v10855_v24  ;;  %v10866_v43 = vld [vmem:[%s19769_s11 + $0x240] sm:$0xff]  ;;  %v10911_v22 = vld [vmem:[%s19769_s11 + $0x3a8] sm:$0xff] }
 0xb41   :  { %11604 = vmatpush1.bf16.msra.mxu1 %v13331_v51  ;;  %11564 = vmatprep.subr.bf16.mxu0 %v13338_v37  ;;  %v10863_v51 = vld [vmem:[%s19769_s11 + $0x228] sm:$0xff]  ;;  %v13393_v33 = vcombine.low %v10858_v11, %v10862_v28  ;;  %v13402_v23 = vcombine.high %v10866_v43, %v10870_v25  ;;  %v13401_v46 = vcombine.low %v10866_v43, %v10870_v25  ;;  %v10914_v24 = vld [vmem:[%s19769_s11 + $0x3c0] sm:$0xff]  ;;  %v19436_v43 = vld [vmem:[%s19769_s11 + $0x38] sm:$0xff] }
 0xb42   :  { %11605 = vmatprep.subr.bf16.mxu1 %v13340_v50  ;;  %v13395_v37 = vcombine.low %v10859_v18, %v10863_v51  ;;  %v13396_v20 = vcombine.high %v10859_v18, %v10863_v51  ;;  %v10867_v50 = vld [vmem:[%s19769_s11 + $0x248] sm:$0xff]  ;;  %v19419_v51 = vld [vmem:[%s19769_s11 + $0x10] sm:$0xff] }
 0xb44   :  { %11565 = vmatpush1.bf16.msra.mxu0 %v13337_v36  ;;  %v13403_v36 = vcombine.low %v10867_v50, %v10871_v21 }
 0xb45   :  { %11606 = vmatpush1.bf16.msra.mxu1 %v13339_v27  ;;  %11566 = vmatprep.subr.bf16.mxu0 %v13346_v1  ;;  %v13404_v27 = vcombine.high %v10867_v50, %v10871_v21  ;;  %v10874_v1 = vld [vmem:[%s19769_s11 + $0x280] sm:$0xff] }
 0xb46   :  { %11607 = vmatprep.subr.bf16.mxu1 %v13348_v57  ;;  %v10878_v57 = vld [vmem:[%s19769_s11 + $0x2a0] sm:$0xff] }
 0xb47   :  { %v13410_v0 = vcombine.high %v10874_v1, %v10878_v57  ;;  %v13409_v10 = vcombine.low %v10874_v1, %v10878_v57  ;;  %v20601_v1 = vld [vmem:[#allocation26_spill] sm:$0xff] }
 0xb48   :  { %11567 = vmatpush1.bf16.msra.mxu0 %v13345_v4  ;;  %v13411_v4 = vcombine.low %v10875_v40, %v10879_v59 }
 0xb49   :  { %11608 = vmatpush1.bf16.msra.mxu1 %v13347_v38  ;;  %11568 = vmatprep.subr.bf16.mxu0 %v13354_v19  ;;  %v13412_v38 = vcombine.high %v10875_v40, %v10879_v59  ;;  %v10882_v19 = vld [vmem:[%s19769_s11 + $0x2c0] sm:$0xff]  ;;  %v20602_v59 = vld [vmem:[#allocation31_spill] sm:$0xff] }
 0xb4a   :  { %11609 = vmatprep.subr.bf16.mxu1 %v13356_v58  ;;  %v10886_v58 = vld [vmem:[%s19769_s11 + $0x2e0] sm:$0xff] }
 0xb4b   :  { %v13418_v9 = vcombine.high %v10882_v19, %v10886_v58  ;;  %v13417_v56 = vcombine.low %v10882_v19, %v10886_v58 }
 0xb4c   :  { %11569 = vmatpush1.bf16.msra.mxu0 %v13353_v31  ;;  %v13419_v31 = vcombine.low %v10883_v53, %v10887_v17 }
 0xb4d   :  { %11610 = vmatpush1.bf16.msra.mxu1 %v13355_v55  ;;  %11570 = vmatprep.subr.bf16.mxu0 %v13362_v42  ;;  %v13420_v55 = vcombine.high %v10883_v53, %v10887_v17  ;;  %v10890_v42 = vld [vmem:[%s19769_s11 + $0x300] sm:$0xff] }
 0xb4e   :  { %11611 = vmatprep.subr.bf16.mxu1 %v13364_v3  ;;  %v10894_v3 = vld [vmem:[%s19769_s11 + $0x320] sm:$0xff] }
 0xb4f   :  { %v13426_v16 = vcombine.high %v10890_v42, %v10894_v3  ;;  %v13425_v30 = vcombine.low %v10890_v42, %v10894_v3 }
 0xb50   :  { %11571 = vmatpush1.bf16.msra.mxu0 %v13361_v2  ;;  %v13427_v2 = vcombine.low %v10891_v52, %v10895_v54 }
 0xb51   :  { %11612 = vmatpush1.bf16.msra.mxu1 %v13363_v5  ;;  %11572 = vmatprep.subr.bf16.mxu0 %v13370_v7  ;;  %v13428_v5 = vcombine.high %v10891_v52, %v10895_v54  ;;  %v10898_v7 = vld [vmem:[%s19769_s11 + $0x340] sm:$0xff] }
 0xb52   :  { %11613 = vmatprep.subr.bf16.mxu1 %v13372_v62  ;;  %v10902_v62 = vld [vmem:[%s19769_s11 + $0x360] sm:$0xff] }
 0xb53   :  { %v13433_v32 = vcombine.low %v10898_v7, %v10902_v62  ;;  %v13434_v48 = vcombine.high %v10898_v7, %v10902_v62 }
 0xb54   :  { %11573 = vmatpush1.bf16.msra.mxu0 %v13369_v15  ;;  %v10906_v15 = vld [vmem:[%s19769_s11 + $0x380] sm:$0xff] }
 0xb55   :  { %11614 = vmatpush1.bf16.msra.mxu1 %v13371_v39  ;;  %11574 = vmatprep.subr.bf16.mxu0 %v13378_v44  ;;  %v10910_v39 = vld [vmem:[%s19769_s11 + $0x3a0] sm:$0xff]  ;;  %v13435_v44 = vcombine.low %v10899_v8, %v10903_v12 }
 0xb56   :  { %11615 = vmatprep.subr.bf16.mxu1 %v13380_v60  ;;  %v13436_v60 = vcombine.high %v10899_v8, %v10903_v12  ;;  %v13442_v6 = vcombine.high %v10906_v15, %v10910_v39  ;;  %v20604_v8 = vld [vmem:[#allocation80_spill] sm:$0xff] }
 0xb58   :  { %11575 = vmatpush1.bf16.msra.mxu0 %v13377_v29  ;;  %v13444_v29 = vcombine.high %v10907_v47, %v10911_v22 }
 0xb59   :  { %11616 = vmatpush1.bf16.msra.mxu1 %v13379_v49  ;;  %11576 = vmatprep.subr.bf16.mxu0 %v13386_v61  ;;  %v10918_v49 = vld [vmem:[%s19769_s11 + $0x3e0] sm:$0xff]  ;;  %v10915_v61 = vld [vmem:[%s19769_s11 + $0x3c8] sm:$0xff] }
 0xb5a   :  { %11617 = vmatprep.subr.bf16.mxu1 %v13388_v35  ;;  %v10919_v35 = vld [vmem:[%s19769_s11 + $0x3e8] sm:$0xff]  ;;  %v13450_v11 = vcombine.high %v10914_v24, %v10918_v49  ;;  %v13449_v18 = vcombine.low %v10914_v24, %v10918_v49 }
 0xb5b   :  { %v13452_v28 = vcombine.high %v10915_v61, %v10919_v35 }
 0xb5c   :  { %11577 = vmatpush1.bf16.msra.mxu0 %v13385_v45  ;;  %v13441_v45 = vcombine.low %v10906_v15, %v10910_v39 }
 0xb5d   :  { %11618 = vmatpush1.bf16.msra.mxu1 %v13387_v13  ;;  %11578 = vmatprep.subr.bf16.mxu0 %v13394_v34  ;;  %v13443_v13 = vcombine.low %v10907_v47, %v10911_v22  ;;  %v13451_v34 = vcombine.low %v10915_v61, %v10919_v35 }
 0xb5e   :  { %11619 = vmatprep.subr.bf16.mxu1 %v13396_v20 }
 0xb60   :  { %11579 = vmatpush1.bf16.msra.mxu0 %v13393_v33  ;;  %v19424_v33 = vld [vmem:[%s19769_s11 + $0x30] sm:$0xff] }
 0xb61   :  { %11620 = vmatpush1.bf16.msra.mxu1 %v13395_v37  ;;  %11580 = vmatprep.subr.bf16.mxu0 %v13402_v23  ;;  %v19429_v37 = vld [vmem:[%s19769_s11 + $0x18] sm:$0xff]  ;;  %v13334_v20 = vcombine.high %v19419_v51, %v19424_v33  ;;  %v13333_v25 = vcombine.low %v19419_v51, %v19424_v33  ;;  %v10824_v51 = vld [vmem:[%s19769_s11 + $0xf0] sm:$0xff] }
 0xb62   :  { %11621 = vmatprep.subr.bf16.mxu1 %v13404_v27  ;;  %v13335_v50 = vcombine.low %v19429_v37, %v19436_v43  ;;  %v13336_v23 = vcombine.high %v19429_v37, %v19436_v43  ;;  %v10821_v33 = vld [vmem:[%s19769_s11 + $0xd8] sm:$0xff] }
 0xb63   :  { %v10825_v37 = vld [vmem:[%s19769_s11 + $0xf8] sm:$0xff] }
 0xb64   :  { %11581 = vmatpush1.bf16.msra.mxu0 %v13401_v46 }
 0xb65   :  { %11622 = vmatpush1.bf16.msra.mxu1 %v13403_v36  ;;  %11582 = vmatprep.subr.bf16.mxu0 %v13410_v0  ;;  %v20600_v36 = vld [vmem:[#allocation29_spill] sm:$0xff] }
 0xb66   :  { %11623 = vmatprep.subr.bf16.mxu1 %v13412_v38 }
 0xb68   :  { %11583 = vmatpush1.bf16.msra.mxu0 %v13409_v10 }
 0xb69   :  { %11624 = vmatpush1.bf16.msra.mxu1 %v13411_v4  ;;  %11584 = vmatprep.subr.bf16.mxu0 %v13418_v9  ;;  %v20603_v4 = vld [vmem:[#allocation27_spill] sm:$0xff] }
 0xb6a   :  { %11625 = vmatprep.subr.bf16.mxu1 %v13420_v55 }
 0xb6c   :  { %11585 = vmatpush1.bf16.msra.mxu0 %v13417_v56 }
 0xb6d   :  { %11626 = vmatpush1.bf16.msra.mxu1 %v13419_v31  ;;  %11586 = vmatprep.subr.bf16.mxu0 %v13426_v16 }
 0xb6e   :  { %11627 = vmatprep.subr.bf16.mxu1 %v13428_v5 }
 0xb70   :  { %11587 = vmatpush1.bf16.msra.mxu0 %v13425_v30 }
 0xb71   :  { %11628 = vmatpush1.bf16.msra.mxu1 %v13427_v2  ;;  %11588 = vmatprep.subr.bf16.mxu0 %v13434_v48  ;;  %v20605_v48 = vld [vmem:[#allocation81_spill] sm:$0xff] }
 0xb72   :  { %11629 = vmatprep.subr.bf16.mxu1 %v13436_v60 }
 0xb74   :  { %11589 = vmatpush1.bf16.msra.mxu0 %v13433_v32 }
 0xb75   :  { %11630 = vmatpush1.bf16.msra.mxu1 %v13435_v44  ;;  %11590 = vmatprep.subr.bf16.mxu0 %v13442_v6  ;;  %v20606_v44 = vld [vmem:[#allocation82_spill] sm:$0xff]  ;;  %v20607_v6 = vld [vmem:[#allocation85_spill] sm:$0xff] }
 0xb76   :  { %11631 = vmatprep.subr.bf16.mxu1 %v13444_v29 }
 0xb78   :  { %11591 = vmatpush1.bf16.msra.mxu0 %v13441_v45 }
 0xb79   :  { %11632 = vmatpush1.bf16.msra.mxu1 %v13443_v13  ;;  %11592 = vmatprep.subr.bf16.mxu0 %v13450_v11 }
 0xb7a   :  { %11633 = vmatprep.subr.bf16.mxu1 %v13452_v28 }
 0xb7c   :  { %11593 = vmatpush1.bf16.msra.mxu0 %v13449_v18 }
 0xb7d   :  { %11634 = vmatpush1.bf16.msra.mxu1 %v13451_v34  ;;  %11644 = vmatprep.subr.bf16.mxu0 %v13334_v20 }
 0xb7e   :  { %11685 = vmatprep.subr.bf16.mxu1 %v13336_v23 }
 0xbd2   :  { %v10594_v21 = vpop.f32.mrb[96].mxu0  ;;  %v10635_v46 = vpop.f32.mrb[124].mxu1 }
 0xbd3   :  { %v10724_v27 = vadd.f32 %v10594_v21, %v20600_v36  ;;  %v10726_v57 = vadd.f32 %v10635_v46, %v20601_v1  ;;  %v10596_v40 = vpop.f32.mrb[97].mxu0  ;;  %v10637_v0 = vpop.f32.mrb[125].mxu1 }
 0xbd4   :  { %v10725_v10 = vadd.f32 %v10596_v40, %v20602_v59  ;;  %v10727_v38 = vadd.f32 %v10637_v0, %v20603_v4  ;;  %v10598_v19 = vpop.f32.mrb[98].mxu0  ;;  %v10639_v58 = vpop.f32.mrb[126].mxu1 }
 0xbd5   :  { %v10599_v53 = vpop.f32.mrb[99].mxu0  ;;  %v10640_v9 = vpop.f32.mrb[127].mxu1  ;;  %v13323_v17 = vmul.f32 -1.442695, %v10724_v27  ;;  %v13325_v56 = vmul.f32 -1.442695, %v10726_v57 }
 0xbd6   :  { %v13324_v31 = vmul.f32 -1.442695, %v10725_v10  ;;  %v13326_v55 = vmul.f32 -1.442695, %v10727_v38  ;;  %v10804_v19 = vld [vmem:[%s19769_s11 + $0x50] sm:$0xff]  ;;  %v10805_v53 = vld [vmem:[%s19769_s11 + $0x58] sm:$0xff] }
 0xbd7   :  { %13998 = vpow2.f32 %v13323_v17  ;;  %v10808_v58 = vld [vmem:[%s19769_s11 + $0x70] sm:$0xff]  ;;  %v10809_v9 = vld [vmem:[%s19769_s11 + $0x78] sm:$0xff] }
 0xbd8   :  { %14000 = vpow2.f32 %v13325_v56 }
 0xbd9   :  { %14002 = vpow2.f32 %v13324_v31  ;;  %v10812_v31 = vld [vmem:[%s19769_s11 + $0x90] sm:$0xff] }
 0xbda   :  { %14004 = vpow2.f32 %v13326_v55  ;;  %v13342_v55 = vcombine.high %v10804_v19, %v10808_v58 }
 0xbe1   :  { %v13999_v42 = vpop.eup %13998 }
 0xbe2   :  { %v14001_v3 = vpop.eup %14000  ;;  %v10750_v54 = vadd.f32 1.0, %v13999_v42  ;;  %v13344_v42 = vcombine.high %v10805_v53, %v10809_v9 }
 0xbe3   :  { %v14003_v52 = vpop.eup %14002  ;;  %v10752_v30 = vadd.f32 1.0, %v14001_v3  ;;  %v10816_v3 = vld [vmem:[%s19769_s11 + $0xb0] sm:$0xff] }
 0xbe4   :  { %v14005_v16 = vpop.eup %14004  ;;  %v10751_v2 = vadd.f32 1.0, %v14003_v52  ;;  %14006 = vrcp.f32 %v10750_v54  ;;  %v10813_v52 = vld [vmem:[%s19769_s11 + $0x98] sm:$0xff]  ;;  %v13341_v54 = vcombine.low %v10804_v19, %v10808_v58  ;;  %v13349_v43 = vcombine.low %v10812_v31, %v10816_v3 }
 0xbe5   :  { %v10753_v5 = vadd.f32 1.0, %v14005_v16  ;;  %14008 = vrcp.f32 %v10752_v30  ;;  %v10817_v16 = vld [vmem:[%s19769_s11 + $0xb8] sm:$0xff]  ;;  %v13343_v30 = vcombine.low %v10805_v53, %v10809_v9 }
 0xbe6   :  { %14010 = vrcp.f32 %v10751_v2  ;;  %v13350_v2 = vcombine.high %v10812_v31, %v10816_v3  ;;  %v10861_v19 = vld [vmem:[%s19769_s11 + $0x218] sm:$0xff] }
 0xbe7   :  { %14012 = vrcp.f32 %v10753_v5  ;;  %v13352_v5 = vcombine.high %v10813_v52, %v10817_v16  ;;  %v10865_v58 = vld [vmem:[%s19769_s11 + $0x238] sm:$0xff] }
 0xbe8   :  { %v13400_v31 = vcombine.high %v10861_v19, %v10865_v58  ;;  %v10869_v3 = vld [vmem:[%s19769_s11 + $0x258] sm:$0xff] }
 0xbee   :  { %v14007_v45 = vpop.eup %14006 }
 0xbef   :  { %v14009_v13 = vpop.eup %14008 }
 0xbf0   :  { %v14011_v11 = vpop.eup %14010  ;;  %v10770_v20 = vmul.f32 %v14009_v13, %v19142_v63  ;;  %v10848_v13 = vld [vmem:[%s19769_s11 + $0x1b0] sm:$0xff] }
 0xbf1   :  { %v14013_v28 = vpop.eup %14012 }
 0xbf2   :  { %v10771_v46 = vmul.f32 %v14013_v28, %v19144_v26  ;;  %v10849_v28 = vld [vmem:[%s19769_s11 + $0x1b8] sm:$0xff] }
 0xc12   :  { %v10676_v7 = vpop.f32.mrb[100].mxu0  ;;  %v10717_v62 = vpop.f32.mrb[128].mxu1 }
 0xc13   :  { %v10728_v32 = vadd.f32 %v10676_v7, %v20604_v8  ;;  %v10730_v12 = vadd.f32 %v10717_v62, %v20605_v48  ;;  %v10678_v15 = vpop.f32.mrb[101].mxu0  ;;  %v10719_v39 = vpop.f32.mrb[129].mxu1  ;;  %v10820_v7 = vld [vmem:[%s19769_s11 + $0xd0] sm:$0xff]  ;;  %v13360_v62 = vcombine.high %v10821_v33, %v10825_v37  ;;  %v10829_v48 = vld [vmem:[%s19769_s11 + $0x118] sm:$0xff] }
 0xc14   :  { %v10729_v60 = vadd.f32 %v10678_v15, %v20606_v44  ;;  %v10731_v47 = vadd.f32 %v10719_v39, %v20607_v6  ;;  %v10680_v22 = vpop.f32.mrb[102].mxu0  ;;  %v10721_v24 = vpop.f32.mrb[130].mxu1  ;;  %v10828_v8 = vld [vmem:[%s19769_s11 + $0x110] sm:$0xff]  ;;  %v13357_v15 = vcombine.low %v10820_v7, %v10824_v51  ;;  %v13359_v39 = vcombine.low %v10821_v33, %v10825_v37  ;;  %v10881_v33 = vld [vmem:[%s19769_s11 + $0x2b8] sm:$0xff] }
 0xc15   :  { %v13327_v29 = vmul.f32 -1.442695, %v10728_v32  ;;  %14014 = vtanh.f32 %v10730_v12  ;;  %v10681_v49 = vpop.f32.mrb[103].mxu0  ;;  %v10722_v61 = vpop.f32.mrb[131].mxu1  ;;  %v10832_v32 = vld [vmem:[%s19769_s11 + $0x130] sm:$0xff]  ;;  %v10833_v12 = vld [vmem:[%s19769_s11 + $0x138] sm:$0xff] }
 0xc16   :  { %v13328_v35 = vmul.f32 -1.442695, %v10729_v60  ;;  %14016 = vtanh.f32 %v10731_v47  ;;  %v13366_v44 = vcombine.high %v10828_v8, %v10832_v32  ;;  %v13368_v60 = vcombine.high %v10829_v48, %v10833_v12  ;;  %v10836_v6 = vld [vmem:[%s19769_s11 + $0x150] sm:$0xff]  ;;  %v10837_v22 = vld [vmem:[%s19769_s11 + $0x158] sm:$0xff] }
 0xc17   :  { %14018 = vpow2.f32 %v13327_v29  ;;  %v10840_v47 = vld [vmem:[%s19769_s11 + $0x170] sm:$0xff]  ;;  %v10841_v24 = vld [vmem:[%s19769_s11 + $0x178] sm:$0xff]  ;;  %v13365_v29 = vcombine.low %v10828_v8, %v10832_v32  ;;  %v13367_v49 = vcombine.low %v10829_v48, %v10833_v12 }
 0xc18   :  { %14020 = vpow2.f32 %v13328_v35  ;;  %v13374_v61 = vcombine.high %v10836_v6, %v10840_v47  ;;  %v13376_v35 = vcombine.high %v10837_v22, %v10841_v24  ;;  %v10888_v8 = vld [vmem:[%s19769_s11 + $0x2f0] sm:$0xff]  ;;  %v10885_v32 = vld [vmem:[%s19769_s11 + $0x2d8] sm:$0xff] }
 0xc19   :  { %v10889_v48 = vld [vmem:[%s19769_s11 + $0x2f8] sm:$0xff] }
 0xc1f   :  { %v14015_v18 = vpop.eup %14014 }
 0xc20   :  { %v14017_v34 = vpop.eup %14016  ;;  %v10772_v23 = vmul.f32 %v14015_v18, %v14007_v45  ;;  %v10844_v45 = vld [vmem:[%s19769_s11 + $0x190] sm:$0xff]  ;;  %v13373_v18 = vcombine.low %v10836_v6, %v10840_v47  ;;  %v10893_v47 = vld [vmem:[%s19769_s11 + $0x318] sm:$0xff] }
 0xc21   :  { %v14019_v21 = vpop.eup %14018  ;;  %v10773_v36 = vmul.f32 %v14017_v34, %v14011_v11  ;;  %v10845_v11 = vld [vmem:[%s19769_s11 + $0x198] sm:$0xff]  ;;  %v13375_v34 = vcombine.low %v10837_v22, %v10841_v24  ;;  %v10896_v6 = vld [vmem:[%s19769_s11 + $0x330] sm:$0xff] }
 0xc22   :  { %v14021_v27 = vpop.eup %14020  ;;  %v10754_v1 = vadd.f32 1.0, %v14019_v21  ;;  %v19454_v57 = vadd.f32 %v10772_v23, %v10770_v20  ;;  %v13382_v20 = vcombine.high %v10844_v45, %v10848_v13  ;;  %v13384_v23 = vcombine.high %v10845_v11, %v10849_v28  ;;  %v10852_v21 = vld [vmem:[%s19769_s11 + $0x1d0] sm:$0xff]  ;;  %v10897_v22 = vld [vmem:[%s19769_s11 + $0x338] sm:$0xff] }
 0xc23   :  { %v10755_v40 = vadd.f32 1.0, %v14021_v27  ;;  %v19456_v0 = vadd.f32 %v10773_v36, %v10771_v46  ;;  %v10856_v46 = vld [vmem:[%s19769_s11 + $0x1f0] sm:$0xff]  ;;  %v10853_v36 = vld [vmem:[%s19769_s11 + $0x1d8] sm:$0xff] }
 0xc24   :  { %14022 = vrcp.f32 %v10754_v1  ;;  %v10857_v27 = vld [vmem:[%s19769_s11 + $0x1f8] sm:$0xff]  ;;  %v13381_v1 = vcombine.low %v10844_v45, %v10848_v13  ;;  %v13389_v53 = vcombine.low %v10852_v21, %v10856_v46  ;;  %v10904_v45 = vld [vmem:[%s19769_s11 + $0x370] sm:$0xff] }
 0xc25   :  { %14024 = vtanh.f32 %v19454_v57  ;;  %v13391_v9 = vcombine.low %v10853_v36, %v10857_v27  ;;  %v10901_v13 = vld [vmem:[%s19769_s11 + $0x358] sm:$0xff] }
 0xc26   :  { %14026 = vrcp.f32 %v10755_v40  ;;  %v13383_v40 = vcombine.low %v10845_v11, %v10849_v28  ;;  %v10905_v11 = vld [vmem:[%s19769_s11 + $0x378] sm:$0xff] }
 0xc27   :  { %14028 = vtanh.f32 %v19456_v0 }
 0xc2e   :  { %v14023_v59 = vpop.eup %14022 }
 0xc2f   :  { %v14025_v63 = vpop.eup %14024 }
 0xc30   :  { %v14027_v10 = vpop.eup %14026  ;;  %v19460_v38 = vmul.f32 %v14025_v63, %v14023_v59  ;;  %v13390_v59 = vcombine.high %v10852_v21, %v10856_v46  ;;  %v13392_v63 = vcombine.high %v10853_v36, %v10857_v27  ;;  %v10912_v21 = vld [vmem:[%s19769_s11 + $0x3b0] sm:$0xff]  ;;  %v10909_v46 = vld [vmem:[%s19769_s11 + $0x398] sm:$0xff] }
 0xc31   :  { %v14029_v4 = vpop.eup %14028  ;;  %v10913_v36 = vld [vmem:[%s19769_s11 + $0x3b8] sm:$0xff] }
 0xc32   :  { %v19462_v26 = vmul.f32 %v14029_v4, %v14027_v10  ;;  %v19480_v56 = vpack.c.bf16 %v19460_v38, %v19460_v38  ;;  %v10860_v10 = vld [vmem:[%s19769_s11 + $0x210] sm:$0xff] }
 0xc33   :  { %v10864_v4 = vld [vmem:[%s19769_s11 + $0x230] sm:$0xff] }
 0xc34   :  { %v10793_v17 = vpack.c.bf16 %v19462_v26, %v19462_v26 }
 0xc36   :  { %11594 = vmatprep.mubr.bf16.mxu0 %v10793_v17  ;;  %11635 = vmatprep.mubr.bf16.mxu1 %v10793_v17 }
 0xc37   :  { %11595 = vmatmul.mubr.bf16.vlgmr.msra.gmra.mrb[104].mxu0 %v19480_v56  ;;  %11636 = vmatmul.mubr.bf16.vlgmr.msra.gmra.mrb[132].mxu1 %v19480_v56 }
 0xc38   :  { %11645 = vmatpush1.bf16.msra.mxu0 %v13333_v25  ;;  %11686 = vmatpush1.bf16.msra.mxu1 %v13335_v50  ;;  %v13351_v25 = vcombine.low %v10813_v52, %v10817_v16  ;;  %v13358_v50 = vcombine.high %v10820_v7, %v10824_v51  ;;  %v10873_v52 = vld [vmem:[%s19769_s11 + $0x278] sm:$0xff]  ;;  %v13397_v16 = vcombine.low %v10860_v10, %v10864_v4  ;;  %v10880_v7 = vld [vmem:[%s19769_s11 + $0x2b0] sm:$0xff] }
 0xc39   :  { %11676 = vmatprep.mubr.bf16.mxu0 %v10793_v17  ;;  %11717 = vmatprep.mubr.bf16.mxu1 %v10793_v17  ;;  %v13398_v17 = vcombine.high %v10860_v10, %v10864_v4  ;;  %v10877_v51 = vld [vmem:[%s19769_s11 + $0x298] sm:$0xff]  ;;  %v10920_v10 = vld [vmem:[%s19769_s11 + $0x3f0] sm:$0xff] }
 0xc3a   :  { %11646 = vmatprep.subr.bf16.mxu0 %v13342_v55  ;;  %11687 = vmatprep.subr.bf16.mxu1 %v13344_v42  ;;  %v10868_v55 = vld [vmem:[%s19769_s11 + $0x250] sm:$0xff]  ;;  %v10917_v4 = vld [vmem:[%s19769_s11 + $0x3d8] sm:$0xff] }
 0xc3b   :  { %v10872_v42 = vld [vmem:[%s19769_s11 + $0x270] sm:$0xff] }
 0xc3c   :  { %11647 = vmatpush1.bf16.msra.mxu0 %v13341_v54  ;;  %11688 = vmatpush1.bf16.msra.mxu1 %v13343_v30  ;;  %v13399_v54 = vcombine.low %v10861_v19, %v10865_v58  ;;  %v13406_v30 = vcombine.high %v10868_v55, %v10872_v42  ;;  %v13405_v37 = vcombine.low %v10868_v55, %v10872_v42  ;;  %v10921_v19 = vld [vmem:[%s19769_s11 + $0x3f8] sm:$0xff]  ;;  %v13790_v42 = vld [vmem:[%s19771_s12 + $0x40] sm:$0xff]  }
 0xc3d   :  { %11648 = vmatprep.subr.bf16.mxu0 %v13350_v2  ;;  %11689 = vmatprep.subr.bf16.mxu1 %v13352_v5  ;;  %v13408_v2 = vcombine.high %v10869_v3, %v10873_v52  ;;  %v10876_v5 = vld [vmem:[%s19769_s11 + $0x290] sm:$0xff]  ;;  %v13455_v55 = vcombine.low %v10917_v4, %v10921_v19 }
 0xc3e   :  { %v13413_v12 = vcombine.low %v10876_v5, %v10880_v7 }
 0xc40   :  { %11649 = vmatpush1.bf16.msra.mxu0 %v13349_v43  ;;  %11690 = vmatpush1.bf16.msra.mxu1 %v13351_v25  ;;  %v13407_v43 = vcombine.low %v10869_v3, %v10873_v52  ;;  %v13414_v25 = vcombine.high %v10876_v5, %v10880_v7  ;;  %v13791_v3 = vld [vmem:[%s19771_s12] sm:$0xff]   ;;  %v13792_v52 = vld [vmem:[%s19771_s12 + $0x48] sm:$0xff]   ;;  %v13794_v5 = vld [vmem:[%s19771_s12 + $0x50] sm:$0xff]  }
 0xc41   :  { %11650 = vmatprep.subr.bf16.mxu0 %v13358_v50  ;;  %11691 = vmatprep.subr.bf16.mxu1 %v13360_v62  ;;  %v13416_v50 = vcombine.high %v10877_v51, %v10881_v33  ;;  %v10884_v62 = vld [vmem:[%s19769_s11 + $0x2d0] sm:$0xff] }
 0xc42   :  { %v13421_v24 = vcombine.low %v10884_v62, %v10888_v8  ;;  %v13795_v7 = vld [vmem:[%s19771_s12 + $0x10] sm:$0xff]  }
 0xc44   :  { %11651 = vmatpush1.bf16.msra.mxu0 %v13357_v15  ;;  %11692 = vmatpush1.bf16.msra.mxu1 %v13359_v39  ;;  %v13415_v15 = vcombine.low %v10877_v51, %v10881_v33  ;;  %v13422_v39 = vcombine.high %v10884_v62, %v10888_v8  ;;  %v13797_v51 = vld [vmem:[%s19771_s12 + $0x18] sm:$0xff]   ;;  %v13798_v33 = vld [vmem:[%s19771_s12 + $0x60] sm:$0xff]   ;;  %v13803_v62 = vld [vmem:[%s19771_s12 + $0x30] sm:$0xff]  }
 0xc45   :  { %11652 = vmatprep.subr.bf16.mxu0 %v13366_v44  ;;  %11693 = vmatprep.subr.bf16.mxu1 %v13368_v60  ;;  %v13424_v44 = vcombine.high %v10885_v32, %v10889_v48  ;;  %v10892_v60 = vld [vmem:[%s19769_s11 + $0x310] sm:$0xff]  ;;  %v13804_v8 = vld [vmem:[%s19771_s12 + $0x78] sm:$0xff]  }
 0xc46   :  { %v13429_v28 = vcombine.low %v10892_v60, %v10896_v6 }
 0xc48   :  { %11653 = vmatpush1.bf16.msra.mxu0 %v13365_v29  ;;  %11694 = vmatpush1.bf16.msra.mxu1 %v13367_v49  ;;  %v13423_v29 = vcombine.low %v10885_v32, %v10889_v48  ;;  %v13430_v49 = vcombine.high %v10892_v60, %v10896_v6  ;;  %v13805_v32 = vld [vmem:[%s19771_s12 + $0x38] sm:$0xff]   ;;  %v20610_v48 = vld [vmem:[#allocation98_spill] sm:$0xff] }
 0xc49   :  { %11654 = vmatprep.subr.bf16.mxu0 %v13374_v61  ;;  %11695 = vmatprep.subr.bf16.mxu1 %v13376_v35  ;;  %v13432_v61 = vcombine.high %v10893_v47, %v10897_v22  ;;  %v10900_v35 = vld [vmem:[%s19769_s11 + $0x350] sm:$0xff]  ;;  %v20614_v6 = vld [vmem:[#allocation90_spill] sm:$0xff] }
 0xc4a   :  { %v13437_v27 = vcombine.low %v10900_v35, %v10904_v45 }
 0xc4c   :  { %11655 = vmatpush1.bf16.msra.mxu0 %v13373_v18  ;;  %11696 = vmatpush1.bf16.msra.mxu1 %v13375_v34  ;;  %v13431_v18 = vcombine.low %v10893_v47, %v10897_v22  ;;  %v13438_v34 = vcombine.high %v10900_v35, %v10904_v45  ;;  %v20615_v47 = vld [vmem:[#allocation135_spill] sm:$0xff] }
 0xc4d   :  { %11656 = vmatprep.subr.bf16.mxu0 %v13382_v20  ;;  %11697 = vmatprep.subr.bf16.mxu1 %v13384_v23  ;;  %v13440_v20 = vcombine.high %v10901_v13, %v10905_v11  ;;  %v10908_v23 = vld [vmem:[%s19769_s11 + $0x390] sm:$0xff]  ;;  %v11807_v22 = vpack.c.bf16 %v20615_v47, %v20614_v6 }
 0xc4e   :  { %v13445_v58 = vcombine.low %v10908_v23, %v10912_v21 }
 0xc50   :  { %11657 = vmatpush1.bf16.msra.mxu0 %v13381_v1  ;;  %11698 = vmatpush1.bf16.msra.mxu1 %v13383_v40  ;;  %v13439_v1 = vcombine.low %v10901_v13, %v10905_v11  ;;  %v13446_v40 = vcombine.high %v10908_v23, %v10912_v21  ;;  %v20618_v13 = vld [vmem:[#allocation32_spill] sm:$0xff]  ;;  %v20620_v23 = vld [vmem:[#allocation33_spill] sm:$0xff] }
 0xc51   :  { %11658 = vmatprep.subr.bf16.mxu0 %v13390_v59  ;;  %11699 = vmatprep.subr.bf16.mxu1 %v13392_v63  ;;  %v13448_v59 = vcombine.high %v10909_v46, %v10913_v36  ;;  %v10916_v63 = vld [vmem:[%s19769_s11 + $0x3d0] sm:$0xff] }
 0xc54   :  { %11659 = vmatpush1.bf16.msra.mxu0 %v13389_v53  ;;  %11700 = vmatpush1.bf16.msra.mxu1 %v13391_v9  ;;  %v13447_v53 = vcombine.low %v10909_v46, %v10913_v36  ;;  %v13454_v9 = vcombine.high %v10916_v63, %v10920_v10  ;;  %v20621_v46 = vld [vmem:[#allocation30_spill] sm:$0xff] }
 0xc55   :  { %11660 = vmatprep.subr.bf16.mxu0 %v13398_v17  ;;  %11701 = vmatprep.subr.bf16.mxu1 %v13400_v31  ;;  %v13456_v17 = vcombine.high %v10917_v4, %v10921_v19  ;;  %v13453_v31 = vcombine.low %v10916_v63, %v10920_v10 }
 0xc58   :  { %11661 = vmatpush1.bf16.msra.mxu0 %v13397_v16  ;;  %11702 = vmatpush1.bf16.msra.mxu1 %v13399_v54  ;;  %v20608_v16 = vld [vmem:[#allocation99_spill] sm:$0xff] }
 0xc59   :  { %11662 = vmatprep.subr.bf16.mxu0 %v13406_v30  ;;  %11703 = vmatprep.subr.bf16.mxu1 %v13408_v2  ;;  %v20609_v54 = vld [vmem:[#allocation35_spill] sm:$0xff] }
 0xc5a   :  { %v11806_v30 = vpack.c.bf16 %v20609_v54, %v20608_v16  ;;  %v13793_v2 = vld [vmem:[%s19771_s12 + $0x8] sm:$0xff]   ;;  %v20623_v54 = vld [vmem:[#allocation88_spill] sm:$0xff] }
 0xc5c   :  { %11663 = vmatpush1.bf16.msra.mxu0 %v13405_v37  ;;  %11704 = vmatpush1.bf16.msra.mxu1 %v13407_v43  ;;  %v13799_v37 = vld [vmem:[%s19771_s12 + $0x20] sm:$0xff]   ;;  %v13800_v43 = vld [vmem:[%s19771_s12 + $0x68] sm:$0xff]  }
 0xc5d   :  { %11664 = vmatprep.subr.bf16.mxu0 %v13414_v25  ;;  %11705 = vmatprep.subr.bf16.mxu1 %v13416_v50  ;;  %v13801_v25 = vld [vmem:[%s19771_s12 + $0x28] sm:$0xff]   ;;  %v13802_v50 = vld [vmem:[%s19771_s12 + $0x70] sm:$0xff]  }
 0xc60   :  { %11665 = vmatpush1.bf16.msra.mxu0 %v13413_v12  ;;  %11706 = vmatpush1.bf16.msra.mxu1 %v13415_v15  ;;  %v20611_v12 = vld [vmem:[#allocation34_spill] sm:$0xff] }
 0xc61   :  { %11666 = vmatprep.subr.bf16.mxu0 %v13422_v39  ;;  %11707 = vmatprep.subr.bf16.mxu1 %v13424_v44  ;;  %v11805_v15 = vpack.c.bf16 %v20611_v12, %v20610_v48  ;;  %v20612_v39 = vld [vmem:[#allocation92_spill] sm:$0xff] }
 0xc62   :  { %v20613_v44 = vld [vmem:[#allocation136_spill] sm:$0xff] }
 0xc63   :  { %v11808_v60 = vpack.c.bf16 %v20613_v44, %v20612_v39 }
 0xc64   :  { %11667 = vmatpush1.bf16.msra.mxu0 %v13421_v24  ;;  %11708 = vmatpush1.bf16.msra.mxu1 %v13423_v29  ;;  %v20616_v24 = vld [vmem:[#allocation66_spill] sm:$0xff] }
 0xc65   :  { %11668 = vmatprep.subr.bf16.mxu0 %v13430_v49  ;;  %11709 = vmatprep.subr.bf16.mxu1 %v13432_v61  ;;  %v11810_v29 = vpack.c.bf16 %v19150_v41, %v20616_v24  ;;  %v20617_v49 = vld [vmem:[#allocation65_spill] sm:$0xff] }
 0xc66   :  { %v11809_v61 = vpack.c.bf16 %v19148_v14, %v20617_v49 }
 0xc68   :  { %11669 = vmatpush1.bf16.msra.mxu0 %v13429_v28  ;;  %11710 = vmatpush1.bf16.msra.mxu1 %v13431_v18  ;;  %v20619_v28 = vld [vmem:[#allocation28_spill] sm:$0xff] }
 0xc69   :  { %11670 = vmatprep.subr.bf16.mxu0 %v13438_v34  ;;  %11711 = vmatprep.subr.bf16.mxu1 %v13440_v20 }
 0xc6c   :  { %11671 = vmatpush1.bf16.msra.mxu0 %v13437_v27  ;;  %11712 = vmatpush1.bf16.msra.mxu1 %v13439_v1 }
 0xc6d   :  { %11672 = vmatprep.subr.bf16.mxu0 %v13446_v40  ;;  %11713 = vmatprep.subr.bf16.mxu1 %v13448_v59 }
 0xc70   :  { %11673 = vmatpush1.bf16.msra.mxu0 %v13445_v58  ;;  %11714 = vmatpush1.bf16.msra.mxu1 %v13447_v53 }
 0xc71   :  { %11674 = vmatprep.subr.bf16.mxu0 %v13454_v9  ;;  %11715 = vmatprep.subr.bf16.mxu1 %v13456_v17 }
 0xc74   :  { %11675 = vmatpush1.bf16.msra.mxu0 %v13453_v31  ;;  %11716 = vmatpush1.bf16.msra.mxu1 %v13455_v55 }
 0xc75   :  { %13485 = vmatprep.subr.bf16.mxu0 %v13790_v42 }
 0xc77   :  { %11677 = vmatmul.mubr.bf16.vlgmr.msra.gmra.mrb[108].mxu0 %v19480_v56  ;;  %11718 = vmatmul.mubr.bf16.vlgmr.msra.gmra.mrb[136].mxu1 %v19480_v56  ;;  %v13796_v56 = vld [vmem:[%s19771_s12 + $0x58] sm:$0xff]  }
 0xc78   :  { %13486 = vmatpush3.bf16.msra.mxu0 %v13791_v3  ;;  %11980 = vmatprep.mubr.bf16.mxu0 %v11806_v30 }
 0xc79   :  { %13487 = vmatprep.subr.bf16.mxu0 %v13792_v52  ;;  %v20622_v52 = vld [vmem:[#allocation86_spill] sm:$0xff] }
 0xc7c   :  { %13488 = vmatpush3.bf16.msra.mxu0 %v13793_v2 }
 0xc7d   :  { %13489 = vmatprep.subr.bf16.mxu0 %v13794_v5 }
 0xc80   :  { %13490 = vmatpush3.bf16.msra.mxu0 %v13795_v7  ;;  %v20624_v7 = vld [vmem:[#allocation89_spill] sm:$0xff] }
 0xc81   :  { %13491 = vmatprep.subr.bf16.mxu0 %v13796_v56 }
 0xc84   :  { %13492 = vmatpush3.bf16.msra.mxu0 %v13797_v51  ;;  %v20625_v51 = vld [vmem:[#allocation91_spill] sm:$0xff] }
 0xc85   :  { %13493 = vmatprep.subr.bf16.mxu0 %v13798_v33 }
 0xc88   :  { %13494 = vmatpush3.bf16.msra.mxu0 %v13799_v37 }
 0xc89   :  { %13495 = vmatprep.subr.bf16.mxu0 %v13800_v43 }
 0xc8c   :  { %13496 = vmatpush3.bf16.msra.mxu0 %v13801_v25 }
 0xc8d   :  { %13497 = vmatprep.subr.bf16.mxu0 %v13802_v50 }
 0xc90   :  { %13498 = vmatpush3.bf16.msra.mxu0 %v13803_v62 }
 0xc91   :  { %13499 = vmatprep.subr.bf16.mxu0 %v13804_v8 }
 0xc94   :  { %13500 = vmatpush3.bf16.msra.mxu0 %v13805_v32 }
 0xc97   :  { %11981 = vmatmul.mubr.bf16.vlgmr.msra.gmra.mrb[112].mxu0 %v11805_v15 }
 0xc98   :  { %11988 = vmatprep.mubr.bf16.mxu0 %v11808_v60 }
 0xc9f   :  { %11989 = vmatmul.mubr.bf16.gmra.mrb[116].mxu0 %v11807_v22 }
 0xca0   :  { %11996 = vmatprep.mubr.bf16.mxu0 %v11810_v29 }
 0xca7   :  { %11997 = vmatmul.mubr.bf16.gmra.mrb[120].mxu0 %v11809_v61 }
 0xd0a   :  { %v11596_v35 = vpop.f32.mrb[104].mxu0  ;;  %v11637_v45 = vpop.f32.mrb[132].mxu1 }
 0xd0b   :  { %v11726_v11 = vadd.f32 %v11596_v35, %v20618_v13  ;;  %v11728_v18 = vadd.f32 %v11637_v45, %v20619_v28  ;;  %v11598_v34 = vpop.f32.mrb[105].mxu0  ;;  %v11639_v20 = vpop.f32.mrb[133].mxu1 }
 0xd0c   :  { %v11727_v21 = vadd.f32 %v11598_v34, %v20620_v23  ;;  %v11729_v36 = vadd.f32 %v11639_v20, %v20621_v46  ;;  %v11600_v27 = vpop.f32.mrb[106].mxu0  ;;  %v11641_v41 = vpop.f32.mrb[134].mxu1 }
 0xd0d   :  { %v11601_v1 = vpop.f32.mrb[107].mxu0  ;;  %v11642_v40 = vpop.f32.mrb[135].mxu1  ;;  %v13457_v59 = vmul.f32 -1.442695, %v11726_v11  ;;  %v13459_v63 = vmul.f32 -1.442695, %v11728_v18 }
 0xd0e   :  { %v13458_v14 = vmul.f32 -1.442695, %v11727_v21  ;;  %v13460_v10 = vmul.f32 -1.442695, %v11729_v36 }
 0xd0f   :  { %14030 = vpow2.f32 %v13457_v59 }
 0xd10   :  { %14032 = vpow2.f32 %v13459_v63 }
 0xd11   :  { %14034 = vpow2.f32 %v13458_v14 }
 0xd12   :  { %14036 = vpow2.f32 %v13460_v10 }
 0xd19   :  { %v14031_v4 = vpop.eup %14030 }
 0xd1a   :  { %v14033_v19 = vpop.eup %14032  ;;  %v11752_v9 = vadd.f32 1.0, %v14031_v4 }
 0xd1b   :  { %v14035_v58 = vpop.eup %14034  ;;  %v11754_v17 = vadd.f32 1.0, %v14033_v19 }
 0xd1c   :  { %v14037_v53 = vpop.eup %14036  ;;  %v11753_v31 = vadd.f32 1.0, %v14035_v58  ;;  %14038 = vrcp.f32 %v11752_v9 }
 0xd1d   :  { %v11755_v55 = vadd.f32 1.0, %v14037_v53  ;;  %14040 = vrcp.f32 %v11754_v17 }
 0xd1e   :  { %14042 = vrcp.f32 %v11753_v31 }
 0xd1f   :  { %14044 = vrcp.f32 %v11755_v55 }
 0xd26   :  { %v14039_v32 = vpop.eup %14038 }
 0xd27   :  { %v14041_v48 = vpop.eup %14040 }
 0xd28   :  { %v14043_v12 = vpop.eup %14042  ;;  %v11772_v60 = vmul.f32 %v14041_v48, %v19454_v57 }
 0xd29   :  { %v14045_v15 = vpop.eup %14044 }
 0xd2a   :  { %v11773_v22 = vmul.f32 %v14045_v15, %v19456_v0  ;;  %v13463_v0 = vld [vmem:[%s19772_s13] ss:$0 sm:$0xff] }
 0xd4a   :  { %v11678_v42 = vpop.f32.mrb[108].mxu0  ;;  %v11719_v3 = vpop.f32.mrb[136].mxu1 }
 0xd4b   :  { %v11730_v16 = vadd.f32 %v11678_v42, %v20622_v52  ;;  %v11732_v30 = vadd.f32 %v11719_v3, %v20623_v54  ;;  %v11680_v2 = vpop.f32.mrb[109].mxu0  ;;  %v11721_v5 = vpop.f32.mrb[137].mxu1 }
 0xd4c   :  { %v11731_v56 = vadd.f32 %v11680_v2, %v20624_v7  ;;  %v11733_v33 = vadd.f32 %v11721_v5, %v20625_v51  ;;  %v11682_v37 = vpop.f32.mrb[110].mxu0  ;;  %v11723_v43 = vpop.f32.mrb[138].mxu1 }
 0xd4d   :  { %v13461_v25 = vmul.f32 -1.442695, %v11730_v16  ;;  %14046 = vtanh.f32 %v11732_v30  ;;  %v11683_v50 = vpop.f32.mrb[111].mxu0  ;;  %v11724_v62 = vpop.f32.mrb[139].mxu1 }
 0xd4e   :  { %v13462_v8 = vmul.f32 -1.442695, %v11731_v56  ;;  %14048 = vtanh.f32 %v11733_v33 }
 0xd4f   :  { %14050 = vpow2.f32 %v13461_v25 }
 0xd50   :  { %14052 = vpow2.f32 %v13462_v8 }
 0xd57   :  { %v14047_v39 = vpop.eup %14046 }
 0xd58   :  { %v14049_v44 = vpop.eup %14048  ;;  %v11774_v6 = vmul.f32 %v14047_v39, %v14039_v32 }
 0xd59   :  { %v14051_v47 = vpop.eup %14050  ;;  %v11775_v24 = vmul.f32 %v14049_v44, %v14043_v12 }
 0xd5a   :  { %v14053_v29 = vpop.eup %14052  ;;  %v11756_v49 = vadd.f32 1.0, %v14051_v47  ;;  %v11776_v61 = vadd.f32 %v11774_v6, %v11772_v60 }
 0xd5b   :  { %v11757_v35 = vadd.f32 1.0, %v14053_v29  ;;  %v11777_v45 = vadd.f32 %v11775_v24, %v11773_v22 }
 0xd5c   :  { %14054 = vrcp.f32 %v11756_v49 }
 0xd5d   :  { %14056 = vtanh.f32 %v11776_v61 }
 0xd5e   :  { %14058 = vrcp.f32 %v11757_v35 }
 0xd5f   :  { %14060 = vtanh.f32 %v11777_v45 }
 0xd66   :  { %v14055_v13 = vpop.eup %14054 }
 0xd67   :  { %v14057_v11 = vpop.eup %14056 }
 0xd68   :  { %v14059_v28 = vpop.eup %14058  ;;  %v11780_v18 = vmul.f32 %v14057_v11, %v14055_v13 }
 0xd69   :  { %v14061_v34 = vpop.eup %14060 }
 0xd6a   :  { %v13501_v57 = vpop.f32.mrb[112].mxu0  ;;  %v11781_v20 = vmul.f32 %v14061_v34, %v14059_v28  ;;  %v11811_v41 = vpack.c.bf16 %v11780_v18, %v19460_v38 }
 0xd6b   :  { %v13502_v23 = vpop.f32.mrb[113].mxu0 }
 0xd6c   :  { %v13503_v21 = vadd.f32 %v13502_v23, %v13501_v57  ;;  %v13504_v46 = vpop.f32.mrb[114].mxu0  ;;  %v11812_v36 = vpack.c.bf16 %v11781_v20, %v19462_v26 }
 0xd6d   :  { %v13505_v27 = vpop.f32.mrb[115].mxu0 }
 0xd6e   :  { %v11983_v1 = vadd.f32 %v13503_v21, %v13463_v0  ;;  %12004 = vmatprep.mubr.bf16.mxu0 %v11812_v36  ;;  %v13506_v40 = vadd.f32 %v13505_v27, %v13504_v46 }
 0xd6f   :  { %12005 = vmatmul.mubr.bf16.gmra.mrb[124].mxu0 %v11811_v41 }
 0xd70   :  { %12013 = vst [vmem:[%s19773_s14] sm:$0xff] %v11983_v1  ;;  %v11986_v59 = vadd.f32 %v13506_v40, %v13463_v0 }
 0xd72   :  { %12014 = vst [vmem:[%s19773_s14 + $0x8] sm:$0xff] %v11986_v59  ;;  %v13507_v63 = vpop.f32.mrb[116].mxu0 }
 0xd73   :  { %v13508_v14 = vpop.f32.mrb[117].mxu0 }
 0xd74   :  { %v13509_v10 = vadd.f32 %v13508_v14, %v13507_v63  ;;  %v13510_v26 = vpop.f32.mrb[118].mxu0 }
 0xd75   :  { %v13511_v4 = vpop.f32.mrb[119].mxu0 }
 0xd76   :  { %v11991_v19 = vadd.f32 %v13509_v10, %v13463_v0  ;;  %v13512_v38 = vadd.f32 %v13511_v4, %v13510_v26 }
 0xd78   :  { %12015 = vst [vmem:[%s19773_s14 + $0x10] sm:$0xff] %v11991_v19  ;;  %v11994_v58 = vadd.f32 %v13512_v38, %v13463_v0 }
 0xd7a   :  { %12016 = vst [vmem:[%s19773_s14 + $0x18] sm:$0xff] %v11994_v58  ;;  %v13513_v53 = vpop.f32.mrb[120].mxu0 }
 0xd7b   :  { %v13514_v9 = vpop.f32.mrb[121].mxu0 }
 0xd7c   :  { %v13515_v17 = vadd.f32 %v13514_v9, %v13513_v53  ;;  %v13516_v31 = vpop.f32.mrb[122].mxu0 }
 0xd7d   :  { %v13517_v55 = vpop.f32.mrb[123].mxu0 }
 0xd7e   :  { %v11999_v42 = vadd.f32 %v13515_v17, %v13463_v0  ;;  %v13518_v3 = vadd.f32 %v13517_v55, %v13516_v31 }
 0xd80   :  { %12017 = vst [vmem:[%s19773_s14 + $0x20] sm:$0xff] %v11999_v42  ;;  %v12002_v52 = vadd.f32 %v13518_v3, %v13463_v0 }
 0xd82   :  { %12018 = vst [vmem:[%s19773_s14 + $0x28] sm:$0xff] %v12002_v52 }
 0xe42   :  { %v13519_v16 = vpop.f32.mrb[124].mxu0 }
 0xe43   :  { %v13520_v54 = vpop.f32.mrb[125].mxu0 }
 0xe44   :  { %v13521_v30 = vadd.f32 %v13520_v54, %v13519_v16  ;;  %v13522_v2 = vpop.f32.mrb[126].mxu0 }
 0xe45   :  { %v13523_v5 = vpop.f32.mrb[127].mxu0 }
 0xe46   :  { %v12007_v7 = vadd.f32 %v13521_v30, %v13463_v0  ;;  %v13524_v56 = vadd.f32 %v13523_v5, %v13522_v2 }
 0xe48   :  { %12019 = vst [vmem:[%s19773_s14 + $0x30] sm:$0xff] %v12007_v7  ;;  %v12010_v51 = vadd.f32 %v13524_v56, %v13463_v0 }
 0xe4a   :  { %12020 = vst [vmem:[%s19773_s14 + $0x38] sm:$0xff] %v12010_v51 }

</bundles_post_ra>
